<compile_context>
chip_gen: v7x
topology: tpu7x:2x2x1
jax: 0.10.0
libtpu: 0.0.40
codegen_flags: <defaults>
</compile_context>

<pallas_src>
import functools

import jax
import jax.numpy as jnp
from jax.experimental import pallas as pl
from jax.experimental.pallas import tpu as pltpu

LANE = 128
# Explicit scoped-VMEM budget: per-call footprint here is ~5 MiB, so a 32 MiB
# cap is safe on v5e/v6e (128 MiB physical) and v7x (64 MiB physical).
VMEM_LIMIT_BYTES = 32 * 1024 * 1024


def _round_up(x, m):
    return (x + m - 1) // m * m


def _out_tile(c_pad):
    # Wider (256) lane-dense output tiles fill the v6e/v7x MXU output width when
    # channel counts allow; at the toy size this stays 128 (also preferred on v5e).
    return 256 if c_pad % 256 == 0 else LANE


# ----------------------------------------------------------------------------
# Kernel 1: backbone stand-in, 3x3 conv + folded BN + ReLU as ONE K=9*Cin matmul
# ----------------------------------------------------------------------------
def _conv_bn_relu_kernel(xcol_ref, w_ref, s_ref, b_ref, o_ref):
    """xcol_ref: (1, HW, 9*Cin) bf16 (taps packed along K in the wrapper)
       w_ref   : (9*Cin, TN) bf16     s_ref/b_ref: (1, TN) f32
       o_ref   : (1, HW, TN) bf16."""
    acc = jnp.dot(xcol_ref[0], w_ref[...], preferred_element_type=jnp.float32)
    y = jnp.maximum(acc * s_ref[...] + b_ref[...], 0.0)
    o_ref[...] = y.reshape(o_ref.shape).astype(o_ref.dtype)


def conv3x3_bn_relu(x, w_col, scale, bias, out_dtype=jnp.bfloat16):
    """x: (N, H, W, Cin) bf16.  w_col: (9*Cin, Cout_pad) bf16.  -> (N, H, W, Cout_pad)."""
    N, H, W, Cin = x.shape
    HW = H * W
    cout_pad = w_col.shape[-1]
    TN = _out_tile(cout_pad)
    # Host-side tap packing ("wrapper input layout"): for this tiny stand-in
    # backbone (Cin=4) the packed slab is ~9x a tiny input and turns nine K=4
    # matmuls into a single K=36 matmul with lane-dense weight/output tiles.
    # TODO(synk): real backbones pad Cin to a multiple of 128 and add a K grid axis.
    xp = jnp.pad(x, ((0, 0), (1, 1), (1, 1), (0, 0)))
    taps = [xp[:, ky:ky + H, kx:kx + W, :] for ky in range(3) for kx in range(3)]
    xcol = jnp.concatenate(taps, axis=-1).reshape(N, HW, 9 * Cin)

    out = pl.pallas_call(
        _conv_bn_relu_kernel,
        out_shape=jax.ShapeDtypeStruct((N, HW, cout_pad), out_dtype),
        grid=(N, cout_pad // TN),
        in_specs=[
            pl.BlockSpec((1, HW, 9 * Cin), lambda n, j: (n, 0, 0)),
            pl.BlockSpec((9 * Cin, TN), lambda n, j: (0, j)),
            pl.BlockSpec((1, TN), lambda n, j: (0, j)),
            pl.BlockSpec((1, TN), lambda n, j: (0, j)),
        ],
        out_specs=pl.BlockSpec((1, HW, TN), lambda n, j: (n, 0, j)),
        compiler_params=pltpu.CompilerParams(
            dimension_semantics=("parallel", "parallel"),
            vmem_limit_bytes=VMEM_LIMIT_BYTES),
    )(xcol, w_col, scale, bias)
    return out.reshape(N, H, W, cout_pad)     # metadata-only reshape


# ----------------------------------------------------------------------------
# Kernel 2: fully fused ASPP head (per image, per output-channel tile)
# ----------------------------------------------------------------------------
def _aspp_fused_kernel(x_ref, w1_ref, wd_ref, wg_ref, wcm_ref, wcg_ref,
                       sbr_ref, bbr_ref, sc_ref, bc_ref,
                       o_ref, xpad_ref, col_ref, slab_ref, *, H, W, PADL, rates):
    """Whole ASPP head for one image from one unpadded VMEM tile.
       x_ref  : (1, H, W, C) bf16 backbone features (unpadded)
       w1_ref : (C, A) 1x1 branch     wd_ref: (3, 9*C, A) dilated branches (K-packed)
       wg_ref : (C, A) global 1x1     wcm_ref: (4*A, TN) conv_cat (spatial branches)
       wcg_ref: (A, TN) conv_cat (global branch)
       sbr/bbr: (5, 1, A) folded-BN scale/bias of branches 1..5
       sc/bc  : (1, TN) folded-BN scale/bias of conv_cat
       o_ref  : (1, HW, TN) bf16
       xpad_ref: (H+2P, W+2P, C) bf16   col_ref: (H, W, 9*C) bf16
       slab_ref: (HW, 4*A) bf16 concat of the 4 spatial branch activations."""
    C = x_ref.shape[-1]
    A = w1_ref.shape[-1]
    HW = H * W
    f32, bf16 = jnp.float32, jnp.bfloat16

    # zero-padded halo tile built in VMEM (replaces the old jnp.pad HBM round
    # trip); PADL is 8-aligned so the interior store is sublane-aligned.
    xpad_ref[...] = jnp.zeros_like(xpad_ref)
    xpad_ref[PADL:PADL + H, PADL:PADL + W, :] = x_ref[0]

    center = x_ref[0].reshape(HW, C)          # lane-dense, aligned (no halo slicing)

    # branch1 (1x1 conv + BN + ReLU) -> bf16 column block of the concat slab
    b1 = jnp.dot(center, w1_ref[...], preferred_element_type=f32)
    b1 = jnp.maximum(b1 * sbr_ref[0] + bbr_ref[0], 0.0)
    slab_ref[:, 0:A] = b1.astype(bf16)

    # branches 2-4: in-VMEM im2col (9 shifted slabs packed along K, copied once
    # into an aligned scratch) then ONE K=9*C matmul per branch.
    for bi, d in enumerate(rates):
        for t in range(9):
            ky, kx = divmod(t, 3)
            y0 = PADL + (ky - 1) * d
            x0 = PADL + (kx - 1) * d
            col_ref[:, :, t * C:(t + 1) * C] = xpad_ref[y0:y0 + H, x0:x0 + W, :]
        br = jnp.dot(col_ref[...].reshape(HW, 9 * C), wd_ref[bi],
                     preferred_element_type=f32)
        br = jnp.maximum(br * sbr_ref[1 + bi] + bbr_ref[1 + bi], 0.0)
        slab_ref[:, (1 + bi) * A:(2 + bi) * A] = br.astype(bf16)

    # branch5 (global): mean pool on the MXU (ones @ center), 1x1, BN, ReLU.
    # Spatially constant, so its conv_cat contribution is a per-image bias row.
    ones = jnp.full((8, HW), 1.0, bf16)
    pooled8 = jnp.dot(ones, center, preferred_element_type=f32) * (1.0 / HW)  # (8, C)
    g = jnp.dot(pooled8.astype(bf16), wg_ref[...], preferred_element_type=f32)
    g = jnp.maximum(g * sbr_ref[4] + bbr_ref[4], 0.0)
    gterm = jnp.dot(g.astype(bf16), wcg_ref[...], preferred_element_type=f32)[0:1]

    # conv_cat: one long-K (K = 4*A) matmul over the bf16 concat slab, global
    # bias folded in, BN + ReLU epilogue, bf16 writeback.
    cat = jnp.dot(slab_ref[...], wcm_ref[...], preferred_element_type=f32)
    out = jnp.maximum((cat + gterm) * sc_ref[...] + bc_ref[...], 0.0)
    o_ref[...] = out.reshape(o_ref.shape).astype(o_ref.dtype)


def aspp_forward(feat, p, *, rates=(6, 12, 18)):
    """feat: (N, H, W, C) bf16 backbone features (C lane-padded). -> (N, HW, A_pad) bf16."""
    N, H, W, C = feat.shape
    HW = H * W
    A = p["w1"].shape[-1]
    TN = _out_tile(A)
    PADL = _round_up(max(rates), 8)           # 8-aligned halo (>= max dilation)
    # Second grid axis tiles the conv_cat output channels so v7x megacore has
    # >=2 parallel steps even for N==1 once A >= 256.  Branch activations are
    # recomputed per output tile (J is small); TODO(synk): split branches /
    # conv_cat into two calls for very large A.
    return pl.pallas_call(
        functools.partial(_aspp_fused_kernel, H=H, W=W, PADL=PADL, rates=tuple(rates)),
        out_shape=jax.ShapeDtypeStruct((N, HW, A), jnp.bfloat16),
        grid=(N, A // TN),
        in_specs=[
            pl.BlockSpec((1, H, W, C), lambda n, j: (n, 0, 0, 0)),
            pl.BlockSpec((C, A), lambda n, j: (0, 0)),
            pl.BlockSpec((3, 9 * C, A), lambda n, j: (0, 0, 0)),
            pl.BlockSpec((C, A), lambda n, j: (0, 0)),
            pl.BlockSpec((4 * A, TN), lambda n, j: (0, j)),
            pl.BlockSpec((A, TN), lambda n, j: (0, j)),
            pl.BlockSpec((5, 1, A), lambda n, j: (0, 0, 0)),
            pl.BlockSpec((5, 1, A), lambda n, j: (0, 0, 0)),
            pl.BlockSpec((1, TN), lambda n, j: (0, j)),
            pl.BlockSpec((1, TN), lambda n, j: (0, j)),
        ],
        out_specs=pl.BlockSpec((1, HW, TN), lambda n, j: (n, 0, j)),
        scratch_shapes=[
            pltpu.VMEM((H + 2 * PADL, W + 2 * PADL, C), jnp.bfloat16),  # halo tile
            pltpu.VMEM((H, W, 9 * C), jnp.bfloat16),                    # im2col slab
            pltpu.VMEM((HW, 4 * A), jnp.bfloat16),                      # branch concat
        ],
        compiler_params=pltpu.CompilerParams(
            dimension_semantics=("parallel", "parallel"),
            vmem_limit_bytes=VMEM_LIMIT_BYTES),
    )(feat, p["w1"], p["w_dil"], p["w_glob"], p["w_cat_main"], p["w_cat_glob"],
      p["s_br"], p["b_br"], p["s_cat"], p["b_cat"])


# ----------------------------------------------------------------------------
# Parameter construction (kaiming conv, identity-stat BN folded, lane padding)
# ----------------------------------------------------------------------------
def _fold_bn(conv_bias, c_out, eps=1e-5):
    gamma = jnp.ones((c_out,), jnp.float32)
    beta = jnp.zeros((c_out,), jnp.float32)
    r_mean = jnp.zeros((c_out,), jnp.float32)
    r_var = jnp.ones((c_out,), jnp.float32)
    scale = gamma / jnp.sqrt(r_var + eps)
    bias = (conv_bias - r_mean) * scale + beta
    return scale, bias


def _make_conv_bn(key, c_in, c_out, ksize, c_in_pad, c_out_pad):
    """Conv(k) + BN folded to (w, scale, bias); channels zero-padded for lanes.
       Padded output lanes get weight=0 / scale=1 / bias=0 so they stay exactly 0."""
    kw, kb = jax.random.split(key)
    fan_out = c_out * ksize * ksize
    std = (2.0 / fan_out) ** 0.5
    w = jax.random.normal(kw, (ksize * ksize, c_in, c_out), jnp.float32) * std
    conv_b = jax.random.normal(kb, (c_out,), jnp.float32) * 0.01
    scale, bias = _fold_bn(conv_b, c_out)
    w = jnp.pad(w, ((0, 0), (0, c_in_pad - c_in), (0, c_out_pad - c_out)))
    scale = jnp.pad(scale, (0, c_out_pad - c_out), constant_values=1.0)
    bias = jnp.pad(bias, (0, c_out_pad - c_out))
    return w.astype(jnp.bfloat16), scale, bias


def build_params(c_in, backbone_dim, aspp_dim):
    cb_pad = _round_up(backbone_dim, LANE)
    a_pad = _round_up(aspp_dim, LANE)
    keys = jax.random.split(jax.random.PRNGKey(0), 7)

    # backbone stand-in: one 3x3 conv + BN + ReLU producing OUTPUT_DIM channels;
    # taps packed along K -> weight stored as (9*Cin, cb_pad).
    wb, sb, bb = _make_conv_bn(keys[0], c_in, backbone_dim, 3, c_in, cb_pad)
    backbone = {"w": wb.reshape(9 * c_in, cb_pad),
                "scale": sb.reshape(1, -1), "bias": bb.reshape(1, -1)}

    # ASPP branches: 1x1, three dilated 3x3 (K-packed), global 1x1
    w1, s1, b1 = _make_conv_bn(keys[1], backbone_dim, aspp_dim, 1, cb_pad, a_pad)
    wds, scales, biases = [], [s1], [b1]
    for k in keys[2:5]:
        w, s, b = _make_conv_bn(k, backbone_dim, aspp_dim, 3, cb_pad, a_pad)
        wds.append(w.reshape(9 * cb_pad, a_pad))
        scales.append(s); biases.append(b)
    wg, sg, bg = _make_conv_bn(keys[5], backbone_dim, aspp_dim, 1, cb_pad, a_pad)
    scales.append(sg); biases.append(bg)

    # conv_cat: 1x1 over concat(b1, b_r6, b_r12, b_r18, global).  K is split so the
    # 4 spatial branches form one (4*A, A) matmul and the global branch a separate
    # (A, A) matmul folded in as a per-image bias; the 5x-wide concat never leaves VMEM.
    kw, kb2 = jax.random.split(keys[6])
    std = (2.0 / aspp_dim) ** 0.5
    wcat = jax.random.normal(kw, (5, aspp_dim, aspp_dim), jnp.float32) * std
    cat_b = jax.random.normal(kb2, (aspp_dim,), jnp.float32) * 0.01
    s_cat, b_cat = _fold_bn(cat_b, aspp_dim)
    wcat = jnp.pad(wcat, ((0, 0), (0, a_pad - aspp_dim), (0, a_pad - aspp_dim)))
    s_cat = jnp.pad(s_cat, (0, a_pad - aspp_dim), constant_values=1.0)
    b_cat = jnp.pad(b_cat, (0, a_pad - aspp_dim))

    aspp = {
        "w1": w1[0],                                           # (cb_pad, a_pad) bf16
        "w_dil": jnp.stack(wds, axis=0),                       # (3, 9*cb_pad, a_pad) bf16
        "w_glob": wg[0],                                       # (cb_pad, a_pad) bf16
        "w_cat_main": wcat[:4].reshape(4 * a_pad, a_pad).astype(jnp.bfloat16),
        "w_cat_glob": wcat[4].astype(jnp.bfloat16),            # (a_pad, a_pad) bf16
        "s_br": jnp.stack(scales)[:, None, :],                 # (5, 1, a_pad) f32
        "b_br": jnp.stack(biases)[:, None, :],                 # (5, 1, a_pad) f32
        "s_cat": s_cat.reshape(1, -1),                         # (1, a_pad) f32
        "b_cat": b_cat.reshape(1, -1),                         # (1, a_pad) f32
    }
    return {"backbone": backbone, "aspp": aspp, "aspp_dim": aspp_dim}


# ----------------------------------------------------------------------------
# Forward: backbone -> fused ASPP (rates [0, 6, 12, 18], has_global=True)
# ----------------------------------------------------------------------------
def deeplabv3_forward(x_nchw, params):
    N, _, H, W = x_nchw.shape
    x = jnp.transpose(x_nchw, (0, 2, 3, 1)).astype(jnp.bfloat16)        # NHWC, bf16
    bp = params["backbone"]
    feat = conv3x3_bn_relu(x, bp["w"], bp["scale"], bp["bias"])         # (N,H,W,128) bf16
    out = aspp_forward(feat, params["aspp"], rates=(6, 12, 18))         # (N,HW,128) bf16
    ad = params["aspp_dim"]
    out = out[..., :ad].reshape(N, H, W, ad).astype(jnp.float32)        # drop lane pad, upcast
    return jnp.transpose(out, (0, 3, 1, 2))                             # back to NCHW


if __name__ == "__main__":
    # small shapes: batch=2, input channels=4, spatial=16x16
    N, C_IN, H, W = 2, 4, 16, 16
    BACKBONE_DIM = 8      # backbone.OUTPUT_DIM
    ASPP_DIM = 8          # cfg.MODEL_ASPP_OUTDIM

    key = jax.random.PRNGKey(0)
    x = jax.random.normal(key, (N, C_IN, H, W), jnp.float32)

    params = build_params(C_IN, BACKBONE_DIM, ASPP_DIM)

    fwd = jax.jit(functools.partial(deeplabv3_forward, params=params))
    out = jax.block_until_ready(fwd(x))

    assert out.shape == (N, ASPP_DIM, H, W), out.shape
    assert out.dtype == jnp.float32
    print("KERNEL_OK")
</pallas_src>

<mosaic_0001>
module attributes {stable_mosaic.version = 11 : i64} {
  func.func @_conv_bn_relu_kernel(%arg0: i32, %arg1: i32, %arg2: memref<1x256x36xbf16, #tpu.memory_space<vmem>>, %arg3: memref<36x128xbf16, #tpu.memory_space<vmem>>, %arg4: memref<1x128xf32, #tpu.memory_space<vmem>>, %arg5: memref<1x128xf32, #tpu.memory_space<vmem>>, %arg6: memref<1x256x128xbf16, #tpu.memory_space<vmem>>) attributes {dimension_semantics = [#tpu.dimension_semantics<parallel>, #tpu.dimension_semantics<parallel>], iteration_bounds = array<i64: 2, 1>, scalar_prefetch = 0 : i64, scratch_operands = 0 : i64, tpu.core_type = #tpu.core_type<tc>, window_params = [{transform_indices = @transform_0, window_bounds = array<i64: 1, 256, 36>}, {transform_indices = @transform_1, window_bounds = array<i64: 36, 128>}, {transform_indices = @transform_2, window_bounds = array<i64: 1, 128>}, {transform_indices = @transform_3, window_bounds = array<i64: 1, 128>}, {transform_indices = @transform_4, window_bounds = array<i64: 1, 256, 128>}]} {
    %c0 = arith.constant 0 : index
    %c0_0 = arith.constant 0 : index
    %c0_1 = arith.constant 0 : index
    %0 = vector.load %arg2[%c0, %c0_0, %c0_1] : memref<1x256x36xbf16, #tpu.memory_space<vmem>>, vector<1x256x36xbf16>
    %1 = vector.shape_cast %0 : vector<1x256x36xbf16> to vector<256x36xbf16>
    %c0_2 = arith.constant 0 : index
    %c0_3 = arith.constant 0 : index
    %2 = vector.load %arg3[%c0_2, %c0_3] : memref<36x128xbf16, #tpu.memory_space<vmem>>, vector<36x128xbf16>
    %cst = arith.constant dense<0.000000e+00> : vector<256x128xf32>
    %3 = tpu.matmul %1, %2, %cst {dimension_numbers = #tpu.dot_dimension_numbers<[1], [0], [0], [1], [0, 0, 1, 1], [], []>} : vector<256x36xbf16>, vector<36x128xbf16>, vector<256x128xf32> -> vector<256x128xf32>
    %c0_4 = arith.constant 0 : index
    %c0_5 = arith.constant 0 : index
    %4 = vector.load %arg4[%c0_4, %c0_5] : memref<1x128xf32, #tpu.memory_space<vmem>>, vector<1x128xf32>
    %5 = vector.broadcast %4 : vector<1x128xf32> to vector<256x128xf32>
    %6 = arith.mulf %3, %5 : vector<256x128xf32>
    %c0_6 = arith.constant 0 : index
    %c0_7 = arith.constant 0 : index
    %7 = vector.load %arg5[%c0_6, %c0_7] : memref<1x128xf32, #tpu.memory_space<vmem>>, vector<1x128xf32>
    %8 = vector.broadcast %7 : vector<1x128xf32> to vector<256x128xf32>
    %9 = arith.addf %6, %8 : vector<256x128xf32>
    %cst_8 = arith.constant 0.000000e+00 : f32
    %10 = vector.broadcast %cst_8 : f32 to vector<256x128xf32>
    %11 = arith.maximumf %9, %10 : vector<256x128xf32>
    %12 = vector.shape_cast %11 : vector<256x128xf32> to vector<1x256x128xf32>
    %13 = arith.truncf %12 : vector<1x256x128xf32> to vector<1x256x128xbf16>
    %c0_9 = arith.constant 0 : index
    %c0_10 = arith.constant 0 : index
    %c0_11 = arith.constant 0 : index
    %14 = vector.load %arg6[%c0_9, %c0_10, %c0_11] : memref<1x256x128xbf16, #tpu.memory_space<vmem>>, vector<1x256x128xbf16>
    tpu.vector_store %arg6[%c0_9, %c0_10, %c0_11], %13 {strides = array<i32>} : memref<1x256x128xbf16, #tpu.memory_space<vmem>>, vector<1x256x128xbf16>,
    return
  }
  func.func @transform_0(%arg0: i32, %arg1: i32) -> (i32, i32, i32) {
    %c0_i32 = arith.constant 0 : i32
    %c0_i32_0 = arith.constant 0 : i32
    %c0_i32_1 = arith.constant 0 : i32
    return %arg0, %c0_i32, %c0_i32_0 : i32, i32, i32
  }
  func.func @transform_1(%arg0: i32, %arg1: i32) -> (i32, i32) {
    %c0_i32 = arith.constant 0 : i32
    %c0_i32_0 = arith.constant 0 : i32
    return %c0_i32, %arg1 : i32, i32
  }
  func.func @transform_2(%arg0: i32, %arg1: i32) -> (i32, i32) {
    %c0_i32 = arith.constant 0 : i32
    %c0_i32_0 = arith.constant 0 : i32
    return %c0_i32, %arg1 : i32, i32
  }
  func.func @transform_3(%arg0: i32, %arg1: i32) -> (i32, i32) {
    %c0_i32 = arith.constant 0 : i32
    %c0_i32_0 = arith.constant 0 : i32
    return %c0_i32, %arg1 : i32, i32
  }
  func.func @transform_4(%arg0: i32, %arg1: i32) -> (i32, i32, i32) {
    %c0_i32 = arith.constant 0 : i32
    %c0_i32_0 = arith.constant 0 : i32
    return %arg0, %c0_i32, %arg1 : i32, i32, i32
  }
}

module attributes {stable_mosaic.version = 11 : i64} {
  func.func @_aspp_fused_kernel(%arg0: i32, %arg1: i32, %arg2: memref<1x16x16x128xbf16, #tpu.memory_space<vmem>>, %arg3: memref<128x128xbf16, #tpu.memory_space<vmem>>, %arg4: memref<3x1152x128xbf16, #tpu.memory_space<vmem>>, %arg5: memref<128x128xbf16, #tpu.memory_space<vmem>>, %arg6: memref<512x128xbf16, #tpu.memory_space<vmem>>, %arg7: memref<128x128xbf16, #tpu.memory_space<vmem>>, %arg8: memref<5x1x128xf32, #tpu.memory_space<vmem>>, %arg9: memref<5x1x128xf32, #tpu.memory_space<vmem>>, %arg10: memref<1x128xf32, #tpu.memory_space<vmem>>, %arg11: memref<1x128xf32, #tpu.memory_space<vmem>>, %arg12: memref<1x256x128xbf16, #tpu.memory_space<vmem>>, %arg13: memref<64x64x128xbf16, #tpu.memory_space<vmem>>, %arg14: memref<16x16x1152xbf16, #tpu.memory_space<vmem>>, %arg15: memref<256x512xbf16, #tpu.memory_space<vmem>>) attributes {dimension_semantics = [#tpu.dimension_semantics<parallel>, #tpu.dimension_semantics<parallel>], iteration_bounds = array<i64: 2, 1>, scalar_prefetch = 0 : i64, scratch_operands = 3 : i64, tpu.core_type = #tpu.core_type<tc>, window_params = [{transform_indices = @transform_0, window_bounds = array<i64: 1, 16, 16, 128>}, {pipeline_mode = #tpu.pipeline_mode<synchronous>, transform_indices = @transform_1, window_bounds = array<i64: 128, 128>}, {pipeline_mode = #tpu.pipeline_mode<synchronous>, transform_indices = @transform_2, window_bounds = array<i64: 3, 1152, 128>}, {pipeline_mode = #tpu.pipeline_mode<synchronous>, transform_indices = @transform_3, window_bounds = array<i64: 128, 128>}, {transform_indices = @transform_4, window_bounds = array<i64: 512, 128>}, {transform_indices = @transform_5, window_bounds = array<i64: 128, 128>}, {pipeline_mode = #tpu.pipeline_mode<synchronous>, transform_indices = @transform_6, window_bounds = array<i64: 5, 1, 128>}, {pipeline_mode = #tpu.pipeline_mode<synchronous>, transform_indices = @transform_7, window_bounds = array<i64: 5, 1, 128>}, {transform_indices = @transform_8, window_bounds = array<i64: 1, 128>}, {transform_indices = @transform_9, window_bounds = array<i64: 1, 128>}, {transform_indices = @transform_10, window_bounds = array<i64: 1, 256, 128>}]} {
    %cst = arith.constant 0.000000e+00 : bf16
    %0 = vector.broadcast %cst : bf16 to vector<64x64x128xbf16>
    %c0 = arith.constant 0 : index
    %c0_0 = arith.constant 0 : index
    %c0_1 = arith.constant 0 : index
    %1 = vector.load %arg13[%c0, %c0_0, %c0_1] : memref<64x64x128xbf16, #tpu.memory_space<vmem>>, vector<64x64x128xbf16>
    tpu.vector_store %arg13[%c0, %c0_0, %c0_1], %0 {strides = array<i32>} : memref<64x64x128xbf16, #tpu.memory_space<vmem>>, vector<64x64x128xbf16>,
    %c0_2 = arith.constant 0 : index
    %c0_3 = arith.constant 0 : index
    %c0_4 = arith.constant 0 : index
    %c0_5 = arith.constant 0 : index
    %2 = vector.load %arg2[%c0_2, %c0_3, %c0_4, %c0_5] : memref<1x16x16x128xbf16, #tpu.memory_space<vmem>>, vector<1x16x16x128xbf16>
    %3 = vector.shape_cast %2 : vector<1x16x16x128xbf16> to vector<16x16x128xbf16>
    %c24 = arith.constant 24 : index
    %c24_6 = arith.constant 24 : index
    %c0_7 = arith.constant 0 : index
    %4 = vector.load %arg13[%c24, %c24_6, %c0_7] : memref<64x64x128xbf16, #tpu.memory_space<vmem>>, vector<16x16x128xbf16>
    tpu.vector_store %arg13[%c24, %c24_6, %c0_7], %3 {strides = array<i32>} : memref<64x64x128xbf16, #tpu.memory_space<vmem>>, vector<16x16x128xbf16>,
    %c0_8 = arith.constant 0 : index
    %c0_9 = arith.constant 0 : index
    %c0_10 = arith.constant 0 : index
    %c0_11 = arith.constant 0 : index
    %5 = vector.load %arg2[%c0_8, %c0_9, %c0_10, %c0_11] : memref<1x16x16x128xbf16, #tpu.memory_space<vmem>>, vector<1x16x16x128xbf16>
    %6 = vector.shape_cast %5 : vector<1x16x16x128xbf16> to vector<16x16x128xbf16>
    %7 = vector.shape_cast %6 : vector<16x16x128xbf16> to vector<256x128xbf16>
    %c0_12 = arith.constant 0 : index
    %c0_13 = arith.constant 0 : index
    %8 = vector.load %arg3[%c0_12, %c0_13] : memref<128x128xbf16, #tpu.memory_space<vmem>>, vector<128x128xbf16>
    %cst_14 = arith.constant dense<0.000000e+00> : vector<256x128xf32>
    %9 = tpu.matmul %7, %8, %cst_14 {dimension_numbers = #tpu.dot_dimension_numbers<[1], [0], [0], [1], [0, 0, 1, 1], [], []>} : vector<256x128xbf16>, vector<128x128xbf16>, vector<256x128xf32> -> vector<256x128xf32>
    %c0_15 = arith.constant 0 : index
    %c0_16 = arith.constant 0 : index
    %c0_17 = arith.constant 0 : index
    %10 = vector.load %arg8[%c0_15, %c0_16, %c0_17] : memref<5x1x128xf32, #tpu.memory_space<vmem>>, vector<1x1x128xf32>
    %11 = vector.shape_cast %10 : vector<1x1x128xf32> to vector<1x128xf32>
    %12 = vector.broadcast %11 : vector<1x128xf32> to vector<256x128xf32>
    %13 = arith.mulf %9, %12 : vector<256x128xf32>
    %c0_18 = arith.constant 0 : index
    %c0_19 = arith.constant 0 : index
    %c0_20 = arith.constant 0 : index
    %14 = vector.load %arg9[%c0_18, %c0_19, %c0_20] : memref<5x1x128xf32, #tpu.memory_space<vmem>>, vector<1x1x128xf32>
    %15 = vector.shape_cast %14 : vector<1x1x128xf32> to vector<1x128xf32>
    %16 = vector.broadcast %15 : vector<1x128xf32> to vector<256x128xf32>
    %17 = arith.addf %13, %16 : vector<256x128xf32>
    %cst_21 = arith.constant 0.000000e+00 : f32
    %18 = vector.broadcast %cst_21 : f32 to vector<256x128xf32>
    %19 = arith.maximumf %17, %18 : vector<256x128xf32>
    %20 = arith.truncf %19 : vector<256x128xf32> to vector<256x128xbf16>
    %c0_22 = arith.constant 0 : index
    %c0_23 = arith.constant 0 : index
    %21 = vector.load %arg15[%c0_22, %c0_23] : memref<256x512xbf16, #tpu.memory_space<vmem>>, vector<256x128xbf16>
    tpu.vector_store %arg15[%c0_22, %c0_23], %20 {strides = array<i32>} : memref<256x512xbf16, #tpu.memory_space<vmem>>, vector<256x128xbf16>,
    %c18 = arith.constant 18 : index
    %c18_24 = arith.constant 18 : index
    %c0_25 = arith.constant 0 : index
    %22 = vector.load %arg13[%c18, %c18_24, %c0_25] : memref<64x64x128xbf16, #tpu.memory_space<vmem>>, vector<16x16x128xbf16>
    %c0_26 = arith.constant 0 : index
    %c0_27 = arith.constant 0 : index
    %c0_28 = arith.constant 0 : index
    %23 = vector.load %arg14[%c0_26, %c0_27, %c0_28] : memref<16x16x1152xbf16, #tpu.memory_space<vmem>>, vector<16x16x128xbf16>
    tpu.vector_store %arg14[%c0_26, %c0_27, %c0_28], %22 {strides = array<i32>} : memref<16x16x1152xbf16, #tpu.memory_space<vmem>>, vector<16x16x128xbf16>,
    %c18_29 = arith.constant 18 : index
    %c24_30 = arith.constant 24 : index
    %c0_31 = arith.constant 0 : index
    %24 = vector.load %arg13[%c18_29, %c24_30, %c0_31] : memref<64x64x128xbf16, #tpu.memory_space<vmem>>, vector<16x16x128xbf16>
    %c0_32 = arith.constant 0 : index
    %c0_33 = arith.constant 0 : index
    %c128 = arith.constant 128 : index
    %25 = vector.load %arg14[%c0_32, %c0_33, %c128] : memref<16x16x1152xbf16, #tpu.memory_space<vmem>>, vector<16x16x128xbf16>
    tpu.vector_store %arg14[%c0_32, %c0_33, %c128], %24 {strides = array<i32>} : memref<16x16x1152xbf16, #tpu.memory_space<vmem>>, vector<16x16x128xbf16>,
    %c18_34 = arith.constant 18 : index
    %c30 = arith.constant 30 : index
    %c0_35 = arith.constant 0 : index
    %26 = vector.load %arg13[%c18_34, %c30, %c0_35] : memref<64x64x128xbf16, #tpu.memory_space<vmem>>, vector<16x16x128xbf16>
    %c0_36 = arith.constant 0 : index
    %c0_37 = arith.constant 0 : index
    %c256 = arith.constant 256 : index
    %27 = vector.load %arg14[%c0_36, %c0_37, %c256] : memref<16x16x1152xbf16, #tpu.memory_space<vmem>>, vector<16x16x128xbf16>
    tpu.vector_store %arg14[%c0_36, %c0_37, %c256], %26 {strides = array<i32>} : memref<16x16x1152xbf16, #tpu.memory_space<vmem>>, vector<16x16x128xbf16>,
    %c24_38 = arith.constant 24 : index
    %c18_39 = arith.constant 18 : index
    %c0_40 = arith.constant 0 : index
    %28 = vector.load %arg13[%c24_38, %c18_39, %c0_40] : memref<64x64x128xbf16, #tpu.memory_space<vmem>>, vector<16x16x128xbf16>
    %c0_41 = arith.constant 0 : index
    %c0_42 = arith.constant 0 : index
    %c384 = arith.constant 384 : index
    %29 = vector.load %arg14[%c0_41, %c0_42, %c384] : memref<16x16x1152xbf16, #tpu.memory_space<vmem>>, vector<16x16x128xbf16>
    tpu.vector_store %arg14[%c0_41, %c0_42, %c384], %28 {strides = array<i32>} : memref<16x16x1152xbf16, #tpu.memory_space<vmem>>, vector<16x16x128xbf16>,
    %c24_43 = arith.constant 24 : index
    %c24_44 = arith.constant 24 : index
    %c0_45 = arith.constant 0 : index
    %30 = vector.load %arg13[%c24_43, %c24_44, %c0_45] : memref<64x64x128xbf16, #tpu.memory_space<vmem>>, vector<16x16x128xbf16>
    %c0_46 = arith.constant 0 : index
    %c0_47 = arith.constant 0 : index
    %c512 = arith.constant 512 : index
    %31 = vector.load %arg14[%c0_46, %c0_47, %c512] : memref<16x16x1152xbf16, #tpu.memory_space<vmem>>, vector<16x16x128xbf16>
    tpu.vector_store %arg14[%c0_46, %c0_47, %c512], %30 {strides = array<i32>} : memref<16x16x1152xbf16, #tpu.memory_space<vmem>>, vector<16x16x128xbf16>,
    %c24_48 = arith.constant 24 : index
    %c30_49 = arith.constant 30 : index
    %c0_50 = arith.constant 0 : index
    %32 = vector.load %arg13[%c24_48, %c30_49, %c0_50] : memref<64x64x128xbf16, #tpu.memory_space<vmem>>, vector<16x16x128xbf16>
    %c0_51 = arith.constant 0 : index
    %c0_52 = arith.constant 0 : index
    %c640 = arith.constant 640 : index
    %33 = vector.load %arg14[%c0_51, %c0_52, %c640] : memref<16x16x1152xbf16, #tpu.memory_space<vmem>>, vector<16x16x128xbf16>
    tpu.vector_store %arg14[%c0_51, %c0_52, %c640], %32 {strides = array<i32>} : memref<16x16x1152xbf16, #tpu.memory_space<vmem>>, vector<16x16x128xbf16>,
    %c30_53 = arith.constant 30 : index
    %c18_54 = arith.constant 18 : index
    %c0_55 = arith.constant 0 : index
    %34 = vector.load %arg13[%c30_53, %c18_54, %c0_55] : memref<64x64x128xbf16, #tpu.memory_space<vmem>>, vector<16x16x128xbf16>
    %c0_56 = arith.constant 0 : index
    %c0_57 = arith.constant 0 : index
    %c768 = arith.constant 768 : index
    %35 = vector.load %arg14[%c0_56, %c0_57, %c768] : memref<16x16x1152xbf16, #tpu.memory_space<vmem>>, vector<16x16x128xbf16>
    tpu.vector_store %arg14[%c0_56, %c0_57, %c768], %34 {strides = array<i32>} : memref<16x16x1152xbf16, #tpu.memory_space<vmem>>, vector<16x16x128xbf16>,
    %c30_58 = arith.constant 30 : index
    %c24_59 = arith.constant 24 : index
    %c0_60 = arith.constant 0 : index
    %36 = vector.load %arg13[%c30_58, %c24_59, %c0_60] : memref<64x64x128xbf16, #tpu.memory_space<vmem>>, vector<16x16x128xbf16>
    %c0_61 = arith.constant 0 : index
    %c0_62 = arith.constant 0 : index
    %c896 = arith.constant 896 : index
    %37 = vector.load %arg14[%c0_61, %c0_62, %c896] : memref<16x16x1152xbf16, #tpu.memory_space<vmem>>, vector<16x16x128xbf16>
    tpu.vector_store %arg14[%c0_61, %c0_62, %c896], %36 {strides = array<i32>} : memref<16x16x1152xbf16, #tpu.memory_space<vmem>>, vector<16x16x128xbf16>,
    %c30_63 = arith.constant 30 : index
    %c30_64 = arith.constant 30 : index
    %c0_65 = arith.constant 0 : index
    %38 = vector.load %arg13[%c30_63, %c30_64, %c0_65] : memref<64x64x128xbf16, #tpu.memory_space<vmem>>, vector<16x16x128xbf16>
    %c0_66 = arith.constant 0 : index
    %c0_67 = arith.constant 0 : index
    %c1024 = arith.constant 1024 : index
    %39 = vector.load %arg14[%c0_66, %c0_67, %c1024] : memref<16x16x1152xbf16, #tpu.memory_space<vmem>>, vector<16x16x128xbf16>
    tpu.vector_store %arg14[%c0_66, %c0_67, %c1024], %38 {strides = array<i32>} : memref<16x16x1152xbf16, #tpu.memory_space<vmem>>, vector<16x16x128xbf16>,
    %c0_68 = arith.constant 0 : index
    %c0_69 = arith.constant 0 : index
    %c0_70 = arith.constant 0 : index
    %40 = vector.load %arg14[%c0_68, %c0_69, %c0_70] : memref<16x16x1152xbf16, #tpu.memory_space<vmem>>, vector<16x16x1152xbf16>
    %41 = vector.shape_cast %40 : vector<16x16x1152xbf16> to vector<256x1152xbf16>
    %c0_71 = arith.constant 0 : index
    %c0_72 = arith.constant 0 : index
    %c0_73 = arith.constant 0 : index
    %42 = vector.load %arg4[%c0_71, %c0_72, %c0_73] : memref<3x1152x128xbf16, #tpu.memory_space<vmem>>, vector<1x1152x128xbf16>
    %43 = vector.shape_cast %42 : vector<1x1152x128xbf16> to vector<1152x128xbf16>
    %cst_74 = arith.constant dense<0.000000e+00> : vector<256x128xf32>
    %44 = tpu.matmul %41, %43, %cst_74 {dimension_numbers = #tpu.dot_dimension_numbers<[1], [0], [0], [1], [0, 0, 1, 1], [], []>} : vector<256x1152xbf16>, vector<1152x128xbf16>, vector<256x128xf32> -> vector<256x128xf32>
    %c1 = arith.constant 1 : index
    %c0_75 = arith.constant 0 : index
    %c0_76 = arith.constant 0 : index
    %45 = vector.load %arg8[%c1, %c0_75, %c0_76] : memref<5x1x128xf32, #tpu.memory_space<vmem>>, vector<1x1x128xf32>
    %46 = vector.shape_cast %45 : vector<1x1x128xf32> to vector<1x128xf32>
    %47 = vector.broadcast %46 : vector<1x128xf32> to vector<256x128xf32>
    %48 = arith.mulf %44, %47 : vector<256x128xf32>
    %c1_77 = arith.constant 1 : index
    %c0_78 = arith.constant 0 : index
    %c0_79 = arith.constant 0 : index
    %49 = vector.load %arg9[%c1_77, %c0_78, %c0_79] : memref<5x1x128xf32, #tpu.memory_space<vmem>>, vector<1x1x128xf32>
    %50 = vector.shape_cast %49 : vector<1x1x128xf32> to vector<1x128xf32>
    %51 = vector.broadcast %50 : vector<1x128xf32> to vector<256x128xf32>
    %52 = arith.addf %48, %51 : vector<256x128xf32>
    %cst_80 = arith.constant 0.000000e+00 : f32
    %53 = vector.broadcast %cst_80 : f32 to vector<256x128xf32>
    %54 = arith.maximumf %52, %53 : vector<256x128xf32>
    %55 = arith.truncf %54 : vector<256x128xf32> to vector<256x128xbf16>
    %c0_81 = arith.constant 0 : index
    %c128_82 = arith.constant 128 : index
    %56 = vector.load %arg15[%c0_81, %c128_82] : memref<256x512xbf16, #tpu.memory_space<vmem>>, vector<256x128xbf16>
    tpu.vector_store %arg15[%c0_81, %c128_82], %55 {strides = array<i32>} : memref<256x512xbf16, #tpu.memory_space<vmem>>, vector<256x128xbf16>,
    %c12 = arith.constant 12 : index
    %c12_83 = arith.constant 12 : index
    %c0_84 = arith.constant 0 : index
    %57 = vector.load %arg13[%c12, %c12_83, %c0_84] : memref<64x64x128xbf16, #tpu.memory_space<vmem>>, vector<16x16x128xbf16>
    %c0_85 = arith.constant 0 : index
    %c0_86 = arith.constant 0 : index
    %c0_87 = arith.constant 0 : index
    %58 = vector.load %arg14[%c0_85, %c0_86, %c0_87] : memref<16x16x1152xbf16, #tpu.memory_space<vmem>>, vector<16x16x128xbf16>
    tpu.vector_store %arg14[%c0_85, %c0_86, %c0_87], %57 {strides = array<i32>} : memref<16x16x1152xbf16, #tpu.memory_space<vmem>>, vector<16x16x128xbf16>,
    %c12_88 = arith.constant 12 : index
    %c24_89 = arith.constant 24 : index
    %c0_90 = arith.constant 0 : index
    %59 = vector.load %arg13[%c12_88, %c24_89, %c0_90] : memref<64x64x128xbf16, #tpu.memory_space<vmem>>, vector<16x16x128xbf16>
    %c0_91 = arith.constant 0 : index
    %c0_92 = arith.constant 0 : index
    %c128_93 = arith.constant 128 : index
    %60 = vector.load %arg14[%c0_91, %c0_92, %c128_93] : memref<16x16x1152xbf16, #tpu.memory_space<vmem>>, vector<16x16x128xbf16>
    tpu.vector_store %arg14[%c0_91, %c0_92, %c128_93], %59 {strides = array<i32>} : memref<16x16x1152xbf16, #tpu.memory_space<vmem>>, vector<16x16x128xbf16>,
    %c12_94 = arith.constant 12 : index
    %c36 = arith.constant 36 : index
    %c0_95 = arith.constant 0 : index
    %61 = vector.load %arg13[%c12_94, %c36, %c0_95] : memref<64x64x128xbf16, #tpu.memory_space<vmem>>, vector<16x16x128xbf16>
    %c0_96 = arith.constant 0 : index
    %c0_97 = arith.constant 0 : index
    %c256_98 = arith.constant 256 : index
    %62 = vector.load %arg14[%c0_96, %c0_97, %c256_98] : memref<16x16x1152xbf16, #tpu.memory_space<vmem>>, vector<16x16x128xbf16>
    tpu.vector_store %arg14[%c0_96, %c0_97, %c256_98], %61 {strides = array<i32>} : memref<16x16x1152xbf16, #tpu.memory_space<vmem>>, vector<16x16x128xbf16>,
    %c24_99 = arith.constant 24 : index
    %c12_100 = arith.constant 12 : index
    %c0_101 = arith.constant 0 : index
    %63 = vector.load %arg13[%c24_99, %c12_100, %c0_101] : memref<64x64x128xbf16, #tpu.memory_space<vmem>>, vector<16x16x128xbf16>
    %c0_102 = arith.constant 0 : index
    %c0_103 = arith.constant 0 : index
    %c384_104 = arith.constant 384 : index
    %64 = vector.load %arg14[%c0_102, %c0_103, %c384_104] : memref<16x16x1152xbf16, #tpu.memory_space<vmem>>, vector<16x16x128xbf16>
    tpu.vector_store %arg14[%c0_102, %c0_103, %c384_104], %63 {strides = array<i32>} : memref<16x16x1152xbf16, #tpu.memory_space<vmem>>, vector<16x16x128xbf16>,
    %c24_105 = arith.constant 24 : index
    %c24_106 = arith.constant 24 : index
    %c0_107 = arith.constant 0 : index
    %65 = vector.load %arg13[%c24_105, %c24_106, %c0_107] : memref<64x64x128xbf16, #tpu.memory_space<vmem>>, vector<16x16x128xbf16>
    %c0_108 = arith.constant 0 : index
    %c0_109 = arith.constant 0 : index
    %c512_110 = arith.constant 512 : index
    %66 = vector.load %arg14[%c0_108, %c0_109, %c512_110] : memref<16x16x1152xbf16, #tpu.memory_space<vmem>>, vector<16x16x128xbf16>
    tpu.vector_store %arg14[%c0_108, %c0_109, %c512_110], %65 {strides = array<i32>} : memref<16x16x1152xbf16, #tpu.memory_space<vmem>>, vector<16x16x128xbf16>,
    %c24_111 = arith.constant 24 : index
    %c36_112 = arith.constant 36 : index
    %c0_113 = arith.constant 0 : index
    %67 = vector.load %arg13[%c24_111, %c36_112, %c0_113] : memref<64x64x128xbf16, #tpu.memory_space<vmem>>, vector<16x16x128xbf16>
    %c0_114 = arith.constant 0 : index
    %c0_115 = arith.constant 0 : index
    %c640_116 = arith.constant 640 : index
    %68 = vector.load %arg14[%c0_114, %c0_115, %c640_116] : memref<16x16x1152xbf16, #tpu.memory_space<vmem>>, vector<16x16x128xbf16>
    tpu.vector_store %arg14[%c0_114, %c0_115, %c640_116], %67 {strides = array<i32>} : memref<16x16x1152xbf16, #tpu.memory_space<vmem>>, vector<16x16x128xbf16>,
    %c36_117 = arith.constant 36 : index
    %c12_118 = arith.constant 12 : index
    %c0_119 = arith.constant 0 : index
    %69 = vector.load %arg13[%c36_117, %c12_118, %c0_119] : memref<64x64x128xbf16, #tpu.memory_space<vmem>>, vector<16x16x128xbf16>
    %c0_120 = arith.constant 0 : index
    %c0_121 = arith.constant 0 : index
    %c768_122 = arith.constant 768 : index
    %70 = vector.load %arg14[%c0_120, %c0_121, %c768_122] : memref<16x16x1152xbf16, #tpu.memory_space<vmem>>, vector<16x16x128xbf16>
    tpu.vector_store %arg14[%c0_120, %c0_121, %c768_122], %69 {strides = array<i32>} : memref<16x16x1152xbf16, #tpu.memory_space<vmem>>, vector<16x16x128xbf16>,
    %c36_123 = arith.constant 36 : index
    %c24_124 = arith.constant 24 : index
    %c0_125 = arith.constant 0 : index
    %71 = vector.load %arg13[%c36_123, %c24_124, %c0_125] : memref<64x64x128xbf16, #tpu.memory_space<vmem>>, vector<16x16x128xbf16>
    %c0_126 = arith.constant 0 : index
    %c0_127 = arith.constant 0 : index
    %c896_128 = arith.constant 896 : index
    %72 = vector.load %arg14[%c0_126, %c0_127, %c896_128] : memref<16x16x1152xbf16, #tpu.memory_space<vmem>>, vector<16x16x128xbf16>
    tpu.vector_store %arg14[%c0_126, %c0_127, %c896_128], %71 {strides = array<i32>} : memref<16x16x1152xbf16, #tpu.memory_space<vmem>>, vector<16x16x128xbf16>,
    %c36_129 = arith.constant 36 : index
    %c36_130 = arith.constant 36 : index
    %c0_131 = arith.constant 0 : index
    %73 = vector.load %arg13[%c36_129, %c36_130, %c0_131] : memref<64x64x128xbf16, #tpu.memory_space<vmem>>, vector<16x16x128xbf16>
    %c0_132 = arith.constant 0 : index
    %c0_133 = arith.constant 0 : index
    %c1024_134 = arith.constant 1024 : index
    %74 = vector.load %arg14[%c0_132, %c0_133, %c1024_134] : memref<16x16x1152xbf16, #tpu.memory_space<vmem>>, vector<16x16x128xbf16>
    tpu.vector_store %arg14[%c0_132, %c0_133, %c1024_134], %73 {strides = array<i32>} : memref<16x16x1152xbf16, #tpu.memory_space<vmem>>, vector<16x16x128xbf16>,
    %c0_135 = arith.constant 0 : index
    %c0_136 = arith.constant 0 : index
    %c0_137 = arith.constant 0 : index
    %75 = vector.load %arg14[%c0_135, %c0_136, %c0_137] : memref<16x16x1152xbf16, #tpu.memory_space<vmem>>, vector<16x16x1152xbf16>
    %76 = vector.shape_cast %75 : vector<16x16x1152xbf16> to vector<256x1152xbf16>
    %c1_138 = arith.constant 1 : index
    %c0_139 = arith.constant 0 : index
    %c0_140 = arith.constant 0 : index
    %77 = vector.load %arg4[%c1_138, %c0_139, %c0_140] : memref<3x1152x128xbf16, #tpu.memory_space<vmem>>, vector<1x1152x128xbf16>
    %78 = vector.shape_cast %77 : vector<1x1152x128xbf16> to vector<1152x128xbf16>
    %cst_141 = arith.constant dense<0.000000e+00> : vector<256x128xf32>
    %79 = tpu.matmul %76, %78, %cst_141 {dimension_numbers = #tpu.dot_dimension_numbers<[1], [0], [0], [1], [0, 0, 1, 1], [], []>} : vector<256x1152xbf16>, vector<1152x128xbf16>, vector<256x128xf32> -> vector<256x128xf32>
    %c2 = arith.constant 2 : index
    %c0_142 = arith.constant 0 : index
    %c0_143 = arith.constant 0 : index
    %80 = vector.load %arg8[%c2, %c0_142, %c0_143] : memref<5x1x128xf32, #tpu.memory_space<vmem>>, vector<1x1x128xf32>
    %81 = vector.shape_cast %80 : vector<1x1x128xf32> to vector<1x128xf32>
    %82 = vector.broadcast %81 : vector<1x128xf32> to vector<256x128xf32>
    %83 = arith.mulf %79, %82 : vector<256x128xf32>
    %c2_144 = arith.constant 2 : index
    %c0_145 = arith.constant 0 : index
    %c0_146 = arith.constant 0 : index
    %84 = vector.load %arg9[%c2_144, %c0_145, %c0_146] : memref<5x1x128xf32, #tpu.memory_space<vmem>>, vector<1x1x128xf32>
    %85 = vector.shape_cast %84 : vector<1x1x128xf32> to vector<1x128xf32>
    %86 = vector.broadcast %85 : vector<1x128xf32> to vector<256x128xf32>
    %87 = arith.addf %83, %86 : vector<256x128xf32>
    %cst_147 = arith.constant 0.000000e+00 : f32
    %88 = vector.broadcast %cst_147 : f32 to vector<256x128xf32>
    %89 = arith.maximumf %87, %88 : vector<256x128xf32>
    %90 = arith.truncf %89 : vector<256x128xf32> to vector<256x128xbf16>
    %c0_148 = arith.constant 0 : index
    %c256_149 = arith.constant 256 : index
    %91 = vector.load %arg15[%c0_148, %c256_149] : memref<256x512xbf16, #tpu.memory_space<vmem>>, vector<256x128xbf16>
    tpu.vector_store %arg15[%c0_148, %c256_149], %90 {strides = array<i32>} : memref<256x512xbf16, #tpu.memory_space<vmem>>, vector<256x128xbf16>,
    %c6 = arith.constant 6 : index
    %c6_150 = arith.constant 6 : index
    %c0_151 = arith.constant 0 : index
    %92 = vector.load %arg13[%c6, %c6_150, %c0_151] : memref<64x64x128xbf16, #tpu.memory_space<vmem>>, vector<16x16x128xbf16>
    %c0_152 = arith.constant 0 : index
    %c0_153 = arith.constant 0 : index
    %c0_154 = arith.constant 0 : index
    %93 = vector.load %arg14[%c0_152, %c0_153, %c0_154] : memref<16x16x1152xbf16, #tpu.memory_space<vmem>>, vector<16x16x128xbf16>
    tpu.vector_store %arg14[%c0_152, %c0_153, %c0_154], %92 {strides = array<i32>} : memref<16x16x1152xbf16, #tpu.memory_space<vmem>>, vector<16x16x128xbf16>,
    %c6_155 = arith.constant 6 : index
    %c24_156 = arith.constant 24 : index
    %c0_157 = arith.constant 0 : index
    %94 = vector.load %arg13[%c6_155, %c24_156, %c0_157] : memref<64x64x128xbf16, #tpu.memory_space<vmem>>, vector<16x16x128xbf16>
    %c0_158 = arith.constant 0 : index
    %c0_159 = arith.constant 0 : index
    %c128_160 = arith.constant 128 : index
    %95 = vector.load %arg14[%c0_158, %c0_159, %c128_160] : memref<16x16x1152xbf16, #tpu.memory_space<vmem>>, vector<16x16x128xbf16>
    tpu.vector_store %arg14[%c0_158, %c0_159, %c128_160], %94 {strides = array<i32>} : memref<16x16x1152xbf16, #tpu.memory_space<vmem>>, vector<16x16x128xbf16>,
    %c6_161 = arith.constant 6 : index
    %c42 = arith.constant 42 : index
    %c0_162 = arith.constant 0 : index
    %96 = vector.load %arg13[%c6_161, %c42, %c0_162] : memref<64x64x128xbf16, #tpu.memory_space<vmem>>, vector<16x16x128xbf16>
    %c0_163 = arith.constant 0 : index
    %c0_164 = arith.constant 0 : index
    %c256_165 = arith.constant 256 : index
    %97 = vector.load %arg14[%c0_163, %c0_164, %c256_165] : memref<16x16x1152xbf16, #tpu.memory_space<vmem>>, vector<16x16x128xbf16>
    tpu.vector_store %arg14[%c0_163, %c0_164, %c256_165], %96 {strides = array<i32>} : memref<16x16x1152xbf16, #tpu.memory_space<vmem>>, vector<16x16x128xbf16>,
    %c24_166 = arith.constant 24 : index
    %c6_167 = arith.constant 6 : index
    %c0_168 = arith.constant 0 : index
    %98 = vector.load %arg13[%c24_166, %c6_167, %c0_168] : memref<64x64x128xbf16, #tpu.memory_space<vmem>>, vector<16x16x128xbf16>
    %c0_169 = arith.constant 0 : index
    %c0_170 = arith.constant 0 : index
    %c384_171 = arith.constant 384 : index
    %99 = vector.load %arg14[%c0_169, %c0_170, %c384_171] : memref<16x16x1152xbf16, #tpu.memory_space<vmem>>, vector<16x16x128xbf16>
    tpu.vector_store %arg14[%c0_169, %c0_170, %c384_171], %98 {strides = array<i32>} : memref<16x16x1152xbf16, #tpu.memory_space<vmem>>, vector<16x16x128xbf16>,
    %c24_172 = arith.constant 24 : index
    %c24_173 = arith.constant 24 : index
    %c0_174 = arith.constant 0 : index
    %100 = vector.load %arg13[%c24_172, %c24_173, %c0_174] : memref<64x64x128xbf16, #tpu.memory_space<vmem>>, vector<16x16x128xbf16>
    %c0_175 = arith.constant 0 : index
    %c0_176 = arith.constant 0 : index
    %c512_177 = arith.constant 512 : index
    %101 = vector.load %arg14[%c0_175, %c0_176, %c512_177] : memref<16x16x1152xbf16, #tpu.memory_space<vmem>>, vector<16x16x128xbf16>
    tpu.vector_store %arg14[%c0_175, %c0_176, %c512_177], %100 {strides = array<i32>} : memref<16x16x1152xbf16, #tpu.memory_space<vmem>>, vector<16x16x128xbf16>,
    %c24_178 = arith.constant 24 : index
    %c42_179 = arith.constant 42 : index
    %c0_180 = arith.constant 0 : index
    %102 = vector.load %arg13[%c24_178, %c42_179, %c0_180] : memref<64x64x128xbf16, #tpu.memory_space<vmem>>, vector<16x16x128xbf16>
    %c0_181 = arith.constant 0 : index
    %c0_182 = arith.constant 0 : index
    %c640_183 = arith.constant 640 : index
    %103 = vector.load %arg14[%c0_181, %c0_182, %c640_183] : memref<16x16x1152xbf16, #tpu.memory_space<vmem>>, vector<16x16x128xbf16>
    tpu.vector_store %arg14[%c0_181, %c0_182, %c640_183], %102 {strides = array<i32>} : memref<16x16x1152xbf16, #tpu.memory_space<vmem>>, vector<16x16x128xbf16>,
    %c42_184 = arith.constant 42 : index
    %c6_185 = arith.constant 6 : index
    %c0_186 = arith.constant 0 : index
    %104 = vector.load %arg13[%c42_184, %c6_185, %c0_186] : memref<64x64x128xbf16, #tpu.memory_space<vmem>>, vector<16x16x128xbf16>
    %c0_187 = arith.constant 0 : index
    %c0_188 = arith.constant 0 : index
    %c768_189 = arith.constant 768 : index
    %105 = vector.load %arg14[%c0_187, %c0_188, %c768_189] : memref<16x16x1152xbf16, #tpu.memory_space<vmem>>, vector<16x16x128xbf16>
    tpu.vector_store %arg14[%c0_187, %c0_188, %c768_189], %104 {strides = array<i32>} : memref<16x16x1152xbf16, #tpu.memory_space<vmem>>, vector<16x16x128xbf16>,
    %c42_190 = arith.constant 42 : index
    %c24_191 = arith.constant 24 : index
    %c0_192 = arith.constant 0 : index
    %106 = vector.load %arg13[%c42_190, %c24_191, %c0_192] : memref<64x64x128xbf16, #tpu.memory_space<vmem>>, vector<16x16x128xbf16>
    %c0_193 = arith.constant 0 : index
    %c0_194 = arith.constant 0 : index
    %c896_195 = arith.constant 896 : index
    %107 = vector.load %arg14[%c0_193, %c0_194, %c896_195] : memref<16x16x1152xbf16, #tpu.memory_space<vmem>>, vector<16x16x128xbf16>
    tpu.vector_store %arg14[%c0_193, %c0_194, %c896_195], %106 {strides = array<i32>} : memref<16x16x1152xbf16, #tpu.memory_space<vmem>>, vector<16x16x128xbf16>,
    %c42_196 = arith.constant 42 : index
    %c42_197 = arith.constant 42 : index
    %c0_198 = arith.constant 0 : index
    %108 = vector.load %arg13[%c42_196, %c42_197, %c0_198] : memref<64x64x128xbf16, #tpu.memory_space<vmem>>, vector<16x16x128xbf16>
    %c0_199 = arith.constant 0 : index
    %c0_200 = arith.constant 0 : index
    %c1024_201 = arith.constant 1024 : index
    %109 = vector.load %arg14[%c0_199, %c0_200, %c1024_201] : memref<16x16x1152xbf16, #tpu.memory_space<vmem>>, vector<16x16x128xbf16>
    tpu.vector_store %arg14[%c0_199, %c0_200, %c1024_201], %108 {strides = array<i32>} : memref<16x16x1152xbf16, #tpu.memory_space<vmem>>, vector<16x16x128xbf16>,
    %c0_202 = arith.constant 0 : index
    %c0_203 = arith.constant 0 : index
    %c0_204 = arith.constant 0 : index
    %110 = vector.load %arg14[%c0_202, %c0_203, %c0_204] : memref<16x16x1152xbf16, #tpu.memory_space<vmem>>, vector<16x16x1152xbf16>
    %111 = vector.shape_cast %110 : vector<16x16x1152xbf16> to vector<256x1152xbf16>
    %c2_205 = arith.constant 2 : index
    %c0_206 = arith.constant 0 : index
    %c0_207 = arith.constant 0 : index
    %112 = vector.load %arg4[%c2_205, %c0_206, %c0_207] : memref<3x1152x128xbf16, #tpu.memory_space<vmem>>, vector<1x1152x128xbf16>
    %113 = vector.shape_cast %112 : vector<1x1152x128xbf16> to vector<1152x128xbf16>
    %cst_208 = arith.constant dense<0.000000e+00> : vector<256x128xf32>
    %114 = tpu.matmul %111, %113, %cst_208 {dimension_numbers = #tpu.dot_dimension_numbers<[1], [0], [0], [1], [0, 0, 1, 1], [], []>} : vector<256x1152xbf16>, vector<1152x128xbf16>, vector<256x128xf32> -> vector<256x128xf32>
    %c3 = arith.constant 3 : index
    %c0_209 = arith.constant 0 : index
    %c0_210 = arith.constant 0 : index
    %115 = vector.load %arg8[%c3, %c0_209, %c0_210] : memref<5x1x128xf32, #tpu.memory_space<vmem>>, vector<1x1x128xf32>
    %116 = vector.shape_cast %115 : vector<1x1x128xf32> to vector<1x128xf32>
    %117 = vector.broadcast %116 : vector<1x128xf32> to vector<256x128xf32>
    %118 = arith.mulf %114, %117 : vector<256x128xf32>
    %c3_211 = arith.constant 3 : index
    %c0_212 = arith.constant 0 : index
    %c0_213 = arith.constant 0 : index
    %119 = vector.load %arg9[%c3_211, %c0_212, %c0_213] : memref<5x1x128xf32, #tpu.memory_space<vmem>>, vector<1x1x128xf32>
    %120 = vector.shape_cast %119 : vector<1x1x128xf32> to vector<1x128xf32>
    %121 = vector.broadcast %120 : vector<1x128xf32> to vector<256x128xf32>
    %122 = arith.addf %118, %121 : vector<256x128xf32>
    %cst_214 = arith.constant 0.000000e+00 : f32
    %123 = vector.broadcast %cst_214 : f32 to vector<256x128xf32>
    %124 = arith.maximumf %122, %123 : vector<256x128xf32>
    %125 = arith.truncf %124 : vector<256x128xf32> to vector<256x128xbf16>
    %c0_215 = arith.constant 0 : index
    %c384_216 = arith.constant 384 : index
    %126 = vector.load %arg15[%c0_215, %c384_216] : memref<256x512xbf16, #tpu.memory_space<vmem>>, vector<256x128xbf16>
    tpu.vector_store %arg15[%c0_215, %c384_216], %125 {strides = array<i32>} : memref<256x512xbf16, #tpu.memory_space<vmem>>, vector<256x128xbf16>,
    %cst_217 = arith.constant 1.000000e+00 : bf16
    %127 = vector.broadcast %cst_217 : bf16 to vector<8x256xbf16>
    %cst_218 = arith.constant dense<0.000000e+00> : vector<8x128xf32>
    %128 = tpu.matmul %127, %7, %cst_218 {dimension_numbers = #tpu.dot_dimension_numbers<[1], [0], [0], [1], [0, 0, 1, 1], [], []>} : vector<8x256xbf16>, vector<256x128xbf16>, vector<8x128xf32> -> vector<8x128xf32>
    %cst_219 = arith.constant 3.906250e-03 : f32
    %129 = vector.broadcast %cst_219 : f32 to vector<8x128xf32>
    %130 = arith.mulf %128, %129 : vector<8x128xf32>
    %131 = arith.truncf %130 : vector<8x128xf32> to vector<8x128xbf16>
    %c0_220 = arith.constant 0 : index
    %c0_221 = arith.constant 0 : index
    %132 = vector.load %arg5[%c0_220, %c0_221] : memref<128x128xbf16, #tpu.memory_space<vmem>>, vector<128x128xbf16>
    %cst_222 = arith.constant dense<0.000000e+00> : vector<8x128xf32>
    %133 = tpu.matmul %131, %132, %cst_222 {dimension_numbers = #tpu.dot_dimension_numbers<[1], [0], [0], [1], [0, 0, 1, 1], [], []>} : vector<8x128xbf16>, vector<128x128xbf16>, vector<8x128xf32> -> vector<8x128xf32>
    %c4 = arith.constant 4 : index
    %c0_223 = arith.constant 0 : index
    %c0_224 = arith.constant 0 : index
    %134 = vector.load %arg8[%c4, %c0_223, %c0_224] : memref<5x1x128xf32, #tpu.memory_space<vmem>>, vector<1x1x128xf32>
    %135 = vector.shape_cast %134 : vector<1x1x128xf32> to vector<1x128xf32>
    %136 = vector.broadcast %135 : vector<1x128xf32> to vector<8x128xf32>
    %137 = arith.mulf %133, %136 : vector<8x128xf32>
    %c4_225 = arith.constant 4 : index
    %c0_226 = arith.constant 0 : index
    %c0_227 = arith.constant 0 : index
    %138 = vector.load %arg9[%c4_225, %c0_226, %c0_227] : memref<5x1x128xf32, #tpu.memory_space<vmem>>, vector<1x1x128xf32>
    %139 = vector.shape_cast %138 : vector<1x1x128xf32> to vector<1x128xf32>
    %140 = vector.broadcast %139 : vector<1x128xf32> to vector<8x128xf32>
    %141 = arith.addf %137, %140 : vector<8x128xf32>
    %cst_228 = arith.constant 0.000000e+00 : f32
    %142 = vector.broadcast %cst_228 : f32 to vector<8x128xf32>
    %143 = arith.maximumf %141, %142 : vector<8x128xf32>
    %144 = arith.truncf %143 : vector<8x128xf32> to vector<8x128xbf16>
    %c0_229 = arith.constant 0 : index
    %c0_230 = arith.constant 0 : index
    %145 = vector.load %arg7[%c0_229, %c0_230] : memref<128x128xbf16, #tpu.memory_space<vmem>>, vector<128x128xbf16>
    %cst_231 = arith.constant dense<0.000000e+00> : vector<8x128xf32>
    %146 = tpu.matmul %144, %145, %cst_231 {dimension_numbers = #tpu.dot_dimension_numbers<[1], [0], [0], [1], [0, 0, 1, 1], [], []>} : vector<8x128xbf16>, vector<128x128xbf16>, vector<8x128xf32> -> vector<8x128xf32>
    %147 = vector.extract_strided_slice %146 {offsets = [0, 0], sizes = [1, 128], strides = [1, 1]} : vector<8x128xf32> to vector<1x128xf32>
    %c0_232 = arith.constant 0 : index
    %c0_233 = arith.constant 0 : index
    %148 = vector.load %arg15[%c0_232, %c0_233] : memref<256x512xbf16, #tpu.memory_space<vmem>>, vector<256x512xbf16>
    %c0_234 = arith.constant 0 : index
    %c0_235 = arith.constant 0 : index
    %149 = vector.load %arg6[%c0_234, %c0_235] : memref<512x128xbf16, #tpu.memory_space<vmem>>, vector<512x128xbf16>
    %cst_236 = arith.constant dense<0.000000e+00> : vector<256x128xf32>
    %150 = tpu.matmul %148, %149, %cst_236 {dimension_numbers = #tpu.dot_dimension_numbers<[1], [0], [0], [1], [0, 0, 1, 1], [], []>} : vector<256x512xbf16>, vector<512x128xbf16>, vector<256x128xf32> -> vector<256x128xf32>
    %151 = vector.broadcast %147 : vector<1x128xf32> to vector<256x128xf32>
    %152 = arith.addf %150, %151 : vector<256x128xf32>
    %c0_237 = arith.constant 0 : index
    %c0_238 = arith.constant 0 : index
    %153 = vector.load %arg10[%c0_237, %c0_238] : memref<1x128xf32, #tpu.memory_space<vmem>>, vector<1x128xf32>
    %154 = vector.broadcast %153 : vector<1x128xf32> to vector<256x128xf32>
    %155 = arith.mulf %152, %154 : vector<256x128xf32>
    %c0_239 = arith.constant 0 : index
    %c0_240 = arith.constant 0 : index
    %156 = vector.load %arg11[%c0_239, %c0_240] : memref<1x128xf32, #tpu.memory_space<vmem>>, vector<1x128xf32>
    %157 = vector.broadcast %156 : vector<1x128xf32> to vector<256x128xf32>
    %158 = arith.addf %155, %157 : vector<256x128xf32>
    %cst_241 = arith.constant 0.000000e+00 : f32
    %159 = vector.broadcast %cst_241 : f32 to vector<256x128xf32>
    %160 = arith.maximumf %158, %159 : vector<256x128xf32>
    %161 = vector.shape_cast %160 : vector<256x128xf32> to vector<1x256x128xf32>
    %162 = arith.truncf %161 : vector<1x256x128xf32> to vector<1x256x128xbf16>
    %c0_242 = arith.constant 0 : index
    %c0_243 = arith.constant 0 : index
    %c0_244 = arith.constant 0 : index
    %163 = vector.load %arg12[%c0_242, %c0_243, %c0_244] : memref<1x256x128xbf16, #tpu.memory_space<vmem>>, vector<1x256x128xbf16>
    tpu.vector_store %arg12[%c0_242, %c0_243, %c0_244], %162 {strides = array<i32>} : memref<1x256x128xbf16, #tpu.memory_space<vmem>>, vector<1x256x128xbf16>,
    return
  }
  func.func @transform_0(%arg0: i32, %arg1: i32) -> (i32, i32, i32, i32) {
    %c0_i32 = arith.constant 0 : i32
    %c0_i32_0 = arith.constant 0 : i32
    %c0_i32_1 = arith.constant 0 : i32
    %c0_i32_2 = arith.constant 0 : i32
    return %arg0, %c0_i32, %c0_i32_0, %c0_i32_1 : i32, i32, i32, i32
  }
  func.func @transform_1(%arg0: i32, %arg1: i32) -> (i32, i32) {
    %c0_i32 = arith.constant 0 : i32
    %c0_i32_0 = arith.constant 0 : i32
    %c0_i32_1 = arith.constant 0 : i32
    return %c0_i32, %c0_i32_0 : i32, i32
  }
  func.func @transform_2(%arg0: i32, %arg1: i32) -> (i32, i32, i32) {
    %c0_i32 = arith.constant 0 : i32
    %c0_i32_0 = arith.constant 0 : i32
    %c0_i32_1 = arith.constant 0 : i32
    %c0_i32_2 = arith.constant 0 : i32
    return %c0_i32, %c0_i32_0, %c0_i32_1 : i32, i32, i32
  }
  func.func @transform_3(%arg0: i32, %arg1: i32) -> (i32, i32) {
    %c0_i32 = arith.constant 0 : i32
    %c0_i32_0 = arith.constant 0 : i32
    %c0_i32_1 = arith.constant 0 : i32
    return %c0_i32, %c0_i32_0 : i32, i32
  }
  func.func @transform_4(%arg0: i32, %arg1: i32) -> (i32, i32) {
    %c0_i32 = arith.constant 0 : i32
    %c0_i32_0 = arith.constant 0 : i32
    return %c0_i32, %arg1 : i32, i32
  }
  func.func @transform_5(%arg0: i32, %arg1: i32) -> (i32, i32) {
    %c0_i32 = arith.constant 0 : i32
    %c0_i32_0 = arith.constant 0 : i32
    return %c0_i32, %arg1 : i32, i32
  }
  func.func @transform_6(%arg0: i32, %arg1: i32) -> (i32, i32, i32) {
    %c0_i32 = arith.constant 0 : i32
    %c0_i32_0 = arith.constant 0 : i32
    %c0_i32_1 = arith.constant 0 : i32
    %c0_i32_2 = arith.constant 0 : i32
    return %c0_i32, %c0_i32_0, %c0_i32_1 : i32, i32, i32
  }
  func.func @transform_7(%arg0: i32, %arg1: i32) -> (i32, i32, i32) {
    %c0_i32 = arith.constant 0 : i32
    %c0_i32_0 = arith.constant 0 : i32
    %c0_i32_1 = arith.constant 0 : i32
    %c0_i32_2 = arith.constant 0 : i32
    return %c0_i32, %c0_i32_0, %c0_i32_1 : i32, i32, i32
  }
  func.func @transform_8(%arg0: i32, %arg1: i32) -> (i32, i32) {
    %c0_i32 = arith.constant 0 : i32
    %c0_i32_0 = arith.constant 0 : i32
    return %c0_i32, %arg1 : i32, i32
  }
  func.func @transform_9(%arg0: i32, %arg1: i32) -> (i32, i32) {
    %c0_i32 = arith.constant 0 : i32
    %c0_i32_0 = arith.constant 0 : i32
    return %c0_i32, %arg1 : i32, i32
  }
  func.func @transform_10(%arg0: i32, %arg1: i32) -> (i32, i32, i32) {
    %c0_i32 = arith.constant 0 : i32
    %c0_i32_0 = arith.constant 0 : i32
    return %arg0, %c0_i32, %arg1 : i32, i32, i32
  }
}

</mosaic_0001>

<bundles_post_ra>
// kernel: deeplabv3_forward.2
= control target key start
LH: loop header
LB: loop body
LE: loop exit
PB: predicated region body
PF: predicated region fallthrough
CT: control target
= control target key end

     0   :  { %s1366_s15 = smov 0   ;;  %s1368_s16 = smov 0   ;;  %s1541_s0 = inlined_call_operand.vmem [shape: bf16[2,256,36], index: 0, kind: input, shape index: {}]   ;;  %s1542_s1 = inlined_call_operand.vmem [shape: bf16[36,128], index: 1, kind: input, shape index: {}]   ;;  %s1543_s2 = inlined_call_operand.vmem [shape: f32[1,128], index: 2, kind: input, shape index: {}]   ;;  %s1544_s3 = inlined_call_operand.vmem [shape: f32[1,128], index: 3, kind: input, shape index: {}]   ;;  %s1545_s4 = inlined_call_operand.vmem [shape: bf16[2,256,128], index: 4, kind: output, shape index: {}]  }
   0x1   :  { %s1370_s17 = smov 0  }
   0x2 LB: > { %s26_s18 = sadd.s32 1, %s1335_s16  ;;  %p1004_p0 = scmp.ge.s32.totalorder %s1339_s17, 1  ;;  %s1339_s17 = sphi %s1370_s17, %s14_s17   ;;  %s1335_s16 = sphi %s1368_s16, %s1547_s16   ;;  %s1331_s15 = sphi %s1366_s15, %s1546_s15  }
   0x3   : > { %p28_p1 = scmp.ge.s32.totalorder %s26_s18, 2  ;;  %p201_p2 = scmp.lt.s32.totalorder %s1339_s17, 3 }
   0x5   : > { %s1549_s18 = smov (%p28_p1, %s26_s18), 0  ;;  %p202_p3 = pnand %p1004_p0, %p201_p2 }
   0x6   : > { %v1298_v0 = vld [vmem:[%s1542_s1] sm:$0xff] (!%p202_p3)   ;;  %v1299_v1 = vld [vmem:[%s1542_s1 + $0x8] sm:$0xff] (!%p202_p3)   ;;  %p240_p4 = scmp.lt.s32.totalorder (!%p202_p3), %s1331_s15, 1  ;;  %v1300_v2 = vld [vmem:[%s1542_s1 + $0x10] ss:$0 sps:$4 sm:$0x33] (!%p202_p3)  }
   0x7   : > { %205 = sbr.rel (%p202_p3) target bundleno = 269 (0x10d), region = 36  ;;  %1228 = vmatprep.subr.bf16.mxu0 (!%p202_p3), %v1298_v0  ;;  %1266 = vmatprep.subr.bf16.mxu1 (!%p202_p3), %v1298_v0  ;;  %vm445_vm0 = vcmask (!%p202_p3), 1041408   ;;  %vm396_vm1 = vcmask (!%p202_p3), 293888   ;;  %v1438_v20 = vld [vmem:[%s1543_s2] ss:$0 sm:$0xff] (!%p202_p3) }
   0x8   : > { %1229 = vmatpush3.bf16.msra.mxu0 (!%p202_p3), %v1298_v0  ;;  %1269 = vmatpush3.bf16.msra.mxu1 (!%p202_p3), %v1298_v0  ;;  %v447_v4 = vsel (!%p202_p3), %vm445_vm0, %v1300_v2, 0  ;;  %v1443_v22 = vld [vmem:[%s1544_s3] ss:$0 sm:$0xff] (!%p202_p3) }
   0x9   : > { %1230 = vmatprep.subr.bf16.mxu0 (!%p202_p3), %v1299_v1  ;;  %1267 = vmatprep.subr.bf16.mxu1 (!%p202_p3), %v1299_v1 }
   0xc   : > { %1231 = vmatpush3.bf16.msra.mxu0 (!%p202_p3), %v1299_v1  ;;  %1270 = vmatpush3.bf16.msra.mxu1 (!%p202_p3), %v1299_v1 }
   0xd   : > { %1272 = vmatprep.subr.msk.bf16.mxu0 (!%p202_p3), %vm445_vm0, %v1300_v2  ;;  %1273 = vmatprep.subr.msk.bf16.mxu1 (!%p202_p3), %vm445_vm0, %v1300_v2 }
   0xe   : > { %s1551_s15 = smov (!%p240_p4, %s1331_s15), 1 }
   0xf   : > { %s1080_s25 = sshll.u32 %s1551_s15, 7 }
  0x10   : > { %s1401_s28 = scalar_lea.vmem %s1541_s0, %s1080_s25  ;;  %1233 = vmatpush3.bf16.msra.mxu0 %v447_v4  ;;  %1271 = vmatpush3.bf16.msra.mxu1 %v447_v4  ;;  %s1466_s9 = scalar_lea.vmem %s1545_s4, %s1080_s25 }
  0x11   : > { %v1301_v3 = vld [vmem:[%s1401_s28] sm:$0xff]   ;;  %v1303_v6 = vld [vmem:[%s1401_s28 + $0x8] sm:$0xff]   ;;  %v1305_v8 = vld [vmem:[%s1401_s28 + $0x10] sm:$0xff]  }
  0x12   : > { %v1302_v5 = vld [vmem:[%s1401_s28 + $0x40] sm:$0xff]   ;;  %1234 = vmatprep.mubr.msk.bf16.mxu0 %vm396_vm1, %v1301_v3  ;;  %v1304_v7 = vld [vmem:[%s1401_s28 + $0x48] sm:$0xff]   ;;  %v1306_v9 = vld [vmem:[%s1401_s28 + $0x50] sm:$0xff]  }
  0x13   : > { %1250 = vmatprep.mubr.msk.bf16.mxu1 %vm396_vm1, %v1302_v5  ;;  %1235 = vmatmul.mubr.msk.bf16.vlgmr.msra.gmra.mrb[0].mxu0 %vm396_vm1, %v1303_v6  ;;  %v1307_v10 = vld [vmem:[%s1401_s28 + $0x18] sm:$0xff]   ;;  %v1309_v12 = vld [vmem:[%s1401_s28 + $0x20] sm:$0xff]   ;;  %v1311_v14 = vld [vmem:[%s1401_s28 + $0x28] sm:$0xff]  }
  0x14   : > { %1251 = vmatmul.mubr.msk.bf16.vlgmr.msra.gmra.mrb[0].mxu1 %vm396_vm1, %v1304_v7  ;;  %1238 = vmatprep.mubr.msk.bf16.mxu0 %vm396_vm1, %v1305_v8  ;;  %v1308_v11 = vld [vmem:[%s1401_s28 + $0x58] sm:$0xff]   ;;  %v1310_v13 = vld [vmem:[%s1401_s28 + $0x60] sm:$0xff]   ;;  %v1312_v15 = vld [vmem:[%s1401_s28 + $0x68] sm:$0xff]  }
  0x15   : > { %1254 = vmatprep.mubr.msk.bf16.mxu1 %vm396_vm1, %v1306_v9  ;;  %v1313_v16 = vld [vmem:[%s1401_s28 + $0x30] sm:$0xff]   ;;  %v1315_v18 = vld [vmem:[%s1401_s28 + $0x38] sm:$0xff]  }
  0x16   : > { %v1314_v17 = vld [vmem:[%s1401_s28 + $0x70] sm:$0xff]   ;;  %v1316_v19 = vld [vmem:[%s1401_s28 + $0x78] sm:$0xff]  }
  0x1b   : > { %1239 = vmatmul.mubr.msk.bf16.gmra.mrb[4].mxu0 %vm396_vm1, %v1307_v10 }
  0x1c   : > { %1255 = vmatmul.mubr.msk.bf16.gmra.mrb[4].mxu1 %vm396_vm1, %v1308_v11  ;;  %1242 = vmatprep.mubr.msk.bf16.mxu0 %vm396_vm1, %v1309_v12 }
  0x1d   : > { %1258 = vmatprep.mubr.msk.bf16.mxu1 %vm396_vm1, %v1310_v13 }
  0x23   : > { %1243 = vmatmul.mubr.msk.bf16.gmra.mrb[8].mxu0 %vm396_vm1, %v1311_v14 }
  0x24   : > { %1259 = vmatmul.mubr.msk.bf16.gmra.mrb[8].mxu1 %vm396_vm1, %v1312_v15  ;;  %1246 = vmatprep.mubr.msk.bf16.mxu0 %vm396_vm1, %v1313_v16 }
  0x25   : > { %1262 = vmatprep.mubr.msk.bf16.mxu1 %vm396_vm1, %v1314_v17 }
  0x2b   : > { %1247 = vmatmul.mubr.msk.bf16.gmra.mrb[12].mxu0 %vm396_vm1, %v1315_v18 }
  0x2c   : > { %1263 = vmatmul.mubr.msk.bf16.gmra.mrb[12].mxu1 %vm396_vm1, %v1316_v19 }
  0xe6   : > { %v1236_v21 = vpop.f32.mrb[0].mxu0 }
  0xe7   : > { %v1252_v23 = vpop.f32.mrb[0].mxu1  ;;  %v619_v24 = vmul.f32 %v1236_v21, %v1438_v20  ;;  %v483_v26 = vpop.f32.mrb[1].mxu0 }
  0xe8   : > { %v635_v25 = vmul.f32 %v1252_v23, %v1438_v20  ;;  %v547_v27 = vpop.f32.mrb[1].mxu1  ;;  %v617_v28 = vmul.f32 %v1438_v20, %v483_v26  ;;  %v1237_v30 = vpop.f32.mrb[2].mxu0 }
  0xe9   : > { %v633_v29 = vmul.f32 %v1438_v20, %v547_v27  ;;  %v1253_v31 = vpop.f32.mrb[2].mxu1  ;;  %v658_v32 = vadd.f32 %v1443_v22, %v619_v24  ;;  %v620_v34 = vmul.f32 %v1237_v30, %v1438_v20  ;;  %v486_v36 = vpop.f32.mrb[3].mxu0 }
  0xea   : > { %v674_v33 = vadd.f32 %v1443_v22, %v635_v25  ;;  %v636_v35 = vmul.f32 %v1253_v31, %v1438_v20  ;;  %v550_v37 = vpop.f32.mrb[3].mxu1  ;;  %v656_v38 = vadd.f32 %v1443_v22, %v617_v28  ;;  %v618_v40 = vmul.f32 %v1438_v20, %v486_v36 }
  0xeb   : > { %v672_v39 = vadd.f32 %v1443_v22, %v633_v29  ;;  %v634_v41 = vmul.f32 %v1438_v20, %v550_v37  ;;  %v659_v42 = vadd.f32 %v1443_v22, %v620_v34  ;;  %v690_v46 = vmax.f32 %v658_v32, 0.0 }
  0xec   : > { %v675_v43 = vadd.f32 %v1443_v22, %v636_v35  ;;  %v657_v44 = vadd.f32 %v1443_v22, %v618_v40  ;;  %v706_v47 = vmax.f32 %v674_v33, 0.0  ;;  %v688_v50 = vmax.f32 %v656_v38, 0.0 }
  0xed   : > { %v673_v45 = vadd.f32 %v1443_v22, %v634_v41  ;;  %v691_v48 = vmax.f32 %v659_v42, 0.0  ;;  %v704_v51 = vmax.f32 %v672_v39, 0.0 }
  0xee   : > { %v707_v49 = vmax.f32 %v675_v43, 0.0  ;;  %v689_v52 = vmax.f32 %v657_v44, 0.0  ;;  %v1240_v54 = vpop.f32.mrb[4].mxu0 }
  0xef   : > { %v705_v53 = vmax.f32 %v673_v45, 0.0  ;;  %v1256_v55 = vpop.f32.mrb[4].mxu1  ;;  %v1122_v56 = vpack.c.bf16 %v691_v48, %v690_v46  ;;  %v623_v58 = vmul.f32 %v1240_v54, %v1438_v20  ;;  %v499_v60 = vpop.f32.mrb[5].mxu0 }
  0xf0   : > { %v1162_v57 = vpack.c.bf16 %v707_v49, %v706_v47  ;;  %v639_v59 = vmul.f32 %v1256_v55, %v1438_v20  ;;  %v563_v61 = vpop.f32.mrb[5].mxu1  ;;  %v1117_v62 = vpack.c.bf16 %v689_v52, %v688_v50  ;;  %v621_v0 = vmul.f32 %v1438_v20, %v499_v60  ;;  %v1241_v2 = vpop.f32.mrb[6].mxu0 }
  0xf1   : > { %v1157_v63 = vpack.c.bf16 %v705_v53, %v704_v51  ;;  %v637_v1 = vmul.f32 %v1438_v20, %v563_v61  ;;  %v1257_v3 = vpop.f32.mrb[6].mxu1  ;;  %1194 = vst [vmem:[%s1466_s9 + $0x8] sm:$0xff] %v1122_v56   ;;  %v662_v4 = vadd.f32 %v1443_v22, %v623_v58  ;;  %v624_v6 = vmul.f32 %v1241_v2, %v1438_v20  ;;  %v502_v8 = vpop.f32.mrb[7].mxu0 }
  0xf2   : > { %1202 = vst [vmem:[%s1466_s9 + $0x48] sm:$0xff] %v1162_v57   ;;  %v678_v5 = vadd.f32 %v1443_v22, %v639_v59  ;;  %v640_v7 = vmul.f32 %v1257_v3, %v1438_v20  ;;  %v566_v9 = vpop.f32.mrb[7].mxu1  ;;  %1118 = vst [vmem:[%s1466_s9] sm:$0xff] %v1117_v62   ;;  %v660_v10 = vadd.f32 %v1443_v22, %v621_v0 }
  0xf3   : > { %1201 = vst [vmem:[%s1466_s9 + $0x40] sm:$0xff] %v1157_v63   ;;  %v676_v11 = vadd.f32 %v1443_v22, %v637_v1  ;;  %v622_v12 = vmul.f32 %v1438_v20, %v502_v8  ;;  %v638_v13 = vmul.f32 %v1438_v20, %v566_v9  ;;  %v663_v14 = vadd.f32 %v1443_v22, %v624_v6 }
  0xf4   : > { %v679_v15 = vadd.f32 %v1443_v22, %v640_v7  ;;  %v694_v18 = vmax.f32 %v662_v4, 0.0  ;;  %v710_v19 = vmax.f32 %v678_v5, 0.0  ;;  %v692_v24 = vmax.f32 %v660_v10, 0.0 }
  0xf5   : > { %v661_v16 = vadd.f32 %v1443_v22, %v622_v12  ;;  %v677_v17 = vadd.f32 %v1443_v22, %v638_v13  ;;  %v695_v21 = vmax.f32 %v663_v14, 0.0  ;;  %v708_v25 = vmax.f32 %v676_v11, 0.0 }
  0xf6   : > { %v711_v23 = vmax.f32 %v679_v15, 0.0  ;;  %v1244_v28 = vpop.f32.mrb[8].mxu0 }
  0xf7   : > { %v693_v26 = vmax.f32 %v661_v16, 0.0  ;;  %v709_v27 = vmax.f32 %v677_v17, 0.0  ;;  %v1260_v29 = vpop.f32.mrb[8].mxu1  ;;  %v1132_v30 = vpack.c.bf16 %v695_v21, %v694_v18  ;;  %v627_v32 = vmul.f32 %v1244_v28, %v1438_v20  ;;  %v515_v34 = vpop.f32.mrb[9].mxu0 }
  0xf8   : > { %v1172_v31 = vpack.c.bf16 %v711_v23, %v710_v19  ;;  %v643_v33 = vmul.f32 %v1260_v29, %v1438_v20  ;;  %v579_v35 = vpop.f32.mrb[9].mxu1  ;;  %v625_v38 = vmul.f32 %v1438_v20, %v515_v34  ;;  %v1245_v40 = vpop.f32.mrb[10].mxu0 }
  0xf9   : > { %v1127_v36 = vpack.c.bf16 %v693_v26, %v692_v24  ;;  %v1167_v37 = vpack.c.bf16 %v709_v27, %v708_v25  ;;  %v641_v39 = vmul.f32 %v1438_v20, %v579_v35  ;;  %v1261_v41 = vpop.f32.mrb[10].mxu1  ;;  %1196 = vst [vmem:[%s1466_s9 + $0x18] sm:$0xff] %v1132_v30   ;;  %v666_v42 = vadd.f32 %v1443_v22, %v627_v32  ;;  %v518_v46 = vpop.f32.mrb[11].mxu0 }
  0xfa   : > { %1204 = vst [vmem:[%s1466_s9 + $0x58] sm:$0xff] %v1172_v31   ;;  %v682_v43 = vadd.f32 %v1443_v22, %v643_v33  ;;  %v628_v44 = vmul.f32 %v1245_v40, %v1438_v20  ;;  %v644_v45 = vmul.f32 %v1261_v41, %v1438_v20  ;;  %v582_v47 = vpop.f32.mrb[11].mxu1  ;;  %v664_v48 = vadd.f32 %v1443_v22, %v625_v38 }
  0xfb   : > { %1195 = vst [vmem:[%s1466_s9 + $0x10] sm:$0xff] %v1127_v36   ;;  %1203 = vst [vmem:[%s1466_s9 + $0x50] sm:$0xff] %v1167_v37   ;;  %v680_v49 = vadd.f32 %v1443_v22, %v641_v39  ;;  %v626_v50 = vmul.f32 %v1438_v20, %v518_v46  ;;  %v642_v51 = vmul.f32 %v1438_v20, %v582_v47  ;;  %v698_v56 = vmax.f32 %v666_v42, 0.0 }
  0xfc   : > { %v667_v52 = vadd.f32 %v1443_v22, %v628_v44  ;;  %v683_v53 = vadd.f32 %v1443_v22, %v644_v45  ;;  %v714_v57 = vmax.f32 %v682_v43, 0.0  ;;  %v696_v60 = vmax.f32 %v664_v48, 0.0 }
  0xfd   : > { %v665_v54 = vadd.f32 %v1443_v22, %v626_v50  ;;  %v681_v55 = vadd.f32 %v1443_v22, %v642_v51  ;;  %v712_v61 = vmax.f32 %v680_v49, 0.0 }
  0xfe   : > { %v699_v58 = vmax.f32 %v667_v52, 0.0  ;;  %v715_v59 = vmax.f32 %v683_v53, 0.0  ;;  %v1248_v0 = vpop.f32.mrb[12].mxu0 }
  0xff   : > { %v697_v62 = vmax.f32 %v665_v54, 0.0  ;;  %v713_v63 = vmax.f32 %v681_v55, 0.0  ;;  %v1264_v1 = vpop.f32.mrb[12].mxu1  ;;  %v631_v4 = vmul.f32 %v1248_v0, %v1438_v20  ;;  %v531_v6 = vpop.f32.mrb[13].mxu0 }
 0x100   : > { %v1142_v2 = vpack.c.bf16 %v699_v58, %v698_v56  ;;  %v1182_v3 = vpack.c.bf16 %v715_v59, %v714_v57  ;;  %v647_v5 = vmul.f32 %v1264_v1, %v1438_v20  ;;  %v595_v7 = vpop.f32.mrb[13].mxu1  ;;  %v629_v10 = vmul.f32 %v1438_v20, %v531_v6  ;;  %v1249_v12 = vpop.f32.mrb[14].mxu0 }
 0x101   : > { %v1137_v8 = vpack.c.bf16 %v697_v62, %v696_v60  ;;  %v1177_v9 = vpack.c.bf16 %v713_v63, %v712_v61  ;;  %v645_v11 = vmul.f32 %v1438_v20, %v595_v7  ;;  %v1265_v13 = vpop.f32.mrb[14].mxu1  ;;  %v670_v14 = vadd.f32 %v1443_v22, %v631_v4  ;;  %v534_v18 = vpop.f32.mrb[15].mxu0 }
 0x102   : > { %1198 = vst [vmem:[%s1466_s9 + $0x28] sm:$0xff] %v1142_v2   ;;  %1206 = vst [vmem:[%s1466_s9 + $0x68] sm:$0xff] %v1182_v3   ;;  %v686_v15 = vadd.f32 %v1443_v22, %v647_v5  ;;  %v632_v16 = vmul.f32 %v1249_v12, %v1438_v20  ;;  %v648_v17 = vmul.f32 %v1265_v13, %v1438_v20  ;;  %v598_v19 = vpop.f32.mrb[15].mxu1 }
 0x103   : > { %1197 = vst [vmem:[%s1466_s9 + $0x20] sm:$0xff] %v1137_v8   ;;  %1205 = vst [vmem:[%s1466_s9 + $0x60] sm:$0xff] %v1177_v9   ;;  %v668_v21 = vadd.f32 %v1443_v22, %v629_v10  ;;  %v684_v23 = vadd.f32 %v1443_v22, %v645_v11  ;;  %v630_v24 = vmul.f32 %v1438_v20, %v534_v18  ;;  %v702_v30 = vmax.f32 %v670_v14, 0.0 }
 0x104   : > { %v646_v25 = vmul.f32 %v1438_v20, %v598_v19  ;;  %v671_v26 = vadd.f32 %v1443_v22, %v632_v16  ;;  %v687_v27 = vadd.f32 %v1443_v22, %v648_v17  ;;  %v718_v31 = vmax.f32 %v686_v15, 0.0 }
 0x105   : > { %v669_v28 = vadd.f32 %v1443_v22, %v630_v24  ;;  %v700_v34 = vmax.f32 %v668_v21, 0.0  ;;  %v716_v35 = vmax.f32 %v684_v23, 0.0 }
 0x106   : > { %v685_v29 = vadd.f32 %v1443_v22, %v646_v25  ;;  %v703_v32 = vmax.f32 %v671_v26, 0.0  ;;  %v719_v33 = vmax.f32 %v687_v27, 0.0 }
 0x107   : > { %v701_v36 = vmax.f32 %v669_v28, 0.0 }
 0x108   : > { %v717_v20 = vmax.f32 %v685_v29, 0.0  ;;  %v1152_v37 = vpack.c.bf16 %v703_v32, %v702_v30  ;;  %v1192_v38 = vpack.c.bf16 %v719_v33, %v718_v31 }
 0x109   : > { %v1147_v39 = vpack.c.bf16 %v701_v36, %v700_v34 }
 0x10a   : > { %v1187_v40 = vpack.c.bf16 %v717_v20, %v716_v35  ;;  %1200 = vst [vmem:[%s1466_s9 + $0x38] sm:$0xff] %v1152_v37   ;;  %1208 = vst [vmem:[%s1466_s9 + $0x78] sm:$0xff] %v1192_v38  }
 0x10b   : > { %1199 = vst [vmem:[%s1466_s9 + $0x30] sm:$0xff] %v1147_v39  }
 0x10c   : > { %1207 = vst [vmem:[%s1466_s9 + $0x70] sm:$0xff] %v1187_v40  }
 0x10d PF: > { %s14_s17 = sadd.s32 1, %s1339_s17   ;;  %s1546_s15 = smov %s1335_s16 }
 0x10e   : > { %p11_p5 = scmp.ge.s32.totalorder %s14_s17, 4   ;;  %s1547_s16 = smov %s1549_s18 }
 0x110   :  { %13 = sbr.rel (!%p11_p5) target bundleno = 2 (0x2), region = 75 }

// kernel: deeplabv3_forward.3
= control target key start
LH: loop header
LB: loop body
LE: loop exit
PB: predicated region body
PF: predicated region fallthrough
CT: control target
= control target key end

     0   :  { %s14820_s13 = smov 0   ;;  %s14822_s14 = smov 0   ;;  %s19992_s0 = inlined_call_operand.vmem [shape: bf16[2,16,16,128], index: 0, kind: input, shape index: {}]   ;;  %s19993_s1 = inlined_call_operand.vmem [shape: bf16[128,128], index: 1, kind: input, shape index: {}]   ;;  %s19994_s2 = inlined_call_operand.vmem [shape: bf16[3,1152,128], index: 2, kind: input, shape index: {}]   ;;  %s19995_s3 = inlined_call_operand.vmem [shape: bf16[128,128], index: 3, kind: input, shape index: {}]   ;;  %s19996_s4 = inlined_call_operand.vmem [shape: bf16[512,128], index: 4, kind: input, shape index: {}]   ;;  %s19997_s5 = inlined_call_operand.vmem [shape: bf16[128,128], index: 5, kind: input, shape index: {}]   ;;  %s19998_s6 = inlined_call_operand.vmem [shape: f32[5,1,128], index: 6, kind: input, shape index: {}]   ;;  %s19999_s7 = inlined_call_operand.vmem [shape: f32[5,1,128], index: 7, kind: input, shape index: {}]   ;;  %s20000_s8 = inlined_call_operand.vmem [shape: f32[1,128], index: 8, kind: input, shape index: {}]   ;;  %s20001_s9 = inlined_call_operand.vmem [shape: f32[1,128], index: 9, kind: input, shape index: {}]   ;;  %s20002_s10 = inlined_call_operand.vmem [shape: bf16[2,256,128], index: 10, kind: output, shape index: {}]  }
   0x1   :  { %s14824_s15 = smov 0  }
   0x2 LB: > { %s32_s16 = sadd.s32 1, %s14755_s14  ;;  %p11624_p0 = scmp.ge.s32.totalorder %s14759_s15, 1  ;;  %s14759_s15 = sphi %s14824_s15, %s20_s15   ;;  %s14755_s14 = sphi %s14822_s14, %s20595_s14   ;;  %s14751_s13 = sphi %s14820_s13, %s20594_s13  }
   0x3   : > { %p34_p1 = scmp.ge.s32.totalorder %s32_s16, 2  ;;  %p360_p2 = scmp.lt.s32.totalorder %s14759_s15, 3 }
   0x5   : > { %s20597_s16 = smov (%p34_p1, %s32_s16), 0  ;;  %p361_p3 = pnand %p11624_p0, %p360_p2 }
   0x7   : > { %364 = sbr.rel (%p361_p3) target bundleno = 1815 (0x717), region = 60 }
   0xe   : > { %v14843_v0 = vld [vmem:[%s19993_s1] sm:$0xff]   ;;  %v14761_v3 = vmov 0   ;;  %v14403_v4 = vld [vmem:[%s19993_s1 + $0x8] sm:$0xff]   ;;  %v14406_v7 = vld [vmem:[%s19993_s1 + $0x10] sm:$0xff]   ;;  %p415_p4 = scmp.lt.s32.totalorder %s14751_s13, 1  ;;  %vm1598_vm0 = vcmask 1043456  }
   0xf   : > { %v14848_v1 = vld [vmem:[%s19994_s2 + $0x40] sm:$0xff]   ;;  %14124 = vmatprep.subr.bf16.mxu0 %v14843_v0  ;;  %517 = vst [vmem:[#allocation2 + $0x248] sm:$0xff] %v14761_v3  ;;  %518 = vst [vmem:[#allocation2 + $0x250] sm:$0xff] %v14761_v3  ;;  %v14404_v5 = vld [vmem:[%s19994_s2 + $0x48] sm:$0xff]   ;;  %vm1453_vm1 = vcmask 1046528   ;;  %vm1743_vm2 = vcmask 1040384  }
  0x10   : > { %v14854_v2 = vld [vmem:[%s19994_s2] sm:$0xff]   ;;  %468 = vst [vmem:[#allocation2 + $0xc0] sm:$0xff] %v14761_v3  ;;  %469 = vst [vmem:[#allocation2 + $0xc8] sm:$0xff] %v14761_v3  ;;  %12444 = vmatprep.subr.bf16.mxu1 %v14848_v1  ;;  %14125 = vmatpush3.bf16.msra.mxu0 %v14843_v0  ;;  %v14405_v6 = vld [vmem:[%s19994_s2 + $0x8] sm:$0xff]   ;;  %s20599_s13 = smov (!%p415_p4, %s14751_s13), 1  ;;  %vm4423_vm3 = vcmask 1041408  }
  0x11   : > { %470 = vst [vmem:[#allocation2 + $0xd0] sm:$0xff] %v14761_v3  ;;  %471 = vst [vmem:[#allocation2 + $0xd8] sm:$0xff] %v14761_v3  ;;  %12445 = vmatpush3.bf16.msra.mxu1 %v14854_v2  ;;  %14126 = vmatprep.subr.bf16.mxu0 %v14403_v4  ;;  %v14407_v8 = vld [vmem:[%s19994_s2 + $0x50] sm:$0xff]   ;;  %v14409_v10 = vld [vmem:[%s19993_s1 + $0x18] sm:$0xff]   ;;  %s12291_s19 = sshll.u32 %s20599_s13, 7  ;;  %vm4712_vm4 = vcmask 1045504  }
  0x12   : > { %472 = vst [vmem:[#allocation2 + $0xe0] sm:$0xff] %v14761_v3  ;;  %473 = vst [vmem:[#allocation2 + $0xe8] sm:$0xff] %v14761_v3  ;;  %12446 = vmatprep.subr.bf16.mxu1 %v14404_v5  ;;  %v14408_v9 = vld [vmem:[%s19994_s2 + $0x10] sm:$0xff]   ;;  %v14410_v11 = vld [vmem:[%s19994_s2 + $0x58] sm:$0xff]   ;;  %s15128_s28 = scalar_lea.vmem %s19992_s0, %s12291_s19  ;;  %vm7393_vm5 = vcmask 1044480   ;;  %vm7682_vm6 = vcmask 1042432   ;;  %s19853_s20 = scalar_lea.vmem %s20002_s10, %s12291_s19 }
  0x13   : > { %474 = vst [vmem:[#allocation2 + $0xf0] sm:$0xff] %v14761_v3  ;;  %475 = vst [vmem:[#allocation2 + $0xf8] sm:$0xff] %v14761_v3  ;;  %v14411_v12 = vld [vmem:[%s19994_s2 + $0x18] sm:$0xff]   ;;  %v14412_v13 = vld [vmem:[%s19993_s1 + $0x20] sm:$0xff]   ;;  %vm14764_vm7 = vmmov 0  }
  0x14   : > { %476 = vst [vmem:[#allocation2 + $0x100] sm:$0xff] %v14761_v3  ;;  %477 = vst [vmem:[#allocation2 + $0x108] sm:$0xff] %v14761_v3  ;;  %14127 = vmatpush3.bf16.msra.mxu0 %v14403_v4  ;;  %v14413_v14 = vld [vmem:[%s19994_s2 + $0x60] sm:$0xff]   ;;  %v14415_v16 = vld [vmem:[%s19993_s1 + $0x28] sm:$0xff]  }
  0x15   : > { %478 = vst [vmem:[#allocation2 + $0x110] sm:$0xff] %v14761_v3  ;;  %479 = vst [vmem:[#allocation2 + $0x118] sm:$0xff] %v14761_v3  ;;  %12447 = vmatpush3.bf16.msra.mxu1 %v14405_v6  ;;  %14128 = vmatprep.subr.bf16.mxu0 %v14406_v7  ;;  %v14414_v15 = vld [vmem:[%s19994_s2 + $0x20] sm:$0xff]   ;;  %v14416_v17 = vld [vmem:[%s19994_s2 + $0x68] sm:$0xff]  }
  0x16   : > { %480 = vst [vmem:[#allocation2 + $0x120] sm:$0xff] %v14761_v3  ;;  %481 = vst [vmem:[#allocation2 + $0x128] sm:$0xff] %v14761_v3  ;;  %12448 = vmatprep.subr.bf16.mxu1 %v14407_v8  ;;  %v14417_v18 = vld [vmem:[%s19994_s2 + $0x28] sm:$0xff]   ;;  %v14418_v19 = vld [vmem:[%s19993_s1 + $0x30] sm:$0xff]  }
  0x17   : > { %482 = vst [vmem:[#allocation2 + $0x130] sm:$0xff] %v14761_v3  ;;  %483 = vst [vmem:[#allocation2 + $0x138] sm:$0xff] %v14761_v3  ;;  %v14419_v20 = vld [vmem:[%s19994_s2 + $0x70] sm:$0xff]   ;;  %v14421_v22 = vld [vmem:[%s19993_s1 + $0x38] sm:$0xff]  }
  0x18   : > { %484 = vst [vmem:[#allocation2 + $0x140] sm:$0xff] %v14761_v3  ;;  %485 = vst [vmem:[#allocation2 + $0x148] sm:$0xff] %v14761_v3  ;;  %14129 = vmatpush3.bf16.msra.mxu0 %v14406_v7  ;;  %v14420_v21 = vld [vmem:[%s19994_s2 + $0x30] sm:$0xff]   ;;  %v14422_v23 = vld [vmem:[%s19994_s2 + $0x78] sm:$0xff]  }
  0x19   : > { %486 = vst [vmem:[#allocation2 + $0x150] sm:$0xff] %v14761_v3  ;;  %487 = vst [vmem:[#allocation2 + $0x158] sm:$0xff] %v14761_v3  ;;  %12449 = vmatpush3.bf16.msra.mxu1 %v14408_v9  ;;  %14130 = vmatprep.subr.bf16.mxu0 %v14409_v10  ;;  %v14424_v24 = vld [vmem:[%s15128_s28] sm:$0xff]   ;;  %v1534_v25 = vld [vmem:[#allocation2 + $0x248] sm:$0xf0] }
  0x1a   : > { %488 = vst [vmem:[#allocation2 + $0x160] sm:$0xff] %v14761_v3  ;;  %489 = vst [vmem:[#allocation2 + $0x168] sm:$0xff] %v14761_v3  ;;  %12450 = vmatprep.subr.bf16.mxu1 %v14410_v11  ;;  %v1535_v26 = vld [vmem:[#allocation2 + $0x250] sm:$0xf]  ;;  %v14423_v27 = vld [vmem:[%s19994_s2 + $0x38] sm:$0xff]   ;;  %14140 = vmatprep.mubr.bf16.mxu0 %v14424_v24  ;;  %v1599_v28 = vrot.slane %v1534_v25, 4 }
  0x1b   : > { %490 = vst [vmem:[#allocation2 + $0x170] sm:$0xff] %v14761_v3  ;;  %491 = vst [vmem:[#allocation2 + $0x178] sm:$0xff] %v14761_v3  ;;  %v1600_v29 = vrot.slane %v1535_v26, 4  ;;  %v14426_v30 = vld [vmem:[%s19994_s2 + $0xc0] sm:$0xff]   ;;  %v1389_v31 = vld [vmem:[#allocation2 + $0x248] sm:$0xfe] }
  0x1c   : > { %492 = vst [vmem:[#allocation2 + $0x180] sm:$0xff] %v14761_v3  ;;  %493 = vst [vmem:[#allocation2 + $0x188] sm:$0xff] %v14761_v3  ;;  %14131 = vmatpush3.bf16.msra.mxu0 %v14409_v10  ;;  %v1390_v32 = vld [vmem:[#allocation2 + $0x250] sm:$0x1]  ;;  %v1454_v34 = vrot.slane %v1389_v31, 1  ;;  %v14425_v36 = vld [vmem:[%s15128_s28 + $0x8] sm:$0xff]  }
  0x1d   : > { %494 = vst [vmem:[#allocation2 + $0x190] sm:$0xff] %v14761_v3  ;;  %495 = vst [vmem:[#allocation2 + $0x198] sm:$0xff] %v14761_v3  ;;  %12451 = vmatpush3.bf16.msra.mxu1 %v14411_v12  ;;  %14132 = vmatprep.subr.bf16.mxu0 %v14412_v13  ;;  %v1601_v33 = vsel %vm1598_vm0, %v1599_v28, %v1600_v29  ;;  %v1455_v35 = vrot.slane %v1390_v32, 1  ;;  %v14427_v38 = vld [vmem:[%s19994_s2 + $0x80] sm:$0xff]   ;;  %v14428_v42 = vld [vmem:[%s15128_s28 + $0x10] sm:$0xff]  }
  0x1e   : > { %496 = vst [vmem:[#allocation2 + $0x1a0] sm:$0xff] %v14761_v3  ;;  %497 = vst [vmem:[#allocation2 + $0x1a8] sm:$0xff] %v14761_v3  ;;  %12452 = vmatprep.subr.bf16.mxu1 %v14413_v14  ;;  %3441 = vmatprep.mubr.bf16.mxu1 %v1601_v33  ;;  %v14430_v47 = vld [vmem:[%s19994_s2 + $0xc8] sm:$0xff]   ;;  %v14434_v55 = vld [vmem:[%s19994_s2 + $0xd0] sm:$0xff]  }
  0x1f   : > { %498 = vst [vmem:[#allocation2 + $0x1b0] sm:$0xff] %v14761_v3  ;;  %499 = vst [vmem:[#allocation2 + $0x1b8] sm:$0xff] %v14761_v3  ;;  %v1456_v41 = vsel %vm1453_vm1, %v1454_v34, %v1455_v35  ;;  %v14431_v50 = vld [vmem:[%s19994_s2 + $0x88] sm:$0xff]   ;;  %v14429_v56 = vld [vmem:[%s15128_s28 + $0x18] sm:$0xff]  }
  0x20   : > { %500 = vst [vmem:[#allocation2 + $0x1c0] sm:$0xff] %v14761_v3  ;;  %501 = vst [vmem:[#allocation2 + $0x1c8] sm:$0xff] %v14761_v3  ;;  %14133 = vmatpush3.bf16.msra.mxu0 %v14412_v13  ;;  %v14432_v57 = vld [vmem:[%s15128_s28 + $0x20] sm:$0xff]   ;;  %v14435_v59 = vld [vmem:[%s19994_s2 + $0x90] sm:$0xff]  }
  0x21   : > { %502 = vst [vmem:[#allocation2 + $0x1d0] sm:$0xff] %v14761_v3  ;;  %503 = vst [vmem:[#allocation2 + $0x1d8] sm:$0xff] %v14761_v3  ;;  %12453 = vmatpush3.bf16.msra.mxu1 %v14414_v15  ;;  %14134 = vmatprep.subr.bf16.mxu0 %v14415_v16  ;;  %v14438_v1 = vld [vmem:[%s19994_s2 + $0xd8] sm:$0xff]   ;;  %v14433_v2 = vld [vmem:[%s15128_s28 + $0x28] sm:$0xff]  }
  0x22   : > { %504 = vst [vmem:[#allocation2 + $0x1e0] sm:$0xff] %v14761_v3  ;;  %505 = vst [vmem:[#allocation2 + $0x1e8] sm:$0xff] %v14761_v3  ;;  %12454 = vmatprep.subr.bf16.mxu1 %v14416_v17  ;;  %v14439_v5 = vld [vmem:[%s19994_s2 + $0x98] sm:$0xff]   ;;  %v14436_v8 = vld [vmem:[%s15128_s28 + $0x30] sm:$0xff]  }
  0x23   : > { %506 = vst [vmem:[#allocation2 + $0x1f0] sm:$0xff] %v14761_v3  ;;  %507 = vst [vmem:[#allocation2 + $0x1f8] sm:$0xff] %v14761_v3  ;;  %v14442_v11 = vld [vmem:[%s19994_s2 + $0xe0] sm:$0xff]   ;;  %v14446_v24 = vld [vmem:[%s19994_s2 + $0xe8] sm:$0xff]  }
  0x24   : > { %508 = vst [vmem:[#allocation2 + $0x200] sm:$0xff] %v14761_v3  ;;  %509 = vst [vmem:[#allocation2 + $0x208] sm:$0xff] %v14761_v3  ;;  %14135 = vmatpush3.bf16.msra.mxu0 %v14415_v16  ;;  %v14443_v16 = vld [vmem:[%s19994_s2 + $0xa0] sm:$0xff]   ;;  %v14447_v28 = vld [vmem:[%s19994_s2 + $0xa8] sm:$0xff]  }
  0x25   : > { %510 = vst [vmem:[#allocation2 + $0x210] sm:$0xff] %v14761_v3  ;;  %511 = vst [vmem:[#allocation2 + $0x218] sm:$0xff] %v14761_v3  ;;  %12455 = vmatpush3.bf16.msra.mxu1 %v14417_v18  ;;  %14136 = vmatprep.subr.bf16.mxu0 %v14418_v19  ;;  %v14449_v32 = vld [vmem:[%s15128_s28] ss:$0 sps:$4 sm:$0xff]   ;;  %v14450_v33 = vld [vmem:[%s15128_s28 + $0x4] ss:$0 sps:$4 sm:$0xff]  }
  0x26   : > { %512 = vst [vmem:[#allocation2 + $0x220] sm:$0xff] %v14761_v3  ;;  %513 = vst [vmem:[#allocation2 + $0x228] sm:$0xff] %v14761_v3  ;;  %12456 = vmatprep.subr.bf16.mxu1 %v14419_v20  ;;  %v14437_v20 = vld [vmem:[%s15128_s28 + $0x38] sm:$0xff]   ;;  %v14441_v34 = vld [vmem:[%s15128_s28 + $0x48] sm:$0xff]  }
  0x27   : > { %514 = vst [vmem:[#allocation2 + $0x230] sm:$0xff] %v14761_v3  ;;  %515 = vst [vmem:[#allocation2 + $0x238] sm:$0xff] %v14761_v3 }
  0x28   : > { %516 = vst [vmem:[#allocation2 + $0x240] sm:$0xff] %v14761_v3  ;;  %519 = vst [vmem:[#allocation2 + $0x258] sm:$0xff] %v14761_v3  ;;  %14137 = vmatpush3.bf16.msra.mxu0 %v14418_v19 }
  0x29   : > { %520 = vst [vmem:[#allocation2 + $0x260] sm:$0xff] %v14761_v3  ;;  %521 = vst [vmem:[#allocation2 + $0x268] sm:$0xff] %v14761_v3  ;;  %12457 = vmatpush3.bf16.msra.mxu1 %v14420_v21  ;;  %14138 = vmatprep.subr.bf16.mxu0 %v14421_v22 }
  0x2a   : > { %522 = vst [vmem:[#allocation2 + $0x270] sm:$0xff] %v14761_v3  ;;  %523 = vst [vmem:[#allocation2 + $0x278] sm:$0xff] %v14761_v3  ;;  %12458 = vmatprep.subr.bf16.mxu1 %v14422_v23  ;;  %v14440_v23 = vld [vmem:[%s15128_s28 + $0x40] sm:$0xff]  }
  0x2b   : > { %524 = vst [vmem:[#allocation2 + $0x280] sm:$0xff] %v14761_v3  ;;  %525 = vst [vmem:[#allocation2 + $0x288] sm:$0xff] %v14761_v3 }
  0x2c   : > { %526 = vst [vmem:[#allocation2 + $0x290] sm:$0xff] %v14761_v3  ;;  %527 = vst [vmem:[#allocation2 + $0x298] sm:$0xff] %v14761_v3  ;;  %14139 = vmatpush3.bf16.msra.mxu0 %v14421_v22 }
  0x2d   : > { %528 = vst [vmem:[#allocation2 + $0x2a0] sm:$0xff] %v14761_v3  ;;  %529 = vst [vmem:[#allocation2 + $0x2a8] sm:$0xff] %v14761_v3  ;;  %12459 = vmatpush3.bf16.msra.mxu1 %v14423_v27  ;;  %12556 = vmatprep.subr.bf16.mxu0 %v14426_v30 }
  0x2e   : > { %530 = vst [vmem:[#allocation2 + $0x2b0] sm:$0xff] %v14761_v3  ;;  %531 = vst [vmem:[#allocation2 + $0x2b8] sm:$0xff] %v14761_v3 }
  0x2f   : > { %532 = vst [vmem:[#allocation2 + $0x2c0] sm:$0xff] %v14761_v3  ;;  %533 = vst [vmem:[#allocation2 + $0x2c8] sm:$0xff] %v14761_v3  ;;  %14141 = vmatmul.mubr.bf16.vlgmr.msra.gmra.mrb[0].mxu0 %v14425_v36 }
  0x30   : > { %534 = vst [vmem:[#allocation2 + $0x2d0] sm:$0xff] %v14761_v3  ;;  %535 = vst [vmem:[#allocation2 + $0x2d8] sm:$0xff] %v14761_v3  ;;  %v1536_v37 = vld [vmem:[#allocation2 + $0x268] sm:$0xf0]  ;;  %3442 = vmatmul.mubr.bf16.vlgmr.msra.gmra.mrb[0].mxu1 %v1456_v41  ;;  %12557 = vmatpush3.bf16.msra.mxu0 %v14427_v38 }
  0x31   : > { %536 = vst [vmem:[#allocation2 + $0x2e0] sm:$0xff] %v14761_v3  ;;  %537 = vst [vmem:[#allocation2 + $0x2e8] sm:$0xff] %v14761_v3  ;;  %v1537_v39 = vld [vmem:[#allocation2 + $0x270] sm:$0xf]  ;;  %v1602_v40 = vrot.slane %v1536_v37, 4  ;;  %14144 = vmatprep.mubr.bf16.mxu0 %v14428_v42  ;;  %12558 = vmatprep.subr.bf16.mxu0 %v14430_v47  ;;  %v14458_v47 = vld [vmem:[%s19994_s2 + $0xf8] sm:$0xff]  }
  0x32   : > { %538 = vst [vmem:[#allocation2 + $0x2f0] sm:$0xff] %v14761_v3  ;;  %539 = vst [vmem:[#allocation2 + $0x2f8] sm:$0xff] %v14761_v3  ;;  %v1603_v43 = vrot.slane %v1537_v39, 4  ;;  %v1391_v44 = vld [vmem:[#allocation2 + $0x268] sm:$0xfe]  ;;  %v14444_v37 = vld [vmem:[%s15128_s28 + $0x50] sm:$0xff]  }
  0x33   : > { %540 = vst [vmem:[#allocation2 + $0x300] sm:$0xff] %v14761_v3  ;;  %541 = vst [vmem:[#allocation2 + $0x308] sm:$0xff] %v14761_v3  ;;  %v1392_v45 = vld [vmem:[#allocation2 + $0x270] sm:$0x1]  ;;  %v1457_v46 = vrot.slane %v1391_v44, 1 }
  0x34   : > { %542 = vst [vmem:[#allocation2 + $0x310] sm:$0xff] %v14761_v3  ;;  %543 = vst [vmem:[#allocation2 + $0x318] sm:$0xff] %v14761_v3  ;;  %v1604_v48 = vsel %vm1598_vm0, %v1602_v40, %v1603_v43  ;;  %v1458_v49 = vrot.slane %v1392_v45, 1  ;;  %v1538_v51 = vld [vmem:[#allocation2 + $0x288] sm:$0xf0]  ;;  %12559 = vmatpush3.bf16.msra.mxu0 %v14431_v50  ;;  %v14452_v39 = vld [vmem:[%s19994_s2 + $0xf0] sm:$0xff]  }
  0x35   : > { %544 = vst [vmem:[#allocation2 + $0x320] sm:$0xff] %v14761_v3  ;;  %545 = vst [vmem:[#allocation2 + $0x328] sm:$0xff] %v14761_v3  ;;  %3449 = vmatprep.mubr.bf16.mxu1 %v1604_v48  ;;  %v1539_v52 = vld [vmem:[#allocation2 + $0x290] sm:$0xf]  ;;  %v1605_v53 = vrot.slane %v1538_v51, 4  ;;  %12560 = vmatprep.subr.bf16.mxu0 %v14434_v55  ;;  %v14459_v55 = vld [vmem:[%s19994_s2 + $0xb8] sm:$0xff]  }
  0x36   : > { %546 = vst [vmem:[#allocation2 + $0x330] sm:$0xff] %v14761_v3  ;;  %547 = vst [vmem:[#allocation2 + $0x338] sm:$0xff] %v14761_v3  ;;  %v1606_v54 = vrot.slane %v1539_v52, 4  ;;  %v1459_v58 = vsel %vm1453_vm1, %v1457_v46, %v1458_v49  ;;  %v1393_v61 = vld [vmem:[#allocation2 + $0x288] sm:$0xfe]  ;;  %v14453_v40 = vld [vmem:[%s19994_s2 + $0xb0] sm:$0xff]  }
  0x37   : > { %548 = vst [vmem:[#allocation2 + $0x340] sm:$0xff] %v14761_v3  ;;  %549 = vst [vmem:[#allocation2 + $0x348] sm:$0xff] %v14761_v3  ;;  %v1394_v62 = vld [vmem:[#allocation2 + $0x290] sm:$0x1]  ;;  %14145 = vmatmul.mubr.bf16.gmra.mrb[4].mxu0 %v14429_v56  ;;  %v1540_v63 = vld [vmem:[#allocation2 + $0x2a8] sm:$0xf0] }
  0x38   : > { %550 = vst [vmem:[#allocation2 + $0x350] sm:$0xff] %v14761_v3  ;;  %551 = vst [vmem:[#allocation2 + $0x358] sm:$0xff] %v14761_v3  ;;  %v1607_v60 = vsel %vm1598_vm0, %v1605_v53, %v1606_v54  ;;  %v1541_v0 = vld [vmem:[#allocation2 + $0x2b0] sm:$0xf]  ;;  %3450 = vmatmul.mubr.bf16.gmra.mrb[4].mxu1 %v1459_v58  ;;  %14148 = vmatprep.mubr.bf16.mxu0 %v14432_v57  ;;  %v1461_v4 = vrot.slane %v1394_v62, 1  ;;  %v1608_v6 = vrot.slane %v1540_v63, 4 }
  0x39   : > { %552 = vst [vmem:[#allocation2 + $0x360] sm:$0xff] %v14761_v3  ;;  %553 = vst [vmem:[#allocation2 + $0x368] sm:$0xff] %v14761_v3  ;;  %3457 = vmatprep.mubr.bf16.mxu1 %v1607_v60  ;;  %12561 = vmatpush3.bf16.msra.mxu0 %v14435_v59  ;;  %v1609_v7 = vrot.slane %v1541_v0, 4  ;;  %v1395_v10 = vld [vmem:[#allocation2 + $0x2a8] sm:$0xfe]  ;;  %v14445_v49 = vld [vmem:[%s15128_s28 + $0x58] sm:$0xff]  }
  0x3a   : > { %554 = vst [vmem:[#allocation2 + $0x370] sm:$0xff] %v14761_v3  ;;  %555 = vst [vmem:[#allocation2 + $0x378] sm:$0xff] %v14761_v3  ;;  %12562 = vmatprep.subr.bf16.mxu0 %v14438_v1  ;;  %v1396_v13 = vld [vmem:[#allocation2 + $0x2b0] sm:$0x1]  ;;  %v1542_v14 = vld [vmem:[#allocation2 + $0x2c8] sm:$0xf0] }
  0x3b   : > { %556 = vst [vmem:[#allocation2 + $0x380] sm:$0xff] %v14761_v3  ;;  %557 = vst [vmem:[#allocation2 + $0x388] sm:$0xff] %v14761_v3  ;;  %v1610_v12 = vsel %vm1598_vm0, %v1608_v6, %v1609_v7  ;;  %v1543_v15 = vld [vmem:[#allocation2 + $0x2d0] sm:$0xf]  ;;  %v1463_v17 = vrot.slane %v1395_v10, 1  ;;  %v1464_v18 = vrot.slane %v1396_v13, 1 }
  0x3c   : > { %558 = vst [vmem:[#allocation2 + $0x390] sm:$0xff] %v14761_v3  ;;  %559 = vst [vmem:[#allocation2 + $0x398] sm:$0xff] %v14761_v3  ;;  %v1397_v19 = vld [vmem:[#allocation2 + $0x2c8] sm:$0xfe]  ;;  %v1611_v21 = vrot.slane %v1542_v14, 4  ;;  %v1612_v22 = vrot.slane %v1543_v15, 4 }
  0x3d   : > { %560 = vst [vmem:[#allocation2 + $0x3a0] sm:$0xff] %v14761_v3  ;;  %561 = vst [vmem:[#allocation2 + $0x3a8] sm:$0xff] %v14761_v3  ;;  %12563 = vmatpush3.bf16.msra.mxu0 %v14439_v5  ;;  %v1398_v25 = vld [vmem:[#allocation2 + $0x2d0] sm:$0x1]  ;;  %v1466_v26 = vrot.slane %v1397_v19, 1  ;;  %v1465_v29 = vsel %vm1453_vm1, %v1463_v17, %v1464_v18  ;;  %v14462_v56 = vld [vmem:[%s19994_s2 + $0x1c0] sm:$0xff]  }
  0x3e   : > { %562 = vst [vmem:[#allocation2 + $0x3b0] sm:$0xff] %v14761_v3  ;;  %563 = vst [vmem:[#allocation2 + $0x3b8] sm:$0xff] %v14761_v3  ;;  %12564 = vmatprep.subr.bf16.mxu0 %v14442_v11  ;;  %v1544_v27 = vld [vmem:[#allocation2 + $0x2e8] sm:$0xf0]  ;;  %v1545_v30 = vld [vmem:[#allocation2 + $0x2f0] sm:$0xf]  ;;  %v1613_v31 = vsel %vm1598_vm0, %v1611_v21, %v1612_v22 }
  0x3f   : > { %564 = vst [vmem:[#allocation2 + $0x3c0] sm:$0xff] %v14761_v3  ;;  %565 = vst [vmem:[#allocation2 + $0x3c8] sm:$0xff] %v14761_v3  ;;  %14149 = vmatmul.mubr.bf16.gmra.mrb[8].mxu0 %v14433_v2  ;;  %v1467_v35 = vrot.slane %v1398_v25, 1  ;;  %v1614_v36 = vrot.slane %v1544_v27, 4  ;;  %v1615_v38 = vrot.slane %v1545_v30, 4  ;;  %v14448_v59 = vld [vmem:[%s15128_s28 + $0x60] sm:$0xff]  }
  0x40   : > { %566 = vst [vmem:[#allocation2 + $0x3d0] sm:$0xff] %v14761_v3  ;;  %567 = vst [vmem:[#allocation2 + $0x3d8] sm:$0xff] %v14761_v3  ;;  %14152 = vmatprep.mubr.bf16.mxu0 %v14436_v8  ;;  %v1399_v41 = vld [vmem:[#allocation2 + $0x2e8] sm:$0xfe]  ;;  %v14455_v43 = vld [vmem:[%s15128_s28 + $0x8] ss:$0 sps:$4 sm:$0xff]  }
  0x41   : > { %568 = vst [vmem:[#allocation2 + $0x3e0] sm:$0xff] %v14761_v3  ;;  %569 = vst [vmem:[#allocation2 + $0x3e8] sm:$0xff] %v14761_v3  ;;  %12565 = vmatpush3.bf16.msra.mxu0 %v14443_v16  ;;  %v1468_v42 = vsel %vm1453_vm1, %v1466_v26, %v1467_v35  ;;  %v14456_v44 = vld [vmem:[%s15128_s28 + $0xc] ss:$0 sps:$4 sm:$0xff]   ;;  %v1616_v45 = vsel %vm1598_vm0, %v1614_v36, %v1615_v38  ;;  %v1400_v46 = vld [vmem:[#allocation2 + $0x2f0] sm:$0x1] }
  0x42   : > { %570 = vst [vmem:[#allocation2 + $0x3f0] sm:$0xff] %v14761_v3  ;;  %571 = vst [vmem:[#allocation2 + $0x3f8] sm:$0xff] %v14761_v3  ;;  %12566 = vmatprep.subr.bf16.mxu0 %v14446_v24  ;;  %v1469_v50 = vrot.slane %v1399_v41, 1  ;;  %v1470_v51 = vrot.slane %v1400_v46, 1  ;;  %v14460_v57 = vld [vmem:[%s15128_s28 + $0x10] ss:$0 sps:$4 sm:$0xff]  }
  0x43   : > { %572 = vst [vmem:[#allocation2 + $0x400] sm:$0xff] %v14761_v3  ;;  %573 = vst [vmem:[#allocation2 + $0x408] sm:$0xff] %v14761_v3  ;;  %v14461_v58 = vld [vmem:[%s15128_s28 + $0x14] ss:$0 sps:$4 sm:$0xff]   ;;  %v14464_v6 = vld [vmem:[%s15128_s28 + $0x18] ss:$0 sps:$4 sm:$0xff]  }
  0x44   : > { %574 = vst [vmem:[#allocation2 + $0x410] sm:$0xff] %v14761_v3  ;;  %575 = vst [vmem:[#allocation2 + $0x418] sm:$0xff] %v14761_v3  ;;  %v1471_v62 = vsel %vm1453_vm1, %v1469_v50, %v1470_v51  ;;  %v14465_v7 = vld [vmem:[%s15128_s28 + $0x1c] ss:$0 sps:$4 sm:$0xff]   ;;  %v14451_v8 = vld [vmem:[%s15128_s28 + $0x68] sm:$0xff]  }
  0x45   : > { %576 = vst [vmem:[#allocation2 + $0x420] sm:$0xff] %v14761_v3  ;;  %577 = vst [vmem:[#allocation2 + $0x428] sm:$0xff] %v14761_v3  ;;  %12567 = vmatpush3.bf16.msra.mxu0 %v14447_v28  ;;  %v14474_v18 = vld [vmem:[%s19994_s2 + $0x140] sm:$0xff]   ;;  %v14457_v27 = vld [vmem:[%s15128_s28 + $0x78] sm:$0xff]  }
  0x46   : > { %578 = vst [vmem:[#allocation2 + $0x430] sm:$0xff] %v14761_v3  ;;  %579 = vst [vmem:[#allocation2 + $0x438] sm:$0xff] %v14761_v3  ;;  %12568 = vmatprep.subr.bf16.mxu0 %v14452_v39  ;;  %v14466_v19 = vld [vmem:[%s15128_s28 + $0x20] ss:$0 sps:$4 sm:$0xff]   ;;  %12668 = vmatprep.subr.bf16.mxu1 %v14474_v18  ;;  %v1679_v28 = vld [vmem:[#allocation2 + $0x248] sm:$0x80] }
  0x47   : > { %580 = vst [vmem:[#allocation2 + $0x440] sm:$0xff] %v14761_v3  ;;  %581 = vst [vmem:[#allocation2 + $0x448] sm:$0xff] %v14761_v3  ;;  %14153 = vmatmul.mubr.bf16.gmra.mrb[12].mxu0 %v14437_v20  ;;  %v14467_v20 = vld [vmem:[%s15128_s28 + $0x24] ss:$0 sps:$4 sm:$0xff]   ;;  %v14471_v41 = vld [vmem:[%s15128_s28 + $0x2c] ss:$0 sps:$4 sm:$0xff]  }
  0x48   : > { %582 = vst [vmem:[#allocation2 + $0x450] sm:$0xff] %v14761_v3  ;;  %583 = vst [vmem:[#allocation2 + $0x458] sm:$0xff] %v14761_v3  ;;  %14156 = vmatprep.mubr.bf16.mxu0 %v14440_v23  ;;  %v1681_v46 = vld [vmem:[#allocation2 + $0x268] sm:$0x80] }
  0x49   : > { %584 = vst [vmem:[#allocation2 + $0x460] sm:$0xff] %v14761_v3  ;;  %585 = vst [vmem:[#allocation2 + $0x468] sm:$0xff] %v14761_v3  ;;  %12569 = vmatpush3.bf16.msra.mxu0 %v14453_v40  ;;  %v14470_v40 = vld [vmem:[%s15128_s28 + $0x28] ss:$0 sps:$4 sm:$0xff]  }
  0x4a   : > { %586 = vst [vmem:[#allocation2 + $0x470] sm:$0xff] %v14761_v3  ;;  %587 = vst [vmem:[#allocation2 + $0x478] sm:$0xff] %v14761_v3  ;;  %12570 = vmatprep.subr.bf16.mxu0 %v14458_v47  ;;  %v14463_v47 = vld [vmem:[%s19994_s2 + $0x180] sm:$0xff]  }
  0x4b   : > { %588 = vst [vmem:[#allocation2 + $0x480] sm:$0xff] %v14761_v3  ;;  %589 = vst [vmem:[#allocation2 + $0x488] sm:$0xff] %v14761_v3 }
  0x4c   : > { %590 = vst [vmem:[#allocation2 + $0x490] sm:$0xff] %v14761_v3  ;;  %591 = vst [vmem:[#allocation2 + $0x498] sm:$0xff] %v14761_v3 }
  0x4d   : > { %592 = vst [vmem:[#allocation2 + $0x4a0] sm:$0xff] %v14761_v3  ;;  %593 = vst [vmem:[#allocation2 + $0x4a8] sm:$0xff] %v14761_v3  ;;  %12571 = vmatpush3.bf16.msra.mxu0 %v14459_v55  ;;  %v1747_v55 = vrot.slane %v1681_v46, 7 }
  0x4e   : > { %594 = vst [vmem:[#allocation2 + $0x4b0] sm:$0xff] %v14761_v3  ;;  %595 = vst [vmem:[#allocation2 + $0x4b8] sm:$0xff] %v14761_v3  ;;  %12780 = vmatprep.subr.bf16.mxu0 %v14462_v56  ;;  %v14468_v56 = vld [vmem:[%s19994_s2 + $0x1c8] sm:$0xff]  }
  0x4f   : > { %596 = vst [vmem:[#allocation2 + $0x4c0] sm:$0xff] %v14761_v3  ;;  %597 = vst [vmem:[#allocation2 + $0x4c8] sm:$0xff] %v14761_v3  ;;  %14157 = vmatmul.mubr.bf16.gmra.mrb[16].mxu0 %v14441_v34 }
  0x50   : > { %598 = vst [vmem:[#allocation2 + $0x4d0] sm:$0xff] %v14761_v3  ;;  %599 = vst [vmem:[#allocation2 + $0x4d8] sm:$0xff] %v14761_v3  ;;  %14160 = vmatprep.mubr.bf16.mxu0 %v14444_v37 }
  0x51   : > { %600 = vst [vmem:[#allocation2 + $0x4e0] sm:$0xff] %v14761_v3  ;;  %601 = vst [vmem:[#allocation2 + $0x4e8] sm:$0xff] %v14761_v3 }
  0x52   : > { %602 = vst [vmem:[#allocation2 + $0x4f0] sm:$0xff] %v14761_v3  ;;  %603 = vst [vmem:[#allocation2 + $0x4f8] sm:$0xff] %v14761_v3 }
  0x53   : > { %604 = vst [vmem:[#allocation2 + $0x500] sm:$0xff] %v14761_v3  ;;  %605 = vst [vmem:[#allocation2 + $0x508] sm:$0xff] %v14761_v3 }
  0x54   : > { %606 = vst [vmem:[#allocation2 + $0x510] sm:$0xff] %v14761_v3  ;;  %607 = vst [vmem:[#allocation2 + $0x518] sm:$0xff] %v14761_v3 }
  0x55   : > { %608 = vst [vmem:[#allocation2 + $0x520] sm:$0xff] %v14761_v3  ;;  %609 = vst [vmem:[#allocation2 + $0x528] sm:$0xff] %v14761_v3 }
  0x56   : > { %610 = vst [vmem:[#allocation2 + $0x530] sm:$0xff] %v14761_v3  ;;  %611 = vst [vmem:[#allocation2 + $0x538] sm:$0xff] %v14761_v3 }
  0x57   : > { %612 = vst [vmem:[#allocation2 + $0x540] sm:$0xff] %v14761_v3  ;;  %613 = vst [vmem:[#allocation2 + $0x548] sm:$0xff] %v14761_v3  ;;  %14161 = vmatmul.mubr.bf16.gmra.mrb[20].mxu0 %v14445_v49 }
  0x58   : > { %614 = vst [vmem:[#allocation2 + $0x550] sm:$0xff] %v14761_v3  ;;  %615 = vst [vmem:[#allocation2 + $0x558] sm:$0xff] %v14761_v3  ;;  %14164 = vmatprep.mubr.bf16.mxu0 %v14448_v59 }
  0x59   : > { %616 = vst [vmem:[#allocation2 + $0x560] sm:$0xff] %v14761_v3  ;;  %617 = vst [vmem:[#allocation2 + $0x568] sm:$0xff] %v14761_v3 }
  0x5a   : > { %618 = vst [vmem:[#allocation2 + $0x570] sm:$0xff] %v14761_v3  ;;  %619 = vst [vmem:[#allocation2 + $0x578] sm:$0xff] %v14761_v3 }
  0x5b   : > { %620 = vst [vmem:[#allocation2 + $0x580] sm:$0xff] %v14761_v3  ;;  %621 = vst [vmem:[#allocation2 + $0x588] sm:$0xff] %v14761_v3 }
  0x5c   : > { %622 = vst [vmem:[#allocation2 + $0x590] sm:$0xff] %v14761_v3  ;;  %623 = vst [vmem:[#allocation2 + $0x598] sm:$0xff] %v14761_v3 }
  0x5d   : > { %624 = vst [vmem:[#allocation2 + $0x5a0] sm:$0xff] %v14761_v3  ;;  %625 = vst [vmem:[#allocation2 + $0x5a8] sm:$0xff] %v14761_v3 }
  0x5e   : > { %626 = vst [vmem:[#allocation2 + $0x5b0] sm:$0xff] %v14761_v3  ;;  %627 = vst [vmem:[#allocation2 + $0x5b8] sm:$0xff] %v14761_v3 }
  0x5f   : > { %628 = vst [vmem:[#allocation2 + $0x5c0] sm:$0xff] %v14761_v3  ;;  %629 = vst [vmem:[#allocation2 + $0x5c8] sm:$0xff] %v14761_v3  ;;  %14165 = vmatmul.mubr.bf16.gmra.mrb[24].mxu0 %v14451_v8  ;;  %v1684_v8 = vld [vmem:[#allocation2 + $0x290] sm:$0x7f] }
  0x60   : > { %630 = vst [vmem:[#allocation2 + $0x5d0] sm:$0xff] %v14761_v3  ;;  %631 = vst [vmem:[#allocation2 + $0x5d8] sm:$0xff] %v14761_v3 }
  0x61   : > { %632 = vst [vmem:[#allocation2 + $0x5e0] sm:$0xff] %v14761_v3  ;;  %633 = vst [vmem:[#allocation2 + $0x5e8] sm:$0xff] %v14761_v3 }
  0x62   : > { %634 = vst [vmem:[#allocation2 + $0x5f0] sm:$0xff] %v14761_v3  ;;  %635 = vst [vmem:[#allocation2 + $0x5f8] sm:$0xff] %v14761_v3 }
  0x63   : > { %636 = vst [vmem:[#allocation2 + $0x600] sm:$0xff] %v14761_v3  ;;  %637 = vst [vmem:[#allocation2 + $0x608] sm:$0xff] %v14761_v3 }
  0x64   : > { %638 = vst [vmem:[#allocation2 + $0x610] sm:$0xff] %v14761_v3  ;;  %639 = vst [vmem:[#allocation2 + $0x618] sm:$0xff] %v14761_v3 }
  0x65   : > { %640 = vst [vmem:[#allocation2 + $0x620] sm:$0xff] %v14761_v3  ;;  %641 = vst [vmem:[#allocation2 + $0x628] sm:$0xff] %v14761_v3 }
  0x66   : > { %642 = vst [vmem:[#allocation2 + $0x630] sm:$0xff] %v14761_v3  ;;  %643 = vst [vmem:[#allocation2 + $0x638] sm:$0xff] %v14761_v3 }
  0x67   : > { %644 = vst [vmem:[#allocation2 + $0x640] sm:$0xff] %v14761_v3  ;;  %645 = vst [vmem:[#allocation2 + $0x648] sm:$0xff] %v14761_v3 }
  0x68   : > { %646 = vst [vmem:[#allocation2 + $0x650] sm:$0xff] %v14761_v3  ;;  %647 = vst [vmem:[#allocation2 + $0x658] sm:$0xff] %v14761_v3 }
  0x69   : > { %648 = vst [vmem:[#allocation2 + $0x660] sm:$0xff] %v14761_v3  ;;  %649 = vst [vmem:[#allocation2 + $0x668] sm:$0xff] %v14761_v3 }
  0x6a   : > { %650 = vst [vmem:[#allocation2 + $0x670] sm:$0xff] %v14761_v3  ;;  %651 = vst [vmem:[#allocation2 + $0x678] sm:$0xff] %v14761_v3 }
  0x6b   : > { %652 = vst [vmem:[#allocation2 + $0x680] sm:$0xff] %v14761_v3  ;;  %653 = vst [vmem:[#allocation2 + $0x688] sm:$0xff] %v14761_v3 }
  0x6c   : > { %654 = vst [vmem:[#allocation2 + $0x690] sm:$0xff] %v14761_v3  ;;  %655 = vst [vmem:[#allocation2 + $0x698] sm:$0xff] %v14761_v3 }
  0x6d   : > { %656 = vst [vmem:[#allocation2 + $0x6a0] sm:$0xff] %v14761_v3  ;;  %657 = vst [vmem:[#allocation2 + $0x6a8] sm:$0xff] %v14761_v3 }
  0x6e   : > { %658 = vst [vmem:[#allocation2 + $0x6b0] sm:$0xff] %v14761_v3  ;;  %659 = vst [vmem:[#allocation2 + $0x6b8] sm:$0xff] %v14761_v3 }
  0x6f   : > { %660 = vst [vmem:[#allocation2 + $0x6c0] sm:$0xff] %v14761_v3  ;;  %661 = vst [vmem:[#allocation2 + $0x6c8] sm:$0xff] %v14761_v3 }
  0x70   : > { %662 = vst [vmem:[#allocation2 + $0x6d0] sm:$0xff] %v14761_v3  ;;  %663 = vst [vmem:[#allocation2 + $0x6d8] sm:$0xff] %v14761_v3 }
  0x71   : > { %664 = vst [vmem:[#allocation2 + $0x6e0] sm:$0xff] %v14761_v3  ;;  %665 = vst [vmem:[#allocation2 + $0x6e8] sm:$0xff] %v14761_v3 }
  0x72   : > { %666 = vst [vmem:[#allocation2 + $0x6f0] sm:$0xff] %v14761_v3  ;;  %667 = vst [vmem:[#allocation2 + $0x6f8] sm:$0xff] %v14761_v3 }
  0x73   : > { %668 = vst [vmem:[#allocation2 + $0x700] sm:$0xff] %v14761_v3  ;;  %669 = vst [vmem:[#allocation2 + $0x708] sm:$0xff] %v14761_v3 }
  0x74   : > { %670 = vst [vmem:[#allocation2 + $0x710] sm:$0xff] %v14761_v3  ;;  %671 = vst [vmem:[#allocation2 + $0x718] sm:$0xff] %v14761_v3 }
  0x75   : > { %672 = vst [vmem:[#allocation2 + $0x720] sm:$0xff] %v14761_v3  ;;  %673 = vst [vmem:[#allocation2 + $0x728] sm:$0xff] %v14761_v3 }
  0x76   : > { %674 = vst [vmem:[#allocation2 + $0x730] sm:$0xff] %v14761_v3  ;;  %675 = vst [vmem:[#allocation2 + $0x738] sm:$0xff] %v14761_v3  ;;  %v1460_v3 = vrot.slane %v1393_v61, 1 }
  0x77   : > { %861 = vst [vmem:[#allocation2 + $0x308] sm:$0xf0] %v14449_v32  ;;  %862 = vst [vmem:[#allocation2 + $0x310] sm:$0xf] %v14450_v33  ;;  %v14476_v32 = vld [vmem:[%s19994_s2 + $0x100] sm:$0xff]  }
  0x78   : > { %v1462_v9 = vsel %vm1453_vm1, %v1460_v3, %v1461_v4  ;;  %863 = vst [vmem:[#allocation2 + $0x328] sm:$0xf0] %v14455_v43  ;;  %864 = vst [vmem:[#allocation2 + $0x330] sm:$0xf] %v14456_v44  ;;  %12669 = vmatpush3.bf16.msra.mxu1 %v14476_v32 }
  0x79   : > { %3458 = vmatmul.mubr.bf16.gmra.mrb[8].mxu1 %v1462_v9  ;;  %865 = vst [vmem:[#allocation2 + $0x348] sm:$0xf0] %v14460_v57  ;;  %866 = vst [vmem:[#allocation2 + $0x350] sm:$0xf] %v14461_v58  ;;  %v14454_v9 = vld [vmem:[%s15128_s28 + $0x70] sm:$0xff]   ;;  %v14478_v58 = vld [vmem:[%s19994_s2 + $0x148] sm:$0xff]  }
  0x7a   : > { %3465 = vmatprep.mubr.bf16.mxu1 %v1610_v12  ;;  %867 = vst [vmem:[#allocation2 + $0x368] sm:$0xf0] %v14464_v6  ;;  %868 = vst [vmem:[#allocation2 + $0x370] sm:$0xf] %v14465_v7  ;;  %14168 = vmatprep.mubr.bf16.mxu0 %v14454_v9  ;;  %v14472_v57 = vld [vmem:[%s15128_s28 + $0x30] ss:$0 sps:$4 sm:$0xff]  }
  0x7b   : > { %869 = vst [vmem:[#allocation2 + $0x388] sm:$0xf0] %v14466_v19  ;;  %870 = vst [vmem:[#allocation2 + $0x390] sm:$0xf] %v14467_v20  ;;  %14169 = vmatmul.mubr.bf16.gmra.mrb[28].mxu0 %v14457_v27  ;;  %12670 = vmatprep.subr.bf16.mxu1 %v14478_v58  ;;  %v14469_v9 = vld [vmem:[%s19994_s2 + $0x188] sm:$0xff]  }
  0x7c   : > { %871 = vst [vmem:[#allocation2 + $0x3a8] sm:$0xf0] %v14470_v40  ;;  %872 = vst [vmem:[#allocation2 + $0x3b0] sm:$0xf] %v14471_v41  ;;  %v1686_v40 = vld [vmem:[#allocation2 + $0x2b0] sm:$0x7f] }
  0x7d   : > { %873 = vst [vmem:[#allocation2 + $0x3c8] sm:$0xf0] %v14472_v57  ;;  %v14484_v41 = vld [vmem:[%s19994_s2 + $0x158] sm:$0xff]   ;;  %v14488_v57 = vld [vmem:[%s19994_s2 + $0x160] sm:$0xff]  }
  0x7e   : > { %v1546_v48 = vld [vmem:[#allocation2 + $0x308] sm:$0xf0]  ;;  %v1547_v52 = vld [vmem:[#allocation2 + $0x310] sm:$0xf] }
  0x7f   : > { %v1617_v53 = vrot.slane %v1546_v48, 4  ;;  %v1618_v54 = vrot.slane %v1547_v52, 4  ;;  %v1401_v60 = vld [vmem:[#allocation2 + $0x308] sm:$0xfe]  ;;  %v1402_v61 = vld [vmem:[#allocation2 + $0x310] sm:$0x1] }
  0x80   : > { %v1548_v0 = vld [vmem:[#allocation2 + $0x328] sm:$0xf0]  ;;  %v1549_v1 = vld [vmem:[#allocation2 + $0x330] sm:$0xf]  ;;  %v1472_v2 = vrot.slane %v1401_v60, 1  ;;  %v1473_v3 = vrot.slane %v1402_v61, 1 }
  0x81   : > { %3466 = vmatmul.mubr.bf16.gmra.mrb[12].mxu1 %v1465_v29  ;;  %v1619_v63 = vsel %vm1598_vm0, %v1617_v53, %v1618_v54  ;;  %v1620_v4 = vrot.slane %v1548_v0, 4  ;;  %v1621_v5 = vrot.slane %v1549_v1, 4  ;;  %v1403_v11 = vld [vmem:[#allocation2 + $0x328] sm:$0xfe]  ;;  %v1825_v13 = vld [vmem:[#allocation2 + $0x310] sm:$0x1] }
  0x82   : > { %3473 = vmatprep.mubr.bf16.mxu1 %v1613_v31  ;;  %v1474_v10 = vsel %vm1453_vm1, %v1472_v2, %v1473_v3  ;;  %v1824_v12 = vld [vmem:[#allocation2 + $0x308] sm:$0xfe]  ;;  %v1404_v15 = vld [vmem:[#allocation2 + $0x330] sm:$0x1]  ;;  %v1475_v21 = vrot.slane %v1403_v11, 1  ;;  %v1889_v24 = vrot.slane %v1825_v13, 1 }
  0x83   : > { %v1622_v14 = vsel %vm1598_vm0, %v1620_v4, %v1621_v5  ;;  %v1550_v16 = vld [vmem:[#allocation2 + $0x348] sm:$0xf0]  ;;  %v1551_v17 = vld [vmem:[#allocation2 + $0x350] sm:$0xf]  ;;  %v1476_v22 = vrot.slane %v1404_v15, 1  ;;  %v1888_v23 = vrot.slane %v1824_v12, 1 }
  0x84   : > { %v1623_v25 = vrot.slane %v1550_v16, 4  ;;  %v1624_v26 = vrot.slane %v1551_v17, 4  ;;  %v1680_v29 = vld [vmem:[#allocation2 + $0x250] sm:$0x7f]  ;;  %v1405_v30 = vld [vmem:[#allocation2 + $0x348] sm:$0xfe] }
  0x85   : > { %v1406_v31 = vld [vmem:[#allocation2 + $0x350] sm:$0x1]  ;;  %v1477_v33 = vsel %vm1453_vm1, %v1475_v21, %v1476_v22  ;;  %v1890_v34 = vsel %vm1453_vm1, %v1888_v23, %v1889_v24  ;;  %v1552_v35 = vld [vmem:[#allocation2 + $0x368] sm:$0xf0]  ;;  %v1745_v43 = vrot.slane %v1680_v29, 7  ;;  %v1478_v44 = vrot.slane %v1405_v30, 1 }
  0x86   : > { %v1826_v36 = vld [vmem:[#allocation2 + $0x328] sm:$0xfe]  ;;  %v1827_v37 = vld [vmem:[#allocation2 + $0x330] sm:$0x1]  ;;  %v1625_v38 = vsel %vm1598_vm0, %v1623_v25, %v1624_v26  ;;  %3602 = vmatprep.mubr.bf16.mxu0 %v1890_v34  ;;  %v1626_v48 = vrot.slane %v1552_v35, 4  ;;  %v1751_v22 = vrot.slane %v1684_v8, 7 }
  0x87   : > { %v1553_v39 = vld [vmem:[#allocation2 + $0x370] sm:$0xf]  ;;  %v1891_v50 = vrot.slane %v1826_v36, 1  ;;  %v1892_v51 = vrot.slane %v1827_v37, 1  ;;  %v1828_v53 = vld [vmem:[#allocation2 + $0x348] sm:$0xfe] }
  0x88   : > { %v1627_v49 = vrot.slane %v1553_v39, 4  ;;  %v1682_v52 = vld [vmem:[#allocation2 + $0x270] sm:$0x7f]  ;;  %v15257_v61 = vld [vmem:[#allocation2 + $0x288] sm:$0x80]  ;;  %v1894_v6 = vrot.slane %v1828_v53, 1 }
  0x89   : > { %3474 = vmatmul.mubr.bf16.gmra.mrb[16].mxu1 %v1468_v42  ;;  %v1744_v42 = vrot.slane %v1679_v28, 7  ;;  %v1829_v60 = vld [vmem:[#allocation2 + $0x350] sm:$0x1]  ;;  %v1893_v0 = vsel %vm1453_vm1, %v1891_v50, %v1892_v51  ;;  %v1407_v1 = vld [vmem:[#allocation2 + $0x368] sm:$0xfe]  ;;  %v1748_v5 = vrot.slane %v1682_v52, 7 }
  0x8a   : > { %3481 = vmatprep.mubr.bf16.mxu1 %v1616_v45  ;;  %v1479_v45 = vrot.slane %v1406_v31, 1  ;;  %v1408_v2 = vld [vmem:[#allocation2 + $0x370] sm:$0x1]  ;;  %v1554_v3 = vld [vmem:[#allocation2 + $0x388] sm:$0xf0]  ;;  %v1895_v7 = vrot.slane %v1829_v60, 1 }
  0x8b   : > { %v1746_v54 = vsel %vm1743_vm2, %v1744_v42, %v1745_v43  ;;  %v1555_v4 = vld [vmem:[#allocation2 + $0x390] sm:$0xf]  ;;  %v1482_v11 = vrot.slane %v1408_v2, 1  ;;  %v1629_v12 = vrot.slane %v1554_v3, 4  ;;  %v1750_v13 = vrot.slane %v15257_v61, 7  ;;  %v14479_v15 = vld [vmem:[%s19994_s2 + $0x108] sm:$0xff]  }
  0x8c   : > { %v1480_v59 = vsel %vm1453_vm1, %v1478_v44, %v1479_v45  ;;  %3603 = vmatmul.mubr.bf16.vlgmr.msra.gmra.mrb[32].mxu0 %v1746_v54  ;;  %v1630_v16 = vrot.slane %v1555_v4, 4  ;;  %v14482_v17 = vld [vmem:[%s19994_s2 + $0x150] sm:$0xff]   ;;  %12671 = vmatpush3.bf16.msra.mxu1 %v14479_v15  ;;  %v1749_v18 = vsel %vm1743_vm2, %v1747_v55, %v1748_v5  ;;  %v1830_v19 = vld [vmem:[#allocation2 + $0x368] sm:$0xfe]  ;;  %v1896_v21 = vsel %vm1453_vm1, %v1894_v6, %v1895_v7  ;;  %v14480_v30 = vld [vmem:[%s15128_s28 + $0x38] ss:$0 sps:$4 sm:$0xff]  }
  0x8d   : > { %12781 = vmatpush3.bf16.msra.mxu0 %v14463_v47  ;;  %3610 = vmatprep.mubr.bf16.mxu0 %v1893_v0  ;;  %v1831_v23 = vld [vmem:[#allocation2 + $0x370] sm:$0x1]  ;;  %v1409_v26 = vld [vmem:[#allocation2 + $0x388] sm:$0xfe]  ;;  %v14481_v31 = vld [vmem:[%s15128_s28 + $0x3c] ss:$0 sps:$4 sm:$0xff]   ;;  %v1752_v42 = vsel %vm1743_vm2, %v1750_v13, %v1751_v22 }
  0x8e   : > { %12782 = vmatprep.subr.bf16.mxu0 %v14468_v56  ;;  %12672 = vmatprep.subr.bf16.mxu1 %v14482_v17  ;;  %v14477_v24 = vld [vmem:[%s19994_s2 + $0x190] sm:$0xff]   ;;  %v1631_v25 = vsel %vm1598_vm0, %v1629_v12, %v1630_v16  ;;  %v1556_v28 = vld [vmem:[#allocation2 + $0x3a8] sm:$0xf0]  ;;  %v1484_v32 = vrot.slane %v1409_v26, 1  ;;  %v1897_v34 = vrot.slane %v1830_v19, 1  ;;  %v1898_v35 = vrot.slane %v1831_v23, 1 }
  0x8f   : > { %v1410_v27 = vld [vmem:[#allocation2 + $0x390] sm:$0x1]  ;;  %v1632_v36 = vrot.slane %v1556_v28, 4  ;;  %875 = vst [vmem:[#allocation2 + $0x3e8] sm:$0xf0] %v14480_v30  ;;  %v14485_v51 = vld [vmem:[%s19994_s2 + $0x118] sm:$0xff]  }
  0x90   : > { %v1557_v29 = vld [vmem:[#allocation2 + $0x3b0] sm:$0xf]  ;;  %876 = vst [vmem:[#allocation2 + $0x3f0] sm:$0xf] %v14481_v31  ;;  %v1685_v39 = vld [vmem:[#allocation2 + $0x2a8] sm:$0x80] }
  0x91   : > { %3482 = vmatmul.mubr.bf16.gmra.mrb[20].mxu1 %v1471_v62  ;;  %v14473_v62 = vld [vmem:[%s15128_s28 + $0x34] ss:$0 sps:$4 sm:$0xff]   ;;  %12783 = vmatpush3.bf16.msra.mxu0 %v14469_v9  ;;  %v1633_v37 = vrot.slane %v1557_v29, 4  ;;  %v1411_v43 = vld [vmem:[#allocation2 + $0x3a8] sm:$0xfe]  ;;  %v1753_v55 = vrot.slane %v1685_v39, 7 }
  0x92   : > { %3489 = vmatprep.mubr.bf16.mxu1 %v1619_v63  ;;  %v1628_v63 = vsel %vm1598_vm0, %v1626_v48, %v1627_v49  ;;  %874 = vst [vmem:[#allocation2 + $0x3d0] sm:$0xf] %v14473_v62  ;;  %v1412_v44 = vld [vmem:[#allocation2 + $0x3b0] sm:$0x1]  ;;  %v1832_v45 = vld [vmem:[#allocation2 + $0x388] sm:$0xfe]  ;;  %v1899_v48 = vsel %vm1453_vm1, %v1897_v34, %v1898_v35 }
  0x93   : > { %v1833_v46 = vld [vmem:[#allocation2 + $0x390] sm:$0x1]  ;;  %v1558_v49 = vld [vmem:[#allocation2 + $0x3c8] sm:$0xf0]  ;;  %v1634_v50 = vsel %vm1598_vm0, %v1632_v36, %v1633_v37  ;;  %v14486_v53 = vld [vmem:[%s15128_s28 + $0x40] ss:$0 sps:$4 sm:$0xff]  }
  0x94   : > { %3611 = vmatmul.mubr.bf16.gmra.mrb[36].mxu0 %v1749_v18  ;;  %v14487_v54 = vld [vmem:[%s15128_s28 + $0x44] ss:$0 sps:$4 sm:$0xff]   ;;  %v1754_v56 = vrot.slane %v1686_v40, 7  ;;  %v1487_v58 = vrot.slane %v1411_v43, 1  ;;  %v1900_v60 = vrot.slane %v1832_v45, 1  ;;  %v1901_v61 = vrot.slane %v1833_v46, 1 }
  0x95   : > { %3618 = vmatprep.mubr.bf16.mxu0 %v1896_v21  ;;  %877 = vst [vmem:[#allocation2 + $0x408] sm:$0xf0] %v14486_v53  ;;  %878 = vst [vmem:[#allocation2 + $0x410] sm:$0xf] %v14487_v54  ;;  %v1635_v62 = vrot.slane %v1558_v49, 4  ;;  %v14489_v9 = vld [vmem:[%s19994_s2 + $0x1d8] sm:$0xff]  }
  0x96   : > { %v1687_v0 = vld [vmem:[#allocation2 + $0x2c8] sm:$0x80]  ;;  %v1688_v3 = vld [vmem:[#allocation2 + $0x2d0] sm:$0x7f]  ;;  %v1755_v5 = vsel %vm1743_vm2, %v1753_v55, %v1754_v56  ;;  %v14491_v16 = vld [vmem:[%s19994_s2 + $0x198] sm:$0xff]  }
  0x97   : > { %v1834_v4 = vld [vmem:[#allocation2 + $0x3a8] sm:$0xfe]  ;;  %v1835_v7 = vld [vmem:[#allocation2 + $0x3b0] sm:$0x1]  ;;  %v1756_v15 = vrot.slane %v1687_v0, 7  ;;  %v1757_v19 = vrot.slane %v1688_v3, 7 }
  0x98   : > { %v1560_v6 = vld [vmem:[#allocation2 + $0x3e8] sm:$0xf0]  ;;  %v1561_v12 = vld [vmem:[#allocation2 + $0x3f0] sm:$0xf]  ;;  %v1904_v23 = vrot.slane %v1835_v7, 1 }
  0x99   : > { %3490 = vmatmul.mubr.bf16.gmra.mrb[24].mxu1 %v1474_v10  ;;  %v1481_v10 = vrot.slane %v1407_v1, 1  ;;  %v1559_v52 = vld [vmem:[#allocation2 + $0x3d0] sm:$0xf]  ;;  %v1413_v1 = vld [vmem:[#allocation2 + $0x3c8] sm:$0xfe]  ;;  %v1638_v22 = vrot.slane %v1560_v6, 4  ;;  %v1758_v30 = vsel %vm1743_vm2, %v1756_v15, %v1757_v19 }
  0x9a   : > { %3497 = vmatprep.mubr.bf16.mxu1 %v1622_v14  ;;  %v14475_v14 = vld [vmem:[%s19994_s2 + $0x1d0] sm:$0xff]   ;;  %v15303_v8 = vld [vmem:[#allocation2 + $0x2e8] sm:$0x80]  ;;  %v1490_v17 = vrot.slane %v1413_v1, 1  ;;  %v14494_v29 = vld [vmem:[%s15128_s28 + $0x48] ss:$0 sps:$4 sm:$0xff]  }
  0x9b   : > { %v1483_v20 = vsel %vm1453_vm1, %v1481_v10, %v1482_v11  ;;  %12784 = vmatprep.subr.bf16.mxu0 %v14475_v14  ;;  %v1414_v2 = vld [vmem:[#allocation2 + $0x3d0] sm:$0x1]  ;;  %v1902_v11 = vsel %vm1453_vm1, %v1900_v60, %v1901_v61  ;;  %v14490_v14 = vld [vmem:[%s19994_s2 + $0x120] sm:$0xff]   ;;  %v14492_v26 = vld [vmem:[%s19994_s2 + $0x168] sm:$0xff]   ;;  %879 = vst [vmem:[#allocation2 + $0x428] sm:$0xf0] %v14494_v29 }
  0x9c   : > { %12785 = vmatpush3.bf16.msra.mxu0 %v14477_v24  ;;  %v1491_v18 = vrot.slane %v1414_v2, 1  ;;  %v1690_v21 = vld [vmem:[#allocation2 + $0x2f0] sm:$0x7f]  ;;  %v1759_v24 = vrot.slane %v15303_v8, 7  ;;  %v14493_v28 = vld [vmem:[%s19994_s2 + $0x128] sm:$0xff]   ;;  %v14501_v8 = vld [vmem:[%s19994_s2 + $0x1a0] sm:$0xff]  }
  0x9d   : > { %3619 = vmatmul.mubr.bf16.gmra.mrb[40].mxu0 %v1752_v42  ;;  %12786 = vmatprep.subr.bf16.mxu0 %v14489_v9  ;;  %v1415_v31 = vld [vmem:[#allocation2 + $0x3e8] sm:$0xfe]  ;;  %v1416_v36 = vld [vmem:[#allocation2 + $0x3f0] sm:$0x1]  ;;  %v1760_v37 = vrot.slane %v1690_v21, 7 }
  0x9e   : > { %3626 = vmatprep.mubr.bf16.mxu0 %v1899_v48  ;;  %v1492_v34 = vsel %vm1453_vm1, %v1490_v17, %v1491_v18  ;;  %v1493_v42 = vrot.slane %v1415_v31, 1  ;;  %v14496_v43 = vld [vmem:[%s19994_s2 + $0x170] sm:$0xff]   ;;  %v1494_v46 = vrot.slane %v1416_v36, 1  ;;  %v1417_v53 = vld [vmem:[#allocation2 + $0x408] sm:$0xfe] }
  0x9f   : > { %v14497_v45 = vld [vmem:[%s19994_s2 + $0x130] sm:$0xff]   ;;  %v1693_v9 = vld [vmem:[#allocation2 + $0x328] sm:$0x80] }
  0xa0   : > { %12787 = vmatpush3.bf16.msra.mxu0 %v14491_v16  ;;  %v1692_v54 = vld [vmem:[#allocation2 + $0x310] sm:$0x7f]  ;;  %v1495_v55 = vsel %vm1453_vm1, %v1493_v42, %v1494_v46  ;;  %v2112_v17 = vld [vmem:[#allocation2 + $0x308] sm:$0x80] }
  0xa1   : > { %3498 = vmatmul.mubr.bf16.gmra.mrb[28].mxu1 %v1477_v33  ;;  %v1485_v33 = vrot.slane %v1410_v27, 1  ;;  %v1639_v27 = vrot.slane %v1561_v12, 4  ;;  %v1839_v61 = vld [vmem:[#allocation2 + $0x3f0] sm:$0x1]  ;;  %v1840_v12 = vld [vmem:[#allocation2 + $0x408] sm:$0xfe] }
  0xa2   : > { %3505 = vmatprep.mubr.bf16.mxu1 %v1625_v38  ;;  %v14483_v38 = vld [vmem:[%s19994_s2 + $0x110] sm:$0xff]   ;;  %v1564_v0 = vld [vmem:[#allocation2 + $0x428] sm:$0xf0] }
  0xa3   : > { %12673 = vmatpush3.bf16.msra.mxu1 %v14483_v38  ;;  %v1486_v47 = vsel %vm1453_vm1, %v1484_v32, %v1485_v33  ;;  %v1837_v32 = vld [vmem:[#allocation2 + $0x3d0] sm:$0x1]  ;;  %v14495_v33 = vld [vmem:[%s15128_s28 + $0x4c] ss:$0 sps:$4 sm:$0xff]   ;;  %v1640_v40 = vsel %vm1598_vm0, %v1638_v22, %v1639_v27  ;;  %v1644_v6 = vrot.slane %v1564_v0, 4 }
  0xa4   : > { %12674 = vmatprep.subr.bf16.mxu1 %v14484_v41  ;;  %v1562_v38 = vld [vmem:[#allocation2 + $0x408] sm:$0xf0]  ;;  %v1563_v41 = vld [vmem:[#allocation2 + $0x410] sm:$0xf]  ;;  %880 = vst [vmem:[#allocation2 + $0x430] sm:$0xf] %v14495_v33 }
  0xa5   : > { %3627 = vmatmul.mubr.bf16.gmra.mrb[44].mxu0 %v1755_v5  ;;  %v1641_v48 = vrot.slane %v1562_v38, 4  ;;  %v1642_v49 = vrot.slane %v1563_v41, 4  ;;  %v14500_v5 = vld [vmem:[%s19994_s2 + $0x1e0] sm:$0xff]   ;;  %v1419_v16 = vld [vmem:[#allocation2 + $0x428] sm:$0xfe]  ;;  %v14510_v46 = vld [vmem:[%s19994_s2 + $0x1f0] sm:$0xff]  }
  0xa6   : > { %3634 = vmatprep.mubr.bf16.mxu0 %v1902_v11  ;;  %12788 = vmatprep.subr.bf16.mxu0 %v14500_v5  ;;  %v1694_v11 = vld [vmem:[#allocation2 + $0x330] sm:$0x7f]  ;;  %v14504_v27 = vld [vmem:[%s19994_s2 + $0x1e8] sm:$0xff]  }
  0xa7   : > { %12675 = vmatpush3.bf16.msra.mxu1 %v14485_v51  ;;  %v1691_v51 = vld [vmem:[#allocation2 + $0x308] sm:$0x80]  ;;  %12789 = vmatpush3.bf16.msra.mxu0 %v14501_v8  ;;  %v2113_v18 = vld [vmem:[#allocation2 + $0x310] sm:$0x7f] }
  0xa8   : > { %12676 = vmatprep.subr.bf16.mxu1 %v14488_v57  ;;  %v1418_v57 = vld [vmem:[#allocation2 + $0x410] sm:$0x1]  ;;  %v1762_v60 = vrot.slane %v1691_v51, 7  ;;  %v14503_v22 = vld [vmem:[%s15128_s28 + $0x54] ss:$0 sps:$4 sm:$0xff]   ;;  %v2177_v31 = vrot.slane %v2113_v18, 7  ;;  %12790 = vmatprep.subr.bf16.mxu0 %v14504_v27 }
  0xa9   : > { %3506 = vmatmul.mubr.bf16.gmra.mrb[32].mxu1 %v1480_v59  ;;  %v1488_v59 = vrot.slane %v1412_v44, 1  ;;  %v1907_v44 = vrot.slane %v1837_v32, 1  ;;  %v1497_v2 = vrot.slane %v1418_v57, 1  ;;  %v14502_v21 = vld [vmem:[%s15128_s28 + $0x50] ss:$0 sps:$4 sm:$0xff]   ;;  %v14505_v38 = vld [vmem:[%s19994_s2 + $0x1a8] sm:$0xff]  }
  0xaa   : > { %3513 = vmatprep.mubr.bf16.mxu1 %v1628_v63  ;;  %v1636_v63 = vrot.slane %v1559_v52, 4  ;;  %v1761_v52 = vsel %vm1743_vm2, %v1759_v24, %v1760_v37  ;;  %v1766_v24 = vrot.slane %v1694_v11, 7  ;;  %881 = vst [vmem:[#allocation2 + $0x448] sm:$0xf0] %v14502_v21  ;;  %882 = vst [vmem:[#allocation2 + $0x450] sm:$0xf] %v14503_v22 }
  0xab   : > { %v1489_v10 = vsel %vm1453_vm1, %v1487_v58, %v1488_v59  ;;  %12677 = vmatpush3.bf16.msra.mxu1 %v14490_v14  ;;  %v1838_v58 = vld [vmem:[#allocation2 + $0x3e8] sm:$0xfe]  ;;  %v1643_v59 = vsel %vm1598_vm0, %v1641_v48, %v1642_v49  ;;  %v1565_v1 = vld [vmem:[#allocation2 + $0x430] sm:$0xf]  ;;  %12791 = vmatpush3.bf16.msra.mxu0 %v14505_v38  ;;  %v14516_v22 = vld [vmem:[%s19994_s2 + $0x1f8] sm:$0xff]  }
  0xac   : > { %v1637_v13 = vsel %vm1598_vm0, %v1635_v62, %v1636_v63  ;;  %12678 = vmatprep.subr.bf16.mxu1 %v14492_v26  ;;  %v1496_v62 = vrot.slane %v1417_v53, 1  ;;  %v1763_v63 = vrot.slane %v1692_v54, 7  ;;  %v1909_v3 = vrot.slane %v1838_v58, 1  ;;  %v1695_v32 = vld [vmem:[#allocation2 + $0x348] sm:$0x80]  ;;  %12792 = vmatprep.subr.bf16.mxu0 %v14510_v46  ;;  %v14517_v27 = vld [vmem:[%s19994_s2 + $0x1b8] sm:$0xff]  }
  0xad   : > { %3635 = vmatmul.mubr.bf16.gmra.mrb[48].mxu0 %v1758_v30  ;;  %v1645_v7 = vrot.slane %v1565_v1, 4  ;;  %v2176_v30 = vrot.slane %v2112_v17, 7  ;;  %v1696_v33 = vld [vmem:[#allocation2 + $0x350] sm:$0x7f]  ;;  %v1842_v36 = vld [vmem:[#allocation2 + $0x428] sm:$0xfe] }
  0xae   : > { %v1498_v14 = vsel %vm1453_vm1, %v1496_v62, %v1497_v2  ;;  %v1843_v37 = vld [vmem:[#allocation2 + $0x430] sm:$0x1]  ;;  %v2114_v42 = vld [vmem:[#allocation2 + $0x328] sm:$0x80]  ;;  %v1769_v48 = vrot.slane %v1696_v33, 7 }
  0xaf   : > { %12679 = vmatpush3.bf16.msra.mxu1 %v14493_v28  ;;  %v1646_v19 = vsel %vm1598_vm0, %v1644_v6, %v1645_v7  ;;  %v1499_v28 = vrot.slane %v1419_v16, 1  ;;  %v1916_v53 = vrot.slane %v1843_v37, 1  ;;  %v2179_v54 = vrot.slane %v2114_v42, 7  ;;  %v14508_v58 = vld [vmem:[%s15128_s28 + $0x60] ss:$0 sps:$4 sm:$0xff]  }
  0xb0   : > { %12680 = vmatprep.subr.bf16.mxu1 %v14496_v43  ;;  %v14506_v43 = vld [vmem:[%s15128_s28 + $0x58] ss:$0 sps:$4 sm:$0xff]   ;;  %v14509_v62 = vld [vmem:[%s15128_s28 + $0x64] ss:$0 sps:$4 sm:$0xff]   ;;  %885 = vst [vmem:[#allocation2 + $0x488] sm:$0xf0] %v14508_v58 }
  0xb1   : > { %3514 = vmatmul.mubr.bf16.gmra.mrb[36].mxu1 %v1483_v20  ;;  %v1903_v20 = vrot.slane %v1834_v4, 1  ;;  %v1910_v4 = vrot.slane %v1839_v61, 1  ;;  %883 = vst [vmem:[#allocation2 + $0x468] sm:$0xf0] %v14506_v43  ;;  %v1971_v61 = vld [vmem:[#allocation2 + $0x330] sm:$0xf] }
  0xb2   : > { %3521 = vmatprep.mubr.bf16.mxu1 %v1631_v25  ;;  %v1836_v25 = vld [vmem:[#allocation2 + $0x3c8] sm:$0xfe]  ;;  %v1845_v1 = vld [vmem:[#allocation2 + $0x450] sm:$0x1]  ;;  %886 = vst [vmem:[#allocation2 + $0x490] sm:$0xf] %v14509_v62 }
  0xb3   : > { %v1905_v35 = vsel %vm1453_vm1, %v1903_v20, %v1904_v23  ;;  %v1906_v39 = vrot.slane %v1836_v25, 1  ;;  %12681 = vmatpush3.bf16.msra.mxu1 %v14497_v45  ;;  %v1911_v15 = vsel %vm1453_vm1, %v1909_v3, %v1910_v4  ;;  %v1420_v20 = vld [vmem:[#allocation2 + $0x430] sm:$0x1]  ;;  %v1765_v23 = vrot.slane %v1693_v9, 7  ;;  %v1844_v0 = vld [vmem:[#allocation2 + $0x448] sm:$0xfe] }
  0xb4   : > { %3642 = vmatprep.mubr.bf16.mxu0 %v1905_v35  ;;  %v1912_v25 = vrot.slane %v1840_v12, 1  ;;  %v1500_v29 = vrot.slane %v1420_v20, 1  ;;  %v1969_v35 = vld [vmem:[#allocation2 + $0x310] sm:$0xf]  ;;  %v2178_v45 = vsel %vm1743_vm2, %v2176_v30, %v2177_v31  ;;  %v2036_v8 = vrot.slane %v1971_v61, 4 }
  0xb5   : > { %v1908_v56 = vsel %vm1453_vm1, %v1906_v39, %v1907_v44  ;;  %3643 = vmatmul.mubr.bf16.gmra.mrb[52].mxu0 %v1761_v52  ;;  %v1767_v39 = vsel %vm1743_vm2, %v1765_v23, %v1766_v24  ;;  %v14507_v44 = vld [vmem:[%s15128_s28 + $0x5c] ss:$0 sps:$4 sm:$0xff]   ;;  %v2033_v51 = vrot.slane %v1969_v35, 4  ;;  %v1915_v52 = vrot.slane %v1842_v36, 1  ;;  %v2116_v9 = vld [vmem:[#allocation2 + $0x348] sm:$0x80] }
  0xb6   : > { %3650 = vmatprep.mubr.bf16.mxu0 %v1908_v56  ;;  %884 = vst [vmem:[#allocation2 + $0x470] sm:$0xf] %v14507_v44  ;;  %v1698_v56 = vld [vmem:[#allocation2 + $0x370] sm:$0x7f]  ;;  %v1918_v11 = vrot.slane %v1844_v0, 1  ;;  %v1919_v12 = vrot.slane %v1845_v1, 1 }
  0xb7   : > { %v1917_v3 = vsel %vm1453_vm1, %v1915_v52, %v1916_v53  ;;  %v1772_v5 = vrot.slane %v1698_v56, 7  ;;  %v1699_v17 = vld [vmem:[#allocation2 + $0x388] sm:$0x80]  ;;  %v1700_v18 = vld [vmem:[#allocation2 + $0x390] sm:$0x7f]  ;;  %v14520_v35 = vld [vmem:[%s19994_s2 + $0x280] sm:$0xff]  }
  0xb8   : > { %v1972_v20 = vld [vmem:[#allocation2 + $0x348] sm:$0xf0]  ;;  %v1973_v21 = vld [vmem:[#allocation2 + $0x350] sm:$0xf]  ;;  %v1920_v24 = vsel %vm1453_vm1, %v1918_v11, %v1919_v12  ;;  %v1774_v33 = vrot.slane %v1699_v17, 7 }
  0xb9   : > { %3522 = vmatmul.mubr.bf16.gmra.mrb[40].mxu1 %v1486_v47  ;;  %v14498_v47 = vld [vmem:[%s19994_s2 + $0x178] sm:$0xff]   ;;  %v2119_v30 = vld [vmem:[#allocation2 + $0x370] sm:$0x7f]  ;;  %v2038_v36 = vrot.slane %v1972_v20, 4  ;;  %v2039_v37 = vrot.slane %v1973_v21, 4 }
  0xba   : > { %3529 = vmatprep.mubr.bf16.mxu1 %v1634_v50  ;;  %v14499_v50 = vld [vmem:[%s19994_s2 + $0x138] sm:$0xff]   ;;  %12682 = vmatprep.subr.bf16.mxu1 %v14498_v47  ;;  %v1768_v47 = vrot.slane %v1695_v32, 7  ;;  %v14514_v31 = vld [vmem:[%s15128_s28 + $0x70] ss:$0 sps:$4 sm:$0xff]   ;;  %v14515_v32 = vld [vmem:[%s15128_s28 + $0x74] ss:$0 sps:$4 sm:$0xff]  }
  0xbb   : > { %12683 = vmatpush3.bf16.msra.mxu1 %v14499_v50  ;;  %v2115_v50 = vld [vmem:[#allocation2 + $0x330] sm:$0x7f]  ;;  %889 = vst [vmem:[#allocation2 + $0x4c8] sm:$0xf0] %v14514_v31  ;;  %890 = vst [vmem:[#allocation2 + $0x4d0] sm:$0xf] %v14515_v32 }
  0xbc   : > { %v2180_v57 = vrot.slane %v2115_v50, 7  ;;  %v1701_v42 = vld [vmem:[#allocation2 + $0x3a8] sm:$0x80]  ;;  %v1702_v43 = vld [vmem:[#allocation2 + $0x3b0] sm:$0x7f] }
  0xbd   : > { %v1975_v46 = vld [vmem:[#allocation2 + $0x370] sm:$0xf]  ;;  %v14518_v52 = vld [vmem:[%s15128_s28 + $0x78] ss:$0 sps:$4 sm:$0xff]   ;;  %v14519_v53 = vld [vmem:[%s15128_s28 + $0x7c] ss:$0 sps:$4 sm:$0xff]  }
  0xbe   : > { %v2181_v6 = vsel %vm1743_vm2, %v2179_v54, %v2180_v57  ;;  %v2120_v54 = vld [vmem:[#allocation2 + $0x388] sm:$0x80]  ;;  %v1777_v56 = vrot.slane %v1701_v42, 7  ;;  %v1778_v57 = vrot.slane %v1702_v43, 7  ;;  %891 = vst [vmem:[#allocation2 + $0x4e8] sm:$0xf0] %v14518_v52 }
  0xbf   : > { %892 = vst [vmem:[#allocation2 + $0x4f0] sm:$0xf] %v14519_v53  ;;  %v2188_v62 = vrot.slane %v2120_v54, 7  ;;  %v1703_v1 = vld [vmem:[#allocation2 + $0x3c8] sm:$0x80] }
  0xc0   : > { %v1779_v0 = vsel %vm1743_vm2, %v1777_v56, %v1778_v57  ;;  %v2123_v11 = vld [vmem:[#allocation2 + $0x3b0] sm:$0x7f]  ;;  %v1780_v12 = vrot.slane %v1703_v1, 7  ;;  %v1705_v21 = vld [vmem:[#allocation2 + $0x3e8] sm:$0x80]  ;;  %v14524_v1 = vld [vmem:[%s19994_s2 + $0x200] sm:$0xff]  }
  0xc1   : > { %3530 = vmatmul.mubr.bf16.gmra.mrb[44].mxu1 %v1489_v10  ;;  %v1764_v10 = vsel %vm1743_vm2, %v1762_v60, %v1763_v63  ;;  %v1970_v60 = vld [vmem:[#allocation2 + $0x328] sm:$0xf0]  ;;  %v1770_v63 = vsel %vm1743_vm2, %v1768_v47, %v1769_v48  ;;  %v2040_v48 = vsel %vm1598_vm0, %v2038_v36, %v2039_v37  ;;  %v2125_v31 = vld [vmem:[#allocation2 + $0x3d0] sm:$0x7f]  ;;  %v1783_v32 = vrot.slane %v1705_v21, 7  ;;  %14172 = vmatprep.subr.bf16.mxu1 %v14524_v1 }
  0xc2   : > { %3537 = vmatprep.mubr.bf16.mxu1 %v1637_v13  ;;  %v1841_v13 = vld [vmem:[#allocation2 + $0x410] sm:$0x1]  ;;  %3651 = vmatmul.mubr.bf16.gmra.mrb[56].mxu0 %v1764_v10  ;;  %v2035_v7 = vrot.slane %v1970_v60, 4  ;;  %v1848_v47 = vld [vmem:[#allocation2 + $0x488] sm:$0xfe] }
  0xc3   : > { %3658 = vmatprep.mubr.bf16.mxu0 %v1911_v15  ;;  %v1913_v26 = vrot.slane %v1841_v13, 1  ;;  %v2117_v10 = vld [vmem:[#allocation2 + $0x350] sm:$0x7f]  ;;  %v14512_v13 = vld [vmem:[%s15128_s28 + $0x68] ss:$0 sps:$4 sm:$0xff]   ;;  %v2182_v15 = vrot.slane %v2116_v9, 7 }
  0xc4   : > { %v2183_v16 = vrot.slane %v2117_v10, 7  ;;  %887 = vst [vmem:[#allocation2 + $0x4a8] sm:$0xf0] %v14512_v13  ;;  %v2037_v23 = vsel %vm1598_vm0, %v2035_v7, %v2036_v8  ;;  %v1924_v60 = vrot.slane %v1848_v47, 1  ;;  %v2122_v10 = vld [vmem:[#allocation2 + $0x3a8] sm:$0x80] }
  0xc5   : > { %v1914_v41 = vsel %vm1453_vm1, %v1912_v25, %v1913_v26  ;;  %v1846_v25 = vld [vmem:[#allocation2 + $0x468] sm:$0xfe]  ;;  %v1981_v47 = vld [vmem:[#allocation2 + $0x3d0] sm:$0xf] }
  0xc6   : > { %v2118_v26 = vld [vmem:[#allocation2 + $0x368] sm:$0x80]  ;;  %v1921_v38 = vrot.slane %v1846_v25, 1 }
  0xc7   : > { %v1978_v25 = vld [vmem:[#allocation2 + $0x3a8] sm:$0xf0] }
  0xc8   : > { %v1707_v43 = vld [vmem:[#allocation2 + $0x408] sm:$0x80] }
  0xc9   : > { %3538 = vmatmul.mubr.bf16.gmra.mrb[48].mxu1 %v1492_v34  ;;  %v1968_v34 = vld [vmem:[#allocation2 + $0x308] sm:$0xf0]  ;;  %v1786_v52 = vrot.slane %v1707_v43, 7  ;;  %v1987_v43 = vld [vmem:[#allocation2 + $0x430] sm:$0xf] }
  0xca   : > { %3545 = vmatprep.mubr.bf16.mxu1 %v1640_v40  ;;  %v1501_v40 = vsel %vm1453_vm1, %v1499_v28, %v1500_v29  ;;  %3659 = vmatmul.mubr.bf16.gmra.mrb[60].mxu0 %v1767_v39  ;;  %v2032_v49 = vrot.slane %v1968_v34, 4  ;;  %v2184_v28 = vsel %vm1743_vm2, %v2182_v15, %v2183_v16  ;;  %v1847_v29 = vld [vmem:[#allocation2 + $0x470] sm:$0x1]  ;;  %v1775_v34 = vrot.slane %v1700_v18, 7 }
  0xcb   : > { %3666 = vmatprep.mubr.bf16.mxu0 %v1914_v41  ;;  %v1922_v39 = vrot.slane %v1847_v29, 1  ;;  %v2186_v41 = vrot.slane %v2119_v30, 7  ;;  %v1850_v8 = vld [vmem:[#allocation2 + $0x4a8] sm:$0xfe]  ;;  %v2191_v18 = vrot.slane %v2122_v10, 7 }
  0xcc   : > { %v2034_v2 = vsel %vm1598_vm0, %v2032_v49, %v2033_v51  ;;  %v1776_v44 = vsel %vm1743_vm2, %v1774_v33, %v1775_v34  ;;  %v1849_v51 = vld [vmem:[#allocation2 + $0x490] sm:$0x1]  ;;  %v1927_v16 = vrot.slane %v1850_v8, 1  ;;  %v2124_v30 = vld [vmem:[#allocation2 + $0x3c8] sm:$0x80]  ;;  %v2047_v34 = vrot.slane %v1978_v25, 4 }
  0xcd   : > { %v1923_v49 = vsel %vm1453_vm1, %v1921_v38, %v1922_v39  ;;  %v1925_v61 = vrot.slane %v1849_v51, 1  ;;  %v1853_v29 = vld [vmem:[#allocation2 + $0x4d0] sm:$0x1]  ;;  %v2194_v38 = vrot.slane %v2124_v30, 7  ;;  %v2195_v39 = vrot.slane %v2125_v31, 7 }
  0xce   : > { %v1931_v37 = vrot.slane %v1853_v29, 1  ;;  %v2127_v51 = vld [vmem:[#allocation2 + $0x3f0] sm:$0x7f]  ;;  %v2403_v30 = vld [vmem:[#allocation2 + $0x3e8] sm:$0xf0] }
  0xcf   : > { %v2129_v8 = vld [vmem:[#allocation2 + $0x410] sm:$0x7f] }
  0xd0   : > { %v2258_v25 = vld [vmem:[#allocation2 + $0x3d0] sm:$0x1] }
  0xd1   : > { %3546 = vmatmul.mubr.bf16.gmra.mrb[52].mxu1 %v1495_v55  ;;  %v1697_v55 = vld [vmem:[#allocation2 + $0x368] sm:$0x80]  ;;  %v2131_v29 = vld [vmem:[#allocation2 + $0x430] sm:$0x7f] }
  0xd2   : > { %3553 = vmatprep.mubr.bf16.mxu1 %v1643_v59  ;;  %v14511_v59 = vld [vmem:[%s19994_s2 + $0x1b0] sm:$0xff]   ;;  %v1771_v4 = vrot.slane %v1697_v55, 7  ;;  %3667 = vmatmul.mubr.bf16.gmra.mrb[64].mxu0 %v1770_v63 }
  0xd3   : > { %12793 = vmatpush3.bf16.msra.mxu0 %v14511_v59  ;;  %3674 = vmatprep.mubr.bf16.mxu0 %v1917_v3  ;;  %v2121_v55 = vld [vmem:[#allocation2 + $0x390] sm:$0x7f]  ;;  %v2042_v59 = vrot.slane %v1975_v46, 4  ;;  %v1926_v3 = vsel %vm1453_vm1, %v1924_v60, %v1925_v61  ;;  %v2196_v46 = vsel %vm1743_vm2, %v2194_v38, %v2195_v39  ;;  %v1709_v60 = vld [vmem:[#allocation2 + $0x428] sm:$0x80]  ;;  %v2468_v38 = vrot.slane %v2403_v30, 4 }
  0xd4   : > { %12794 = vmatprep.subr.bf16.mxu0 %v14516_v22  ;;  %v2189_v63 = vrot.slane %v2121_v55, 7  ;;  %v2051_v55 = vrot.slane %v1981_v47, 4  ;;  %v1710_v61 = vld [vmem:[#allocation2 + $0x430] sm:$0x7f]  ;;  %v1789_v10 = vrot.slane %v1709_v60, 7  ;;  %v14521_v39 = vld [vmem:[%s19994_s2 + $0x240] sm:$0xff]  }
  0xd5   : > { %v2260_v47 = vld [vmem:[#allocation2 + $0x3f0] sm:$0x1]  ;;  %v2263_v30 = vld [vmem:[#allocation2 + $0x428] sm:$0xfe] }
  0xd6   : > { %v2190_v7 = vsel %vm1743_vm2, %v2188_v62, %v2189_v63  ;;  %v1982_v63 = vld [vmem:[#allocation2 + $0x3e8] sm:$0xf0] }
  0xd7   : > { %12795 = vmatpush3.bf16.msra.mxu0 %v14517_v27 }
  0xd8   : > { %12916 = vmatprep.subr.bf16.mxu0 %v14520_v35 }
  0xd9   : > { %3554 = vmatmul.mubr.bf16.gmra.mrb[56].mxu1 %v1498_v14  ;;  %v14513_v14 = vld [vmem:[%s15128_s28 + $0x6c] ss:$0 sps:$4 sm:$0xff]  }
  0xda   : > { %3561 = vmatprep.mubr.bf16.mxu1 %v1646_v19  ;;  %888 = vst [vmem:[#allocation2 + $0x4b0] sm:$0xf] %v14513_v14  ;;  %v1773_v19 = vsel %vm1743_vm2, %v1771_v4, %v1772_v5  ;;  %v1704_v4 = vld [vmem:[#allocation2 + $0x3d0] sm:$0x7f]  ;;  %v1976_v5 = vld [vmem:[#allocation2 + $0x388] sm:$0xf0] }
  0xdb   : > { %3675 = vmatmul.mubr.bf16.gmra.mrb[68].mxu0 %v1773_v19  ;;  %v1781_v13 = vrot.slane %v1704_v4, 7  ;;  %v2044_v14 = vrot.slane %v1976_v5, 4  ;;  %v2192_v19 = vrot.slane %v2123_v11, 7  ;;  %v2401_v4 = vld [vmem:[#allocation2 + $0x3c8] sm:$0xf0]  ;;  %v1790_v11 = vrot.slane %v1710_v61, 7 }
  0xdc   : > { %3682 = vmatprep.mubr.bf16.mxu0 %v1920_v24  ;;  %v1706_v24 = vld [vmem:[#allocation2 + $0x3f0] sm:$0x7f] }
  0xdd   : > { %v1782_v20 = vsel %vm1743_vm2, %v1780_v12, %v1781_v13  ;;  %v2193_v27 = vsel %vm1743_vm2, %v2191_v18, %v2192_v19  ;;  %v1784_v33 = vrot.slane %v1706_v24, 7  ;;  %v2053_v12 = vrot.slane %v1982_v63, 4  ;;  %v1984_v18 = vld [vmem:[#allocation2 + $0x408] sm:$0xf0]  ;;  %v1985_v19 = vld [vmem:[#allocation2 + $0x410] sm:$0xf] }
  0xde   : > { %v1791_v21 = vsel %vm1743_vm2, %v1789_v10, %v1790_v11  ;;  %v2056_v31 = vrot.slane %v1984_v18, 4  ;;  %v2134_v10 = vld [vmem:[#allocation2 + $0x468] sm:$0x80] }
  0xdf   : > { %v2407_v11 = vld [vmem:[#allocation2 + $0x428] sm:$0xf0] }
  0xe1   : > { %3562 = vmatmul.mubr.bf16.gmra.mrb[60].mxu1 %v1501_v40  ;;  %v2185_v40 = vrot.slane %v2118_v26, 7  ;;  %v1851_v9 = vld [vmem:[#allocation2 + $0x4b0] sm:$0x1] }
  0xe2   : > { %3763 = vmatprep.mubr.bf16.mxu1 %v2178_v45  ;;  %v1974_v45 = vld [vmem:[#allocation2 + $0x368] sm:$0xf0]  ;;  %v1928_v17 = vrot.slane %v1851_v9, 1  ;;  %v1979_v26 = vld [vmem:[#allocation2 + $0x3b0] sm:$0xf] }
  0xe3   : > { %v2187_v50 = vsel %vm1743_vm2, %v2185_v40, %v2186_v41  ;;  %3683 = vmatmul.mubr.bf16.gmra.mrb[72].mxu0 %v1776_v44  ;;  %v2041_v58 = vrot.slane %v1974_v45, 4  ;;  %v2048_v35 = vrot.slane %v1979_v26, 4  ;;  %v1785_v40 = vsel %vm1743_vm2, %v1783_v32, %v1784_v33  ;;  %v1708_v44 = vld [vmem:[#allocation2 + $0x410] sm:$0x7f]  ;;  %v1980_v45 = vld [vmem:[#allocation2 + $0x3c8] sm:$0xf0] }
  0xe4   : > { %3690 = vmatprep.mubr.bf16.mxu0 %v1923_v49  ;;  %v1855_v49 = vld [vmem:[#allocation2 + $0x4f0] sm:$0x1]  ;;  %v1787_v53 = vrot.slane %v1708_v44, 7  ;;  %v2050_v54 = vrot.slane %v1980_v45, 4  ;;  %v14527_v9 = vld [vmem:[%s19994_s2 + $0x208] sm:$0xff]   ;;  %v2057_v33 = vrot.slane %v1985_v19, 4 }
  0xe5   : > { %v2049_v41 = vsel %vm1598_vm0, %v2047_v34, %v2048_v35  ;;  %v1934_v57 = vrot.slane %v1855_v49, 1  ;;  %v2130_v26 = vld [vmem:[#allocation2 + $0x428] sm:$0x80]  ;;  %v2404_v32 = vld [vmem:[#allocation2 + $0x3f0] sm:$0xf]  ;;  %v2322_v35 = vrot.slane %v2258_v25, 1 }
  0xe6   : > { %v1788_v62 = vsel %vm1743_vm2, %v1786_v52, %v1787_v53  ;;  %v2259_v45 = vld [vmem:[#allocation2 + $0x3e8] sm:$0xfe]  ;;  %v2406_v52 = vld [vmem:[#allocation2 + $0x410] sm:$0xf]  ;;  %v2209_v25 = vrot.slane %v2134_v10, 7 }
  0xe7   : > { %v2405_v49 = vld [vmem:[#allocation2 + $0x408] sm:$0xf0]  ;;  %v2472_v63 = vrot.slane %v2406_v52, 4  ;;  %v15500_v52 = vld [vmem:[#allocation2 + $0x490] sm:$0xf] }
  0xe8   : > { %v14522_v53 = vld [vmem:[%s19994_s2 + $0x288] sm:$0xff]   ;;  %v2471_v61 = vrot.slane %v2405_v49, 4 }
  0xe9   : > { %3764 = vmatmul.mubr.bf16.vlgmr.msra.gmra.mrb[64].mxu1 %v2034_v2  ;;  %v2043_v2 = vsel %vm1598_vm0, %v2041_v58, %v2042_v59  ;;  %v2198_v59 = vrot.slane %v2127_v51, 7 }
  0xea   : > { %3771 = vmatprep.mubr.bf16.mxu1 %v2181_v6  ;;  %v1977_v6 = vld [vmem:[#allocation2 + $0x390] sm:$0xf]  ;;  %14173 = vmatpush3.bf16.msra.mxu1 %v14524_v1 }
  0xeb   : > { %3691 = vmatmul.mubr.bf16.gmra.mrb[76].mxu0 %v1779_v0  ;;  %v2045_v15 = vrot.slane %v1977_v6, 4  ;;  %v1983_v0 = vld [vmem:[#allocation2 + $0x3f0] sm:$0xf]  ;;  %14174 = vmatprep.subr.bf16.mxu1 %v14527_v9 }
  0xec   : > { %3698 = vmatprep.mubr.bf16.mxu0 %v1926_v3  ;;  %v2402_v6 = vld [vmem:[#allocation2 + $0x3d0] sm:$0xf]  ;;  %v2054_v13 = vrot.slane %v1983_v0, 4 }
  0xed   : > { %v2046_v22 = vsel %vm1598_vm0, %v2044_v14, %v2045_v15  ;;  %v2465_v14 = vrot.slane %v2401_v4, 4  ;;  %v2466_v15 = vrot.slane %v2402_v6, 4  ;;  %v14525_v0 = vld [vmem:[%s19994_s2 + $0x290] sm:$0xff]   ;;  %v1988_v4 = vld [vmem:[#allocation2 + $0x448] sm:$0xf0] }
  0xee   : > { %14175 = vmatpush3.bf16.msra.mxu1 %v14527_v9  ;;  %v2261_v6 = vld [vmem:[#allocation2 + $0x408] sm:$0xfe]  ;;  %v2473_v9 = vsel %vm1598_vm0, %v2471_v61, %v2472_v63 }
  0xef   : > { %v2467_v24 = vsel %vm1598_vm0, %v2465_v14, %v2466_v15  ;;  %v2408_v14 = vld [vmem:[#allocation2 + $0x430] sm:$0xf]  ;;  %v14531_v15 = vld [vmem:[%s19994_s2 + $0x298] sm:$0xff]   ;;  %v2327_v18 = vrot.slane %v2261_v6, 1  ;;  %v14539_v63 = vld [vmem:[%s19994_s2 + $0x268] sm:$0xff]   ;;  %v2069_v6 = vrot.slane %v15500_v52, 4 }
  0xf1   : > { %3772 = vmatmul.mubr.bf16.gmra.mrb[68].mxu1 %v2037_v23  ;;  %v1929_v23 = vsel %vm1453_vm1, %v1927_v16, %v1928_v17  ;;  %v2201_v17 = vrot.slane %v2129_v8, 7 }
  0xf2   : > { %3779 = vmatprep.mubr.bf16.mxu1 %v2184_v28  ;;  %v1852_v28 = vld [vmem:[#allocation2 + $0x4c8] sm:$0xfe] }
  0xf3   : > { %3699 = vmatmul.mubr.bf16.gmra.mrb[80].mxu0 %v1782_v20  ;;  %v1930_v36 = vrot.slane %v1852_v28, 1  ;;  %v2257_v20 = vld [vmem:[#allocation2 + $0x3c8] sm:$0xfe] }
  0xf4   : > { %3706 = vmatprep.mubr.bf16.mxu0 %v1929_v23  ;;  %v2055_v23 = vsel %vm1598_vm0, %v2053_v12, %v2054_v13  ;;  %v2321_v34 = vrot.slane %v2257_v20, 1  ;;  %v14526_v12 = vld [vmem:[%s19994_s2 + $0x250] sm:$0xff]   ;;  %v2062_v20 = vrot.slane %v1988_v4, 4 }
  0xf5   : > { %v1932_v42 = vsel %vm1453_vm1, %v1930_v36, %v1931_v37  ;;  %v2203_v36 = vrot.slane %v2130_v26, 7  ;;  %v2204_v37 = vrot.slane %v2131_v29, 7  ;;  %v1991_v29 = vld [vmem:[#allocation2 + $0x470] sm:$0xf] }
  0xf6   : > { %v2323_v44 = vsel %vm1453_vm1, %v2321_v34, %v2322_v35  ;;  %v2137_v34 = vld [vmem:[#allocation2 + $0x490] sm:$0x7f]  ;;  %v2409_v35 = vld [vmem:[#allocation2 + $0x448] sm:$0xf0] }
  0xf7   : > { %v2477_v49 = vrot.slane %v2409_v35, 4 }
  0xf9   : > { %3780 = vmatmul.mubr.bf16.gmra.mrb[72].mxu1 %v2040_v48  ;;  %v1854_v48 = vld [vmem:[#allocation2 + $0x4e8] sm:$0xfe] }
  0xfa   : > { %3787 = vmatprep.mubr.bf16.mxu1 %v2187_v50  ;;  %v2126_v50 = vld [vmem:[#allocation2 + $0x3e8] sm:$0x80]  ;;  %v1933_v56 = vrot.slane %v1854_v48, 1 }
  0xfb   : > { %3707 = vmatmul.mubr.bf16.gmra.mrb[84].mxu0 %v1785_v40  ;;  %v2197_v58 = vrot.slane %v2126_v50, 7  ;;  %v2469_v40 = vrot.slane %v2404_v32, 4  ;;  %v2132_v48 = vld [vmem:[#allocation2 + $0x448] sm:$0x80]  ;;  %v2205_v50 = vsel %vm1743_vm2, %v2203_v36, %v2204_v37 }
  0xfc   : > { %3714 = vmatprep.mubr.bf16.mxu0 %v1932_v42  ;;  %v1935_v3 = vsel %vm1453_vm1, %v1933_v56, %v1934_v57  ;;  %v14530_v42 = vld [vmem:[%s19994_s2 + $0x220] sm:$0xff]   ;;  %v2060_v56 = vrot.slane %v1987_v43, 4  ;;  %v2133_v57 = vld [vmem:[#allocation2 + $0x450] sm:$0x7f]  ;;  %v2206_v60 = vrot.slane %v2132_v48, 7  ;;  %v2066_v43 = vrot.slane %v1991_v29, 4 }
  0xfd   : > { %v2199_v5 = vsel %vm1743_vm2, %v2197_v58, %v2198_v59  ;;  %v2470_v51 = vsel %vm1598_vm0, %v2468_v38, %v2469_v40  ;;  %v2324_v58 = vrot.slane %v2259_v45, 1  ;;  %v2325_v59 = vrot.slane %v2260_v47, 1  ;;  %v2410_v38 = vld [vmem:[#allocation2 + $0x450] sm:$0xf]  ;;  %v14537_v40 = vld [vmem:[%s19994_s2 + $0x260] sm:$0xff]  }
  0xfe   : > { %v2207_v1 = vrot.slane %v2133_v57, 7  ;;  %v15493_v45 = vld [vmem:[%s19998_s6] ss:$0 sm:$0xff]  ;;  %v2213_v48 = vrot.slane %v2137_v34, 7  ;;  %v15507_v57 = vld [vmem:[#allocation2 + $0x4a8] sm:$0x80] }
  0xff   : > { %v15558_v34 = vld [vmem:[#allocation2 + $0x4c8] sm:$0x80] }
 0x100   : > { %v2208_v13 = vsel %vm1743_vm2, %v2206_v60, %v2207_v1  ;;  %v14540_v1 = vld [vmem:[%s19994_s2 + $0x2b0] sm:$0xff]   ;;  %v2218_v52 = vrot.slane %v15558_v34, 7 }
 0x101   : > { %3788 = vmatmul.mubr.bf16.gmra.mrb[76].mxu1 %v2043_v2  ;;  %v2052_v2 = vsel %vm1598_vm0, %v2050_v54, %v2051_v55  ;;  %v14533_v54 = vld [vmem:[%s19994_s2 + $0x228] sm:$0xff]  }
 0x102   : > { %3795 = vmatprep.mubr.bf16.mxu1 %v2190_v7  ;;  %v2128_v7 = vld [vmem:[#allocation2 + $0x408] sm:$0x80] }
 0x103   : > { %3715 = vmatmul.mubr.bf16.gmra.mrb[88].mxu0 %v1788_v62  ;;  %v2200_v16 = vrot.slane %v2128_v7, 7  ;;  %v14523_v62 = vld [vmem:[%s19994_s2 + $0x248] sm:$0xff]   ;;  %v2262_v7 = vld [vmem:[#allocation2 + $0x410] sm:$0x1] }
 0x104   : > { %3722 = vmatprep.mubr.bf16.mxu0 %v1935_v3  ;;  %v2326_v3 = vsel %vm1453_vm1, %v2324_v58, %v2325_v59  ;;  %v2328_v19 = vrot.slane %v2262_v7, 1  ;;  %v14538_v58 = vld [vmem:[%s19994_s2 + $0x2a8] sm:$0xff]  }
 0x105   : > { %v2202_v28 = vsel %vm1743_vm2, %v2200_v16, %v2201_v17  ;;  %v14535_v16 = vld [vmem:[%s19994_s2 + $0x238] sm:$0xff]   ;;  %v2135_v17 = vld [vmem:[#allocation2 + $0x470] sm:$0x7f]  ;;  %v15526_v7 = vld [vmem:[#allocation2 + $0x468] sm:$0xf0] }
 0x106   : > { %v2210_v26 = vrot.slane %v2135_v17, 7  ;;  %v2329_v32 = vsel %vm1453_vm1, %v2327_v18, %v2328_v19  ;;  %v14542_v17 = vld [vmem:[%s19994_s2 + $0x270] sm:$0xff]  }
 0x109   : > { %3796 = vmatmul.mubr.bf16.gmra.mrb[80].mxu1 %v2046_v22  ;;  %v14528_v22 = vld [vmem:[%s19994_s2 + $0x210] sm:$0xff]  }
 0x10a   : > { %3803 = vmatprep.mubr.bf16.mxu1 %v2193_v27  ;;  %v14529_v27 = vld [vmem:[%s19994_s2 + $0x218] sm:$0xff]   ;;  %14176 = vmatprep.subr.bf16.mxu1 %v14528_v22 }
 0x10b   : > { %3723 = vmatmul.mubr.bf16.gmra.mrb[92].mxu0 %v1791_v21  ;;  %14177 = vmatpush3.bf16.msra.mxu1 %v14528_v22  ;;  %v2474_v22 = vrot.slane %v2407_v11, 4 }
 0x10c   : > { %3924 = vmatprep.mubr.bf16.mxu0 %v2467_v24  ;;  %14178 = vmatprep.subr.bf16.mxu1 %v14529_v27  ;;  %v14532_v24 = vld [vmem:[%s19994_s2 + $0x258] sm:$0xff]  }
 0x10f   : > { %14179 = vmatpush3.bf16.msra.mxu1 %v14529_v27  ;;  %v1990_v27 = vld [vmem:[#allocation2 + $0x468] sm:$0xf0] }
 0x110   : > { %14180 = vmatprep.subr.bf16.mxu1 %v14530_v42 }
 0x111   : > { %3804 = vmatmul.mubr.bf16.gmra.mrb[84].mxu1 %v2049_v41  ;;  %v1986_v41 = vld [vmem:[#allocation2 + $0x428] sm:$0xf0] }
 0x112   : > { %3811 = vmatprep.mubr.bf16.mxu1 %v2196_v46  ;;  %v2058_v46 = vsel %vm1598_vm0, %v2056_v31, %v2057_v33  ;;  %v2059_v55 = vrot.slane %v1986_v41, 4  ;;  %v2264_v31 = vld [vmem:[#allocation2 + $0x430] sm:$0x1]  ;;  %v2136_v33 = vld [vmem:[#allocation2 + $0x488] sm:$0x80]  ;;  %v2211_v41 = vsel %vm1743_vm2, %v2209_v25, %v2210_v26  ;;  %v2215_v26 = vrot.slane %v15507_v57, 7 }
 0x113   : > { %3925 = vmatmul.mubr.bf16.vlgmr.msra.gmra.mrb[96].mxu0 %v2323_v44  ;;  %14181 = vmatpush3.bf16.msra.mxu1 %v14530_v42  ;;  %v2065_v42 = vrot.slane %v1990_v27, 4  ;;  %v2330_v44 = vrot.slane %v2263_v30, 1  ;;  %v2212_v47 = vrot.slane %v2136_v33, 7  ;;  %v15556_v33 = vld [vmem:[#allocation2 + $0x470] sm:$0x1] }
 0x114   : > { %12917 = vmatpush3.bf16.msra.mxu0 %v14521_v39  ;;  %3932 = vmatprep.mubr.bf16.mxu0 %v2470_v51  ;;  %v2061_v8 = vsel %vm1598_vm0, %v2059_v55, %v2060_v56  ;;  %v15484_v39 = vld [vmem:[#allocation2 + $0x488] sm:$0xf0]  ;;  %v2478_v51 = vrot.slane %v2410_v38, 4  ;;  %v15505_v55 = vld [vmem:[#allocation2 + $0x450] sm:$0x1]  ;;  %v14142_v56 = vpop.f32.mrb[0].mxu0 }
 0x115   : > { %12918 = vmatprep.subr.bf16.mxu0 %v14522_v53  ;;  %14182 = vmatprep.subr.bf16.mxu1 %v14533_v54  ;;  %v2068_v53 = vrot.slane %v15484_v39, 4  ;;  %v1255_v59 = vmul.f32 %v14142_v56, %v15493_v45  ;;  %v1119_v60 = vpop.f32.mrb[1].mxu0  ;;  %v2067_v61 = vsel %vm1598_vm0, %v2065_v42, %v2066_v43 }
 0x117   : > { %14183 = vmatpush3.bf16.msra.mxu1 %v14533_v54  ;;  %v15503_v54 = vld [vmem:[#allocation2 + $0x448] sm:$0xfe]  ;;  %v2070_v43 = vsel %vm1598_vm0, %v2068_v53, %v2069_v6 }
 0x118   : > { %12919 = vmatpush3.bf16.msra.mxu0 %v14523_v62  ;;  %v15514_v62 = vld [vmem:[#allocation2 + $0x4b0] sm:$0x7f] }
 0x119   : > { %3812 = vmatmul.mubr.bf16.gmra.mrb[88].mxu1 %v2052_v2  ;;  %v14534_v2 = vld [vmem:[%s19994_s2 + $0x230] sm:$0xff]   ;;  %12920 = vmatprep.subr.bf16.mxu0 %v14525_v0  ;;  %v12460_v0 = vpop.f32.mrb[0].mxu1  ;;  %v2216_v27 = vrot.slane %v15514_v62, 7 }
 0x11a   : > { %3819 = vmatprep.mubr.bf16.mxu1 %v2199_v5  ;;  %v1989_v5 = vld [vmem:[#allocation2 + $0x450] sm:$0xf]  ;;  %14184 = vmatprep.subr.bf16.mxu1 %v14534_v2 }
 0x11b   : > { %3933 = vmatmul.mubr.bf16.gmra.mrb[100].mxu0 %v2326_v3  ;;  %14185 = vmatpush3.bf16.msra.mxu1 %v14534_v2  ;;  %v2063_v21 = vrot.slane %v1989_v5, 4  ;;  %v1253_v2 = vmul.f32 %v15493_v45, %v1119_v60  ;;  %v14143_v3 = vpop.f32.mrb[2].mxu0  ;;  %v2479_v5 = vsel %vm1598_vm0, %v2477_v49, %v2478_v51  ;;  %v2337_v51 = vrot.slane %v15556_v33, 1  ;;  %v15578_v60 = vld [vmem:[#allocation2 + $0x4c8] sm:$0xf0] }
 0x11c   : > { %3940 = vmatprep.mubr.bf16.mxu0 %v2473_v9  ;;  %12921 = vmatpush3.bf16.msra.mxu0 %v14526_v12  ;;  %v14541_v9 = vld [vmem:[%s19994_s2 + $0x300] sm:$0xff]   ;;  %v1256_v11 = vmul.f32 %v14143_v3, %v15493_v45  ;;  %v1122_v12 = vpop.f32.mrb[3].mxu0  ;;  %v15585_v3 = vld [vmem:[#allocation2 + $0x488] sm:$0xfe] }
 0x11d   : > { %12922 = vmatprep.subr.bf16.mxu0 %v14531_v15  ;;  %14186 = vmatprep.subr.bf16.mxu1 %v14535_v16  ;;  %v2064_v36 = vsel %vm1598_vm0, %v2062_v20, %v2063_v21  ;;  %v1254_v19 = vmul.f32 %v15493_v45, %v1122_v12  ;;  %v2214_v20 = vsel %vm1743_vm2, %v2212_v47, %v2213_v48  ;;  %v2334_v21 = vrot.slane %v15505_v55, 1  ;;  %v14146_v42 = vpop.f32.mrb[4].mxu0  ;;  %v15608_v33 = vld [vmem:[#allocation2 + $0x4a8] sm:$0xf0] }
 0x11e   : > { %v1259_v48 = vmul.f32 %v14146_v42, %v15493_v45  ;;  %v1135_v49 = vpop.f32.mrb[5].mxu0 }
 0x11f   : > { %14187 = vmatpush3.bf16.msra.mxu1 %v14535_v16  ;;  %v1257_v39 = vmul.f32 %v15493_v45, %v1135_v49  ;;  %v14147_v53 = vpop.f32.mrb[6].mxu0 }
 0x120   : > { %12923 = vmatpush3.bf16.msra.mxu0 %v14532_v24  ;;  %13028 = vmatprep.subr.bf16.mxu1 %v14541_v9 }
 0x121   : > { %3820 = vmatmul.mubr.bf16.gmra.mrb[92].mxu1 %v2055_v23  ;;  %v2475_v23 = vrot.slane %v2408_v14, 4  ;;  %v2412_v14 = vld [vmem:[#allocation2 + $0x470] sm:$0xf] }
 0x122   : > { %3827 = vmatprep.mubr.bf16.mxu1 %v2202_v28  ;;  %v14536_v28 = vld [vmem:[%s19994_s2 + $0x2a0] sm:$0xff]  }
 0x123   : > { %v2476_v37 = vsel %vm1598_vm0, %v2474_v22, %v2475_v23  ;;  %12924 = vmatprep.subr.bf16.mxu0 %v14536_v28  ;;  %3941 = vmatmul.mubr.bf16.gmra.mrb[104].mxu0 %v2329_v32  ;;  %v15543_v22 = vld [vmem:[#allocation2 + $0x4a8] sm:$0xf0]  ;;  %v15545_v23 = vld [vmem:[#allocation2 + $0x4b0] sm:$0xf]  ;;  %v2481_v32 = vrot.slane %v2412_v14, 4 }
 0x124   : > { %3948 = vmatprep.mubr.bf16.mxu0 %v2476_v37  ;;  %12925 = vmatpush3.bf16.msra.mxu0 %v14537_v40  ;;  %v15550_v28 = vld [vmem:[#allocation2 + $0x468] sm:$0xfe]  ;;  %v2071_v37 = vrot.slane %v15543_v22, 4  ;;  %v2072_v38 = vrot.slane %v15545_v23, 4 }
 0x125   : > { %12926 = vmatprep.subr.bf16.mxu0 %v14538_v58  ;;  %v2217_v58 = vsel %vm1743_vm2, %v2215_v26, %v2216_v27  ;;  %v15601_v27 = vld [vmem:[#allocation2 + $0x4e8] sm:$0x80] }
 0x128   : > { %12927 = vmatpush3.bf16.msra.mxu0 %v14539_v63  ;;  %v1260_v63 = vmul.f32 %v14147_v53, %v15493_v45  ;;  %v15624_v53 = vld [vmem:[#allocation2 + $0x4e8] sm:$0xf0] }
 0x129   : > { %3828 = vmatmul.mubr.bf16.gmra.mrb[96].mxu1 %v2058_v46  ;;  %v2331_v46 = vrot.slane %v2264_v31, 1  ;;  %12928 = vmatprep.subr.bf16.mxu0 %v14540_v1  ;;  %v2480_v31 = vrot.slane %v15526_v7, 4 }
 0x12a   : > { %3835 = vmatprep.mubr.bf16.mxu1 %v2205_v50  ;;  %v15498_v50 = vld [vmem:[%s19999_s7] ss:$0 sm:$0xff] }
 0x12b   : > { %v2332_v4 = vsel %vm1453_vm1, %v2330_v44, %v2331_v46  ;;  %v1294_v10 = vadd.f32 %v15498_v50, %v1255_v59  ;;  %v1292_v18 = vadd.f32 %v15498_v50, %v1253_v2  ;;  %v1295_v25 = vadd.f32 %v15498_v50, %v1256_v11  ;;  %v15566_v46 = vld [vmem:[#allocation2 + $0x4d0] sm:$0x7f] }
 0x12c   : > { %3949 = vmatmul.mubr.bf16.gmra.mrb[108].mxu0 %v2332_v4  ;;  %v1293_v30 = vadd.f32 %v15498_v50, %v1254_v19  ;;  %v2336_v44 = vrot.slane %v15550_v28, 1  ;;  %v2414_v59 = vld [vmem:[#allocation2 + $0x490] sm:$0xf]  ;;  %v1298_v62 = vadd.f32 %v15498_v50, %v1259_v48  ;;  %v2482_v1 = vsel %vm1598_vm0, %v2480_v31, %v2481_v32 }
 0x12d   : > { %3956 = vmatprep.mubr.bf16.mxu0 %v2479_v5  ;;  %v1326_v35 = vmax.f32 %v1294_v10, 0.0  ;;  %12929 = vmatpush3.bf16.msra.mxu0 %v14542_v17  ;;  %v1324_v40 = vmax.f32 %v1292_v18, 0.0  ;;  %v15583_v2 = vld [vmem:[#allocation2 + $0x4d0] sm:$0xf]  ;;  %v1296_v6 = vadd.f32 %v15498_v50, %v1257_v39  ;;  %v1299_v11 = vadd.f32 %v15498_v50, %v1260_v63 }
 0x12e   : > { %v2484_v12 = vrot.slane %v2414_v59, 4  ;;  %v2075_v18 = vrot.slane %v15583_v2, 4  ;;  %v2339_v19 = vrot.slane %v15585_v3, 1  ;;  %v15603_v28 = vld [vmem:[#allocation2 + $0x4f0] sm:$0x7f] }
 0x12f   : > { %v2222_v63 = vrot.slane %v15603_v28, 7 }
 0x131   : > { %3836 = vmatmul.mubr.bf16.gmra.mrb[100].mxu1 %v2061_v8  ;;  %v12461_v8 = vpop.f32.mrb[1].mxu1 }
 0x132   : > { %3843 = vmatprep.mubr.bf16.mxu1 %v2208_v13  ;;  %v2333_v13 = vrot.slane %v15503_v54, 1  ;;  %v15534_v15 = vadd.f32 %v12461_v8, %v12460_v0  ;;  %v12463_v16 = vpop.f32.mrb[2].mxu1  ;;  %v2413_v54 = vld [vmem:[#allocation2 + $0x488] sm:$0xf0]  ;;  %v1138_v0 = vpop.f32.mrb[7].mxu0  ;;  %v2219_v8 = vrot.slane %v15566_v46, 7  ;;  %v2338_v46 = vsel %vm1453_vm1, %v2336_v44, %v2337_v51 }
 0x133   : > { %v12464_v24 = vpop.f32.mrb[3].mxu1  ;;  %v1258_v7 = vmul.f32 %v15493_v45, %v1138_v0  ;;  %v2483_v9 = vrot.slane %v2413_v54, 4  ;;  %v14150_v26 = vpop.f32.mrb[8].mxu0  ;;  %v15634_v44 = vld [vmem:[#allocation2 + $0x4f0] sm:$0xf] }
 0x134   : > { %v15552_v29 = vadd.f32 %v12464_v24, %v12463_v16  ;;  %v12466_v55 = vpop.f32.mrb[4].mxu1  ;;  %v2335_v57 = vsel %vm1453_vm1, %v2333_v13, %v2334_v21  ;;  %v2074_v13 = vrot.slane %v15578_v60, 4  ;;  %v1330_v16 = vmax.f32 %v1298_v62, 0.0  ;;  %v15599_v24 = vld [vmem:[#allocation2 + $0x490] sm:$0x1]  ;;  %v1151_v32 = vpop.f32.mrb[9].mxu0 }
 0x135   : > { %3957 = vmatmul.mubr.bf16.gmra.mrb[112].mxu0 %v2335_v57  ;;  %v1297_v17 = vadd.f32 %v15498_v50, %v1258_v7  ;;  %v1331_v21 = vmax.f32 %v1299_v11, 0.0  ;;  %v1263_v31 = vmul.f32 %v14150_v26, %v15493_v45  ;;  %v14151_v42 = vpop.f32.mrb[10].mxu0  ;;  %v2485_v39 = vsel %vm1598_vm0, %v2483_v9, %v2484_v12  ;;  %v15636_v51 = vld [vmem:[#allocation2 + $0x4a8] sm:$0xfe]  ;;  %v2272_v0 = vld [vmem:[#allocation2 + $0x4b0] sm:$0x1] }
 0x136   : > { %3964 = vmatprep.mubr.bf16.mxu0 %v2482_v1  ;;  %v1264_v54 = vmul.f32 %v14151_v42, %v15493_v45  ;;  %v2221_v62 = vrot.slane %v15601_v27, 7  ;;  %v2417_v7 = vld [vmem:[#allocation2 + $0x4c8] sm:$0xf0]  ;;  %v2342_v11 = vrot.slane %v15636_v51, 1  ;;  %v14550_v12 = vld [vmem:[%s19994_s2 + $0x2b8] sm:$0xff]   ;;  %v2076_v42 = vsel %vm1598_vm0, %v2074_v13, %v2075_v18 }
 0x137   : > { %v1302_v49 = vadd.f32 %v15498_v50, %v1263_v31  ;;  %v2489_v28 = vrot.slane %v2417_v7, 4  ;;  %v15655_v31 = vld [vmem:[#allocation2 + $0x3c8] sm:$0x80]  ;;  %12930 = vmatprep.subr.bf16.mxu0 %v14550_v12 }
 0x138   : > { %v2223_v3 = vsel %vm1743_vm2, %v2221_v62, %v2222_v63  ;;  %v15690_v63 = vld [vmem:[#allocation2 + $0x3e8] sm:$0x80] }
 0x139   : > { %3844 = vmatmul.mubr.bf16.gmra.mrb[104].mxu1 %v2064_v36  ;;  %v1327_v36 = vmax.f32 %v1295_v25, 0.0  ;;  %v1329_v25 = vmax.f32 %v1297_v17, 0.0 }
 0x13a   : > { %3851 = vmatprep.mubr.bf16.mxu1 %v2211_v41  ;;  %v1325_v41 = vmax.f32 %v1293_v30, 0.0  ;;  %v15605_v30 = vpack.c.bf16 %v1331_v21, %v1330_v16  ;;  %v2343_v21 = vrot.slane %v2272_v0, 1  ;;  %v15692_v0 = vld [vmem:[#allocation2 + $0x3f0] sm:$0x7f] }
 0x13b   : > { %v15568_v47 = vpack.c.bf16 %v1327_v36, %v1326_v35  ;;  %v15610_v35 = vld [vmem:[#allocation2 + $0x4b0] sm:$0xf] }
 0x13c   : > { %v15573_v56 = vpack.c.bf16 %v1325_v41, %v1324_v40  ;;  %20034 = vst [vmem:[#allocation7_spill] sm:$0xff] %v15605_v30  ;;  %v1261_v41 = vmul.f32 %v15493_v45, %v1151_v32  ;;  %v2344_v62 = vsel %vm1453_vm1, %v2342_v11, %v2343_v21  ;;  %v2420_v11 = vld [vmem:[#allocation2 + $0x4f0] sm:$0xf]  ;;  %v4800_v30 = vld [vmem:[#allocation2 + $0x368] sm:$0x3f] }
 0x13d   : > { %20032 = vst [vmem:[#allocation5_spill] sm:$0xff] %v15568_v47  ;;  %3965 = vmatmul.mubr.bf16.gmra.mrb[116].mxu0 %v2338_v46  ;;  %v4801_v47 = vld [vmem:[#allocation2 + $0x380] sm:$0xc0] }
 0x13e   : > { %20033 = vst [vmem:[#allocation6_spill] sm:$0xff] %v15573_v56  ;;  %v1300_v23 = vadd.f32 %v15498_v50, %v1261_v41  ;;  %3972 = vmatprep.mubr.bf16.mxu0 %v2485_v39  ;;  %v4802_v56 = vld [vmem:[#allocation2 + $0x388] sm:$0x3f] }
 0x140   : > { %v1332_v16 = vmax.f32 %v1300_v23, 0.0 }
 0x141   : > { %3852 = vmatmul.mubr.bf16.gmra.mrb[108].mxu1 %v2067_v61  ;;  %v12467_v61 = vpop.f32.mrb[5].mxu1 }
 0x142   : > { %3859 = vmatprep.mubr.bf16.mxu1 %v2214_v20  ;;  %v15587_v4 = vadd.f32 %v12467_v61, %v12466_v55  ;;  %v12469_v5 = vpop.f32.mrb[6].mxu1  ;;  %v1328_v20 = vmax.f32 %v1296_v6, 0.0  ;;  %v1154_v55 = vpop.f32.mrb[11].mxu0  ;;  %v1303_v61 = vadd.f32 %v15498_v50, %v1264_v54  ;;  %v2077_v6 = vrot.slane %v15624_v53, 4 }
 0x143   : > { %v12470_v10 = vpop.f32.mrb[7].mxu1  ;;  %v1262_v22 = vmul.f32 %v15493_v45, %v1154_v55 }
 0x144   : > { %v15594_v14 = vadd.f32 %v12470_v10, %v12469_v5  ;;  %v15612_v40 = vpack.c.bf16 %v1329_v25, %v1328_v20  ;;  %v2487_v5 = vrot.slane %v15610_v35, 4  ;;  %v1335_v9 = vmax.f32 %v1303_v61, 0.0  ;;  %v14154_v20 = vpop.f32.mrb[12].mxu0 }
 0x145   : > { %v1301_v34 = vadd.f32 %v15498_v50, %v1262_v22  ;;  %v2078_v10 = vrot.slane %v15634_v44, 4  ;;  %v1267_v26 = vmul.f32 %v14154_v20, %v15493_v45  ;;  %v1167_v27 = vpop.f32.mrb[13].mxu0  ;;  %v15686_v44 = vld [vmem:[#allocation2 + $0x4d0] sm:$0x1] }
 0x146   : > { %20035 = vst [vmem:[#allocation8_spill] sm:$0xff] %v15612_v40  ;;  %v14155_v41 = vpop.f32.mrb[14].mxu0  ;;  %v16000_v40 = vld [vmem:[#allocation2 + $0x1e0] sm:$0xc0] }
 0x147   : > { %v1333_v17 = vmax.f32 %v1301_v34, 0.0  ;;  %v1170_v54 = vpop.f32.mrb[15].mxu0  ;;  %v2079_v61 = vsel %vm1598_vm0, %v2077_v6, %v2078_v10  ;;  %v2346_v10 = vrot.slane %v15686_v44, 1 }
 0x148   : > { %v1266_v2 = vmul.f32 %v15493_v45, %v1170_v54 }
 0x149   : > { %3860 = vmatmul.mubr.bf16.gmra.mrb[112].mxu1 %v2070_v43  ;;  %v2073_v43 = vsel %vm1598_vm0, %v2071_v37, %v2072_v38  ;;  %v2220_v37 = vsel %vm1743_vm2, %v2218_v52, %v2219_v8  ;;  %v2340_v38 = vrot.slane %v15599_v24, 1  ;;  %v2486_v52 = vrot.slane %v15608_v33, 4  ;;  %v2418_v24 = vld [vmem:[#allocation2 + $0x4d0] sm:$0xf]  ;;  %v14552_v33 = vld [vmem:[%s19994_s2 + $0x278] sm:$0xff]  }
 0x14a   : > { %3867 = vmatprep.mubr.bf16.mxu1 %v2217_v58  ;;  %v1334_v8 = vmax.f32 %v1302_v49, 0.0  ;;  %v15660_v35 = vpack.c.bf16 %v1333_v17, %v1332_v16  ;;  %v1268_v49 = vmul.f32 %v14155_v41, %v15493_v45  ;;  %12931 = vmatpush3.bf16.msra.mxu0 %v14552_v33  ;;  %v2490_v13 = vrot.slane %v2418_v24, 4 }
 0x14b   : > { %v2488_v55 = vsel %vm1598_vm0, %v2486_v52, %v2487_v5  ;;  %v1305_v22 = vadd.f32 %v15498_v50, %v1266_v2  ;;  %v14158_v5 = vpop.f32.mrb[16].mxu0 }
 0x14c   : > { %v12472_v36 = vpop.f32.mrb[8].mxu1  ;;  %v15652_v25 = vpack.c.bf16 %v1335_v9, %v1334_v8  ;;  %20037 = vst [vmem:[#allocation10_spill] sm:$0xff] %v15660_v35  ;;  %v2491_v7 = vsel %vm1598_vm0, %v2489_v28, %v2490_v13  ;;  %v2419_v9 = vld [vmem:[#allocation2 + $0x4e8] sm:$0xf0]  ;;  %v1271_v16 = vmul.f32 %v14158_v5, %v15493_v45  ;;  %v1183_v17 = vpop.f32.mrb[17].mxu0  ;;  %v2613_v28 = vrot.slane %v15692_v0, 7 }
 0x14d   : > { %v12473_v48 = vpop.f32.mrb[9].mxu1  ;;  %v1337_v52 = vmax.f32 %v1305_v22, 0.0  ;;  %v1269_v24 = vmul.f32 %v15493_v45, %v1183_v17  ;;  %v15725_v0 = vld [vmem:[#allocation2 + $0x430] sm:$0x7f] }
 0x14e   : > { %v15626_v57 = vadd.f32 %v12473_v48, %v12472_v36  ;;  %v12475_v58 = vpop.f32.mrb[10].mxu1  ;;  %20036 = vst [vmem:[#allocation9_spill] sm:$0xff] %v15652_v25  ;;  %v1265_v36 = vmul.f32 %v15493_v45, %v1167_v27  ;;  %v1306_v48 = vadd.f32 %v15498_v50, %v1267_v26  ;;  %v14159_v26 = vpop.f32.mrb[18].mxu0  ;;  %v2612_v27 = vrot.slane %v15690_v63, 7  ;;  %v15723_v63 = vld [vmem:[#allocation2 + $0x428] sm:$0x80] }
 0x14f   : > { %v12476_v59 = vpop.f32.mrb[11].mxu1  ;;  %v1310_v33 = vadd.f32 %v15498_v50, %v1271_v16  ;;  %v1186_v41 = vpop.f32.mrb[19].mxu0 }
 0x150   : > { %v15641_v1 = vadd.f32 %v12476_v59, %v12475_v58  ;;  %v1304_v60 = vadd.f32 %v15498_v50, %v1265_v36  ;;  %v2546_v58 = vld [vmem:[#allocation2 + $0x3d0] sm:$0x7f]  ;;  %v1338_v51 = vmax.f32 %v1306_v48, 0.0  ;;  %v1272_v36 = vmul.f32 %v14159_v26, %v15493_v45 }
 0x151   : > { %3868 = vmatmul.mubr.bf16.gmra.mrb[116].mxu1 %v2073_v43  ;;  %v2341_v43 = vsel %vm1453_vm1, %v2339_v19, %v2340_v38  ;;  %v1307_v19 = vadd.f32 %v15498_v50, %v1268_v49  ;;  %v15684_v38 = vld [vmem:[#allocation2 + $0x4c8] sm:$0xfe]  ;;  %v2610_v8 = vrot.slane %v2546_v58, 7  ;;  %v1308_v49 = vadd.f32 %v15498_v50, %v1269_v24  ;;  %v2422_v24 = vld [vmem:[#allocation2 + $0x510] sm:$0xf] }
 0x152   : > { %3875 = vmatprep.mubr.bf16.mxu1 %v2220_v37  ;;  %3973 = vmatmul.mubr.bf16.gmra.mrb[120].mxu0 %v2341_v43  ;;  %v2609_v37 = vrot.slane %v15655_v31, 7  ;;  %v1336_v34 = vmax.f32 %v1304_v60, 0.0  ;;  %v2345_v6 = vrot.slane %v15684_v38, 1  ;;  %v2549_v31 = vld [vmem:[#allocation2 + $0x408] sm:$0x80]  ;;  %v1270_v54 = vmul.f32 %v15493_v45, %v1186_v41 }
 0x153   : > { %3980 = vmatprep.mubr.bf16.mxu0 %v2488_v55  ;;  %v1339_v59 = vmax.f32 %v1307_v19, 0.0  ;;  %v2550_v43 = vld [vmem:[#allocation2 + $0x410] sm:$0x7f]  ;;  %v1311_v2 = vadd.f32 %v15498_v50, %v1272_v36  ;;  %v1342_v19 = vmax.f32 %v1310_v33, 0.0  ;;  %v15719_v38 = vld [vmem:[#allocation2 + $0x4e8] sm:$0xfe]  ;;  %v2614_v17 = vsel %vm1743_vm2, %v2612_v27, %v2613_v28 }
 0x154   : > { %v12478_v32 = vpop.f32.mrb[12].mxu1  ;;  %v15700_v21 = vpack.c.bf16 %v1337_v52, %v1336_v34  ;;  %v2611_v55 = vsel %vm1743_vm2, %v2609_v37, %v2610_v8  ;;  %v1309_v58 = vadd.f32 %v15498_v50, %v1270_v54  ;;  %v2616_v22 = vrot.slane %v2550_v43, 7  ;;  %v14543_v36 = vld [vmem:[%s19994_s2 + $0x2c0] sm:$0xff]   ;;  %v14544_v54 = vld [vmem:[%s19994_s2 + $0x308] sm:$0xff]  }
 0x155   : > { %v12479_v46 = vpop.f32.mrb[13].mxu1  ;;  %v15695_v12 = vpack.c.bf16 %v1339_v59, %v1338_v51  ;;  %v1340_v37 = vmax.f32 %v1308_v49, 0.0  ;;  %v1343_v44 = vmax.f32 %v1311_v2, 0.0  ;;  %v15721_v51 = vld [vmem:[#allocation2 + $0x4f0] sm:$0x1]  ;;  %v2347_v5 = vsel %vm1453_vm1, %v2345_v6, %v2346_v10 }
 0x156   : > { %v15674_v39 = vadd.f32 %v12479_v46, %v12478_v32  ;;  %v12481_v53 = vpop.f32.mrb[14].mxu1  ;;  %20039 = vst [vmem:[#allocation12_spill] sm:$0xff] %v15700_v21  ;;  %v1341_v59 = vmax.f32 %v1309_v58, 0.0  ;;  %v2348_v6 = vrot.slane %v15719_v38, 1  ;;  %v2553_v10 = vld [vmem:[#allocation2 + $0x448] sm:$0x80] }
 0x157   : > { %v12482_v18 = vpop.f32.mrb[15].mxu1  ;;  %20038 = vst [vmem:[#allocation11_spill] sm:$0xff] %v15695_v12  ;;  %v15727_v34 = vpack.c.bf16 %v1343_v44, %v1342_v19  ;;  %v2554_v49 = vld [vmem:[#allocation2 + $0x450] sm:$0x7f]  ;;  %v2619_v2 = vrot.slane %v15725_v0, 7  ;;  %v2496_v58 = vrot.slane %v2422_v24, 4 }
 0x158   : > { %v15680_v23 = vadd.f32 %v12482_v18, %v12481_v53  ;;  %v2493_v53 = vrot.slane %v2420_v11, 4  ;;  %v14560_v18 = vld [vmem:[%s19994_s2 + $0x380] sm:$0xff]   ;;  %v15731_v8 = vpack.c.bf16 %v1341_v59, %v1340_v37  ;;  %v2622_v44 = vrot.slane %v2554_v49, 7  ;;  %v15760_v0 = vld [vmem:[#allocation2 + $0x508] sm:$0xfe] }
 0x159   : > { %3876 = vmatmul.mubr.bf16.gmra.mrb[120].mxu1 %v2076_v42  ;;  %v2492_v42 = vrot.slane %v2419_v9, 4  ;;  %13140 = vmatprep.subr.bf16.mxu0 %v14560_v18  ;;  %20040 = vst [vmem:[#allocation13_spill] sm:$0xff] %v15727_v34  ;;  %v14575_v12 = vld [vmem:[%s19994_s2 + $0x3c0] sm:$0xff]  }
 0x15a   : > { %3883 = vmatprep.mubr.bf16.mxu1 %v2223_v3  ;;  %3981 = vmatmul.mubr.bf16.gmra.mrb[124].mxu0 %v2344_v62  ;;  %v2615_v3 = vrot.slane %v2549_v31, 7  ;;  %v14162_v62 = vpop.f32.mrb[20].mxu0  ;;  %20041 = vst [vmem:[#allocation14_spill] sm:$0xff] %v15731_v8  ;;  %v4798_v8 = vld [vmem:[#allocation2 + $0x348] sm:$0x3f] }
 0x15b   : > { %3988 = vmatprep.mubr.bf16.mxu0 %v2491_v7  ;;  %v1199_v52 = vpop.f32.mrb[21].mxu0  ;;  %v2494_v11 = vsel %vm1598_vm0, %v2492_v42, %v2493_v53 }
 0x15c   : > { %v12484_v20 = vpop.f32.mrb[16].mxu1  ;;  %v1273_v9 = vmul.f32 %v15493_v45, %v1199_v52  ;;  %v14163_v16 = vpop.f32.mrb[22].mxu0  ;;  %v2617_v43 = vsel %vm1743_vm2, %v2615_v3, %v2616_v22  ;;  %v2621_v22 = vrot.slane %v2553_v10, 7 }
 0x15d   : > { %v12485_v32 = vpop.f32.mrb[17].mxu1  ;;  %v1202_v33 = vpop.f32.mrb[23].mxu0 }
 0x15e   : > { %v15707_v46 = vadd.f32 %v12485_v32, %v12484_v20  ;;  %v12487_v48 = vpop.f32.mrb[18].mxu1  ;;  %v2421_v20 = vld [vmem:[#allocation2 + $0x508] sm:$0xf0]  ;;  %v1276_v32 = vmul.f32 %v14163_v16, %v15493_v45  ;;  %v1312_v28 = vadd.f32 %v15498_v50, %v1273_v9  ;;  %v1274_v42 = vmul.f32 %v15493_v45, %v1202_v33  ;;  %v15768_v9 = vld [vmem:[#allocation2 + $0x510] sm:$0x1] }
 0x15f   : > { %v12488_v60 = vpop.f32.mrb[19].mxu1  ;;  %v2495_v3 = vrot.slane %v2421_v20, 4  ;;  %v15770_v16 = vld [vmem:[#allocation2 + $0x468] sm:$0x80] }
 0x160   : > { %v15713_v13 = vadd.f32 %v12488_v60, %v12487_v48  ;;  %v2349_v48 = vrot.slane %v15721_v51, 1  ;;  %v1315_v53 = vadd.f32 %v15498_v50, %v1276_v32  ;;  %v2618_v60 = vrot.slane %v15723_v63, 7  ;;  %v14545_v51 = vld [vmem:[%s19994_s2 + $0x2c8] sm:$0xff]   ;;  %v14166_v63 = vpop.f32.mrb[24].mxu0 }
 0x161   : > { %3884 = vmatmul.mubr.bf16.gmra.mrb[124].mxu1 %v2079_v61  ;;  %v1275_v61 = vmul.f32 %v14162_v62, %v15493_v45  ;;  %v1313_v19 = vadd.f32 %v15498_v50, %v1274_v42  ;;  %v1344_v59 = vmax.f32 %v1312_v28, 0.0  ;;  %v2497_v42 = vsel %vm1598_vm0, %v2495_v3, %v2496_v58  ;;  %v2557_v58 = vld [vmem:[#allocation2 + $0x488] sm:$0x80] }
 0x162   : > { %14188 = vmatprep.mubr.bf16.mxu1 %v2611_v55  ;;  %3989 = vmatmul.mubr.bf16.gmra.mrb[128].mxu0 %v2347_v5  ;;  %v1347_v37 = vmax.f32 %v1315_v53, 0.0  ;;  %v1279_v5 = vmul.f32 %v14166_v63, %v15493_v45  ;;  %v2350_v32 = vsel %vm1453_vm1, %v2348_v6, %v2349_v48  ;;  %v2620_v33 = vsel %vm1743_vm2, %v2618_v60, %v2619_v2  ;;  %v2423_v48 = vld [vmem:[#allocation2 + $0x528] sm:$0xf0]  ;;  %v2424_v53 = vld [vmem:[#allocation2 + $0x530] sm:$0xf]  ;;  %v14548_v60 = vld [vmem:[%s19994_s2 + $0x318] sm:$0xff]  }
 0x163   : > { %v1314_v31 = vadd.f32 %v15498_v50, %v1275_v61  ;;  %3996 = vmatprep.mubr.bf16.mxu0 %v2494_v11  ;;  %v1345_v62 = vmax.f32 %v1313_v19, 0.0  ;;  %v14546_v61 = vld [vmem:[%s19994_s2 + $0x310] sm:$0xff]   ;;  %v2623_v6 = vsel %vm1743_vm2, %v2621_v22, %v2622_v44  ;;  %v2351_v3 = vrot.slane %v15760_v0, 1  ;;  %v14549_v0 = vld [vmem:[%s19994_s2 + $0x2d8] sm:$0xff]  }
 0x164   : > { %v12490_v7 = vpop.f32.mrb[20].mxu1  ;;  %v14547_v11 = vld [vmem:[%s19994_s2 + $0x2d0] sm:$0xff]   ;;  %v2352_v22 = vrot.slane %v15768_v9, 1  ;;  %v2624_v44 = vrot.slane %v15770_v16, 7  ;;  %v15804_v9 = vld [vmem:[#allocation2 + $0x528] sm:$0xfe] }
 0x165   : > { %v12491_v26 = vpop.f32.mrb[21].mxu1  ;;  %v1346_v38 = vmax.f32 %v1314_v31, 0.0  ;;  %v15777_v24 = vpack.c.bf16 %v1345_v62, %v1344_v59  ;;  %v14551_v16 = vld [vmem:[%s19994_s2 + $0x320] sm:$0xff]  }
 0x166   : > { %v15742_v41 = vadd.f32 %v12491_v26, %v12490_v7  ;;  %v12493_v27 = vpop.f32.mrb[22].mxu1  ;;  %v1215_v7 = vpop.f32.mrb[25].mxu0 }
 0x167   : > { %v12494_v55 = vpop.f32.mrb[23].mxu1  ;;  %v15765_v52 = vpack.c.bf16 %v1347_v37, %v1346_v38  ;;  %20043 = vst [vmem:[#allocation16_spill] sm:$0xff] %v15777_v24  ;;  %v1277_v26 = vmul.f32 %v15493_v45, %v1215_v7  ;;  %v14167_v31 = vpop.f32.mrb[26].mxu0  ;;  %v2558_v38 = vld [vmem:[#allocation2 + $0x490] sm:$0x7f] }
 0x168   : > { %v15754_v18 = vadd.f32 %v12494_v55, %v12493_v27  ;;  %v1280_v27 = vmul.f32 %v14167_v31, %v15493_v45  ;;  %v1218_v28 = vpop.f32.mrb[27].mxu0  ;;  %v2627_v31 = vrot.slane %v2557_v58, 7  ;;  %v4797_v24 = vld [vmem:[#allocation2 + $0x340] sm:$0xc0] }
 0x169   : > { %14189 = vmatmul.mubr.bf16.vlgmr.msra.gmra.mrb[128].mxu1 %v2614_v17  ;;  %20042 = vst [vmem:[#allocation15_spill] sm:$0xff] %v15765_v52  ;;  %v15772_v17 = vld [vmem:[#allocation2 + $0x470] sm:$0x7f]  ;;  %v1278_v55 = vmul.f32 %v15493_v45, %v1218_v28 }
 0x16a   : > { %14192 = vmatprep.mubr.bf16.mxu1 %v2617_v43  ;;  %13029 = vmatpush3.bf16.msra.mxu1 %v14543_v36  ;;  %v1318_v36 = vadd.f32 %v15498_v50, %v1279_v5  ;;  %v1319_v19 = vadd.f32 %v15498_v50, %v1280_v27  ;;  %v2625_v59 = vrot.slane %v15772_v17, 7  ;;  %v2499_v5 = vrot.slane %v2424_v53, 4  ;;  %v15816_v27 = vld [vmem:[#allocation2 + $0x4b0] sm:$0x7f] }
 0x16b   : > { %13030 = vmatprep.subr.bf16.mxu1 %v14544_v54  ;;  %v1316_v54 = vadd.f32 %v15498_v50, %v1277_v26  ;;  %3997 = vmatmul.mubr.bf16.gmra.mrb[132].mxu0 %v2350_v32  ;;  %v14170_v26 = vpop.f32.mrb[28].mxu0  ;;  %v2628_v32 = vrot.slane %v2558_v38, 7  ;;  %v4509_v52 = vld [vmem:[#allocation2 + $0x1d0] sm:$0xf] }
 0x16c   : > { %v12496_v20 = vpop.f32.mrb[24].mxu1  ;;  %4004 = vmatprep.mubr.bf16.mxu0 %v2497_v42  ;;  %v1350_v62 = vmax.f32 %v1318_v36, 0.0  ;;  %v1351_v63 = vmax.f32 %v1319_v19, 0.0  ;;  %v15814_v36 = vld [vmem:[#allocation2 + $0x4a8] sm:$0x80] }
 0x16d   : > { %v12497_v10 = vpop.f32.mrb[25].mxu1  ;;  %v1348_v7 = vmax.f32 %v1316_v54, 0.0 }
 0x16e   : > { %13031 = vmatpush3.bf16.msra.mxu1 %v14545_v51  ;;  %v15785_v43 = vadd.f32 %v12497_v10, %v12496_v20  ;;  %v12499_v49 = vpop.f32.mrb[26].mxu1  ;;  %v1317_v51 = vadd.f32 %v15498_v50, %v1278_v55  ;;  %v15809_v17 = vpack.c.bf16 %v1351_v63, %v1350_v62  ;;  %v15812_v10 = vld [vmem:[#allocation2 + $0x530] sm:$0x1]  ;;  %v2353_v55 = vsel %vm1453_vm1, %v2351_v3, %v2352_v22 }
 0x16f   : > { %13032 = vmatprep.subr.bf16.mxu1 %v14546_v61  ;;  %v12500_v2 = vpop.f32.mrb[27].mxu1  ;;  %v2498_v61 = vrot.slane %v2423_v48, 4  ;;  %v2425_v48 = vld [vmem:[#allocation2 + $0x548] sm:$0xf0] }
 0x170   : > { %v15795_v37 = vadd.f32 %v12500_v2, %v12499_v49  ;;  %v1349_v20 = vmax.f32 %v1317_v51, 0.0  ;;  %20044 = vst [vmem:[#allocation17_spill] sm:$0xff] %v15809_v17 }
 0x171   : > { %14193 = vmatmul.mubr.bf16.gmra.mrb[132].mxu1 %v2620_v33  ;;  %v1231_v33 = vpop.f32.mrb[29].mxu0  ;;  %v2500_v38 = vsel %vm1598_vm0, %v2498_v61, %v2499_v5  ;;  %v2354_v61 = vrot.slane %v15804_v9, 1  ;;  %v2561_v5 = vld [vmem:[#allocation2 + $0x4c8] sm:$0x80] }
 0x172   : > { %14196 = vmatprep.mubr.bf16.mxu1 %v2623_v6  ;;  %13033 = vmatpush3.bf16.msra.mxu1 %v14547_v11  ;;  %v1283_v11 = vmul.f32 %v14170_v26, %v15493_v45  ;;  %v15818_v42 = vpack.c.bf16 %v1349_v20, %v1348_v7  ;;  %v1281_v49 = vmul.f32 %v15493_v45, %v1231_v33  ;;  %v14171_v54 = vpop.f32.mrb[30].mxu0  ;;  %v14554_v7 = vld [vmem:[%s19994_s2 + $0x328] sm:$0xff]  }
 0x173   : > { %13034 = vmatprep.subr.bf16.mxu1 %v14548_v60  ;;  %v2626_v6 = vsel %vm1743_vm2, %v2624_v44, %v2625_v59  ;;  %v14553_v60 = vld [vmem:[%s19994_s2 + $0x2e0] sm:$0xff]   ;;  %v1284_v19 = vmul.f32 %v14171_v54, %v15493_v45  ;;  %v1234_v58 = vpop.f32.mrb[31].mxu0  ;;  %v2629_v44 = vsel %vm1743_vm2, %v2627_v31, %v2628_v32  ;;  %v2426_v59 = vld [vmem:[#allocation2 + $0x550] sm:$0xf]  ;;  %4005 = vmatmul.mubr.bf16.gmra.mrb[136].mxu0 %v2353_v55  ;;  %v2355_v31 = vrot.slane %v15812_v10, 1  ;;  %v14555_v9 = vld [vmem:[%s19994_s2 + $0x2e8] sm:$0xff]  }
 0x174   : > { %v12502_v28 = vpop.f32.mrb[28].mxu1  ;;  %20045 = vst [vmem:[#allocation18_spill] sm:$0xff] %v15818_v42  ;;  %v1322_v2 = vadd.f32 %v15498_v50, %v1283_v11  ;;  %v1320_v3 = vadd.f32 %v15498_v50, %v1281_v49  ;;  %v1282_v22 = vmul.f32 %v15493_v45, %v1234_v58  ;;  %4012 = vmatprep.mubr.bf16.mxu0 %v2500_v38  ;;  %v2630_v32 = vrot.slane %v15814_v36, 7  ;;  %v12572_v55 = vpop.f32.mrb[32].mxu0  ;;  %v2281_v10 = vld [vmem:[#allocation2 + $0x548] sm:$0xfe] }
 0x175   : > { %v12503_v53 = vpop.f32.mrb[29].mxu1  ;;  %v1323_v20 = vadd.f32 %v15498_v50, %v1284_v19  ;;  %v2502_v49 = vrot.slane %v2426_v59, 4  ;;  %v14556_v36 = vld [vmem:[%s19994_s2 + $0x330] sm:$0xff]  }
 0x176   : > { %13035 = vmatpush3.bf16.msra.mxu1 %v14549_v0  ;;  %v15829_v51 = vadd.f32 %v12503_v53, %v12502_v28  ;;  %v12505_v62 = vpop.f32.mrb[30].mxu1  ;;  %v2562_v0 = vld [vmem:[#allocation2 + $0x4d0] sm:$0x7f]  ;;  %v1321_v45 = vadd.f32 %v15498_v50, %v1282_v22  ;;  %v1354_v11 = vmax.f32 %v1322_v2, 0.0  ;;  %v2501_v28 = vrot.slane %v2425_v48, 4  ;;  %v12573_v48 = vpop.f32.mrb[33].mxu0 }
 0x177   : > { %13036 = vmatprep.subr.bf16.mxu1 %v14551_v16  ;;  %v12506_v63 = vpop.f32.mrb[31].mxu1  ;;  %v2631_v16 = vrot.slane %v15816_v27, 7  ;;  %v1355_v33 = vmax.f32 %v1323_v20, 0.0  ;;  %v1352_v54 = vmax.f32 %v1320_v3, 0.0  ;;  %v2634_v53 = vrot.slane %v2562_v0, 7 }
 0x178   : > { %v15839_v26 = vadd.f32 %v12506_v63, %v12505_v62  ;;  %v1353_v50 = vmax.f32 %v1321_v45, 0.0  ;;  %v2282_v2 = vld [vmem:[#allocation2 + $0x550] sm:$0x1]  ;;  %v12574_v38 = vadd.f32 %v12573_v48, %v12572_v55  ;;  %v12575_v62 = vpop.f32.mrb[34].mxu0  ;;  %v2356_v3 = vsel %vm1453_vm1, %v2354_v61, %v2355_v31 }
 0x179   : > { %14197 = vmatmul.mubr.bf16.gmra.mrb[136].mxu1 %v2626_v6  ;;  %v2633_v6 = vrot.slane %v2561_v5, 7  ;;  %v15851_v27 = vpack.c.bf16 %v1355_v33, %v1354_v11  ;;  %v2564_v22 = vld [vmem:[#allocation2 + $0x4f0] sm:$0x7f]  ;;  %v12576_v63 = vpop.f32.mrb[35].mxu0  ;;  %v2503_v20 = vsel %vm1598_vm0, %v2501_v28, %v2502_v49  ;;  %v2358_v28 = vrot.slane %v2282_v2, 1 }
 0x17a   : > { %14200 = vmatprep.mubr.bf16.mxu1 %v2629_v44  ;;  %13037 = vmatpush3.bf16.msra.mxu1 %v14553_v60  ;;  %v2563_v60 = vld [vmem:[#allocation2 + $0x4e8] sm:$0x80]  ;;  %v15853_v58 = vpack.c.bf16 %v1353_v50, %v1352_v54  ;;  %v2428_v5 = vld [vmem:[#allocation2 + $0x570] sm:$0xf]  ;;  %v15864_v33 = vadd.f32 %v12574_v38, %v15534_v15  ;;  %v12577_v61 = vadd.f32 %v12576_v63, %v12575_v62  ;;  %v12578_v2 = vpop.f32.mrb[36].mxu0 }
 0x17b   : > { %13038 = vmatprep.subr.bf16.mxu1 %v14554_v7  ;;  %20046 = vst [vmem:[#allocation19_spill] sm:$0xff] %v15851_v27  ;;  %v2427_v44 = vld [vmem:[#allocation2 + $0x568] sm:$0xf0]  ;;  %v2632_v7 = vsel %vm1743_vm2, %v2630_v32, %v2631_v16  ;;  %v14557_v11 = vld [vmem:[%s19994_s2 + $0x2f0] sm:$0xff]   ;;  %v2635_v31 = vsel %vm1743_vm2, %v2633_v6, %v2634_v53  ;;  %v14558_v32 = vld [vmem:[%s19994_s2 + $0x338] sm:$0xff]   ;;  %4013 = vmatmul.mubr.bf16.gmra.mrb[140].mxu0 %v2356_v3  ;;  %v2357_v16 = vrot.slane %v2281_v10, 1 }
 0x17c   : > { %v12508_v19 = vpop.f32.mrb[32].mxu1  ;;  %20047 = vst [vmem:[#allocation20_spill] sm:$0xff] %v15853_v58  ;;  %v2565_v54 = vld [vmem:[#allocation2 + $0x508] sm:$0x80]  ;;  %v2636_v49 = vrot.slane %v2563_v60, 7  ;;  %v15873_v15 = vadd.f32 %v12577_v61, %v15552_v29  ;;  %4020 = vmatprep.mubr.bf16.mxu0 %v2503_v20  ;;  %v2637_v6 = vrot.slane %v2564_v22, 7 }
 0x17d   : > { %v12509_v59 = vpop.f32.mrb[33].mxu1  ;;  %v2504_v53 = vrot.slane %v2427_v44, 4  ;;  %v2505_v48 = vrot.slane %v2428_v5, 4  ;;  %v14559_v10 = vld [vmem:[%s19994_s2 + $0x2f8] sm:$0xff]   ;;  %v2359_v3 = vsel %vm1453_vm1, %v2357_v16, %v2358_v28  ;;  %v2284_v22 = vld [vmem:[#allocation2 + $0x570] sm:$0x1] }
 0x17e   : > { %v15858_v0 = vadd.f32 %v12509_v59, %v12508_v19  ;;  %v12511_v45 = vpop.f32.mrb[34].mxu1  ;;  %13039 = vmatpush3.bf16.msra.mxu1 %v14555_v9  ;;  %v2566_v9 = vld [vmem:[#allocation2 + $0x510] sm:$0x7f]  ;;  %v12579_v19 = vpop.f32.mrb[37].mxu0  ;;  %v2283_v59 = vld [vmem:[#allocation2 + $0x568] sm:$0xfe] }
 0x17f   : > { %v12512_v50 = vpop.f32.mrb[35].mxu1  ;;  %13040 = vmatprep.subr.bf16.mxu1 %v14556_v36  ;;  %v2639_v36 = vrot.slane %v2565_v54, 7  ;;  %v2640_v60 = vrot.slane %v2566_v9, 7  ;;  %v12580_v62 = vadd.f32 %v12579_v19, %v12578_v2  ;;  %v12581_v29 = vpop.f32.mrb[38].mxu0  ;;  %v2506_v20 = vsel %vm1598_vm0, %v2504_v53, %v2505_v48  ;;  %v2567_v5 = vld [vmem:[#allocation2 + $0x528] sm:$0x80] }
 0x180   : > { %v15870_v55 = vadd.f32 %v12512_v50, %v12511_v45  ;;  %v12582_v63 = vpop.f32.mrb[39].mxu0  ;;  %v2568_v45 = vld [vmem:[#allocation2 + $0x530] sm:$0x7f]  ;;  %v2569_v9 = vld [vmem:[#allocation2 + $0x548] sm:$0x80]  ;;  %v2360_v48 = vrot.slane %v2283_v59, 1 }
 0x181   : > { %14201 = vmatmul.mubr.bf16.gmra.mrb[140].mxu1 %v2632_v7  ;;  %v2638_v7 = vsel %vm1743_vm2, %v2636_v49, %v2637_v6  ;;  %v12583_v54 = vadd.f32 %v12582_v63, %v12581_v29  ;;  %v2641_v50 = vsel %vm1743_vm2, %v2639_v36, %v2640_v60  ;;  %v2430_v16 = vld [vmem:[#allocation2 + $0x590] sm:$0xf]  ;;  %v2643_v2 = vrot.slane %v2568_v45, 7  ;;  %v12584_v60 = vpop.f32.mrb[40].mxu0  ;;  %v2431_v45 = vld [vmem:[#allocation2 + $0x5a8] sm:$0xf0] }
 0x182   : > { %14204 = vmatprep.mubr.bf16.mxu1 %v2635_v31  ;;  %13041 = vmatpush3.bf16.msra.mxu1 %v14557_v11  ;;  %v15884_v31 = vadd.f32 %v12580_v62, %v15587_v4  ;;  %v2570_v49 = vld [vmem:[#allocation2 + $0x550] sm:$0x7f]  ;;  %v2642_v4 = vrot.slane %v2567_v5, 7  ;;  %v2508_v36 = vrot.slane %v2430_v16, 4  ;;  %v12585_v29 = vpop.f32.mrb[41].mxu0 }
 0x183   : > { %13042 = vmatprep.subr.bf16.mxu1 %v14558_v32  ;;  %v2429_v32 = vld [vmem:[#allocation2 + $0x588] sm:$0xf0]  ;;  %4021 = vmatmul.mubr.bf16.gmra.mrb[144].mxu0 %v2359_v3  ;;  %v15890_v53 = vadd.f32 %v12583_v54, %v15594_v14  ;;  %v2646_v62 = vrot.slane %v2570_v49, 7  ;;  %v14573_v14 = vld [vmem:[%s19994_s2 + $0x400] sm:$0xff]   ;;  %v2572_v5 = vld [vmem:[#allocation2 + $0x570] sm:$0x7f] }
 0x184   : > { %v12514_v38 = vpop.f32.mrb[36].mxu1  ;;  %4028 = vmatprep.mubr.bf16.mxu0 %v2506_v20  ;;  %v2507_v19 = vrot.slane %v2429_v32, 4  ;;  %v2285_v3 = vld [vmem:[#allocation2 + $0x588] sm:$0xfe]  ;;  %v12587_v20 = vpop.f32.mrb[42].mxu0 }
 0x185   : > { %v12515_v44 = vpop.f32.mrb[37].mxu1  ;;  %v12588_v54 = vpop.f32.mrb[43].mxu0  ;;  %v2432_v16 = vld [vmem:[#allocation2 + $0x5b0] sm:$0xf] }
 0x186   : > { %v15881_v11 = vadd.f32 %v12515_v44, %v12514_v38  ;;  %v12517_v61 = vpop.f32.mrb[38].mxu1  ;;  %13043 = vmatpush3.bf16.msra.mxu1 %v14559_v10  ;;  %v2361_v10 = vrot.slane %v2284_v22, 1  ;;  %v2645_v38 = vrot.slane %v2569_v9, 7  ;;  %v2286_v44 = vld [vmem:[#allocation2 + $0x590] sm:$0x1]  ;;  %v2509_v32 = vsel %vm1598_vm0, %v2507_v19, %v2508_v36 }
 0x187   : > { %v12518_v28 = vpop.f32.mrb[39].mxu1  ;;  %v2571_v22 = vld [vmem:[#allocation2 + $0x568] sm:$0x80]  ;;  %13252 = vmatprep.subr.bf16.mxu1 %v14573_v14  ;;  %v2574_v27 = vld [vmem:[#allocation2 + $0x590] sm:$0x7f]  ;;  %v2364_v19 = vrot.slane %v2286_v44, 1 }
 0x188   : > { %v15887_v6 = vadd.f32 %v12518_v28, %v12517_v61  ;;  %v2362_v59 = vsel %vm1453_vm1, %v2360_v48, %v2361_v10  ;;  %v2573_v28 = vld [vmem:[#allocation2 + $0x588] sm:$0x80]  ;;  %v2647_v48 = vsel %vm1743_vm2, %v2645_v38, %v2646_v62  ;;  %v2648_v36 = vrot.slane %v2571_v22, 7 }
 0x189   : > { %14205 = vmatmul.mubr.bf16.gmra.mrb[144].mxu1 %v2638_v7  ;;  %v12586_v7 = vadd.f32 %v12585_v29, %v12584_v60  ;;  %v12589_v29 = vadd.f32 %v12588_v54, %v12587_v20  ;;  %v2511_v14 = vrot.slane %v2432_v16, 4  ;;  %v2651_v20 = vrot.slane %v2573_v28, 7 }
 0x18a   : > { %14208 = vmatprep.mubr.bf16.mxu1 %v2641_v50  ;;  %v2644_v50 = vsel %vm1743_vm2, %v2642_v4, %v2643_v2  ;;  %v2363_v2 = vrot.slane %v2285_v3, 1  ;;  %v2652_v38 = vrot.slane %v2574_v27, 7 }
 0x18b   : > { %v15901_v60 = vadd.f32 %v12586_v7, %v15626_v57  ;;  %4029 = vmatmul.mubr.bf16.gmra.mrb[148].mxu0 %v2362_v59  ;;  %v15907_v4 = vadd.f32 %v12589_v29, %v15641_v1  ;;  %v2510_v57 = vrot.slane %v2431_v45, 4  ;;  %v12590_v7 = vpop.f32.mrb[44].mxu0  ;;  %v2287_v59 = vld [vmem:[#allocation2 + $0x5a8] sm:$0xfe]  ;;  %v2288_v29 = vld [vmem:[#allocation2 + $0x5b0] sm:$0x1] }
 0x18c   : > { %v12520_v63 = vpop.f32.mrb[40].mxu1  ;;  %4036 = vmatprep.mubr.bf16.mxu0 %v2509_v32  ;;  %v12591_v62 = vpop.f32.mrb[45].mxu0  ;;  %v2365_v1 = vsel %vm1453_vm1, %v2363_v2, %v2364_v19  ;;  %v4504_v45 = vld [vmem:[#allocation2 + $0x188] sm:$0xf0]  ;;  %v4505_v2 = vld [vmem:[#allocation2 + $0x190] sm:$0xf] }
 0x18d   : > { %v12521_v61 = vpop.f32.mrb[41].mxu1  ;;  %v12592_v54 = vadd.f32 %v12591_v62, %v12590_v7  ;;  %v2512_v22 = vsel %vm1598_vm0, %v2510_v57, %v2511_v14  ;;  %v4793_v19 = vld [vmem:[#allocation2 + $0x300] sm:$0xc0]  ;;  %v4794_v62 = vld [vmem:[#allocation2 + $0x308] sm:$0x3f]  ;;  %v2367_v57 = vrot.slane %v2288_v29, 1 }
 0x18e   : > { %v15898_v9 = vadd.f32 %v12521_v61, %v12520_v63  ;;  %v12523_v49 = vpop.f32.mrb[42].mxu1  ;;  %v2649_v63 = vrot.slane %v2572_v5, 7  ;;  %v2576_v5 = vld [vmem:[#allocation2 + $0x5b0] sm:$0x7f] }
 0x18f   : > { %v12524_v10 = vpop.f32.mrb[43].mxu1  ;;  %v15915_v28 = vadd.f32 %v12592_v54, %v15674_v39  ;;  %v2655_v39 = vrot.slane %v2576_v5, 7  ;;  %v4569_v54 = vrot.slane %v4505_v2, 4  ;;  %v4648_v5 = vld [vmem:[#allocation2 + $0x190] sm:$0xfc] }
 0x190   : > { %v15904_v58 = vadd.f32 %v12524_v10, %v12523_v49  ;;  %v12593_v49 = vpop.f32.mrb[46].mxu0  ;;  %v2650_v44 = vsel %vm1743_vm2, %v2648_v36, %v2649_v63  ;;  %v2653_v10 = vsel %vm1743_vm2, %v2651_v20, %v2652_v38  ;;  %v2366_v63 = vrot.slane %v2287_v59, 1 }
 0x191   : > { %14209 = vmatmul.mubr.bf16.gmra.mrb[148].mxu1 %v2644_v50  ;;  %v2575_v50 = vld [vmem:[#allocation2 + $0x5a8] sm:$0x80]  ;;  %v12594_v3 = vpop.f32.mrb[47].mxu0  ;;  %v4857_v20 = vrot.slane %v4793_v19, 6 }
 0x192   : > { %14212 = vmatprep.mubr.bf16.mxu1 %v2647_v48  ;;  %v12595_v48 = vadd.f32 %v12594_v3, %v12593_v49  ;;  %v2654_v14 = vrot.slane %v2575_v50, 7  ;;  %v12596_v38 = vpop.f32.mrb[48].mxu0  ;;  %v4858_v49 = vrot.slane %v4794_v62, 6  ;;  %v4360_v50 = vld [vmem:[#allocation2 + $0x188] sm:$0x3f] }
 0x193   : > { %4037 = vmatmul.mubr.bf16.gmra.mrb[152].mxu0 %v2365_v1  ;;  %v4649_v62 = vld [vmem:[#allocation2 + $0x198] sm:$0x3] }
 0x194   : > { %v12526_v61 = vpop.f32.mrb[44].mxu1  ;;  %v15921_v36 = vadd.f32 %v12595_v48, %v15680_v23  ;;  %4044 = vmatprep.mubr.bf16.mxu0 %v2512_v22  ;;  %v2368_v23 = vsel %vm1453_vm1, %v2366_v63, %v2367_v57  ;;  %v4359_v48 = vld [vmem:[#allocation2 + $0x180] sm:$0xc0]  ;;  %v2656_v59 = vsel %vm1743_vm2, %v2654_v14, %v2655_v39  ;;  %v4506_v57 = vld [vmem:[#allocation2 + $0x1a8] sm:$0xf0] }
 0x195   : > { %v12527_v32 = vpop.f32.mrb[45].mxu1  ;;  %v4507_v14 = vld [vmem:[#allocation2 + $0x1b0] sm:$0xf]  ;;  %v4795_v39 = vld [vmem:[#allocation2 + $0x320] sm:$0xc0] }
 0x196   : > { %v15912_v16 = vadd.f32 %v12527_v32, %v12526_v61  ;;  %v12529_v27 = vpop.f32.mrb[46].mxu1  ;;  %v4568_v61 = vrot.slane %v4504_v45, 4  ;;  %v12597_v32 = vpop.f32.mrb[49].mxu0 }
 0x197   : > { %v12530_v7 = vpop.f32.mrb[47].mxu1  ;;  %v12598_v3 = vadd.f32 %v12597_v32, %v12596_v38  ;;  %v4424_v32 = vrot.slane %v4359_v48, 6 }
 0x198   : > { %v15918_v17 = vadd.f32 %v12530_v7, %v12529_v27  ;;  %v12599_v27 = vpop.f32.mrb[50].mxu0  ;;  %v4570_v29 = vsel %vm1598_vm0, %v4568_v61, %v4569_v54  ;;  %v4859_v7 = vsel %vm4423_vm3, %v4857_v20, %v4858_v49  ;;  %v4796_v61 = vld [vmem:[#allocation2 + $0x328] sm:$0x3f]  ;;  %v4714_v20 = vrot.slane %v4649_v62, 2  ;;  %v4651_v62 = vld [vmem:[#allocation2 + $0x1b8] sm:$0x3] }
 0x199   : > { %14213 = vmatmul.mubr.bf16.gmra.mrb[152].mxu1 %v2650_v44  ;;  %v12600_v22 = vpop.f32.mrb[51].mxu0  ;;  %v15929_v2 = vadd.f32 %v12598_v3, %v15707_v46  ;;  %v4425_v46 = vrot.slane %v4360_v50, 6  ;;  %v4571_v49 = vrot.slane %v4506_v57, 4  ;;  %v14562_v57 = vld [vmem:[%s19994_s2 + $0x388] sm:$0xff]  }
 0x19a   : > { %14216 = vmatprep.mubr.bf16.mxu1 %v2653_v10  ;;  %v12601_v19 = vadd.f32 %v12600_v22, %v12599_v27  ;;  %v12602_v3 = vpop.f32.mrb[52].mxu0  ;;  %v14561_v27 = vld [vmem:[%s19994_s2 + $0x340] sm:$0xff]   ;;  %v4861_v22 = vrot.slane %v4796_v61, 6 }
 0x19b   : > { %4045 = vmatmul.mubr.bf16.gmra.mrb[156].mxu0 %v2368_v23  ;;  %v4572_v23 = vrot.slane %v4507_v14, 4 }
 0x19c   : > { %v12532_v1 = vpop.f32.mrb[48].mxu1  ;;  %v15935_v54 = vadd.f32 %v12601_v19, %v15713_v13  ;;  %6411 = vmatprep.mubr.bf16.mxu0 %v4570_v29  ;;  %v12603_v13 = vpop.f32.mrb[53].mxu0  ;;  %v4650_v29 = vld [vmem:[#allocation2 + $0x1b0] sm:$0xfc] }
 0x19d   : > { %v12533_v44 = vpop.f32.mrb[49].mxu1  ;;  %v12604_v48 = vadd.f32 %v12603_v13, %v12602_v3  ;;  %v12605_v50 = vpop.f32.mrb[54].mxu0 }
 0x19e   : > { %v15926_v45 = vadd.f32 %v12533_v44, %v12532_v1  ;;  %v12535_v10 = vpop.f32.mrb[50].mxu1  ;;  %v4713_v1 = vrot.slane %v4648_v5, 2  ;;  %v4860_v44 = vrot.slane %v4795_v39, 6  ;;  %v12606_v42 = vpop.f32.mrb[55].mxu0 }
 0x19f   : > { %v12536_v63 = vpop.f32.mrb[51].mxu1  ;;  %v15948_v3 = vadd.f32 %v12604_v48, %v15742_v41  ;;  %v12607_v13 = vadd.f32 %v12606_v42, %v12605_v50  ;;  %v14576_v41 = vld [vmem:[%s19994_s2 + $0x408] sm:$0xff]   ;;  %v4864_v48 = vrot.slane %v4798_v8, 6  ;;  %v12608_v50 = vpop.f32.mrb[56].mxu0  ;;  %v14565_v8 = vld [vmem:[%s19994_s2 + $0x350] sm:$0xff]  }
 0x1a0   : > { %v15932_v38 = vadd.f32 %v12536_v63, %v12535_v10  ;;  %v4361_v10 = vld [vmem:[#allocation2 + $0x1a0] sm:$0xc0]  ;;  %v4508_v63 = vld [vmem:[#allocation2 + $0x1c8] sm:$0xf0]  ;;  %v4715_v14 = vsel %vm4712_vm4, %v4713_v1, %v4714_v20 }
 0x1a1   : > { %14217 = vmatmul.mubr.bf16.gmra.mrb[156].mxu1 %v2656_v59  ;;  %v4362_v59 = vld [vmem:[#allocation2 + $0x1a8] sm:$0x3f]  ;;  %v4427_v1 = vrot.slane %v4361_v10, 6  ;;  %v15961_v42 = vadd.f32 %v12607_v13, %v15754_v18  ;;  %v4575_v10 = vrot.slane %v4509_v52, 4  ;;  %v14564_v18 = vld [vmem:[%s19994_s2 + $0x390] sm:$0xff]   ;;  %v14566_v13 = vld [vmem:[%s19994_s2 + $0x398] sm:$0xff]  }
 0x1a2   : > { %6572 = vmatprep.mubr.bf16.mxu1 %v4859_v7  ;;  %v4426_v7 = vsel %vm4423_vm3, %v4424_v32, %v4425_v46  ;;  %v4573_v32 = vsel %vm1598_vm0, %v4571_v49, %v4572_v23  ;;  %v4862_v46 = vsel %vm4423_vm3, %v4860_v44, %v4861_v22  ;;  %v4428_v49 = vrot.slane %v4362_v59, 6  ;;  %v14563_v22 = vld [vmem:[%s19994_s2 + $0x348] sm:$0xff]   ;;  %v15976_v52 = vld [vmem:[#allocation2 + $0x1d0] sm:$0xfc] }
 0x1a3   : > { %6412 = vmatmul.mubr.bf16.vlgmr.msra.gmra.mrb[160].mxu0 %v4426_v7  ;;  %v4716_v23 = vrot.slane %v4650_v29, 2  ;;  %v4717_v44 = vrot.slane %v4651_v62, 2  ;;  %v15969_v7 = vld [vmem:[#allocation2 + $0x1c0] sm:$0xc0]  ;;  %v14577_v59 = vld [vmem:[%s19994_s2 + $0x3c8] sm:$0xff]   ;;  %v12609_v29 = vpop.f32.mrb[57].mxu0 }
 0x1a4   : > { %v12538_v19 = vpop.f32.mrb[52].mxu1  ;;  %13141 = vmatpush3.bf16.msra.mxu0 %v14561_v27  ;;  %6419 = vmatprep.mubr.bf16.mxu0 %v4573_v32  ;;  %v15971_v27 = vld [vmem:[#allocation2 + $0x1c8] sm:$0x3f]  ;;  %v12610_v62 = vadd.f32 %v12609_v29, %v12608_v50  ;;  %v4511_v29 = vld [vmem:[#allocation2 + $0x1f0] sm:$0xf] }
 0x1a5   : > { %v12539_v5 = vpop.f32.mrb[53].mxu1  ;;  %13142 = vmatprep.subr.bf16.mxu0 %v14562_v57 }
 0x1a6   : > { %v15945_v39 = vadd.f32 %v12539_v5, %v12538_v19  ;;  %v12541_v61 = vpop.f32.mrb[54].mxu1  ;;  %v4863_v19 = vrot.slane %v4797_v24, 6  ;;  %v14578_v24 = vld [vmem:[%s19994_s2 + $0x410] sm:$0xff]  }
 0x1a7   : > { %v12542_v34 = vpop.f32.mrb[55].mxu1 }
 0x1a8   : > { %v15955_v20 = vadd.f32 %v12542_v34, %v12541_v61  ;;  %v4574_v34 = vrot.slane %v4508_v63, 4  ;;  %v12611_v63 = vpop.f32.mrb[58].mxu0  ;;  %13143 = vmatpush3.bf16.msra.mxu0 %v14563_v22  ;;  %v15987_v61 = vld [vmem:[#allocation2 + $0x1e8] sm:$0xf0]  ;;  %v4865_v35 = vsel %vm4423_vm3, %v4863_v19, %v4864_v48  ;;  %v14580_v19 = vld [vmem:[%s19994_s2 + $0x418] sm:$0xff]  }
 0x1a9   : > { %6573 = vmatmul.mubr.bf16.vlgmr.msra.gmra.mrb[160].mxu1 %v4715_v14  ;;  %v15985_v14 = vld [vmem:[#allocation2 + $0x1d8] sm:$0x3]  ;;  %v12612_v32 = vpop.f32.mrb[59].mxu0  ;;  %13144 = vmatprep.subr.bf16.mxu0 %v14564_v18  ;;  %v4719_v18 = vrot.slane %v15976_v52, 2 }
 0x1aa   : > { %6580 = vmatprep.mubr.bf16.mxu1 %v4862_v46  ;;  %13253 = vmatpush3.bf16.msra.mxu1 %v14575_v12  ;;  %v4429_v12 = vsel %vm4423_vm3, %v4427_v1, %v4428_v49  ;;  %v4718_v46 = vsel %vm4712_vm4, %v4716_v23, %v4717_v44  ;;  %v4576_v50 = vsel %vm1598_vm0, %v4574_v34, %v4575_v10  ;;  %v4799_v1 = vld [vmem:[#allocation2 + $0x360] sm:$0xc0]  ;;  %v14579_v23 = vld [vmem:[%s19994_s2 + $0x3d0] sm:$0xff]   ;;  %v4430_v34 = vrot.slane %v15969_v7, 6  ;;  %v16009_v10 = vld [vmem:[#allocation2 + $0x1e8] sm:$0x3f] }
 0x1ab   : > { %13254 = vmatprep.subr.bf16.mxu1 %v14576_v41  ;;  %v15997_v49 = vadd.f32 %v12610_v62, %v15785_v43  ;;  %v12613_v22 = vadd.f32 %v12612_v32, %v12611_v63  ;;  %6420 = vmatmul.mubr.bf16.gmra.mrb[164].mxu0 %v4429_v12  ;;  %v4431_v43 = vrot.slane %v15971_v27, 6  ;;  %v14567_v7 = vld [vmem:[%s19994_s2 + $0x358] sm:$0xff]   ;;  %v14568_v27 = vld [vmem:[%s19994_s2 + $0x3a0] sm:$0xff]   ;;  %v16027_v62 = vld [vmem:[#allocation2 + $0x1f0] sm:$0xfc]  ;;  %v12614_v52 = vpop.f32.mrb[60].mxu0 }
 0x1ac   : > { %v12544_v5 = vpop.f32.mrb[56].mxu1  ;;  %6427 = vmatprep.mubr.bf16.mxu0 %v4576_v50  ;;  %13145 = vmatpush3.bf16.msra.mxu0 %v14565_v8  ;;  %v4434_v63 = vrot.slane %v16009_v10, 6  ;;  %v16030_v12 = vld [vmem:[#allocation2 + $0x1f8] sm:$0x3]  ;;  %v14569_v8 = vld [vmem:[%s19994_s2 + $0x360] sm:$0xff]  }
 0x1ad   : > { %v12545_v57 = vpop.f32.mrb[57].mxu1  ;;  %v16015_v48 = vadd.f32 %v12613_v22, %v15795_v37  ;;  %v4866_v37 = vrot.slane %v4799_v1, 6  ;;  %13146 = vmatprep.subr.bf16.mxu0 %v14566_v13  ;;  %v4432_v13 = vsel %vm4423_vm3, %v4430_v34, %v4431_v43  ;;  %v4722_v34 = vrot.slane %v16027_v62, 2  ;;  %v14570_v43 = vld [vmem:[%s19994_s2 + $0x3a8] sm:$0xff]   ;;  %v16069_v62 = vld [vmem:[#allocation2 + $0x200] sm:$0xc0] }
 0x1ae   : > { %v15993_v41 = vadd.f32 %v12545_v57, %v12544_v5  ;;  %v12547_v21 = vpop.f32.mrb[58].mxu1  ;;  %13255 = vmatpush3.bf16.msra.mxu1 %v14577_v59  ;;  %v4578_v59 = vrot.slane %v4511_v29, 4  ;;  %v4867_v5 = vrot.slane %v4800_v30, 6  ;;  %v16032_v57 = vld [vmem:[#allocation2 + $0x208] sm:$0xf0]  ;;  %v14583_v30 = vld [vmem:[%s19994_s2 + $0x420] sm:$0xff]  }
 0x1af   : > { %v12548_v25 = vpop.f32.mrb[59].mxu1  ;;  %13256 = vmatprep.subr.bf16.mxu1 %v14578_v24  ;;  %20048 = vst [vmem:[#allocation21_spill] sm:$0xff] %v16015_v48  ;;  %v4513_v29 = vld [vmem:[#allocation2 + $0x210] sm:$0xf] }
 0x1b0   : > { %v16005_v44 = vadd.f32 %v12548_v25, %v12547_v21  ;;  %v4720_v25 = vrot.slane %v15985_v14, 2  ;;  %v4577_v21 = vrot.slane %v15987_v61, 4  ;;  %v12615_v14 = vpop.f32.mrb[61].mxu0  ;;  %13147 = vmatpush3.bf16.msra.mxu0 %v14567_v7  ;;  %v4581_v7 = vrot.slane %v4513_v29, 4 }
 0x1b1   : > { %6581 = vmatmul.mubr.bf16.gmra.mrb[164].mxu1 %v4718_v46  ;;  %v12616_v32 = vadd.f32 %v12615_v14, %v12614_v52  ;;  %v12617_v46 = vpop.f32.mrb[62].mxu0  ;;  %v4868_v14 = vsel %vm4423_vm3, %v4866_v37, %v4867_v5  ;;  %13148 = vmatprep.subr.bf16.mxu0 %v14568_v27  ;;  %v14586_v27 = vld [vmem:[%s19994_s2 + $0x428] sm:$0xff]   ;;  %v4869_v37 = vrot.slane %v4801_v47, 6  ;;  %v4870_v5 = vrot.slane %v4802_v56, 6 }
 0x1b2   : > { %6588 = vmatprep.mubr.bf16.mxu1 %v4865_v35  ;;  %13257 = vmatpush3.bf16.msra.mxu1 %v14579_v23  ;;  %v14581_v35 = vld [vmem:[%s19994_s2 + $0x3d8] sm:$0xff]   ;;  %v12618_v1 = vpop.f32.mrb[63].mxu0  ;;  %v4721_v23 = vsel %vm4712_vm4, %v4719_v18, %v4720_v25  ;;  %v4579_v24 = vsel %vm1598_vm0, %v4577_v21, %v4578_v59  ;;  %v14585_v18 = vld [vmem:[%s19994_s2 + $0x3e0] sm:$0xff]   ;;  %v4580_v21 = vrot.slane %v16032_v57, 4  ;;  %v14572_v57 = vld [vmem:[%s19994_s2 + $0x3b0] sm:$0xff]  }
 0x1b3   : > { %13258 = vmatprep.subr.bf16.mxu1 %v14580_v19  ;;  %v16049_v48 = vadd.f32 %v12616_v32, %v15829_v51  ;;  %v12619_v19 = vadd.f32 %v12618_v1, %v12617_v46  ;;  %6428 = vmatmul.mubr.bf16.gmra.mrb[168].mxu0 %v4432_v13  ;;  %v4723_v51 = vrot.slane %v16030_v12, 2  ;;  %v14571_v12 = vld [vmem:[%s19994_s2 + $0x368] sm:$0xff]   ;;  %v12620_v47 = vpop.f32.mrb[64].mxu0  ;;  %v16095_v1 = vld [vmem:[#allocation2 + $0x3a0] sm:$0xc0] }
 0x1b4   : > { %v12550_v61 = vpop.f32.mrb[60].mxu1  ;;  %6435 = vmatprep.mubr.bf16.mxu0 %v4579_v24  ;;  %13149 = vmatpush3.bf16.msra.mxu0 %v14569_v8  ;;  %v16083_v56 = vld [vmem:[#allocation2 + $0x228] sm:$0xf0]  ;;  %v16085_v24 = vld [vmem:[#allocation2 + $0x230] sm:$0xf]  ;;  %v12621_v46 = vpop.f32.mrb[65].mxu0  ;;  %v4582_v8 = vsel %vm1598_vm0, %v4580_v21, %v4581_v7 }
 0x1b5   : > { %v12551_v50 = vpop.f32.mrb[61].mxu1  ;;  %v16067_v59 = vadd.f32 %v12619_v19, %v15839_v26  ;;  %v16081_v26 = vld [vmem:[#allocation2 + $0x218] sm:$0x3]  ;;  %13150 = vmatprep.subr.bf16.mxu0 %v14570_v43  ;;  %v4724_v29 = vsel %vm4712_vm4, %v4722_v34, %v4723_v51  ;;  %v4804_v43 = vld [vmem:[#allocation2 + $0x3a8] sm:$0x3f] }
 0x1b6   : > { %v16044_v22 = vadd.f32 %v12551_v50, %v12550_v61  ;;  %v12553_v10 = vpop.f32.mrb[62].mxu1  ;;  %13259 = vmatpush3.bf16.msra.mxu1 %v14581_v35  ;;  %v16077_v35 = vld [vmem:[#allocation2 + $0x208] sm:$0x3f]  ;;  %v20049_v50 = vrot.slane %v16000_v40, 6  ;;  %v4436_v40 = vrot.slane %v16069_v62, 6  ;;  %v4726_v7 = vrot.slane %v16081_v26, 2 }
 0x1b7   : > { %v12554_v52 = vpop.f32.mrb[63].mxu1  ;;  %13260 = vmatprep.subr.bf16.mxu1 %v14583_v30  ;;  %v16079_v30 = vld [vmem:[#allocation2 + $0x210] sm:$0xfc]  ;;  %v14587_v61 = vld [vmem:[%s19994_s2 + $0x3e8] sm:$0xff]  }
 0x1b8   : > { %v16059_v25 = vadd.f32 %v12554_v52, %v12553_v10  ;;  %v4435_v13 = vsel %vm4423_vm3, %v20049_v50, %v4434_v63  ;;  %v12622_v10 = vadd.f32 %v12621_v46, %v12620_v47  ;;  %v12623_v52 = vpop.f32.mrb[66].mxu0  ;;  %v4437_v63 = vrot.slane %v16077_v35, 6  ;;  %13151 = vmatpush3.bf16.msra.mxu0 %v14571_v12  ;;  %v14574_v47 = vld [vmem:[%s19994_s2 + $0x370] sm:$0xff]  }
 0x1b9   : > { %6589 = vmatmul.mubr.bf16.gmra.mrb[168].mxu1 %v4721_v23  ;;  %v14588_v23 = vld [vmem:[%s19994_s2 + $0x430] sm:$0xff]   ;;  %v12624_v51 = vpop.f32.mrb[67].mxu0  ;;  %v4725_v21 = vrot.slane %v16079_v30, 2  ;;  %v4584_v35 = vrot.slane %v16085_v24, 4  ;;  %13152 = vmatprep.subr.bf16.mxu0 %v14572_v57  ;;  %v14582_v30 = vld [vmem:[%s19994_s2 + $0x3b8] sm:$0xff]  }
 0x1ba   : > { %6596 = vmatprep.mubr.bf16.mxu1 %v4868_v14  ;;  %13261 = vmatpush3.bf16.msra.mxu1 %v14585_v18  ;;  %v4871_v14 = vsel %vm4423_vm3, %v4869_v37, %v4870_v5  ;;  %v16110_v37 = vadd.f32 %v12622_v10, %v15858_v0  ;;  %v12625_v5 = vadd.f32 %v12624_v51, %v12623_v52  ;;  %v14589_v12 = vld [vmem:[%s19994_s2 + $0x3f0] sm:$0xff]   ;;  %v14584_v24 = vld [vmem:[%s19994_s2 + $0x378] sm:$0xff]   ;;  %v12626_v50 = vpop.f32.mrb[68].mxu0 }
 0x1bb   : > { %13262 = vmatprep.subr.bf16.mxu1 %v14586_v27  ;;  %v4583_v27 = vrot.slane %v16083_v56, 4  ;;  %6436 = vmatmul.mubr.bf16.gmra.mrb[172].mxu0 %v4435_v13  ;;  %v4873_v56 = vrot.slane %v4804_v43, 6  ;;  %v14590_v57 = vld [vmem:[%s19994_s2 + $0x438] sm:$0xff]   ;;  %v4369_v13 = vld [vmem:[#allocation2 + $0x220] sm:$0xc0] }
 0x1bc   : > { %v12684_v32 = vpop.f32.mrb[64].mxu1  ;;  %6443 = vmatprep.mubr.bf16.mxu0 %v4582_v8  ;;  %13153 = vmatpush3.bf16.msra.mxu0 %v14574_v47  ;;  %v4658_v52 = vld [vmem:[#allocation2 + $0x230] sm:$0xfc]  ;;  %v4659_v47 = vld [vmem:[#allocation2 + $0x238] sm:$0x3] }
 0x1bd   : > { %v12685_v19 = vpop.f32.mrb[65].mxu1  ;;  %13154 = vmatprep.subr.bf16.mxu0 %v14582_v30  ;;  %v4585_v51 = vsel %vm1598_vm0, %v4583_v27, %v4584_v35  ;;  %v4806_v35 = vld [vmem:[#allocation2 + $0x3c8] sm:$0x3f] }
 0x1be   : > { %v12686_v34 = vadd.f32 %v12685_v19, %v12684_v32  ;;  %v12687_v18 = vpop.f32.mrb[66].mxu1  ;;  %v4872_v32 = vrot.slane %v16095_v1, 6  ;;  %13263 = vmatpush3.bf16.msra.mxu1 %v14587_v61  ;;  %v16130_v61 = vadd.f32 %v12625_v5, %v15870_v55  ;;  %v14592_v55 = vld [vmem:[%s19994_s2 + $0x440] sm:$0xff]   ;;  %v4438_v19 = vsel %vm4423_vm3, %v4436_v40, %v4437_v63  ;;  %v4516_v5 = vld [vmem:[#allocation2 + $0x248] sm:$0xf0] }
 0x1bf   : > { %v12688_v62 = vpop.f32.mrb[67].mxu1  ;;  %13264 = vmatprep.subr.bf16.mxu1 %v14588_v23  ;;  %v4517_v40 = vld [vmem:[#allocation2 + $0x250] sm:$0xf]  ;;  %v4805_v63 = vld [vmem:[#allocation2 + $0x3c0] sm:$0xc0] }
 0x1c0   : > { %v16121_v26 = vadd.f32 %v12686_v34, %v15864_v33  ;;  %v12689_v0 = vadd.f32 %v12688_v62, %v12687_v18  ;;  %v14591_v33 = vld [vmem:[%s19994_s2 + $0x3f8] sm:$0xff]   ;;  %v4727_v18 = vsel %vm4712_vm4, %v4725_v21, %v4726_v7  ;;  %13155 = vmatpush3.bf16.msra.mxu0 %v14584_v24  ;;  %v4439_v7 = vrot.slane %v4369_v13, 6 }
 0x1c1   : > { %6597 = vmatmul.mubr.bf16.gmra.mrb[172].mxu1 %v4724_v29  ;;  %v12627_v29 = vpop.f32.mrb[69].mxu0  ;;  %14220 = vmatprep.subr.bf16.mxu0 %v14592_v55 }
 0x1c2   : > { %v16136_v46 = vadd.f32 %v12689_v0, %v15873_v15  ;;  %6604 = vmatprep.mubr.bf16.mxu1 %v4871_v14  ;;  %13265 = vmatpush3.bf16.msra.mxu1 %v14589_v12  ;;  %v12628_v8 = vadd.f32 %v12627_v29, %v12626_v50  ;;  %v12629_v10 = vpop.f32.mrb[70].mxu0  ;;  %v4370_v15 = vld [vmem:[#allocation2 + $0x228] sm:$0x3f]  ;;  %v4874_v0 = vsel %vm4423_vm3, %v4872_v32, %v4873_v56  ;;  %v4729_v50 = vrot.slane %v4659_v47, 2  ;;  %v4371_v29 = vld [vmem:[#allocation2 + $0x240] sm:$0xc0] }
 0x1c3   : > { %13266 = vmatprep.subr.bf16.mxu1 %v14590_v57  ;;  %v12630_v34 = vpop.f32.mrb[71].mxu0  ;;  %6444 = vmatmul.mubr.bf16.gmra.mrb[176].mxu0 %v4438_v19  ;;  %v4440_v27 = vrot.slane %v4370_v15, 6  ;;  %v4586_v32 = vrot.slane %v4516_v5, 4  ;;  %v4518_v47 = vld [vmem:[#allocation2 + $0x268] sm:$0xf0] }
 0x1c4   : > { %v12690_v1 = vpop.f32.mrb[68].mxu1  ;;  %v16145_v62 = vadd.f32 %v12628_v8, %v15881_v11  ;;  %v12631_v30 = vadd.f32 %v12630_v34, %v12629_v10  ;;  %6451 = vmatprep.mubr.bf16.mxu0 %v4585_v51  ;;  %v4728_v11 = vrot.slane %v4658_v52, 2  ;;  %v12632_v55 = vpop.f32.mrb[72].mxu0  ;;  %v4660_v10 = vld [vmem:[#allocation2 + $0x250] sm:$0xfc] }
 0x1c5   : > { %v12691_v23 = vpop.f32.mrb[69].mxu1  ;;  %v12633_v8 = vpop.f32.mrb[73].mxu0  ;;  %v4441_v52 = vsel %vm4423_vm3, %v4439_v7, %v4440_v27  ;;  %v4661_v51 = vld [vmem:[#allocation2 + $0x258] sm:$0x3]  ;;  %v4442_v27 = vrot.slane %v4371_v29, 6 }
 0x1c6   : > { %v12692_v14 = vadd.f32 %v12691_v23, %v12690_v1  ;;  %v12693_v43 = vpop.f32.mrb[70].mxu1  ;;  %13267 = vmatpush3.bf16.msra.mxu1 %v14591_v33  ;;  %v16152_v24 = vadd.f32 %v12631_v30, %v15887_v6  ;;  %v4587_v33 = vrot.slane %v4517_v40, 4  ;;  %v4876_v1 = vrot.slane %v4806_v35, 6  ;;  %v4372_v23 = vld [vmem:[#allocation2 + $0x248] sm:$0x3f]  ;;  %v12635_v15 = vpop.f32.mrb[74].mxu0 }
 0x1c7   : > { %v12694_v12 = vpop.f32.mrb[71].mxu1  ;;  %v12634_v6 = vadd.f32 %v12633_v8, %v12632_v55  ;;  %v12636_v34 = vpop.f32.mrb[75].mxu0  ;;  %v4519_v40 = vld [vmem:[#allocation2 + $0x270] sm:$0xf]  ;;  %v4808_v35 = vld [vmem:[#allocation2 + $0x3e8] sm:$0x3f] }
 0x1c8   : > { %v16149_v57 = vadd.f32 %v12692_v14, %v15884_v31  ;;  %v12695_v21 = vadd.f32 %v12694_v12, %v12693_v43  ;;  %v4875_v31 = vrot.slane %v4805_v63, 6  ;;  %v12637_v30 = vadd.f32 %v12636_v34, %v12635_v15  ;;  %v4807_v63 = vld [vmem:[#allocation2 + $0x3e0] sm:$0xc0] }
 0x1c9   : > { %6605 = vmatmul.mubr.bf16.gmra.mrb[176].mxu1 %v4727_v18  ;;  %v4588_v18 = vsel %vm1598_vm0, %v4586_v32, %v4587_v33  ;;  %v16161_v5 = vadd.f32 %v12634_v6, %v15898_v9  ;;  %v4443_v9 = vrot.slane %v4372_v23, 6  ;;  %v4732_v32 = vrot.slane %v4661_v51, 2  ;;  %v4373_v6 = vld [vmem:[#allocation2 + $0x260] sm:$0xc0] }
 0x1ca   : > { %v16155_v56 = vadd.f32 %v12695_v21, %v15890_v53  ;;  %6612 = vmatprep.mubr.bf16.mxu1 %v4874_v0  ;;  %v4730_v53 = vsel %vm4712_vm4, %v4728_v11, %v4729_v50  ;;  %v4877_v0 = vsel %vm4423_vm3, %v4875_v31, %v4876_v1  ;;  %v16168_v11 = vadd.f32 %v12637_v30, %v15904_v58  ;;  %v12638_v1 = vpop.f32.mrb[76].mxu0  ;;  %v4662_v58 = vld [vmem:[#allocation2 + $0x270] sm:$0xfc] }
 0x1cb   : > { %6452 = vmatmul.mubr.bf16.gmra.mrb[180].mxu0 %v4441_v52  ;;  %v4731_v50 = vrot.slane %v4660_v10, 2  ;;  %v4589_v31 = vrot.slane %v4518_v47, 4  ;;  %v4590_v55 = vrot.slane %v4519_v40, 4  ;;  %v12639_v29 = vpop.f32.mrb[77].mxu0  ;;  %v4444_v23 = vsel %vm4423_vm3, %v4442_v27, %v4443_v9  ;;  %v4663_v10 = vld [vmem:[#allocation2 + $0x278] sm:$0x3] }
 0x1cc   : > { %v12696_v13 = vpop.f32.mrb[72].mxu1  ;;  %6459 = vmatprep.mubr.bf16.mxu0 %v4588_v18  ;;  %v12640_v15 = vadd.f32 %v12639_v29, %v12638_v1  ;;  %v4809_v27 = vld [vmem:[#allocation2 + $0x400] sm:$0xc0] }
 0x1cd   : > { %v12697_v19 = vpop.f32.mrb[73].mxu1  ;;  %v4733_v51 = vsel %vm4712_vm4, %v4731_v50, %v4732_v32  ;;  %v4591_v47 = vsel %vm1598_vm0, %v4589_v31, %v4590_v55  ;;  %v4445_v50 = vrot.slane %v4373_v6, 6  ;;  %v4735_v55 = vrot.slane %v4663_v10, 2 }
 0x1ce   : > { %v12698_v14 = vadd.f32 %v12697_v19, %v12696_v13  ;;  %v12699_v43 = vpop.f32.mrb[74].mxu1  ;;  %v4879_v13 = vrot.slane %v4808_v35, 6  ;;  %v4374_v19 = vld [vmem:[#allocation2 + $0x268] sm:$0x3f]  ;;  %v16177_v30 = vadd.f32 %v12640_v15, %v15912_v16  ;;  %v4734_v16 = vrot.slane %v4662_v58, 2 }
 0x1cf   : > { %v12700_v12 = vpop.f32.mrb[75].mxu1  ;;  %v4810_v35 = vld [vmem:[#allocation2 + $0x408] sm:$0x3f]  ;;  %v4446_v32 = vrot.slane %v4374_v19, 6  ;;  %v4665_v58 = vld [vmem:[#allocation2 + $0x298] sm:$0x3] }
 0x1d0   : > { %v16165_v21 = vadd.f32 %v12698_v14, %v15901_v60  ;;  %v12701_v7 = vadd.f32 %v12700_v12, %v12699_v43  ;;  %v4878_v60 = vrot.slane %v4807_v63, 6  ;;  %v12641_v14 = vpop.f32.mrb[78].mxu0  ;;  %v4520_v43 = vld [vmem:[#allocation2 + $0x288] sm:$0xf0] }
 0x1d1   : > { %6613 = vmatmul.mubr.bf16.gmra.mrb[180].mxu1 %v4730_v53  ;;  %v12642_v18 = vpop.f32.mrb[79].mxu0  ;;  %v4447_v19 = vsel %vm4423_vm3, %v4445_v50, %v4446_v32 }
 0x1d2   : > { %v16171_v33 = vadd.f32 %v12701_v7, %v15907_v4  ;;  %6620 = vmatprep.mubr.bf16.mxu1 %v4877_v0  ;;  %v4521_v4 = vld [vmem:[#allocation2 + $0x290] sm:$0xf]  ;;  %v12643_v12 = vadd.f32 %v12642_v18, %v12641_v14  ;;  %v4880_v40 = vsel %vm4423_vm3, %v4878_v60, %v4879_v13  ;;  %v4592_v60 = vrot.slane %v4520_v43, 4  ;;  %v12644_v1 = vpop.f32.mrb[80].mxu0 }
 0x1d3   : > { %6460 = vmatmul.mubr.bf16.gmra.mrb[184].mxu0 %v4444_v23  ;;  %v4881_v13 = vrot.slane %v4809_v27, 6  ;;  %v12645_v15 = vpop.f32.mrb[81].mxu0  ;;  %v4664_v14 = vld [vmem:[#allocation2 + $0x290] sm:$0xfc] }
 0x1d4   : > { %v12702_v8 = vpop.f32.mrb[76].mxu1  ;;  %v16184_v9 = vadd.f32 %v12643_v12, %v15918_v17  ;;  %6467 = vmatprep.mubr.bf16.mxu0 %v4591_v47  ;;  %v4376_v17 = vld [vmem:[#allocation2 + $0x288] sm:$0x3f]  ;;  %v12646_v23 = vadd.f32 %v12645_v15, %v12644_v1  ;;  %v12647_v6 = vpop.f32.mrb[82].mxu0  ;;  %v4811_v47 = vld [vmem:[#allocation2 + $0x420] sm:$0xc0] }
 0x1d5   : > { %v12703_v52 = vpop.f32.mrb[77].mxu1  ;;  %v12648_v43 = vpop.f32.mrb[83].mxu0  ;;  %v4812_v12 = vld [vmem:[#allocation2 + $0x428] sm:$0x3f] }
 0x1d6   : > { %v12704_v34 = vadd.f32 %v12703_v52, %v12702_v8  ;;  %v12705_v53 = vpop.f32.mrb[78].mxu1  ;;  %v4882_v8 = vrot.slane %v4810_v35, 6  ;;  %v4375_v52 = vld [vmem:[#allocation2 + $0x280] sm:$0xc0] }
 0x1d7   : > { %v12706_v0 = vpop.f32.mrb[79].mxu1 }
 0x1d8   : > { %v16181_v63 = vadd.f32 %v12704_v34, %v15915_v28  ;;  %v12707_v7 = vadd.f32 %v12706_v0, %v12705_v53  ;;  %v4593_v28 = vrot.slane %v4521_v4, 4  ;;  %v4523_v53 = vld [vmem:[#allocation2 + $0x2b0] sm:$0xf]  ;;  %v4736_v4 = vsel %vm4712_vm4, %v4734_v16, %v4735_v55 }
 0x1d9   : > { %6621 = vmatmul.mubr.bf16.gmra.mrb[184].mxu1 %v4733_v51  ;;  %v16193_v0 = vadd.f32 %v12646_v23, %v15926_v45  ;;  %v4883_v27 = vsel %vm4423_vm3, %v4881_v13, %v4882_v8  ;;  %v4448_v16 = vrot.slane %v4375_v52, 6  ;;  %v4449_v55 = vrot.slane %v4376_v17, 6  ;;  %v12650_v8 = vpop.f32.mrb[84].mxu0  ;;  %v4666_v17 = vld [vmem:[#allocation2 + $0x2b0] sm:$0xfc] }
 0x1da   : > { %v16187_v31 = vadd.f32 %v12707_v7, %v15921_v36  ;;  %6628 = vmatprep.mubr.bf16.mxu1 %v4880_v40  ;;  %v4522_v36 = vld [vmem:[#allocation2 + $0x2a8] sm:$0xf0]  ;;  %v4594_v51 = vsel %vm1598_vm0, %v4592_v60, %v4593_v28  ;;  %v12649_v40 = vadd.f32 %v12648_v43, %v12647_v6  ;;  %v4737_v60 = vrot.slane %v4664_v14, 2  ;;  %v12651_v23 = vpop.f32.mrb[85].mxu0  ;;  %v4667_v14 = vld [vmem:[#allocation2 + $0x2b8] sm:$0x3] }
 0x1db   : > { %6468 = vmatmul.mubr.bf16.gmra.mrb[188].mxu0 %v4447_v19  ;;  %v4738_v28 = vrot.slane %v4665_v58, 2  ;;  %v4595_v1 = vrot.slane %v4522_v36, 4  ;;  %v4596_v13 = vrot.slane %v4523_v53, 4  ;;  %v12652_v6 = vadd.f32 %v12651_v23, %v12650_v8  ;;  %v4524_v53 = vld [vmem:[#allocation2 + $0x2c8] sm:$0xf0] }
 0x1dc   : > { %v12708_v29 = vpop.f32.mrb[80].mxu1  ;;  %v16200_v32 = vadd.f32 %v12649_v40, %v15932_v38  ;;  %6475 = vmatprep.mubr.bf16.mxu0 %v4594_v51  ;;  %v4378_v38 = vld [vmem:[#allocation2 + $0x2a8] sm:$0x3f]  ;;  %v4450_v52 = vsel %vm4423_vm3, %v4448_v16, %v4449_v55  ;;  %v4525_v40 = vld [vmem:[#allocation2 + $0x2d0] sm:$0xf]  ;;  %v4598_v8 = vrot.slane %v4524_v53, 4 }
 0x1dd   : > { %v12709_v34 = vpop.f32.mrb[81].mxu1  ;;  %v4739_v58 = vsel %vm4712_vm4, %v4737_v60, %v4738_v28  ;;  %v4597_v36 = vsel %vm1598_vm0, %v4595_v1, %v4596_v13  ;;  %v4814_v16 = vld [vmem:[#allocation2 + $0x448] sm:$0x3f]  ;;  %v4740_v28 = vrot.slane %v4666_v17, 2  ;;  %v4741_v13 = vrot.slane %v4667_v14, 2 }
 0x1de   : > { %v12710_v18 = vadd.f32 %v12709_v34, %v12708_v29  ;;  %v12711_v10 = vpop.f32.mrb[82].mxu1  ;;  %v4885_v29 = vrot.slane %v4812_v12, 6  ;;  %v4377_v34 = vld [vmem:[#allocation2 + $0x2a0] sm:$0xc0] }
 0x1df   : > { %v12712_v7 = vpop.f32.mrb[83].mxu1  ;;  %v4451_v60 = vrot.slane %v4377_v34, 6  ;;  %v4379_v34 = vld [vmem:[#allocation2 + $0x2c0] sm:$0xc0] }
 0x1e0   : > { %v16197_v35 = vadd.f32 %v12710_v18, %v15929_v2  ;;  %v12713_v50 = vadd.f32 %v12712_v7, %v12711_v10  ;;  %v4884_v2 = vrot.slane %v4811_v47, 6  ;;  %v12653_v18 = vpop.f32.mrb[86].mxu0 }
 0x1e1   : > { %6629 = vmatmul.mubr.bf16.gmra.mrb[188].mxu1 %v4736_v4  ;;  %v12654_v43 = vpop.f32.mrb[87].mxu0  ;;  %v16209_v4 = vadd.f32 %v12652_v6, %v15945_v39  ;;  %v4452_v39 = vrot.slane %v4378_v38, 6  ;;  %v4380_v38 = vld [vmem:[#allocation2 + $0x2c8] sm:$0x3f] }
 0x1e2   : > { %v16203_v45 = vadd.f32 %v12713_v50, %v15935_v54  ;;  %6636 = vmatprep.mubr.bf16.mxu1 %v4883_v27  ;;  %v12655_v51 = vadd.f32 %v12654_v43, %v12653_v18  ;;  %v4886_v12 = vsel %vm4423_vm3, %v4884_v2, %v4885_v29  ;;  %v4813_v50 = vld [vmem:[#allocation2 + $0x440] sm:$0xc0]  ;;  %v12656_v2 = vpop.f32.mrb[88].mxu0  ;;  %v4668_v43 = vld [vmem:[#allocation2 + $0x2d0] sm:$0xfc] }
 0x1e3   : > { %6476 = vmatmul.mubr.bf16.gmra.mrb[192].mxu0 %v4450_v52  ;;  %v4887_v29 = vrot.slane %v4813_v50, 6  ;;  %v12657_v6 = vpop.f32.mrb[89].mxu0  ;;  %v4453_v52 = vsel %vm4423_vm3, %v4451_v60, %v4452_v39  ;;  %v4815_v60 = vld [vmem:[#allocation2 + $0x460] sm:$0xc0]  ;;  %v4816_v39 = vld [vmem:[#allocation2 + $0x468] sm:$0x3f] }
 0x1e4   : > { %v12714_v15 = vpop.f32.mrb[84].mxu1  ;;  %v16216_v55 = vadd.f32 %v12655_v51, %v15955_v20  ;;  %6483 = vmatprep.mubr.bf16.mxu0 %v4597_v36  ;;  %v12659_v18 = vpop.f32.mrb[90].mxu0 }
 0x1e5   : > { %v12715_v19 = vpop.f32.mrb[85].mxu1 }
 0x1e6   : > { %v12716_v54 = vadd.f32 %v12715_v19, %v12714_v15  ;;  %v12717_v10 = vpop.f32.mrb[86].mxu1  ;;  %v4888_v15 = vrot.slane %v4814_v16, 6  ;;  %v12658_v19 = vadd.f32 %v12657_v6, %v12656_v2  ;;  %v4454_v16 = vrot.slane %v4379_v34, 6 }
 0x1e7   : > { %v12718_v47 = vpop.f32.mrb[87].mxu1  ;;  %v4891_v6 = vrot.slane %v4816_v39, 6 }
 0x1e8   : > { %v16213_v7 = vadd.f32 %v12716_v54, %v15948_v3  ;;  %v12719_v27 = vadd.f32 %v12718_v47, %v12717_v10  ;;  %v4599_v3 = vrot.slane %v4525_v40, 4  ;;  %v4742_v10 = vsel %vm4712_vm4, %v4740_v28, %v4741_v13  ;;  %v4527_v40 = vld [vmem:[#allocation2 + $0x2f0] sm:$0xf] }
 0x1e9   : > { %6637 = vmatmul.mubr.bf16.gmra.mrb[192].mxu1 %v4739_v58  ;;  %v4669_v58 = vld [vmem:[#allocation2 + $0x2d8] sm:$0x3]  ;;  %v16225_v36 = vadd.f32 %v12658_v19, %v15993_v41  ;;  %v4889_v47 = vsel %vm4423_vm3, %v4887_v29, %v4888_v15  ;;  %v4455_v41 = vrot.slane %v4380_v38, 6  ;;  %v4743_v13 = vrot.slane %v4668_v43, 2  ;;  %v4382_v38 = vld [vmem:[#allocation2 + $0x2e8] sm:$0x3f] }
 0x1ea   : > { %v16219_v1 = vadd.f32 %v12719_v27, %v15961_v42  ;;  %6644 = vmatprep.mubr.bf16.mxu1 %v4886_v12  ;;  %v12660_v42 = vpop.f32.mrb[91].mxu0  ;;  %v4600_v14 = vsel %vm1598_vm0, %v4598_v8, %v4599_v3  ;;  %v4526_v12 = vld [vmem:[#allocation2 + $0x2e8] sm:$0xf0]  ;;  %v4744_v8 = vrot.slane %v4669_v58, 2  ;;  %v20050_v3 = vld [vmem:[#allocation21_spill] sm:$0xff] }
 0x1eb   : > { %v12661_v53 = vadd.f32 %v12660_v42, %v12659_v18  ;;  %6484 = vmatmul.mubr.bf16.gmra.mrb[196].mxu0 %v4453_v52  ;;  %v4601_v29 = vrot.slane %v4526_v12, 4  ;;  %v12662_v15 = vpop.f32.mrb[92].mxu0  ;;  %v4456_v34 = vsel %vm4423_vm3, %v4454_v16, %v4455_v41  ;;  %v4670_v58 = vld [vmem:[#allocation2 + $0x2f0] sm:$0xfc]  ;;  %v4817_v41 = vld [vmem:[#allocation2 + $0x480] sm:$0xc0] }
 0x1ec   : > { %v12720_v23 = vpop.f32.mrb[88].mxu1  ;;  %6491 = vmatprep.mubr.bf16.mxu0 %v4600_v14  ;;  %v4745_v14 = vsel %vm4712_vm4, %v4743_v13, %v4744_v8  ;;  %v4529_v16 = vld [vmem:[#allocation2 + $0x310] sm:$0xf]  ;;  %v4818_v13 = vld [vmem:[#allocation2 + $0x488] sm:$0x3f] }
 0x1ed   : > { %v12721_v20 = vpop.f32.mrb[89].mxu1  ;;  %v16232_v28 = vadd.f32 %v12661_v53, %v16005_v44  ;;  %v4671_v53 = vld [vmem:[#allocation2 + $0x2f8] sm:$0x3] }
 0x1ee   : > { %v12722_v17 = vadd.f32 %v12721_v20, %v12720_v23  ;;  %v12723_v54 = vpop.f32.mrb[90].mxu1  ;;  %v4890_v23 = vrot.slane %v4815_v60, 6  ;;  %v12663_v20 = vpop.f32.mrb[93].mxu0 }
 0x1ef   : > { %v12724_v51 = vpop.f32.mrb[91].mxu1  ;;  %v12664_v18 = vadd.f32 %v12663_v20, %v12662_v15  ;;  %v12665_v44 = vpop.f32.mrb[94].mxu0  ;;  %v4747_v15 = vrot.slane %v4671_v53, 2  ;;  %v4894_v20 = vrot.slane %v4818_v13, 6 }
 0x1f0   : > { %v16229_v27 = vadd.f32 %v12722_v17, %v15997_v49  ;;  %v12725_v50 = vadd.f32 %v12724_v51, %v12723_v54  ;;  %v4602_v49 = vrot.slane %v4527_v40, 4  ;;  %v4381_v17 = vld [vmem:[#allocation2 + $0x2e0] sm:$0xc0]  ;;  %v4892_v40 = vsel %vm4423_vm3, %v4890_v23, %v4891_v6 }
 0x1f1   : > { %6645 = vmatmul.mubr.bf16.gmra.mrb[196].mxu1 %v4742_v10  ;;  %v12666_v10 = vpop.f32.mrb[95].mxu0  ;;  %v16241_v51 = vadd.f32 %v12664_v18, %v16044_v22  ;;  %v4457_v22 = vrot.slane %v4381_v17, 6 }
 0x1f2   : > { %v16235_v2 = vadd.f32 %v12725_v50, %v20050_v3  ;;  %6652 = vmatprep.mubr.bf16.mxu1 %v4889_v47  ;;  %v4603_v43 = vsel %vm1598_vm0, %v4601_v29, %v4602_v49  ;;  %v12667_v47 = vadd.f32 %v12666_v10, %v12665_v44  ;;  %v4528_v50 = vld [vmem:[#allocation2 + $0x308] sm:$0xf0]  ;;  %v4458_v3 = vrot.slane %v4382_v38, 6  ;;  %v12796_v6 = vpop.f32.mrb[96].mxu0  ;;  %v4383_v44 = vld [vmem:[#allocation2 + $0x300] sm:$0xc0] }
 0x1f3   : > { %6492 = vmatmul.mubr.bf16.gmra.mrb[200].mxu0 %v4456_v34  ;;  %v4746_v29 = vrot.slane %v4670_v58, 2  ;;  %v4604_v23 = vrot.slane %v4528_v50, 4  ;;  %v4672_v38 = vld [vmem:[#allocation2 + $0x310] sm:$0xfc]  ;;  %v4673_v10 = vld [vmem:[#allocation2 + $0x318] sm:$0x3] }
 0x1f4   : > { %v12726_v19 = vpop.f32.mrb[92].mxu1  ;;  %v16248_v8 = vadd.f32 %v12667_v47, %v16059_v25  ;;  %6499 = vmatprep.mubr.bf16.mxu0 %v4603_v43  ;;  %v4384_v25 = vld [vmem:[#allocation2 + $0x308] sm:$0x3f]  ;;  %v4459_v17 = vsel %vm4423_vm3, %v4457_v22, %v4458_v3  ;;  %v4819_v22 = vld [vmem:[#allocation2 + $0x4a0] sm:$0xc0] }
 0x1f5   : > { %v12727_v52 = vpop.f32.mrb[93].mxu1  ;;  %v4748_v58 = vsel %vm4712_vm4, %v4746_v29, %v4747_v15  ;;  %v4530_v47 = vld [vmem:[#allocation2 + $0x328] sm:$0xf0]  ;;  %v4460_v29 = vrot.slane %v4383_v44, 6  ;;  %v4461_v15 = vrot.slane %v4384_v25, 6 }
 0x1f6   : > { %v12728_v54 = vadd.f32 %v12727_v52, %v12726_v19  ;;  %v12729_v42 = vpop.f32.mrb[94].mxu1  ;;  %v4893_v19 = vrot.slane %v4817_v41, 6  ;;  %v12797_v52 = vpop.f32.mrb[97].mxu0  ;;  %v4820_v3 = vld [vmem:[#allocation2 + $0x4a8] sm:$0x3f] }
 0x1f7   : > { %v12730_v12 = vpop.f32.mrb[95].mxu1  ;;  %v4462_v25 = vsel %vm4423_vm3, %v4460_v29, %v4461_v15  ;;  %v4821_v15 = vld [vmem:[#allocation2 + $0x4c0] sm:$0xc0] }
 0x1f8   : > { %v16245_v60 = vadd.f32 %v12728_v54, %v16049_v48  ;;  %v12731_v39 = vadd.f32 %v12730_v12, %v12729_v42  ;;  %v4605_v48 = vrot.slane %v4529_v16, 4  ;;  %v12798_v54 = vadd.f32 %v12797_v52, %v12796_v6  ;;  %v12799_v42 = vpop.f32.mrb[98].mxu0  ;;  %v4531_v12 = vld [vmem:[#allocation2 + $0x330] sm:$0xf] }
 0x1f9   : > { %6653 = vmatmul.mubr.bf16.gmra.mrb[200].mxu1 %v4745_v14  ;;  %v12800_v43 = vpop.f32.mrb[99].mxu0  ;;  %v4895_v16 = vsel %vm4423_vm3, %v4893_v19, %v4894_v20  ;;  %v4607_v19 = vrot.slane %v4530_v47, 4  ;;  %v4897_v52 = vrot.slane %v4820_v3, 6 }
 0x1fa   : > { %v16251_v49 = vadd.f32 %v12731_v39, %v16067_v59  ;;  %6660 = vmatprep.mubr.bf16.mxu1 %v4892_v40  ;;  %v4606_v53 = vsel %vm1598_vm0, %v4604_v23, %v4605_v48  ;;  %v12801_v50 = vadd.f32 %v12800_v43, %v12799_v42  ;;  %v16258_v39 = vadd.f32 %v12798_v54, %v16121_v26  ;;  %v12802_v20 = vpop.f32.mrb[100].mxu0 }
 0x1fb   : > { %6500 = vmatmul.mubr.bf16.gmra.mrb[204].mxu0 %v4459_v17  ;;  %v4749_v23 = vrot.slane %v4672_v38, 2  ;;  %v4750_v26 = vrot.slane %v4673_v10, 2  ;;  %v12803_v54 = vpop.f32.mrb[101].mxu0  ;;  %v4385_v38 = vld [vmem:[#allocation2 + $0x320] sm:$0xc0] }
 0x1fc   : > { %v12732_v18 = vpop.f32.mrb[96].mxu1  ;;  %6507 = vmatprep.mubr.bf16.mxu0 %v4606_v53  ;;  %v16264_v48 = vadd.f32 %v12801_v50, %v16136_v46  ;;  %v12804_v17 = vadd.f32 %v12803_v54, %v12802_v20  ;;  %v12805_v44 = vpop.f32.mrb[102].mxu0  ;;  %v4386_v46 = vld [vmem:[#allocation2 + $0x328] sm:$0x3f]  ;;  %v4675_v53 = vld [vmem:[#allocation2 + $0x338] sm:$0x3] }
 0x1fd   : > { %v12733_v34 = vpop.f32.mrb[97].mxu1  ;;  %v4751_v43 = vsel %vm4712_vm4, %v4749_v23, %v4750_v26  ;;  %v4532_v50 = vld [vmem:[#allocation2 + $0x348] sm:$0xf0]  ;;  %v4463_v29 = vrot.slane %v4385_v38, 6  ;;  %v14599_v26 = vld [vmem:[%s19994_s2 + $0x4c0] sm:$0xff]   ;;  %v4753_v20 = vrot.slane %v4675_v53, 2 }
 0x1fe   : > { %v12734_v59 = vadd.f32 %v12733_v34, %v12732_v18  ;;  %v12735_v14 = vpop.f32.mrb[98].mxu1  ;;  %v4896_v18 = vrot.slane %v4819_v22, 6  ;;  %v4822_v23 = vld [vmem:[#allocation2 + $0x4c8] sm:$0x3f]  ;;  %13388 = vmatprep.subr.bf16.mxu1 %v14599_v26  ;;  %v4899_v54 = vrot.slane %v4821_v15, 6 }
 0x1ff   : > { %v12736_v40 = vpop.f32.mrb[99].mxu1  ;;  %v4676_v53 = vld [vmem:[#allocation2 + $0x350] sm:$0xfc]  ;;  %v4823_v26 = vld [vmem:[#allocation2 + $0x4e0] sm:$0xc0] }
 0x200   : > { %v16261_v41 = vadd.f32 %v12734_v59, %v16110_v37  ;;  %v12737_v13 = vadd.f32 %v12736_v40, %v12735_v14  ;;  %v4608_v37 = vrot.slane %v4531_v12, 4  ;;  %v4898_v40 = vsel %vm4423_vm3, %v4896_v18, %v4897_v52 }
 0x201   : > { %6661 = vmatmul.mubr.bf16.gmra.mrb[204].mxu1 %v4748_v58  ;;  %v4674_v58 = vld [vmem:[#allocation2 + $0x330] sm:$0xfc]  ;;  %v4610_v18 = vrot.slane %v4532_v50, 4 }
 0x202   : > { %v16267_v6 = vadd.f32 %v12737_v13, %v16130_v61  ;;  %6668 = vmatprep.mubr.bf16.mxu1 %v4895_v16  ;;  %v12806_v61 = vpop.f32.mrb[103].mxu0  ;;  %v4609_v10 = vsel %vm1598_vm0, %v4607_v19, %v4608_v37  ;;  %v4533_v16 = vld [vmem:[#allocation2 + $0x350] sm:$0xf]  ;;  %v16274_v13 = vadd.f32 %v12804_v17, %v16149_v57  ;;  %v4464_v19 = vrot.slane %v4386_v46, 6 }
 0x203   : > { %v12807_v12 = vadd.f32 %v12806_v61, %v12805_v44  ;;  %6508 = vmatmul.mubr.bf16.gmra.mrb[208].mxu0 %v4462_v25  ;;  %v4752_v37 = vrot.slane %v4674_v58, 2  ;;  %v4611_v52 = vrot.slane %v4533_v16, 4  ;;  %v4534_v16 = vld [vmem:[#allocation2 + $0x368] sm:$0xf0] }
 0x204   : > { %v12738_v34 = vpop.f32.mrb[100].mxu1  ;;  %6515 = vmatprep.mubr.bf16.mxu0 %v4609_v10 }
 0x205   : > { %v12739_v42 = vpop.f32.mrb[101].mxu1  ;;  %v16283_v57 = vadd.f32 %v12807_v12, %v16155_v56  ;;  %v4388_v56 = vld [vmem:[#allocation2 + $0x348] sm:$0x3f]  ;;  %v4754_v10 = vsel %vm4712_vm4, %v4752_v37, %v4753_v20  ;;  %v4612_v58 = vsel %vm1598_vm0, %v4610_v18, %v4611_v52  ;;  %v4755_v18 = vrot.slane %v4676_v53, 2 }
 0x206   : > { %v12740_v59 = vadd.f32 %v12739_v42, %v12738_v34  ;;  %v12741_v14 = vpop.f32.mrb[102].mxu1  ;;  %v12808_v34 = vpop.f32.mrb[104].mxu0  ;;  %v4900_v42 = vrot.slane %v4822_v23, 6  ;;  %v4467_v20 = vrot.slane %v4388_v56, 6 }
 0x207   : > { %v12742_v47 = vpop.f32.mrb[103].mxu1  ;;  %v12809_v44 = vpop.f32.mrb[105].mxu0 }
 0x208   : > { %v16277_v22 = vadd.f32 %v12740_v59, %v16145_v62  ;;  %v12743_v3 = vadd.f32 %v12742_v47, %v12741_v14  ;;  %v12810_v38 = vadd.f32 %v12809_v44, %v12808_v34  ;;  %v12811_v46 = vpop.f32.mrb[106].mxu0  ;;  %v4465_v59 = vsel %vm4423_vm3, %v4463_v29, %v4464_v19  ;;  %v4387_v14 = vld [vmem:[#allocation2 + $0x340] sm:$0xc0]  ;;  %v4677_v47 = vld [vmem:[#allocation2 + $0x358] sm:$0x3] }
 0x209   : > { %6669 = vmatmul.mubr.bf16.gmra.mrb[208].mxu1 %v4751_v43  ;;  %v4901_v50 = vsel %vm4423_vm3, %v4899_v54, %v4900_v42  ;;  %v4824_v19 = vld [vmem:[#allocation2 + $0x4e8] sm:$0x3f]  ;;  %v4466_v37 = vrot.slane %v4387_v14, 6  ;;  %v4613_v54 = vrot.slane %v4534_v16, 4 }
 0x20a   : > { %v16286_v62 = vadd.f32 %v12743_v3, %v16152_v24  ;;  %6676 = vmatprep.mubr.bf16.mxu1 %v4898_v40  ;;  %v12812_v24 = vpop.f32.mrb[107].mxu0  ;;  %v4535_v3 = vld [vmem:[#allocation2 + $0x370] sm:$0xf]  ;;  %v16293_v15 = vadd.f32 %v12810_v38, %v16165_v21  ;;  %v4756_v21 = vrot.slane %v4677_v47, 2  ;;  %v4903_v44 = vrot.slane %v4824_v19, 6 }
 0x20b   : > { %v12813_v40 = vadd.f32 %v12812_v24, %v12811_v46  ;;  %6516 = vmatmul.mubr.bf16.gmra.mrb[212].mxu0 %v4465_v59  ;;  %v12814_v42 = vpop.f32.mrb[108].mxu0  ;;  %v4389_v46 = vld [vmem:[#allocation2 + $0x360] sm:$0xc0]  ;;  %v4390_v59 = vld [vmem:[#allocation2 + $0x368] sm:$0x3f] }
 0x20c   : > { %v12744_v17 = vpop.f32.mrb[104].mxu1  ;;  %6523 = vmatprep.mubr.bf16.mxu0 %v4612_v58  ;;  %v12815_v38 = vpop.f32.mrb[109].mxu0  ;;  %v4679_v24 = vld [vmem:[#allocation2 + $0x378] sm:$0x3]  ;;  %v4757_v53 = vsel %vm4712_vm4, %v4755_v18, %v4756_v21  ;;  %v4469_v18 = vrot.slane %v4389_v46, 6  ;;  %v4470_v21 = vrot.slane %v4390_v59, 6 }
 0x20d   : > { %v12745_v25 = vpop.f32.mrb[105].mxu1  ;;  %v16299_v52 = vadd.f32 %v12813_v40, %v16171_v33  ;;  %v12816_v56 = vadd.f32 %v12815_v38, %v12814_v42  ;;  %v4468_v33 = vsel %vm4423_vm3, %v4466_v37, %v4467_v20  ;;  %v5082_v40 = vld [vmem:[#allocation2 + $0x318] sm:$0x3]  ;;  %v5370_v37 = vld [vmem:[#allocation2 + $0x488] sm:$0xf0] }
 0x20e   : > { %v12746_v61 = vadd.f32 %v12745_v25, %v12744_v17  ;;  %v12747_v43 = vpop.f32.mrb[106].mxu1  ;;  %v4902_v17 = vrot.slane %v4823_v26, 6  ;;  %v5371_v20 = vld [vmem:[#allocation2 + $0x490] sm:$0xf]  ;;  %v5434_v38 = vrot.slane %v5370_v37, 4 }
 0x20f   : > { %v12748_v12 = vpop.f32.mrb[107].mxu1  ;;  %v5084_v37 = vld [vmem:[#allocation2 + $0x338] sm:$0x3] }
 0x210   : > { %v16296_v29 = vadd.f32 %v12746_v61, %v16161_v5  ;;  %v12749_v23 = vadd.f32 %v12748_v12, %v12747_v43  ;;  %v4614_v5 = vrot.slane %v4535_v3, 4  ;;  %v12817_v61 = vpop.f32.mrb[110].mxu0  ;;  %v4678_v43 = vld [vmem:[#allocation2 + $0x370] sm:$0xfc]  ;;  %v4904_v3 = vsel %vm4423_vm3, %v4902_v17, %v4903_v44  ;;  %v4937_v44 = vld [vmem:[#allocation2 + $0x308] sm:$0xf0] }
 0x211   : > { %6677 = vmatmul.mubr.bf16.gmra.mrb[212].mxu1 %v4754_v10  ;;  %v12818_v58 = vpop.f32.mrb[111].mxu0  ;;  %v5081_v12 = vld [vmem:[#allocation2 + $0x310] sm:$0xfc] }
 0x212   : > { %v16302_v34 = vadd.f32 %v12749_v23, %v16168_v11  ;;  %6684 = vmatprep.mubr.bf16.mxu1 %v4901_v50  ;;  %v4615_v47 = vsel %vm1598_vm0, %v4613_v54, %v4614_v5  ;;  %v12819_v16 = vadd.f32 %v12818_v58, %v12817_v61  ;;  %v16309_v23 = vadd.f32 %v12816_v56, %v16181_v63 }
 0x213   : > { %6524 = vmatmul.mubr.bf16.gmra.mrb[216].mxu0 %v4468_v33  ;;  %v4758_v54 = vrot.slane %v4678_v43, 2  ;;  %v4759_v63 = vrot.slane %v4679_v24, 2  ;;  %v5145_v17 = vrot.slane %v5081_v12, 2  ;;  %v4938_v33 = vld [vmem:[#allocation2 + $0x310] sm:$0xf] }
 0x214   : > { %v12750_v25 = vpop.f32.mrb[108].mxu1  ;;  %6531 = vmatprep.mubr.bf16.mxu0 %v4615_v47  ;;  %v16315_v5 = vadd.f32 %v12819_v16, %v16187_v31  ;;  %v4471_v31 = vsel %vm4423_vm3, %v4469_v18, %v4470_v21  ;;  %v5226_v47 = vld [vmem:[#allocation2 + $0x480] sm:$0xc0]  ;;  %v5227_v12 = vld [vmem:[#allocation2 + $0x488] sm:$0x3f] }
 0x215   : > { %v12751_v14 = vpop.f32.mrb[109].mxu1  ;;  %v4760_v24 = vsel %vm4712_vm4, %v4758_v54, %v4759_v63  ;;  %v5372_v54 = vld [vmem:[#allocation2 + $0x4a8] sm:$0xf0]  ;;  %v5373_v63 = vld [vmem:[#allocation2 + $0x4b0] sm:$0xf] }
 0x216   : > { %v12752_v11 = vadd.f32 %v12751_v14, %v12750_v25  ;;  %v12753_v10 = vpop.f32.mrb[110].mxu1  ;;  %v12820_v25 = vpop.f32.mrb[112].mxu0  ;;  %v5435_v14 = vrot.slane %v5371_v20, 4 }
 0x217   : > { %v12754_v50 = vpop.f32.mrb[111].mxu1  ;;  %v12821_v61 = vpop.f32.mrb[113].mxu0 }
 0x218   : > { %v16312_v26 = vadd.f32 %v12752_v11, %v16177_v30  ;;  %v12755_v19 = vadd.f32 %v12754_v50, %v12753_v10  ;;  %v5146_v30 = vrot.slane %v5082_v40, 2  ;;  %v12822_v59 = vadd.f32 %v12821_v61, %v12820_v25  ;;  %v12823_v43 = vpop.f32.mrb[114].mxu0  ;;  %v4940_v25 = vld [vmem:[#allocation2 + $0x330] sm:$0xf] }
 0x219   : > { %6685 = vmatmul.mubr.bf16.gmra.mrb[216].mxu1 %v4757_v53  ;;  %v5001_v11 = vrot.slane %v4937_v44, 4  ;;  %v12824_v58 = vpop.f32.mrb[115].mxu0  ;;  %v5436_v16 = vsel %vm1598_vm0, %v5434_v38, %v5435_v14  ;;  %v5291_v44 = vrot.slane %v5227_v12, 6  ;;  %v16332_v38 = vld [vmem:[#allocation2 + $0x4a0] sm:$0xc0] }
 0x21a   : > { %v16318_v42 = vadd.f32 %v12755_v19, %v16184_v9  ;;  %6692 = vmatprep.mubr.bf16.mxu1 %v4904_v3  ;;  %v5147_v53 = vsel %vm4712_vm4, %v5145_v17, %v5146_v30  ;;  %v12825_v50 = vadd.f32 %v12824_v58, %v12823_v43  ;;  %v5002_v3 = vrot.slane %v4938_v33, 4  ;;  %v5083_v19 = vld [vmem:[#allocation2 + $0x330] sm:$0xfc]  ;;  %v16330_v17 = vld [vmem:[#allocation2 + $0x328] sm:$0xf0]  ;;  %v12826_v61 = vpop.f32.mrb[116].mxu0 }
 0x21b   : > { %v16325_v20 = vadd.f32 %v12822_v59, %v16197_v35  ;;  %6532 = vmatmul.mubr.bf16.gmra.mrb[220].mxu0 %v4471_v31  ;;  %v5290_v30 = vrot.slane %v5226_v47, 6  ;;  %v5437_v33 = vrot.slane %v5372_v54, 4  ;;  %v5004_v59 = vrot.slane %v16330_v17, 4  ;;  %v12827_v31 = vpop.f32.mrb[117].mxu0  ;;  %v5085_v47 = vld [vmem:[#allocation2 + $0x350] sm:$0xfc] }
 0x21c   : > { %v12756_v56 = vpop.f32.mrb[112].mxu1  ;;  %6733 = vmatprep.mubr.bf16.mxu0 %v5147_v53  ;;  %v16335_v14 = vadd.f32 %v12825_v50, %v16203_v45  ;;  %v5293_v58 = vrot.slane %v16332_v38, 6  ;;  %v12828_v45 = vadd.f32 %v12827_v31, %v12826_v61  ;;  %v12829_v53 = vpop.f32.mrb[118].mxu0  ;;  %v5086_v12 = vld [vmem:[#allocation2 + $0x358] sm:$0x3] }
 0x21d   : > { %v12757_v46 = vpop.f32.mrb[113].mxu1  ;;  %v16347_v54 = vld [vmem:[#allocation2 + $0x4d0] sm:$0xf]  ;;  %v5152_v61 = vrot.slane %v5086_v12, 2  ;;  %v16391_v12 = vld [vmem:[#allocation2 + $0x378] sm:$0x3] }
 0x21e   : > { %v12758_v10 = vadd.f32 %v12757_v46, %v12756_v56  ;;  %v12759_v9 = vpop.f32.mrb[114].mxu1  ;;  %v5149_v56 = vrot.slane %v5084_v37, 2  ;;  %v5438_v46 = vrot.slane %v5373_v63, 4  ;;  %v5441_v31 = vrot.slane %v16347_v54, 4 }
 0x21f   : > { %v12760_v40 = vpop.f32.mrb[115].mxu1 }
 0x220   : > { %v16328_v18 = vadd.f32 %v12758_v10, %v16193_v0  ;;  %v12761_v21 = vadd.f32 %v12760_v40, %v12759_v9  ;;  %v5148_v0 = vrot.slane %v5083_v19, 2  ;;  %v5005_v10 = vrot.slane %v4940_v25, 4  ;;  %v5229_v9 = vld [vmem:[#allocation2 + $0x4a8] sm:$0x3f] }
 0x221   : > { %6693 = vmatmul.mubr.bf16.gmra.mrb[220].mxu1 %v4760_v24  ;;  %v5292_v19 = vsel %vm4423_vm3, %v5290_v30, %v5291_v44  ;;  %v5439_v25 = vsel %vm1598_vm0, %v5437_v33, %v5438_v46  ;;  %v5294_v38 = vrot.slane %v5229_v9, 6  ;;  %v14600_v30 = vld [vmem:[%s19994_s2 + $0x480] sm:$0xff]   ;;  %v16362_v33 = vld [vmem:[#allocation2 + $0x348] sm:$0xf0]  ;;  %v16367_v46 = vld [vmem:[%s19994_s2 + $0x450] sm:$0xff]  }
 0x222   : > { %v16338_v35 = vadd.f32 %v12761_v21, %v16200_v32  ;;  %6894 = vmatprep.mubr.bf16.mxu1 %v5436_v16  ;;  %v5003_v32 = vsel %vm1598_vm0, %v5001_v11, %v5002_v3  ;;  %v12830_v16 = vpop.f32.mrb[119].mxu0  ;;  %v5150_v37 = vsel %vm4712_vm4, %v5148_v0, %v5149_v56  ;;  %v16345_v21 = vld [vmem:[#allocation2 + $0x4c8] sm:$0xf0]  ;;  %v16354_v3 = vadd.f32 %v12828_v45, %v16213_v7  ;;  %v16377_v9 = vld [vmem:[#allocation2 + $0x350] sm:$0xf] }
 0x223   : > { %v12831_v17 = vadd.f32 %v12830_v16, %v12829_v53  ;;  %v14593_v11 = vld [vmem:[%s19994_s2 + $0x448] sm:$0xff]   ;;  %6734 = vmatmul.mubr.bf16.vlgmr.msra.gmra.mrb[224].mxu0 %v5003_v32  ;;  %v5151_v56 = vrot.slane %v5085_v47, 2  ;;  %v16389_v47 = vld [vmem:[#allocation2 + $0x370] sm:$0xfc] }
 0x224   : > { %v12762_v43 = vpop.f32.mrb[116].mxu1  ;;  %v14601_v7 = vld [vmem:[%s19994_s2 + $0x4c8] sm:$0xff]   ;;  %6741 = vmatprep.mubr.bf16.mxu0 %v5150_v37 }
 0x225   : > { %v12763_v24 = vpop.f32.mrb[117].mxu1  ;;  %v16382_v45 = vadd.f32 %v12831_v17, %v16219_v1  ;;  %v16387_v32 = vld [vmem:[#allocation2 + $0x4c8] sm:$0x3f]  ;;  %v5153_v54 = vsel %vm4712_vm4, %v5151_v56, %v5152_v61 }
 0x226   : > { %v12764_v40 = vadd.f32 %v12763_v24, %v12762_v43  ;;  %v12765_v50 = vpop.f32.mrb[118].mxu1  ;;  %v5440_v43 = vrot.slane %v16345_v21, 4  ;;  %v16379_v24 = vld [vmem:[#allocation2 + $0x4c0] sm:$0xc0]  ;;  %v16394_v16 = vld [vmem:[#allocation2 + $0x4e8] sm:$0xf0]  ;;  %v5295_v21 = vsel %vm4423_vm3, %v5293_v58, %v5294_v38 }
 0x227   : > { %v12766_v63 = vpop.f32.mrb[119].mxu1  ;;  %v5154_v58 = vrot.slane %v16389_v47, 2  ;;  %v14595_v38 = vld [vmem:[%s19994_s2 + $0x458] sm:$0xff]  }
 0x228   : > { %v16360_v44 = vadd.f32 %v12764_v40, %v16209_v4  ;;  %v12767_v0 = vadd.f32 %v12766_v63, %v12765_v50  ;;  %v14720_v4 = vld [vmem:[%s19994_s2 + $0x440] sm:$0xff]   ;;  %v12832_v40 = vpop.f32.mrb[120].mxu0  ;;  %v5006_v50 = vsel %vm1598_vm0, %v5004_v59, %v5005_v10  ;;  %v5007_v63 = vrot.slane %v16362_v33, 4  ;;  %v14603_v10 = vld [vmem:[%s19994_s2 + $0x4d0] sm:$0xff]  }
 0x229   : > { %6895 = vmatmul.mubr.bf16.vlgmr.msra.gmra.mrb[224].mxu1 %v5292_v19  ;;  %14221 = vmatpush3.bf16.msra.mxu0 %v14720_v4  ;;  %v16396_v19 = vld [vmem:[#allocation2 + $0x4f0] sm:$0xf]  ;;  %v12833_v37 = vpop.f32.mrb[121].mxu0  ;;  %v5008_v59 = vrot.slane %v16377_v9, 4  ;;  %v5297_v4 = vrot.slane %v16387_v32, 6  ;;  %v5443_v9 = vrot.slane %v16394_v16, 4  ;;  %v5442_v47 = vsel %vm1598_vm0, %v5440_v43, %v5441_v31 }
 0x22a   : > { %v16385_v53 = vadd.f32 %v12767_v0, %v16216_v55  ;;  %6902 = vmatprep.mubr.bf16.mxu1 %v5439_v25  ;;  %14222 = vmatprep.subr.bf16.mxu0 %v14593_v11  ;;  %v14602_v55 = vld [vmem:[%s19994_s2 + $0x488] sm:$0xff]   ;;  %v12834_v25 = vadd.f32 %v12833_v37, %v12832_v40  ;;  %v5296_v0 = vrot.slane %v16379_v24, 6  ;;  %v5444_v40 = vrot.slane %v16396_v19, 4  ;;  %v16435_v43 = vld [vmem:[#allocation2 + $0x4e0] sm:$0xc0] }
 0x22b   : > { %13389 = vmatpush3.bf16.msra.mxu1 %v14600_v30  ;;  %v12835_v30 = vpop.f32.mrb[122].mxu0  ;;  %6742 = vmatmul.mubr.bf16.gmra.mrb[228].mxu0 %v5006_v50  ;;  %v16431_v37 = vld [vmem:[#allocation2 + $0x368] sm:$0xf0]  ;;  %v14596_v31 = vld [vmem:[%s19994_s2 + $0x460] sm:$0xff]  }
 0x22c   : > { %v12768_v1 = vpop.f32.mrb[120].mxu1  ;;  %13390 = vmatprep.subr.bf16.mxu1 %v14601_v7  ;;  %v12836_v33 = vpop.f32.mrb[123].mxu0  ;;  %v5155_v7 = vrot.slane %v16391_v12, 2  ;;  %v14605_v12 = vld [vmem:[%s19994_s2 + $0x4d8] sm:$0xff]   ;;  %6749 = vmatprep.mubr.bf16.mxu0 %v5153_v54  ;;  %v16446_v50 = vld [vmem:[#allocation2 + $0x4e8] sm:$0x3f] }
 0x22d   : > { %v12769_v17 = vpop.f32.mrb[121].mxu1  ;;  %14223 = vmatpush3.bf16.msra.mxu0 %v14593_v11  ;;  %v14604_v11 = vld [vmem:[%s19994_s2 + $0x490] sm:$0xff]   ;;  %v12837_v32 = vadd.f32 %v12836_v33, %v12835_v30  ;;  %v16451_v54 = vld [vmem:[#allocation2 + $0x398] sm:$0x3]  ;;  %v5298_v30 = vsel %vm4423_vm3, %v5296_v0, %v5297_v4 }
 0x22e   : > { %v12770_v56 = vadd.f32 %v12769_v17, %v12768_v1  ;;  %v12771_v61 = vpop.f32.mrb[122].mxu1  ;;  %14224 = vmatprep.subr.bf16.mxu0 %v16367_v46  ;;  %v16423_v1 = vadd.f32 %v12834_v25, %v16229_v27  ;;  %v16433_v17 = vld [vmem:[#allocation2 + $0x370] sm:$0xf] }
 0x22f   : > { %v12772_v24 = vpop.f32.mrb[123].mxu1  ;;  %13391 = vmatpush3.bf16.msra.mxu1 %v14602_v55  ;;  %v16438_v27 = vadd.f32 %v12837_v32, %v16235_v2  ;;  %v12838_v55 = vpop.f32.mrb[124].mxu0  ;;  %v14606_v2 = vld [vmem:[%s19994_s2 + $0x498] sm:$0xff]   ;;  %v5445_v32 = vsel %vm1598_vm0, %v5443_v9, %v5444_v40 }
 0x230   : > { %v16429_v16 = vadd.f32 %v12770_v56, %v16225_v36  ;;  %v12773_v19 = vadd.f32 %v12772_v24, %v12771_v61  ;;  %13392 = vmatprep.subr.bf16.mxu1 %v14603_v10  ;;  %v12839_v25 = vpop.f32.mrb[125].mxu0  ;;  %v5156_v56 = vsel %vm4712_vm4, %v5154_v58, %v5155_v7  ;;  %v14608_v61 = vld [vmem:[%s19994_s2 + $0x4e0] sm:$0xff]   ;;  %v5299_v7 = vrot.slane %v16435_v43, 6 }
 0x231   : > { %6903 = vmatmul.mubr.bf16.gmra.mrb[228].mxu1 %v5295_v21  ;;  %14225 = vmatpush3.bf16.msra.mxu0 %v16367_v46  ;;  %v16449_v21 = vld [vmem:[#allocation2 + $0x390] sm:$0xfc]  ;;  %v16459_v46 = vld [vmem:[#allocation2 + $0x508] sm:$0xf0]  ;;  %v12841_v24 = vpop.f32.mrb[126].mxu0 }
 0x232   : > { %v16444_v36 = vadd.f32 %v12773_v19, %v16232_v28  ;;  %6910 = vmatprep.mubr.bf16.mxu1 %v5442_v47  ;;  %14226 = vmatprep.subr.bf16.mxu0 %v14595_v38  ;;  %v5009_v28 = vsel %vm1598_vm0, %v5007_v63, %v5008_v59  ;;  %v5010_v47 = vrot.slane %v16431_v37, 4  ;;  %v5011_v63 = vrot.slane %v16433_v17, 4  ;;  %v5379_v59 = vld [vmem:[#allocation2 + $0x510] sm:$0xf]  ;;  %v12842_v58 = vpop.f32.mrb[127].mxu0  ;;  %v14597_v37 = vld [vmem:[%s19994_s2 + $0x468] sm:$0xff]  }
 0x233   : > { %13393 = vmatpush3.bf16.msra.mxu1 %v14604_v11  ;;  %v12840_v11 = vadd.f32 %v12839_v25, %v12838_v55  ;;  %v5157_v19 = vrot.slane %v16449_v21, 2  ;;  %v12843_v55 = vadd.f32 %v12842_v58, %v12841_v24  ;;  %v5158_v25 = vrot.slane %v16451_v54, 2  ;;  %v14609_v17 = vld [vmem:[%s19994_s2 + $0x4a0] sm:$0xff]   ;;  %6750 = vmatmul.mubr.bf16.gmra.mrb[232].mxu0 %v5009_v28  ;;  %v16487_v21 = vld [vmem:[#allocation2 + $0x388] sm:$0xf0]  ;;  %v14598_v28 = vld [vmem:[%s19994_s2 + $0x470] sm:$0xff]  }
 0x234   : > { %20051 = vst [vmem:[#allocation21_spill] sm:$0xff] %v16444_v36  ;;  %v12774_v10 = vpop.f32.mrb[124].mxu1  ;;  %13394 = vmatprep.subr.bf16.mxu1 %v14605_v12  ;;  %v5300_v12 = vrot.slane %v16446_v50, 6  ;;  %v5446_v9 = vrot.slane %v16459_v46, 4  ;;  %v5447_v50 = vrot.slane %v5379_v59, 4  ;;  %6757 = vmatprep.mubr.bf16.mxu0 %v5156_v56 }
 0x235   : > { %v12775_v33 = vpop.f32.mrb[125].mxu1  ;;  %14227 = vmatpush3.bf16.msra.mxu0 %v14595_v38  ;;  %v16473_v40 = vadd.f32 %v12840_v11, %v16245_v60  ;;  %v14610_v60 = vld [vmem:[%s19994_s2 + $0x4e8] sm:$0xff]   ;;  %v16490_v54 = vadd.f32 %v12843_v55, %v16251_v49  ;;  %v5012_v49 = vsel %vm1598_vm0, %v5010_v47, %v5011_v63  ;;  %v5091_v59 = vld [vmem:[#allocation2 + $0x3b0] sm:$0xfc]  ;;  %v5013_v55 = vrot.slane %v16487_v21, 4 }
 0x236   : > { %v12776_v0 = vadd.f32 %v12775_v33, %v12774_v10  ;;  %v12777_v4 = vpop.f32.mrb[126].mxu1  ;;  %14228 = vmatprep.subr.bf16.mxu0 %v14596_v31  ;;  %v16497_v10 = vld [vmem:[#allocation2 + $0x500] sm:$0xc0]  ;;  %v16503_v46 = vld [vmem:[#allocation2 + $0x508] sm:$0x3f]  ;;  %v5301_v24 = vsel %vm4423_vm3, %v5299_v7, %v5300_v12  ;;  %v5448_v58 = vsel %vm1598_vm0, %v5446_v9, %v5447_v50  ;;  %v14607_v9 = vld [vmem:[%s19994_s2 + $0x478] sm:$0xff]  }
 0x237   : > { %v12778_v36 = vpop.f32.mrb[127].mxu1  ;;  %13395 = vmatpush3.bf16.msra.mxu1 %v14606_v2  ;;  %v5303_v50 = vrot.slane %v16503_v46, 6  ;;  %v4948_v46 = vld [vmem:[#allocation2 + $0x3b0] sm:$0xf] }
 0x238   : > { %v16482_v38 = vadd.f32 %v12776_v0, %v16241_v51  ;;  %v12779_v43 = vadd.f32 %v12778_v36, %v12777_v4  ;;  %13396 = vmatprep.subr.bf16.mxu1 %v14608_v61  ;;  %v12844_v51 = vpop.f32.mrb[128].mxu0  ;;  %v16495_v36 = vld [vmem:[#allocation2 + $0x390] sm:$0xf]  ;;  %v5092_v0 = vld [vmem:[#allocation2 + $0x3b8] sm:$0x3] }
 0x239   : > { %6911 = vmatmul.mubr.bf16.gmra.mrb[232].mxu1 %v5298_v30  ;;  %14229 = vmatpush3.bf16.msra.mxu0 %v14596_v31  ;;  %v12845_v56 = vpop.f32.mrb[129].mxu0  ;;  %v5161_v21 = vrot.slane %v5092_v0, 2 }
 0x23a   : > { %v16493_v2 = vadd.f32 %v12779_v43, %v16248_v8  ;;  %6918 = vmatprep.mubr.bf16.mxu1 %v5445_v32  ;;  %14230 = vmatprep.subr.bf16.mxu0 %v14597_v37  ;;  %v14611_v8 = vld [vmem:[%s19994_s2 + $0x4a8] sm:$0xff]   ;;  %v12846_v61 = vadd.f32 %v12845_v56, %v12844_v51  ;;  %v12847_v11 = vpop.f32.mrb[130].mxu0  ;;  %v5159_v32 = vsel %vm4712_vm4, %v5157_v19, %v5158_v25  ;;  %v5302_v19 = vrot.slane %v16497_v10, 6  ;;  %v5381_v25 = vld [vmem:[#allocation2 + $0x530] sm:$0xf] }
 0x23b   : > { %13397 = vmatpush3.bf16.msra.mxu1 %v14609_v17  ;;  %v12848_v4 = vpop.f32.mrb[131].mxu0  ;;  %v5380_v17 = vld [vmem:[#allocation2 + $0x528] sm:$0xf0]  ;;  %6758 = vmatmul.mubr.bf16.gmra.mrb[236].mxu0 %v5012_v49  ;;  %v5450_v10 = vrot.slane %v5381_v25, 4 }
 0x23c   : > { %v14190_v30 = vpop.f32.mrb[128].mxu1  ;;  %13398 = vmatprep.subr.bf16.mxu1 %v14610_v60  ;;  %v12849_v7 = vadd.f32 %v12848_v4, %v12847_v11  ;;  %v5160_v60 = vrot.slane %v5091_v59, 2  ;;  %6765 = vmatprep.mubr.bf16.mxu0 %v5159_v32  ;;  %v5449_v51 = vrot.slane %v5380_v17, 4  ;;  %v4947_v49 = vld [vmem:[#allocation2 + $0x3a8] sm:$0xf0] }
 0x23d   : > { %v16509_v31 = vadd.f32 %v14190_v30, %v16274_v13  ;;  %v4087_v33 = vpop.f32.mrb[129].mxu1  ;;  %v5014_v13 = vrot.slane %v16495_v36, 4  ;;  %14231 = vmatpush3.bf16.msra.mxu0 %v14597_v37  ;;  %v14612_v37 = vld [vmem:[%s19994_s2 + $0x4f0] sm:$0xff]   ;;  %v14615_v30 = vld [vmem:[%s19994_s2 + $0x4b8] sm:$0xff]   ;;  %v5236_v59 = vld [vmem:[#allocation2 + $0x520] sm:$0xc0] }
 0x23e   : > { %v16514_v47 = vadd.f32 %v4087_v33, %v16258_v39  ;;  %v14191_v63 = vpop.f32.mrb[130].mxu1  ;;  %v16524_v39 = vadd.f32 %v12846_v61, %v16261_v41  ;;  %14232 = vmatprep.subr.bf16.mxu0 %v14598_v28  ;;  %v14613_v41 = vld [vmem:[%s19994_s2 + $0x4b0] sm:$0xff]   ;;  %v16540_v36 = vadd.f32 %v12849_v7, %v16267_v6  ;;  %v12850_v56 = vpop.f32.mrb[132].mxu0  ;;  %v14616_v6 = vld [vmem:[%s19994_s2 + $0x540] sm:$0xff]   ;;  %v5162_v17 = vsel %vm4712_vm4, %v5160_v60, %v5161_v21  ;;  %v5237_v7 = vld [vmem:[#allocation2 + $0x528] sm:$0x3f] }
 0x23f   : > { %20052 = vst [vmem:[#allocation22_spill] sm:$0xff] %v16509_v31  ;;  %v16520_v43 = vadd.f32 %v14191_v63, %v16283_v57  ;;  %v4090_v12 = vpop.f32.mrb[131].mxu1  ;;  %13399 = vmatpush3.bf16.msra.mxu1 %v14611_v8  ;;  %v12851_v61 = vpop.f32.mrb[133].mxu0  ;;  %v5015_v32 = vsel %vm1598_vm0, %v5013_v55, %v5014_v13  ;;  %v5451_v55 = vsel %vm1598_vm0, %v5449_v51, %v5450_v10  ;;  %v5094_v13 = vld [vmem:[#allocation2 + $0x3d8] sm:$0x3]  ;;  %v5017_v60 = vrot.slane %v4948_v46, 4 }
 0x240   : > { %20053 = vst [vmem:[#allocation23_spill] sm:$0xff] %v16514_v47  ;;  %v16533_v57 = vadd.f32 %v4090_v12, %v16264_v48  ;;  %v14614_v48 = vld [vmem:[%s19994_s2 + $0x4f8] sm:$0xff]   ;;  %13400 = vmatprep.subr.bf16.mxu1 %v14612_v37  ;;  %v5093_v12 = vld [vmem:[#allocation2 + $0x3d0] sm:$0xfc]  ;;  %v5306_v21 = vrot.slane %v5237_v7, 6 }
 0x241   : > { %20054 = vst [vmem:[#allocation24_spill] sm:$0xff] %v16520_v43  ;;  %6919 = vmatmul.mubr.bf16.gmra.mrb[236].mxu1 %v5301_v24  ;;  %14233 = vmatpush3.bf16.msra.mxu0 %v14598_v28  ;;  %v12852_v28 = vadd.f32 %v12851_v61, %v12850_v56  ;;  %v12853_v24 = vpop.f32.mrb[134].mxu0  ;;  %v17287_v43 = vld [vmem:[#allocation2 + $0x150] sm:$0xe0] }
 0x242   : > { %20055 = vst [vmem:[#allocation25_spill] sm:$0xff] %v16533_v57  ;;  %6926 = vmatprep.mubr.bf16.mxu1 %v5448_v58  ;;  %14234 = vmatprep.subr.bf16.mxu0 %v14607_v9  ;;  %v12854_v4 = vpop.f32.mrb[135].mxu0  ;;  %v5304_v58 = vsel %vm4423_vm3, %v5302_v19, %v5303_v50  ;;  %v5016_v50 = vrot.slane %v4947_v49, 4  ;;  %v4950_v49 = vld [vmem:[#allocation2 + $0x3d0] sm:$0xf] }
 0x243   : > { %13401 = vmatpush3.bf16.msra.mxu1 %v14613_v41  ;;  %v12855_v25 = vadd.f32 %v12854_v4, %v12853_v24  ;;  %v5382_v41 = vld [vmem:[#allocation2 + $0x548] sm:$0xf0]  ;;  %6766 = vmatmul.mubr.bf16.gmra.mrb[240].mxu0 %v5015_v32 }
 0x244   : > { %v14194_v8 = vpop.f32.mrb[132].mxu1  ;;  %13402 = vmatprep.subr.bf16.mxu1 %v14614_v48  ;;  %6773 = vmatprep.mubr.bf16.mxu0 %v5162_v17  ;;  %v5163_v48 = vrot.slane %v5093_v12, 2  ;;  %v5452_v10 = vrot.slane %v5382_v41, 4  ;;  %v5018_v24 = vsel %vm1598_vm0, %v5016_v50, %v5017_v60  ;;  %v5239_v17 = vld [vmem:[#allocation2 + $0x548] sm:$0x3f] }
 0x245   : > { %v16552_v33 = vadd.f32 %v14194_v8, %v16309_v23  ;;  %v4103_v11 = vpop.f32.mrb[133].mxu1  ;;  %14235 = vmatpush3.bf16.msra.mxu0 %v14607_v9  ;;  %v5383_v9 = vld [vmem:[#allocation2 + $0x550] sm:$0xf]  ;;  %v16571_v51 = vadd.f32 %v12855_v25, %v16286_v62  ;;  %v5384_v50 = vld [vmem:[#allocation2 + $0x568] sm:$0xf0] }
 0x246   : > { %v16556_v0 = vadd.f32 %v4103_v11, %v16293_v15  ;;  %v14195_v63 = vpop.f32.mrb[134].mxu1  ;;  %v16565_v15 = vadd.f32 %v12852_v28, %v16277_v22  ;;  %13500 = vmatprep.subr.bf16.mxu0 %v14616_v6  ;;  %v5164_v22 = vrot.slane %v5094_v13, 2  ;;  %v12856_v56 = vpop.f32.mrb[136].mxu0  ;;  %v5453_v6 = vrot.slane %v5383_v9, 4  ;;  %v5385_v60 = vld [vmem:[#allocation2 + $0x570] sm:$0xf] }
 0x247   : > { %20056 = vst [vmem:[#allocation26_spill] sm:$0xff] %v16552_v33  ;;  %v16561_v23 = vadd.f32 %v14195_v63, %v16315_v5  ;;  %v4106_v37 = vpop.f32.mrb[135].mxu1  ;;  %13403 = vmatpush3.bf16.msra.mxu1 %v14615_v30  ;;  %v5305_v5 = vrot.slane %v5236_v59, 6  ;;  %v12857_v61 = vpop.f32.mrb[137].mxu0 }
 0x248   : > { %20057 = vst [vmem:[#allocation27_spill] sm:$0xff] %v16556_v0  ;;  %v16568_v19 = vadd.f32 %v4106_v37, %v16299_v52  ;;  %v4949_v52 = vld [vmem:[#allocation2 + $0x3c8] sm:$0xf0]  ;;  %v12858_v30 = vadd.f32 %v12857_v61, %v12856_v56  ;;  %v12859_v11 = vpop.f32.mrb[138].mxu0  ;;  %v5165_v4 = vsel %vm4712_vm4, %v5163_v48, %v5164_v22  ;;  %v5454_v25 = vsel %vm1598_vm0, %v5452_v10, %v5453_v6  ;;  %v5095_v37 = vld [vmem:[#allocation2 + $0x3f0] sm:$0xfc] }
 0x249   : > { %20058 = vst [vmem:[#allocation28_spill] sm:$0xff] %v16561_v23  ;;  %6927 = vmatmul.mubr.bf16.gmra.mrb[240].mxu1 %v5304_v58  ;;  %v12860_v59 = vpop.f32.mrb[139].mxu0  ;;  %v5307_v63 = vsel %vm4423_vm3, %v5305_v5, %v5306_v21  ;;  %v5238_v58 = vld [vmem:[#allocation2 + $0x540] sm:$0xc0]  ;;  %v5019_v41 = vrot.slane %v4949_v52, 4  ;;  %v5309_v5 = vrot.slane %v5239_v17, 6 }
 0x24a   : > { %20059 = vst [vmem:[#allocation29_spill] sm:$0xff] %v16568_v19  ;;  %6934 = vmatprep.mubr.bf16.mxu1 %v5451_v55  ;;  %v5096_v55 = vld [vmem:[#allocation2 + $0x3f8] sm:$0x3]  ;;  %v5308_v9 = vrot.slane %v5238_v58, 6  ;;  %v5166_v48 = vrot.slane %v5095_v37, 2  ;;  %v5455_v10 = vrot.slane %v5384_v50, 4 }
 0x24b   : > { %6774 = vmatmul.mubr.bf16.gmra.mrb[244].mxu0 %v5018_v24  ;;  %v5167_v22 = vrot.slane %v5096_v55, 2  ;;  %v5456_v56 = vrot.slane %v5385_v60, 4  ;;  %v5241_v58 = vld [vmem:[#allocation2 + $0x568] sm:$0x3f]  ;;  %v5097_v17 = vld [vmem:[#allocation2 + $0x410] sm:$0xfc] }
 0x24c   : > { %v14198_v8 = vpop.f32.mrb[136].mxu1  ;;  %6781 = vmatprep.mubr.bf16.mxu0 %v5165_v4  ;;  %v5098_v55 = vld [vmem:[#allocation2 + $0x418] sm:$0x3]  ;;  %v5387_v50 = vld [vmem:[#allocation2 + $0x590] sm:$0xf] }
 0x24d   : > { %v16574_v46 = vadd.f32 %v14198_v8, %v16354_v3  ;;  %v4119_v28 = vpop.f32.mrb[137].mxu1  ;;  %v12861_v3 = vadd.f32 %v12860_v59, %v12859_v11  ;;  %v4951_v8 = vld [vmem:[#allocation2 + $0x3e8] sm:$0xf0]  ;;  %v4952_v11 = vld [vmem:[#allocation2 + $0x3f0] sm:$0xf]  ;;  %v5168_v4 = vsel %vm4712_vm4, %v5166_v48, %v5167_v22  ;;  %v5169_v48 = vrot.slane %v5097_v17, 2 }
 0x24e   : > { %v16578_v62 = vadd.f32 %v4119_v28, %v16325_v20  ;;  %v14199_v32 = vpop.f32.mrb[138].mxu1  ;;  %v16587_v20 = vadd.f32 %v12858_v30, %v16296_v29  ;;  %v12862_v29 = vpop.f32.mrb[140].mxu0  ;;  %v5022_v60 = vrot.slane %v4951_v8, 4  ;;  %v5170_v22 = vrot.slane %v5098_v55, 2 }
 0x24f   : > { %20060 = vst [vmem:[#allocation30_spill] sm:$0xff] %v16574_v46  ;;  %v16583_v7 = vadd.f32 %v14199_v32, %v16382_v45  ;;  %v4122_v12 = vpop.f32.mrb[139].mxu1  ;;  %v5020_v45 = vrot.slane %v4950_v49, 4  ;;  %v16593_v21 = vadd.f32 %v12861_v3, %v16302_v34  ;;  %v12863_v6 = vpop.f32.mrb[141].mxu0  ;;  %v5240_v34 = vld [vmem:[#allocation2 + $0x560] sm:$0xc0] }
 0x250   : > { %20061 = vst [vmem:[#allocation31_spill] sm:$0xff] %v16578_v62  ;;  %v16590_v13 = vadd.f32 %v4122_v12, %v16335_v14  ;;  %v12864_v61 = vadd.f32 %v12863_v6, %v12862_v29  ;;  %v12865_v49 = vpop.f32.mrb[142].mxu0  ;;  %v16930_v62 = vld [vmem:[#allocation2 + $0x168] sm:$0xf0] }
 0x251   : > { %20062 = vst [vmem:[#allocation32_spill] sm:$0xff] %v16583_v7  ;;  %6935 = vmatmul.mubr.bf16.gmra.mrb[244].mxu1 %v5307_v63  ;;  %v5021_v28 = vsel %vm1598_vm0, %v5019_v41, %v5020_v45  ;;  %v12866_v59 = vpop.f32.mrb[143].mxu0  ;;  %v5310_v63 = vsel %vm4423_vm3, %v5308_v9, %v5309_v5  ;;  %v5023_v45 = vrot.slane %v4952_v11, 4  ;;  %v5311_v9 = vrot.slane %v5240_v34, 6  ;;  %v16928_v7 = vld [vmem:[#allocation2 + $0x5d8] sm:$0x3] }
 0x252   : > { %20063 = vst [vmem:[#allocation33_spill] sm:$0xff] %v16590_v13  ;;  %6942 = vmatprep.mubr.bf16.mxu1 %v5454_v25  ;;  %v12867_v3 = vadd.f32 %v12866_v59, %v12865_v49  ;;  %v5457_v25 = vsel %vm1598_vm0, %v5455_v10, %v5456_v56  ;;  %v4015_v37 = vadd.f32 %v12864_v61, %v16312_v26  ;;  %v5312_v5 = vrot.slane %v5241_v58, 6  ;;  %v4953_v49 = vld [vmem:[#allocation2 + $0x408] sm:$0xf0] }
 0x253   : > { %6782 = vmatmul.mubr.bf16.gmra.mrb[248].mxu0 %v5021_v28  ;;  %v5459_v10 = vrot.slane %v5387_v50, 4  ;;  %v5171_v59 = vsel %vm4712_vm4, %v5169_v48, %v5170_v22 }
 0x254   : > { %v14202_v14 = vpop.f32.mrb[140].mxu1  ;;  %6789 = vmatprep.mubr.bf16.mxu0 %v5168_v4  ;;  %v5243_v4 = vld [vmem:[#allocation2 + $0x588] sm:$0x3f] }
 0x255   : > { %v16596_v52 = vadd.f32 %v14202_v14, %v16473_v40  ;;  %v4135_v30 = vpop.f32.mrb[141].mxu1 }
 0x256   : > { %v16600_v24 = vadd.f32 %v4135_v30, %v16423_v1  ;;  %v14203_v32 = vpop.f32.mrb[142].mxu1  ;;  %v5386_v1 = vld [vmem:[#allocation2 + $0x588] sm:$0xf0]  ;;  %v12868_v29 = vpop.f32.mrb[144].mxu0  ;;  %v5024_v30 = vsel %vm1598_vm0, %v5022_v60, %v5023_v45  ;;  %v5389_v45 = vld [vmem:[#allocation2 + $0x5b0] sm:$0xf] }
 0x257   : > { %20064 = vst [vmem:[#allocation34_spill] sm:$0xff] %v16596_v52  ;;  %v16605_v40 = vadd.f32 %v14203_v32, %v16490_v54  ;;  %v4138_v12 = vpop.f32.mrb[143].mxu1  ;;  %v16613_v54 = vadd.f32 %v12867_v3, %v16318_v42  ;;  %v5458_v26 = vrot.slane %v5386_v1, 4  ;;  %v4954_v42 = vld [vmem:[#allocation2 + $0x410] sm:$0xf]  ;;  %v5313_v32 = vsel %vm4423_vm3, %v5311_v9, %v5312_v5 }
 0x258   : > { %20065 = vst [vmem:[#allocation35_spill] sm:$0xff] %v16600_v24  ;;  %v16610_v41 = vadd.f32 %v4138_v12, %v16438_v27  ;;  %v12869_v27 = vpop.f32.mrb[145].mxu0  ;;  %v5025_v1 = vrot.slane %v4953_v49, 4  ;;  %v5026_v50 = vrot.slane %v4954_v42, 4  ;;  %v5388_v60 = vld [vmem:[#allocation2 + $0x5a8] sm:$0xf0] }
 0x259   : > { %20066 = vst [vmem:[#allocation36_spill] sm:$0xff] %v16605_v40  ;;  %6943 = vmatmul.mubr.bf16.gmra.mrb[248].mxu1 %v5310_v63  ;;  %v12870_v6 = vadd.f32 %v12869_v27, %v12868_v29  ;;  %v12871_v8 = vpop.f32.mrb[146].mxu0  ;;  %v5242_v63 = vld [vmem:[#allocation2 + $0x580] sm:$0xc0]  ;;  %v5460_v3 = vsel %vm1598_vm0, %v5458_v26, %v5459_v10  ;;  %v5315_v9 = vrot.slane %v5243_v4, 6  ;;  %v5461_v26 = vrot.slane %v5388_v60, 4 }
 0x25a   : > { %20067 = vst [vmem:[#allocation37_spill] sm:$0xff] %v16610_v41  ;;  %6950 = vmatprep.mubr.bf16.mxu1 %v5457_v25  ;;  %v12872_v34 = vpop.f32.mrb[147].mxu0  ;;  %v5100_v25 = vld [vmem:[#allocation2 + $0x438] sm:$0x3]  ;;  %v5462_v29 = vrot.slane %v5389_v45, 4 }
 0x25b   : > { %v12873_v58 = vadd.f32 %v12872_v34, %v12871_v8  ;;  %v16629_v12 = vadd.f32 %v12870_v6, %v16328_v18  ;;  %6790 = vmatmul.mubr.bf16.gmra.mrb[252].mxu0 %v5024_v30  ;;  %v5173_v48 = vrot.slane %v5100_v25, 2  ;;  %v5027_v8 = vsel %vm1598_vm0, %v5025_v1, %v5026_v50  ;;  %v4955_v30 = vld [vmem:[#allocation2 + $0x428] sm:$0xf0]  ;;  %v4956_v49 = vld [vmem:[#allocation2 + $0x430] sm:$0xf] }
 0x25c   : > { %v14206_v56 = vpop.f32.mrb[144].mxu1  ;;  %6797 = vmatprep.mubr.bf16.mxu0 %v5171_v59  ;;  %v5244_v59 = vld [vmem:[#allocation2 + $0x5a0] sm:$0xc0]  ;;  %v5390_v1 = vld [vmem:[#allocation2 + $0x5c8] sm:$0xf0]  ;;  %v5029_v45 = vrot.slane %v4956_v49, 4 }
 0x25d   : > { %v16616_v14 = vadd.f32 %v14206_v56, %v16565_v15  ;;  %v4151_v61 = vpop.f32.mrb[145].mxu1  ;;  %v16635_v5 = vadd.f32 %v12873_v58, %v16338_v35  ;;  %v5391_v50 = vld [vmem:[#allocation2 + $0x5d0] sm:$0xf] }
 0x25e   : > { %v16620_v28 = vadd.f32 %v4151_v61, %v16524_v39  ;;  %v14207_v11 = vpop.f32.mrb[146].mxu1  ;;  %v5099_v39 = vld [vmem:[#allocation2 + $0x430] sm:$0xfc]  ;;  %v12874_v22 = vpop.f32.mrb[148].mxu0 }
 0x25f   : > { %20068 = vst [vmem:[#allocation38_spill] sm:$0xff] %v16616_v14  ;;  %v16625_v15 = vadd.f32 %v14207_v11, %v16571_v51  ;;  %v4154_v17 = vpop.f32.mrb[147].mxu1  ;;  %v5314_v51 = vrot.slane %v5242_v63, 6  ;;  %v5172_v18 = vrot.slane %v5099_v39, 2  ;;  %v12875_v10 = vpop.f32.mrb[149].mxu0 }
 0x260   : > { %20069 = vst [vmem:[#allocation39_spill] sm:$0xff] %v16620_v28  ;;  %v16632_v55 = vadd.f32 %v4154_v17, %v16540_v36  ;;  %v12876_v27 = vadd.f32 %v12875_v10, %v12874_v22  ;;  %v12877_v61 = vpop.f32.mrb[150].mxu0  ;;  %v5245_v63 = vld [vmem:[#allocation2 + $0x5a8] sm:$0x3f]  ;;  %v5101_v39 = vld [vmem:[#allocation2 + $0x450] sm:$0xfc] }
 0x261   : > { %20070 = vst [vmem:[#allocation40_spill] sm:$0xff] %v16625_v15  ;;  %6951 = vmatmul.mubr.bf16.gmra.mrb[252].mxu1 %v5313_v32  ;;  %v12878_v11 = vpop.f32.mrb[151].mxu0  ;;  %v5316_v34 = vsel %vm4423_vm3, %v5314_v51, %v5315_v9  ;;  %v5174_v32 = vsel %vm4712_vm4, %v5172_v18, %v5173_v48  ;;  %v5317_v51 = vrot.slane %v5244_v59, 6  ;;  %v5318_v9 = vrot.slane %v5245_v63, 6  ;;  %v5247_v59 = vld [vmem:[#allocation2 + $0x5c8] sm:$0x3f] }
 0x262   : > { %20071 = vst [vmem:[#allocation41_spill] sm:$0xff] %v16632_v55  ;;  %6958 = vmatprep.mubr.bf16.mxu1 %v5460_v3  ;;  %v12879_v4 = vadd.f32 %v12878_v11, %v12877_v61  ;;  %v4031_v17 = vadd.f32 %v12876_v27, %v16360_v44  ;;  %v5463_v3 = vsel %vm1598_vm0, %v5461_v26, %v5462_v29  ;;  %v5175_v44 = vrot.slane %v5101_v39, 2  ;;  %v5103_v63 = vld [vmem:[#allocation2 + $0x470] sm:$0xfc] }
 0x263   : > { %6798 = vmatmul.mubr.bf16.gmra.mrb[0].mxu0 %v5027_v8  ;;  %v5464_v22 = vrot.slane %v5390_v1, 4  ;;  %v5465_v26 = vrot.slane %v5391_v50, 4  ;;  %v4958_v8 = vld [vmem:[#allocation2 + $0x450] sm:$0xf]  ;;  %v5392_v1 = vld [vmem:[#allocation2 + $0x5e8] sm:$0xf0] }
 0x264   : > { %v14210_v36 = vpop.f32.mrb[148].mxu1  ;;  %v4034_v60 = vadd.f32 %v12879_v4, %v16385_v53  ;;  %6805 = vmatprep.mubr.bf16.mxu0 %v5174_v32  ;;  %v5393_v50 = vld [vmem:[#allocation2 + $0x5f0] sm:$0xf] }
 0x265   : > { %v16637_v56 = vadd.f32 %v14210_v36, %v4015_v37  ;;  %v4167_v6 = vpop.f32.mrb[149].mxu1  ;;  %v4957_v36 = vld [vmem:[#allocation2 + $0x448] sm:$0xf0]  ;;  %v5466_v39 = vsel %vm1598_vm0, %v5464_v22, %v5465_v26  ;;  %v5467_v22 = vrot.slane %v5392_v1, 4  ;;  %v5468_v26 = vrot.slane %v5393_v50, 4 }
 0x266   : > { %v16641_v35 = vadd.f32 %v4167_v6, %v16587_v20  ;;  %v14211_v42 = vpop.f32.mrb[150].mxu1  ;;  %v5102_v20 = vld [vmem:[#allocation2 + $0x458] sm:$0x3]  ;;  %v12880_v48 = vpop.f32.mrb[152].mxu0  ;;  %v5394_v50 = vld [vmem:[#allocation2 + $0x608] sm:$0xf0] }
 0x267   : > { %20072 = vst [vmem:[#allocation42_spill] sm:$0xff] %v16637_v56  ;;  %v16646_v37 = vadd.f32 %v14211_v42, %v16613_v54  ;;  %v4170_v58 = vpop.f32.mrb[151].mxu1  ;;  %v5028_v54 = vrot.slane %v4955_v30, 4  ;;  %v5176_v18 = vrot.slane %v5102_v20, 2  ;;  %v5246_v30 = vld [vmem:[#allocation2 + $0x5c0] sm:$0xc0]  ;;  %v5469_v1 = vsel %vm1598_vm0, %v5467_v22, %v5468_v26 }
 0x268   : > { %20073 = vst [vmem:[#allocation43_spill] sm:$0xff] %v16641_v35  ;;  %v16651_v25 = vadd.f32 %v4170_v58, %v16593_v21  ;;  %v12881_v21 = vpop.f32.mrb[153].mxu0  ;;  %v5104_v20 = vld [vmem:[#allocation2 + $0x478] sm:$0x3] }
 0x269   : > { %20074 = vst [vmem:[#allocation44_spill] sm:$0xff] %v16646_v37  ;;  %6959 = vmatmul.mubr.bf16.gmra.mrb[0].mxu1 %v5316_v34  ;;  %v12882_v27 = vadd.f32 %v12881_v21, %v12880_v48  ;;  %v12883_v61 = vpop.f32.mrb[154].mxu0  ;;  %v5030_v53 = vsel %vm1598_vm0, %v5028_v54, %v5029_v45  ;;  %v5319_v34 = vsel %vm4423_vm3, %v5317_v51, %v5318_v9  ;;  %v20080_v54 = vld [vmem:[#allocation21_spill] sm:$0xff]  ;;  %v5031_v51 = vrot.slane %v4957_v36, 4  ;;  %v5249_v36 = vld [vmem:[#allocation2 + $0x5e8] sm:$0x3f] }
 0x26a   : > { %20075 = vst [vmem:[#allocation45_spill] sm:$0xff] %v16651_v25  ;;  %6966 = vmatprep.mubr.bf16.mxu1 %v5463_v3  ;;  %v12884_v11 = vpop.f32.mrb[155].mxu0  ;;  %v5177_v32 = vsel %vm4712_vm4, %v5175_v44, %v5176_v18  ;;  %v5320_v9 = vrot.slane %v5246_v30, 6  ;;  %v5321_v44 = vrot.slane %v5247_v59, 6  ;;  %v5178_v18 = vrot.slane %v5103_v63, 2 }
 0x26b   : > { %v12885_v58 = vadd.f32 %v12884_v11, %v12883_v61  ;;  %v4039_v3 = vadd.f32 %v12882_v27, %v16429_v16  ;;  %6806 = vmatmul.mubr.bf16.gmra.mrb[4].mxu0 %v5030_v53  ;;  %v5179_v16 = vrot.slane %v5104_v20, 2  ;;  %v4960_v27 = vld [vmem:[#allocation2 + $0x470] sm:$0xf]  ;;  %v5248_v11 = vld [vmem:[#allocation2 + $0x5e0] sm:$0xc0] }
 0x26c   : > { %v14214_v29 = vpop.f32.mrb[152].mxu1  ;;  %6813 = vmatprep.mubr.bf16.mxu0 %v5177_v32  ;;  %v5322_v32 = vsel %vm4423_vm3, %v5320_v9, %v5321_v44  ;;  %v5105_v63 = vld [vmem:[#allocation2 + $0x490] sm:$0xfc]  ;;  %v5035_v44 = vrot.slane %v4960_v27, 4  ;;  %v5251_v27 = vld [vmem:[#allocation2 + $0x608] sm:$0x3f] }
 0x26d   : > { %v16654_v10 = vadd.f32 %v14214_v29, %v4031_v17  ;;  %v4183_v6 = vpop.f32.mrb[153].mxu1  ;;  %v4042_v45 = vadd.f32 %v12885_v58, %v20080_v54  ;;  %v5180_v59 = vsel %vm4712_vm4, %v5178_v18, %v5179_v16  ;;  %v5106_v58 = vld [vmem:[#allocation2 + $0x498] sm:$0x3]  ;;  %v5323_v18 = vrot.slane %v5248_v11, 6  ;;  %v5107_v11 = vld [vmem:[#allocation2 + $0x4b0] sm:$0xfc] }
 0x26e   : > { %v16658_v49 = vadd.f32 %v4183_v6, %v16629_v12  ;;  %v14215_v42 = vpop.f32.mrb[154].mxu1  ;;  %v12886_v48 = vpop.f32.mrb[156].mxu0  ;;  %v5181_v16 = vrot.slane %v5105_v63, 2 }
 0x26f   : > { %20076 = vst [vmem:[#allocation46_spill] sm:$0xff] %v16654_v10  ;;  %v16662_v4 = vadd.f32 %v14215_v42, %v4034_v60  ;;  %v4186_v17 = vpop.f32.mrb[155].mxu1  ;;  %v5032_v60 = vrot.slane %v4958_v8, 4  ;;  %v12887_v21 = vpop.f32.mrb[157].mxu0 }
 0x270   : > { %20077 = vst [vmem:[#allocation47_spill] sm:$0xff] %v16658_v49  ;;  %v16667_v12 = vadd.f32 %v4186_v17, %v16635_v5  ;;  %v4959_v5 = vld [vmem:[#allocation2 + $0x468] sm:$0xf0]  ;;  %v12888_v6 = vadd.f32 %v12887_v21, %v12886_v48  ;;  %v12889_v53 = vpop.f32.mrb[158].mxu0  ;;  %v5182_v48 = vrot.slane %v5106_v58, 2 }
 0x271   : > { %20078 = vst [vmem:[#allocation48_spill] sm:$0xff] %v16662_v4  ;;  %6967 = vmatmul.mubr.bf16.gmra.mrb[4].mxu1 %v5319_v34  ;;  %v5033_v42 = vsel %vm1598_vm0, %v5031_v51, %v5032_v60  ;;  %v12890_v34 = vpop.f32.mrb[159].mxu0  ;;  %v5034_v9 = vrot.slane %v4959_v5, 4 }
 0x272   : > { %20079 = vst [vmem:[#allocation49_spill] sm:$0xff] %v16667_v12  ;;  %6974 = vmatprep.mubr.bf16.mxu1 %v5466_v39  ;;  %v4047_v17 = vadd.f32 %v12888_v6, %v16482_v38  ;;  %v12891_v39 = vadd.f32 %v12890_v34, %v12889_v53  ;;  %v5324_v38 = vrot.slane %v5249_v36, 6  ;;  %v4962_v53 = vld [vmem:[#allocation2 + $0x490] sm:$0xf]  ;;  %v5183_v58 = vsel %vm4712_vm4, %v5181_v16, %v5182_v48  ;;  %v16726_v12 = vld [vmem:[#allocation2 + $0x4b8] sm:$0x3] }
 0x273   : > { %6814 = vmatmul.mubr.bf16.gmra.mrb[8].mxu0 %v5033_v42  ;;  %v5250_v42 = vld [vmem:[#allocation2 + $0x600] sm:$0xc0]  ;;  %v5036_v5 = vsel %vm1598_vm0, %v5034_v9, %v5035_v44  ;;  %v5397_v9 = vld [vmem:[#allocation2 + $0x630] sm:$0xf] }
 0x274   : > { %v14218_v29 = vpop.f32.mrb[156].mxu1  ;;  %v4050_v60 = vadd.f32 %v12891_v39, %v16493_v2  ;;  %6821 = vmatprep.mubr.bf16.mxu0 %v5180_v59  ;;  %v5396_v39 = vld [vmem:[#allocation2 + $0x628] sm:$0xf0] }
 0x275   : > { %v4199_v61 = vpop.f32.mrb[157].mxu1  ;;  %v16679_v51 = vadd.f32 %v14218_v29, %v4047_v17  ;;  %v4961_v29 = vld [vmem:[#allocation2 + $0x488] sm:$0xf0]  ;;  %v5108_v17 = vld [vmem:[#allocation2 + $0x4b8] sm:$0x3] }
 0x276   : > { %v16671_v8 = vadd.f32 %v4199_v61, %v4039_v3  ;;  %v14219_v30 = vpop.f32.mrb[158].mxu1  ;;  %v5395_v3 = vld [vmem:[#allocation2 + $0x610] sm:$0xf]  ;;  %v12932_v22 = vpop.f32.mrb[160].mxu0  ;;  %v5037_v44 = vrot.slane %v4961_v29, 4  ;;  %v5185_v16 = vrot.slane %v5108_v17, 2 }
 0x277   : > { %v4202_v20 = vpop.f32.mrb[159].mxu1  ;;  %20083 = vst [vmem:[#allocation51_spill] sm:$0xff] %v16679_v51  ;;  %v16682_v21 = vadd.f32 %v14219_v30, %v4050_v60  ;;  %v5471_v26 = vrot.slane %v5395_v3, 4  ;;  %v12933_v61 = vpop.f32.mrb[161].mxu0  ;;  %v5325_v30 = vsel %vm4423_vm3, %v5323_v18, %v5324_v38  ;;  %v5327_v18 = vrot.slane %v5251_v27, 6 }
 0x278   : > { %20081 = vst [vmem:[#allocation21_spill] sm:$0xff] %v16671_v8  ;;  %v16677_v54 = vadd.f32 %v4202_v20, %v4042_v45  ;;  %v5470_v45 = vrot.slane %v5394_v50, 4  ;;  %v12934_v2 = vadd.f32 %v12933_v61, %v12932_v22  ;;  %v5038_v22 = vrot.slane %v4962_v53, 4  ;;  %v5253_v53 = vld [vmem:[#allocation2 + $0x628] sm:$0x3f] }
 0x279   : > { %6975 = vmatmul.mubr.bf16.gmra.mrb[8].mxu1 %v5322_v32  ;;  %20084 = vst [vmem:[#allocation52_spill] sm:$0xff] %v16682_v21  ;;  %v12935_v32 = vpop.f32.mrb[162].mxu0  ;;  %v5184_v38 = vrot.slane %v5107_v11, 2  ;;  %v5401_v8 = vld [vmem:[#allocation2 + $0x670] sm:$0xf] }
 0x27a   : > { %20082 = vst [vmem:[#allocation50_spill] sm:$0xff] %v16677_v54  ;;  %6982 = vmatprep.mubr.bf16.mxu1 %v5469_v1  ;;  %v12936_v63 = vpop.f32.mrb[163].mxu0  ;;  %v5472_v50 = vsel %vm1598_vm0, %v5470_v45, %v5471_v26  ;;  %v5039_v29 = vsel %vm1598_vm0, %v5037_v44, %v5038_v22  ;;  %v5398_v22 = vld [vmem:[#allocation2 + $0x648] sm:$0xf0] }
 0x27b   : > { %v12937_v20 = vadd.f32 %v12936_v63, %v12935_v32  ;;  %6822 = vmatmul.mubr.bf16.gmra.mrb[12].mxu0 %v5036_v5  ;;  %v5474_v32 = vrot.slane %v5397_v9, 4  ;;  %v5252_v5 = vld [vmem:[#allocation2 + $0x620] sm:$0xc0]  ;;  %v5186_v17 = vsel %vm4712_vm4, %v5184_v38, %v5185_v16 }
 0x27c   : > { %v13044_v6 = vpop.f32.mrb[160].mxu1  ;;  %6829 = vmatprep.mubr.bf16.mxu0 %v5183_v58  ;;  %v14636_v9 = vld [vmem:[%s19994_s2 + $0x5c0] sm:$0xff]   ;;  %v5329_v38 = vrot.slane %v5252_v5, 6 }
 0x27d   : > { %v13045_v34 = vpop.f32.mrb[161].mxu1  ;;  %13612 = vmatprep.subr.bf16.mxu1 %v14636_v9 }
 0x27e   : > { %v13046_v36 = vadd.f32 %v13045_v34, %v13044_v6  ;;  %v13047_v59 = vpop.f32.mrb[162].mxu1  ;;  %v5326_v6 = vrot.slane %v5250_v42, 6  ;;  %v12938_v48 = vpop.f32.mrb[164].mxu0  ;;  %v5473_v34 = vrot.slane %v5396_v39, 4  ;;  %v5109_v42 = vld [vmem:[#allocation2 + $0x4d0] sm:$0xfc] }
 0x27f   : > { %v13048_v1 = vpop.f32.mrb[163].mxu1  ;;  %v12939_v26 = vpop.f32.mrb[165].mxu0  ;;  %v5110_v39 = vld [vmem:[#allocation2 + $0x4d8] sm:$0x3] }
 0x280   : > { %v16688_v3 = vadd.f32 %v13046_v36, %v12934_v2  ;;  %v13049_v60 = vadd.f32 %v13048_v1, %v13047_v59  ;;  %v4963_v2 = vld [vmem:[#allocation2 + $0x4a8] sm:$0xf0]  ;;  %v4964_v36 = vld [vmem:[#allocation2 + $0x4b0] sm:$0xf]  ;;  %v12940_v59 = vadd.f32 %v12939_v26, %v12938_v48  ;;  %v5328_v11 = vsel %vm4423_vm3, %v5326_v6, %v5327_v18 }
 0x281   : > { %6983 = vmatmul.mubr.bf16.gmra.mrb[12].mxu1 %v5325_v30  ;;  %v12941_v30 = vpop.f32.mrb[166].mxu0  ;;  %v5040_v6 = vrot.slane %v4963_v2, 4  ;;  %v5041_v18 = vrot.slane %v4964_v36, 4  ;;  %v5330_v26 = vrot.slane %v5253_v53, 6  ;;  %v5400_v53 = vld [vmem:[#allocation2 + $0x668] sm:$0xf0] }
 0x282   : > { %v16690_v61 = vadd.f32 %v13049_v60, %v12937_v20  ;;  %6990 = vmatprep.mubr.bf16.mxu1 %v5472_v50  ;;  %v12942_v27 = vpop.f32.mrb[167].mxu0  ;;  %v5475_v60 = vsel %vm1598_vm0, %v5473_v34, %v5474_v32  ;;  %v5187_v34 = vrot.slane %v5109_v42, 2  ;;  %v5188_v32 = vrot.slane %v5110_v39, 2 }
 0x283   : > { %v12943_v1 = vadd.f32 %v12942_v27, %v12941_v30  ;;  %6830 = vmatmul.mubr.bf16.gmra.mrb[16].mxu0 %v5039_v29  ;;  %v5476_v30 = vrot.slane %v5398_v22, 4  ;;  %v4966_v27 = vld [vmem:[#allocation2 + $0x4d0] sm:$0xf] }
 0x284   : > { %v13050_v45 = vpop.f32.mrb[164].mxu1  ;;  %6837 = vmatprep.mubr.bf16.mxu0 %v5186_v17  ;;  %v5111_v17 = vld [vmem:[#allocation2 + $0x4f0] sm:$0xfc]  ;;  %v5189_v22 = vsel %vm4712_vm4, %v5187_v34, %v5188_v32 }
 0x285   : > { %v13051_v63 = vpop.f32.mrb[165].mxu1  ;;  %v5190_v32 = vrot.slane %v5111_v17, 2 }
 0x286   : > { %v13052_v58 = vadd.f32 %v13051_v63, %v13050_v45  ;;  %v13053_v20 = vpop.f32.mrb[166].mxu1  ;;  %v5399_v45 = vld [vmem:[#allocation2 + $0x650] sm:$0xf]  ;;  %v12944_v63 = vpop.f32.mrb[168].mxu0 }
 0x287   : > { %v13054_v50 = vpop.f32.mrb[167].mxu1  ;;  %v12945_v29 = vpop.f32.mrb[169].mxu0 }
 0x288   : > { %v16699_v48 = vadd.f32 %v13052_v58, %v12940_v59  ;;  %v13055_v44 = vadd.f32 %v13054_v50, %v13053_v20  ;;  %v5477_v59 = vrot.slane %v5399_v45, 4  ;;  %v4965_v58 = vld [vmem:[#allocation2 + $0x4c8] sm:$0xf0]  ;;  %v5254_v50 = vld [vmem:[#allocation2 + $0x640] sm:$0xc0]  ;;  %v12946_v2 = vadd.f32 %v12945_v29, %v12944_v63  ;;  %v12947_v5 = vpop.f32.mrb[170].mxu0 }
 0x289   : > { %6991 = vmatmul.mubr.bf16.gmra.mrb[16].mxu1 %v5328_v11  ;;  %v5255_v11 = vld [vmem:[#allocation2 + $0x648] sm:$0x3f]  ;;  %v12948_v9 = vpop.f32.mrb[171].mxu0  ;;  %v5043_v54 = vrot.slane %v4965_v58, 4  ;;  %v5480_v58 = vrot.slane %v5401_v8, 4 }
 0x28a   : > { %v16701_v16 = vadd.f32 %v13055_v44, %v12943_v1  ;;  %6998 = vmatprep.mubr.bf16.mxu1 %v5475_v60  ;;  %v5042_v1 = vsel %vm1598_vm0, %v5040_v6, %v5041_v18  ;;  %v5112_v60 = vld [vmem:[#allocation2 + $0x4f8] sm:$0x3]  ;;  %v5331_v44 = vsel %vm4423_vm3, %v5329_v38, %v5330_v26  ;;  %v12949_v45 = vadd.f32 %v12948_v9, %v12947_v5  ;;  %v16709_v6 = vld [vmem:[#allocation2 + $0x4e8] sm:$0xf0]  ;;  %v16711_v18 = vld [vmem:[#allocation2 + $0x4f0] sm:$0xf] }
 0x28b   : > { %v5478_v51 = vsel %vm1598_vm0, %v5476_v30, %v5477_v59  ;;  %6838 = vmatmul.mubr.bf16.gmra.mrb[20].mxu0 %v5042_v1  ;;  %v5044_v38 = vrot.slane %v4966_v27, 4  ;;  %v5332_v26 = vrot.slane %v5254_v50, 6  ;;  %v5333_v34 = vrot.slane %v5255_v11, 6  ;;  %v5257_v1 = vld [vmem:[#allocation2 + $0x668] sm:$0x3f] }
 0x28c   : > { %v13056_v20 = vpop.f32.mrb[168].mxu1  ;;  %6845 = vmatprep.mubr.bf16.mxu0 %v5189_v22  ;;  %v5191_v30 = vrot.slane %v5112_v60, 2  ;;  %v5479_v59 = vrot.slane %v5400_v53, 4  ;;  %v5047_v5 = vrot.slane %v16711_v18, 4  ;;  %v5514_v27 = vld [vmem:[#allocation2 + $0x490] sm:$0xfc] }
 0x28d   : > { %v13057_v36 = vpop.f32.mrb[169].mxu1  ;;  %v5515_v50 = vld [vmem:[#allocation2 + $0x498] sm:$0x3]  ;;  %v7474_v60 = vld [vmem:[#allocation2 + $0xc8] sm:$0xf0]  ;;  %v5336_v4 = vrot.slane %v5257_v1, 6 }
 0x28e   : > { %v13058_v42 = vadd.f32 %v13057_v36, %v13056_v20  ;;  %v13059_v39 = vpop.f32.mrb[170].mxu1  ;;  %v16713_v20 = vld [vmem:[#allocation2 + $0x660] sm:$0xc0]  ;;  %v7475_v53 = vld [vmem:[#allocation2 + $0xd0] sm:$0xf]  ;;  %v5481_v18 = vsel %vm1598_vm0, %v5479_v59, %v5480_v58  ;;  %v5578_v49 = vrot.slane %v5514_v27, 2 }
 0x28f   : > { %v13060_v21 = vpop.f32.mrb[171].mxu1  ;;  %v7539_v10 = vrot.slane %v7475_v53, 4  ;;  %v16732_v59 = vld [vmem:[#allocation2 + $0x4d0] sm:$0xfc]  ;;  %v16734_v58 = vld [vmem:[#allocation2 + $0x4d8] sm:$0x3] }
 0x290   : > { %v16707_v63 = vadd.f32 %v13058_v42, %v12946_v2  ;;  %v13061_v29 = vadd.f32 %v13060_v21, %v13059_v39  ;;  %v12950_v21 = vpop.f32.mrb[172].mxu0  ;;  %v5046_v2 = vrot.slane %v16709_v6, 4  ;;  %v5335_v42 = vrot.slane %v16713_v20, 6  ;;  %v16724_v20 = vld [vmem:[#allocation2 + $0x4b0] sm:$0xfc] }
 0x291   : > { %6999 = vmatmul.mubr.bf16.gmra.mrb[20].mxu1 %v5331_v44  ;;  %v12951_v9 = vpop.f32.mrb[173].mxu0  ;;  %v5192_v6 = vsel %vm4712_vm4, %v5190_v32, %v5191_v30  ;;  %v5582_v32 = vrot.slane %v16726_v12, 2  ;;  %v7330_v30 = vld [vmem:[#allocation2 + $0xc8] sm:$0x7]  ;;  %v16738_v27 = vld [vmem:[#allocation2 + $0xe8] sm:$0xf0] }
 0x292   : > { %v16715_v36 = vadd.f32 %v13061_v29, %v12949_v45  ;;  %7006 = vmatprep.mubr.bf16.mxu1 %v5478_v51  ;;  %v12952_v11 = vadd.f32 %v12951_v9, %v12950_v21  ;;  %v12953_v44 = vpop.f32.mrb[174].mxu0  ;;  %v5045_v51 = vsel %vm1598_vm0, %v5043_v54, %v5044_v38  ;;  %v5334_v29 = vsel %vm4423_vm3, %v5332_v26, %v5333_v34  ;;  %v7329_v26 = vld [vmem:[#allocation2 + $0xc0] sm:$0xf8]  ;;  %v16741_v53 = vld [vmem:[#allocation2 + $0xf0] sm:$0xf] }
 0x293   : > { %v12954_v45 = vpop.f32.mrb[175].mxu0  ;;  %v5579_v54 = vrot.slane %v5515_v50, 2  ;;  %6846 = vmatmul.mubr.bf16.gmra.mrb[24].mxu0 %v5045_v51  ;;  %v5581_v34 = vrot.slane %v16724_v20, 2  ;;  %v16748_v20 = vld [vmem:[#allocation2 + $0x4f8] sm:$0x3] }
 0x294   : > { %v13062_v39 = vpop.f32.mrb[172].mxu1  ;;  %v12955_v21 = vadd.f32 %v12954_v45, %v12953_v44  ;;  %6853 = vmatprep.mubr.bf16.mxu0 %v5192_v6 }
 0x295   : > { %v13063_v17 = vpop.f32.mrb[173].mxu1  ;;  %v5580_v6 = vsel %vm4712_vm4, %v5578_v49, %v5579_v54  ;;  %v7542_v49 = vrot.slane %v16741_v53, 4  ;;  %v16769_v53 = vld [vmem:[#allocation2 + $0x110] sm:$0xf] }
 0x296   : > { %v13064_v8 = vadd.f32 %v13063_v17, %v13062_v39  ;;  %v13065_v22 = vpop.f32.mrb[174].mxu1  ;;  %v7538_v17 = vrot.slane %v7474_v60, 4  ;;  %v12956_v50 = vpop.f32.mrb[176].mxu0  ;;  %v5048_v60 = vsel %vm1598_vm0, %v5046_v2, %v5047_v5  ;;  %v7395_v5 = vrot.slane %v7330_v30, 3 }
 0x297   : > { %v13066_v9 = vpop.f32.mrb[175].mxu1  ;;  %v12957_v51 = vpop.f32.mrb[177].mxu0 }
 0x298   : > { %v16728_v38 = vadd.f32 %v13064_v8, %v12952_v11  ;;  %v13067_v39 = vadd.f32 %v13066_v9, %v13065_v22  ;;  %v7394_v11 = vrot.slane %v7329_v26, 3  ;;  %v16743_v8 = vld [vmem:[#allocation2 + $0x4f0] sm:$0xfc]  ;;  %v12958_v12 = vadd.f32 %v12957_v51, %v12956_v50  ;;  %v12959_v45 = vpop.f32.mrb[178].mxu0 }
 0x299   : > { %7007 = vmatmul.mubr.bf16.gmra.mrb[24].mxu1 %v5334_v29  ;;  %v5337_v29 = vsel %vm4423_vm3, %v5335_v42, %v5336_v4  ;;  %v12960_v2 = vpop.f32.mrb[179].mxu0  ;;  %v5584_v26 = vrot.slane %v16732_v59, 2  ;;  %v5585_v50 = vrot.slane %v16734_v58, 2  ;;  %v7541_v4 = vrot.slane %v16738_v27, 4  ;;  %v16757_v42 = vld [vmem:[#allocation2 + $0xe8] sm:$0x7] }
 0x29a   : > { %v16736_v1 = vadd.f32 %v13067_v39, %v12955_v21  ;;  %7014 = vmatprep.mubr.bf16.mxu1 %v5481_v18  ;;  %v7540_v18 = vsel %vm1598_vm0, %v7538_v17, %v7539_v10  ;;  %v16750_v21 = vld [vmem:[#allocation2 + $0xe0] sm:$0xf8]  ;;  %v12961_v51 = vadd.f32 %v12960_v2, %v12959_v45  ;;  %v16765_v58 = vld [vmem:[#allocation2 + $0x518] sm:$0x3]  ;;  %v16767_v27 = vld [vmem:[#allocation2 + $0x108] sm:$0xf0] }
 0x29b   : > { %6854 = vmatmul.mubr.bf16.gmra.mrb[28].mxu0 %v5048_v60  ;;  %v16777_v60 = vld [vmem:[#allocation2 + $0x100] sm:$0xf8]  ;;  %v16779_v45 = vld [vmem:[#allocation2 + $0x108] sm:$0x7]  ;;  %v5591_v30 = vrot.slane %v16765_v58, 2  ;;  %v5586_v35 = vsel %vm4712_vm4, %v5584_v26, %v5585_v50  ;;  %v7543_v56 = vsel %vm1598_vm0, %v7541_v4, %v7542_v49  ;;  %v20091_v40 = vrot.slane %v16757_v42, 3 }
 0x29c   : > { %v13068_v44 = vpop.f32.mrb[176].mxu1  ;;  %14236 = vmatprep.mubr.bf16.mxu0 %v5580_v6  ;;  %v14617_v6 = vld [vmem:[%s19994_s2 + $0x500] sm:$0xff]   ;;  %v14618_v2 = vld [vmem:[%s19994_s2 + $0x548] sm:$0xff]   ;;  %v16824_v50 = vld [vmem:[#allocation2 + $0x130] sm:$0xf] }
 0x29d   : > { %v13069_v22 = vpop.f32.mrb[177].mxu1  ;;  %v16826_v49 = vld [vmem:[#allocation2 + $0x570] sm:$0xfc] }
 0x29e   : > { %v13070_v9 = vadd.f32 %v13069_v22, %v13068_v44  ;;  %v13071_v39 = vpop.f32.mrb[178].mxu1  ;;  %v16763_v44 = vld [vmem:[#allocation2 + $0x510] sm:$0xfc] }
 0x29f   : > { %v13072_v25 = vpop.f32.mrb[179].mxu1  ;;  %v16771_v22 = vld [vmem:[#allocation2 + $0x530] sm:$0xfc]  ;;  %v5590_v10 = vrot.slane %v16763_v44, 2 }
 0x2a0   : > { %v16759_v54 = vadd.f32 %v13070_v9, %v12958_v12  ;;  %v13073_v17 = vadd.f32 %v13072_v25, %v13071_v39  ;;  %v16775_v25 = vld [vmem:[#allocation2 + $0x538] sm:$0x3]  ;;  %v12962_v9 = vpop.f32.mrb[180].mxu0  ;;  %v5583_v39 = vsel %vm4712_vm4, %v5581_v34, %v5582_v32  ;;  %v7544_v34 = vrot.slane %v16767_v27, 4 }
 0x2a1   : > { %7015 = vmatmul.mubr.bf16.gmra.mrb[28].mxu1 %v5337_v29  ;;  %v7396_v29 = vsel %vm7393_vm5, %v7394_v11, %v7395_v5  ;;  %v12963_v59 = vpop.f32.mrb[181].mxu0  ;;  %v7545_v32 = vrot.slane %v16769_v53, 4  ;;  %v14640_v53 = vld [vmem:[%s19994_s2 + $0x5c8] sm:$0xff]  }
 0x2a2   : > { %20085 = vst [vmem:[#allocation53_spill] sm:$0xff] %v16759_v54  ;;  %v16773_v12 = vadd.f32 %v13073_v17, %v12961_v51  ;;  %9381 = vmatprep.mubr.bf16.mxu1 %v7540_v18  ;;  %v16787_v51 = vld [vmem:[#allocation2 + $0x550] sm:$0xfc]  ;;  %v16789_v18 = vld [vmem:[#allocation2 + $0x558] sm:$0x3]  ;;  %v12964_v11 = vadd.f32 %v12963_v59, %v12962_v9  ;;  %v12965_v37 = vpop.f32.mrb[182].mxu0 }
 0x2a3   : > { %v12966_v58 = vpop.f32.mrb[183].mxu0  ;;  %v14638_v9 = vld [vmem:[%s19994_s2 + $0x580] sm:$0xff]   ;;  %14237 = vmatmul.mubr.bf16.vlgmr.msra.gmra.mrb[32].mxu0 %v5583_v39 }
 0x2a4   : > { %20086 = vst [vmem:[#allocation54_spill] sm:$0xff] %v16773_v12  ;;  %v13074_v17 = vpop.f32.mrb[180].mxu1  ;;  %v12967_v28 = vadd.f32 %v12966_v58, %v12965_v37  ;;  %v14620_v37 = vld [vmem:[%s19994_s2 + $0x550] sm:$0xff]   ;;  %13501 = vmatpush3.bf16.msra.mxu0 %v14617_v6  ;;  %14240 = vmatprep.mubr.bf16.mxu0 %v5586_v35 }
 0x2a5   : > { %v13075_v5 = vpop.f32.mrb[181].mxu1  ;;  %13502 = vmatprep.subr.bf16.mxu0 %v14618_v2  ;;  %v14642_v35 = vld [vmem:[%s19994_s2 + $0x5d0] sm:$0xff]  }
 0x2a6   : > { %v13076_v44 = vadd.f32 %v13075_v5, %v13074_v17  ;;  %v13077_v15 = vpop.f32.mrb[182].mxu1  ;;  %v14619_v17 = vld [vmem:[%s19994_s2 + $0x508] sm:$0xff]   ;;  %v12968_v4 = vpop.f32.mrb[184].mxu0 }
 0x2a7   : > { %v13078_v14 = vpop.f32.mrb[183].mxu1  ;;  %v16812_v5 = vld [vmem:[#allocation2 + $0x128] sm:$0xf0]  ;;  %v12969_v39 = vpop.f32.mrb[185].mxu0 }
 0x2a8   : > { %v16817_v59 = vadd.f32 %v13076_v44, %v12964_v11  ;;  %v13079_v55 = vadd.f32 %v13078_v14, %v13077_v15  ;;  %v14641_v14 = vld [vmem:[%s19994_s2 + $0x588] sm:$0xff]   ;;  %v12971_v2 = vpop.f32.mrb[186].mxu0  ;;  %v20089_v11 = vrot.slane %v16748_v20, 2  ;;  %v20090_v44 = vrot.slane %v16743_v8, 2  ;;  %13503 = vmatpush3.bf16.msra.mxu0 %v14619_v17  ;;  %v16858_v17 = vld [vmem:[#allocation2 + $0x598] sm:$0x3] }
 0x2a9   : > { %9382 = vmatmul.mubr.bf16.vlgmr.msra.gmra.mrb[32].mxu1 %v7396_v29  ;;  %v12970_v29 = vadd.f32 %v12969_v39, %v12968_v4  ;;  %v12972_v41 = vpop.f32.mrb[187].mxu0  ;;  %v20092_v4 = vrot.slane %v16750_v21, 3  ;;  %v5592_v20 = vsel %vm4712_vm4, %v5590_v10, %v5591_v30  ;;  %v7546_v8 = vsel %vm1598_vm0, %v7544_v34, %v7545_v32  ;;  %13504 = vmatprep.subr.bf16.mxu0 %v14620_v37  ;;  %v14643_v21 = vld [vmem:[%s19994_s2 + $0x590] sm:$0xff]   ;;  %v14623_v32 = vld [vmem:[%s19994_s2 + $0x518] sm:$0xff]   ;;  %v16876_v37 = vld [vmem:[#allocation2 + $0x148] sm:$0xf0] }
 0x2aa   : > { %20087 = vst [vmem:[#allocation55_spill] sm:$0xff] %v16817_v59  ;;  %v16822_v26 = vadd.f32 %v13079_v55, %v12967_v28  ;;  %9389 = vmatprep.mubr.bf16.mxu1 %v7543_v56  ;;  %13613 = vmatpush3.bf16.msra.mxu1 %v14638_v9  ;;  %v14621_v28 = vld [vmem:[%s19994_s2 + $0x510] sm:$0xff]   ;;  %v16835_v56 = vld [vmem:[#allocation2 + $0x578] sm:$0x3]  ;;  %v5589_v58 = vsel %vm4712_vm4, %v20090_v44, %v20089_v11  ;;  %v16845_v9 = vld [vmem:[#allocation2 + $0x120] sm:$0xf8] }
 0x2ab   : > { %13614 = vmatprep.subr.bf16.mxu1 %v14640_v53  ;;  %v16847_v55 = vld [vmem:[#allocation2 + $0x128] sm:$0x7]  ;;  %v7399_v39 = vsel %vm7393_vm5, %v20092_v4, %v20091_v40  ;;  %v16856_v11 = vld [vmem:[#allocation2 + $0x590] sm:$0xfc]  ;;  %v12973_v44 = vadd.f32 %v12972_v41, %v12971_v2  ;;  %v14622_v40 = vld [vmem:[%s19994_s2 + $0x558] sm:$0xff]   ;;  %14241 = vmatmul.mubr.bf16.gmra.mrb[36].mxu0 %v5589_v58  ;;  %v20096_v41 = vrot.slane %v16771_v22, 2 }
 0x2ac   : > { %20088 = vst [vmem:[#allocation56_spill] sm:$0xff] %v16822_v26  ;;  %v13080_v15 = vpop.f32.mrb[184].mxu1  ;;  %14244 = vmatprep.mubr.bf16.mxu0 %v5592_v20  ;;  %13505 = vmatpush3.bf16.msra.mxu0 %v14621_v28  ;;  %v16888_v2 = vld [vmem:[#allocation2 + $0x150] sm:$0xf]  ;;  %v16894_v4 = vld [vmem:[#allocation2 + $0x140] sm:$0xf8] }
 0x2ad   : > { %v13081_v6 = vpop.f32.mrb[185].mxu1  ;;  %13506 = vmatprep.subr.bf16.mxu0 %v14622_v40  ;;  %v14625_v28 = vld [vmem:[%s19994_s2 + $0x520] sm:$0xff]   ;;  %v20099_v22 = vrot.slane %v16789_v18, 2  ;;  %v20101_v46 = vrot.slane %v16812_v5, 4  ;;  %v16937_v18 = vld [vmem:[#allocation2 + $0x170] sm:$0xf] }
 0x2ae   : > { %v13082_v27 = vadd.f32 %v13081_v6, %v13080_v15  ;;  %v13083_v53 = vpop.f32.mrb[186].mxu1  ;;  %v7548_v15 = vrot.slane %v16824_v50, 4  ;;  %13615 = vmatpush3.bf16.msra.mxu1 %v14641_v14  ;;  %v14644_v50 = vld [vmem:[%s19994_s2 + $0x5d8] sm:$0xff]   ;;  %v14624_v14 = vld [vmem:[%s19994_s2 + $0x560] sm:$0xff]   ;;  %v12974_v58 = vpop.f32.mrb[188].mxu0  ;;  %v20106_v19 = vrot.slane %v16847_v55, 3 }
 0x2af   : > { %v13084_v24 = vpop.f32.mrb[187].mxu1  ;;  %13616 = vmatprep.subr.bf16.mxu1 %v14642_v35  ;;  %v16890_v35 = vld [vmem:[#allocation2 + $0x5b0] sm:$0xfc]  ;;  %v14646_v40 = vld [vmem:[%s19994_s2 + $0x5e0] sm:$0xff]   ;;  %v16911_v6 = vld [vmem:[#allocation2 + $0x148] sm:$0x7] }
 0x2b0   : > { %v16869_v10 = vadd.f32 %v13082_v27, %v12970_v29  ;;  %v13085_v30 = vadd.f32 %v13084_v24, %v13083_v53  ;;  %v16892_v53 = vld [vmem:[#allocation2 + $0x5b8] sm:$0x3]  ;;  %v20095_v27 = vrot.slane %v16775_v25, 2  ;;  %13507 = vmatpush3.bf16.msra.mxu0 %v14623_v32  ;;  %v20110_v57 = vrot.slane %v16876_v37, 4  ;;  %v14653_v55 = vld [vmem:[%s19994_s2 + $0x5b0] sm:$0xff]  }
 0x2b1   : > { %9390 = vmatmul.mubr.bf16.gmra.mrb[36].mxu1 %v7399_v39  ;;  %v14645_v39 = vld [vmem:[%s19994_s2 + $0x598] sm:$0xff]   ;;  %13508 = vmatprep.subr.bf16.mxu0 %v14624_v14  ;;  %v16988_v14 = vld [vmem:[#allocation2 + $0x188] sm:$0xf0]  ;;  %v17309_v26 = vld [vmem:[#allocation2 + $0x270] sm:$0xf] }
 0x2b2   : > { %20093 = vst [vmem:[#allocation57_spill] sm:$0xff] %v16869_v10  ;;  %v16886_v29 = vadd.f32 %v13085_v30, %v12973_v44  ;;  %9397 = vmatprep.mubr.bf16.mxu1 %v7546_v8  ;;  %13617 = vmatpush3.bf16.msra.mxu1 %v14643_v21  ;;  %v12975_v44 = vpop.f32.mrb[189].mxu0  ;;  %v5595_v34 = vsel %vm4712_vm4, %v20096_v41, %v20095_v27  ;;  %v16913_v8 = vld [vmem:[#allocation2 + $0x5d0] sm:$0xfc]  ;;  %v20100_v41 = vrot.slane %v16787_v51, 2  ;;  %v14648_v51 = vld [vmem:[%s19994_s2 + $0x5a0] sm:$0xff]  }
 0x2b3   : > { %13618 = vmatprep.subr.bf16.mxu1 %v14644_v50  ;;  %v12976_v30 = vadd.f32 %v12975_v44, %v12974_v58  ;;  %v12977_v21 = vpop.f32.mrb[190].mxu0  ;;  %v14626_v50 = vld [vmem:[%s19994_s2 + $0x568] sm:$0xff]   ;;  %v20097_v58 = vrot.slane %v16779_v45, 3  ;;  %v20098_v44 = vrot.slane %v16777_v60, 3  ;;  %v7549_v45 = vsel %vm1598_vm0, %v20101_v46, %v7548_v15  ;;  %14245 = vmatmul.mubr.bf16.gmra.mrb[40].mxu0 %v5595_v34  ;;  %v16986_v46 = vld [vmem:[#allocation2 + $0x618] sm:$0x3] }
 0x2b4   : > { %20094 = vst [vmem:[#allocation58_spill] sm:$0xff] %v16886_v29  ;;  %v13086_v20 = vpop.f32.mrb[188].mxu1  ;;  %v12978_v13 = vpop.f32.mrb[191].mxu0  ;;  %v5598_v27 = vsel %vm4712_vm4, %v20100_v41, %v20099_v22  ;;  %v7551_v60 = vrot.slane %v16888_v2, 4  ;;  %v14650_v15 = vld [vmem:[%s19994_s2 + $0x5e8] sm:$0xff]   ;;  %13509 = vmatpush3.bf16.msra.mxu0 %v14625_v28  ;;  %v14652_v22 = vld [vmem:[%s19994_s2 + $0x5f0] sm:$0xff]  }
 0x2b5   : > { %v13087_v24 = vpop.f32.mrb[189].mxu1  ;;  %v7402_v25 = vsel %vm7393_vm5, %v20098_v44, %v20097_v58  ;;  %14248 = vmatprep.mubr.bf16.mxu0 %v5598_v27  ;;  %v14627_v34 = vld [vmem:[%s19994_s2 + $0x528] sm:$0xff]   ;;  %13510 = vmatprep.subr.bf16.mxu0 %v14626_v50  ;;  %v16972_v28 = vld [vmem:[#allocation2 + $0x160] sm:$0xf8]  ;;  %v20105_v2 = vrot.slane %v16826_v49, 2  ;;  %v14630_v5 = vld [vmem:[%s19994_s2 + $0x578] sm:$0xff]  }
 0x2b6   : > { %v13088_v42 = vadd.f32 %v13087_v24, %v13086_v20  ;;  %v13089_v52 = vpop.f32.mrb[190].mxu1  ;;  %v12979_v24 = vadd.f32 %v12978_v13, %v12977_v21  ;;  %13619 = vmatpush3.bf16.msra.mxu1 %v14645_v39  ;;  %v14628_v39 = vld [vmem:[%s19994_s2 + $0x570] sm:$0xff]   ;;  %v14651_v21 = vld [vmem:[%s19994_s2 + $0x5a8] sm:$0xff]   ;;  %v12980_v44 = vpop.f32.mrb[192].mxu0  ;;  %v14654_v37 = vld [vmem:[%s19994_s2 + $0x5f8] sm:$0xff]  }
 0x2b7   : > { %v13090_v20 = vpop.f32.mrb[191].mxu1  ;;  %13620 = vmatprep.subr.bf16.mxu1 %v14646_v40  ;;  %v12981_v27 = vpop.f32.mrb[193].mxu0  ;;  %v16990_v58 = vld [vmem:[#allocation2 + $0x190] sm:$0xf] }
 0x2b8   : > { %v16942_v32 = vadd.f32 %v13088_v42, %v12976_v30  ;;  %v13091_v13 = vadd.f32 %v13090_v20, %v13089_v52  ;;  %v16974_v20 = vld [vmem:[#allocation2 + $0x168] sm:$0x7]  ;;  %v12982_v50 = vadd.f32 %v12981_v27, %v12980_v44  ;;  %v12983_v52 = vpop.f32.mrb[194].mxu0  ;;  %v20104_v30 = vrot.slane %v16835_v56, 2  ;;  %13511 = vmatpush3.bf16.msra.mxu0 %v14627_v34  ;;  %v17060_v34 = vld [vmem:[#allocation2 + $0x678] sm:$0x3] }
 0x2b9   : > { %9398 = vmatmul.mubr.bf16.gmra.mrb[40].mxu1 %v7402_v25  ;;  %v16965_v25 = vld [vmem:[#allocation2 + $0x5f0] sm:$0xfc]  ;;  %v12984_v27 = vpop.f32.mrb[195].mxu0  ;;  %v20107_v56 = vrot.slane %v16845_v9, 3  ;;  %13512 = vmatprep.subr.bf16.mxu0 %v14628_v39 }
 0x2ba   : > { %20102 = vst [vmem:[#allocation59_spill] sm:$0xff] %v16942_v32  ;;  %v16959_v40 = vadd.f32 %v13091_v13, %v12979_v24  ;;  %9405 = vmatprep.mubr.bf16.mxu1 %v7549_v45  ;;  %13621 = vmatpush3.bf16.msra.mxu1 %v14648_v51  ;;  %v16970_v24 = vld [vmem:[#allocation2 + $0x5f8] sm:$0x3]  ;;  %v16976_v45 = vld [vmem:[#allocation2 + $0x610] sm:$0xfc]  ;;  %v5601_v42 = vsel %vm4712_vm4, %v20105_v2, %v20104_v30  ;;  %v20108_v2 = vrot.slane %v16858_v17, 2 }
 0x2bb   : > { %v14629_v13 = vld [vmem:[%s19994_s2 + $0x530] sm:$0xff]   ;;  %13622 = vmatprep.subr.bf16.mxu1 %v14650_v15  ;;  %v7405_v49 = vsel %vm7393_vm5, %v20107_v56, %v20106_v19  ;;  %v20109_v30 = vrot.slane %v16856_v11, 2  ;;  %v12985_v0 = vadd.f32 %v12984_v27, %v12983_v52  ;;  %14249 = vmatmul.mubr.bf16.gmra.mrb[44].mxu0 %v5601_v42  ;;  %v17014_v17 = vld [vmem:[#allocation2 + $0x638] sm:$0x3]  ;;  %v17038_v27 = vld [vmem:[#allocation2 + $0x180] sm:$0xf8] }
 0x2bc   : > { %20103 = vst [vmem:[#allocation60_spill] sm:$0xff] %v16959_v40  ;;  %v13092_v41 = vpop.f32.mrb[192].mxu1  ;;  %v17012_v11 = vld [vmem:[#allocation2 + $0x630] sm:$0xfc]  ;;  %13513 = vmatpush3.bf16.msra.mxu0 %v14629_v13  ;;  %v14655_v13 = vld [vmem:[%s19994_s2 + $0x5b8] sm:$0xff]  }
 0x2bd   : > { %v13093_v51 = vpop.f32.mrb[193].mxu1  ;;  %v5604_v23 = vsel %vm4712_vm4, %v20109_v30, %v20108_v2  ;;  %13514 = vmatprep.subr.bf16.mxu0 %v14630_v5  ;;  %v17043_v2 = vld [vmem:[#allocation2 + $0x188] sm:$0x7]  ;;  %v17045_v30 = vld [vmem:[#allocation2 + $0x650] sm:$0xfc]  ;;  %v20113_v5 = vrot.slane %v16892_v53, 2 }
 0x2be   : > { %v13094_v15 = vadd.f32 %v13093_v51, %v13092_v41  ;;  %v13095_v44 = vpop.f32.mrb[194].mxu1  ;;  %v7552_v41 = vsel %vm1598_vm0, %v20110_v57, %v7551_v60  ;;  %13623 = vmatpush3.bf16.msra.mxu1 %v14651_v21  ;;  %14252 = vmatprep.mubr.bf16.mxu0 %v5604_v23  ;;  %v14631_v23 = vld [vmem:[%s19994_s2 + $0x538] sm:$0xff]   ;;  %v12986_v51 = vpop.f32.mrb[196].mxu0  ;;  %v17056_v21 = vld [vmem:[#allocation2 + $0x1b0] sm:$0xf]  ;;  %v20117_v53 = vrot.slane %v16928_v7, 2 }
 0x2bf   : > { %v13096_v33 = vpop.f32.mrb[195].mxu1  ;;  %13624 = vmatprep.subr.bf16.mxu1 %v14652_v22  ;;  %v14632_v22 = vld [vmem:[%s19994_s2 + $0x640] sm:$0xff]   ;;  %v17058_v52 = vld [vmem:[#allocation2 + $0x670] sm:$0xfc]  ;;  %v17074_v60 = vld [vmem:[#allocation2 + $0x1a8] sm:$0x7] }
 0x2c0   : > { %v13097_v19 = vadd.f32 %v13096_v33, %v13095_v44  ;;  %v17019_v57 = vadd.f32 %v13094_v15, %v12982_v50  ;;  %13515 = vmatpush3.bf16.msra.mxu0 %v14631_v23  ;;  %v20125_v23 = vrot.slane %v16974_v20, 3 }
 0x2c1   : > { %9406 = vmatmul.mubr.bf16.gmra.mrb[44].mxu1 %v7405_v49  ;;  %v12987_v49 = vpop.f32.mrb[197].mxu0  ;;  %13724 = vmatprep.subr.bf16.mxu0 %v14632_v22 }
 0x2c2   : > { %20111 = vst [vmem:[#allocation61_spill] sm:$0xff] %v17019_v57  ;;  %9413 = vmatprep.mubr.bf16.mxu1 %v7552_v41  ;;  %v17034_v50 = vadd.f32 %v13097_v19, %v12985_v0  ;;  %13625 = vmatpush3.bf16.msra.mxu1 %v14653_v55  ;;  %v17047_v0 = vld [vmem:[#allocation2 + $0x658] sm:$0x3]  ;;  %v17049_v41 = vld [vmem:[#allocation2 + $0x1a8] sm:$0xf0]  ;;  %v12988_v19 = vadd.f32 %v12987_v49, %v12986_v51  ;;  %v12989_v44 = vpop.f32.mrb[198].mxu0 }
 0x2c3   : > { %13626 = vmatprep.subr.bf16.mxu1 %v14654_v37  ;;  %v20114_v55 = vrot.slane %v16890_v35, 2  ;;  %v12990_v9 = vpop.f32.mrb[199].mxu0  ;;  %v20115_v37 = vrot.slane %v16911_v6, 3  ;;  %v20116_v51 = vrot.slane %v16894_v4, 3  ;;  %v20118_v35 = vrot.slane %v16913_v8, 2 }
 0x2c4   : > { %20112 = vst [vmem:[#allocation62_spill] sm:$0xff] %v17034_v50  ;;  %v13098_v56 = vpop.f32.mrb[196].mxu1  ;;  %v20119_v6 = vrot.slane %v16937_v18, 4  ;;  %v20120_v4 = vrot.slane %v16930_v62, 4  ;;  %v17115_v62 = vld [vmem:[#allocation2 + $0xd8] sm:$0x1f] }
 0x2c5   : > { %v13099_v15 = vpop.f32.mrb[197].mxu1  ;;  %v5607_v39 = vsel %vm4712_vm4, %v20114_v55, %v20113_v5  ;;  %v7408_v49 = vsel %vm7393_vm5, %v20116_v51, %v20115_v37  ;;  %v5610_v5 = vsel %vm4712_vm4, %v20118_v35, %v20117_v53  ;;  %v17072_v55 = vld [vmem:[#allocation2 + $0x1a0] sm:$0xf8] }
 0x2c6   : > { %v13100_v33 = vadd.f32 %v13099_v15, %v13098_v56  ;;  %v13101_v42 = vpop.f32.mrb[198].mxu1  ;;  %v17076_v15 = vld [vmem:[#allocation2 + $0x1c8] sm:$0xf0]  ;;  %v12991_v56 = vadd.f32 %v12990_v9, %v12989_v44  ;;  %v7555_v37 = vsel %vm1598_vm0, %v20120_v4, %v20119_v6  ;;  %13627 = vmatpush3.bf16.msra.mxu1 %v14655_v13  ;;  %14253 = vmatmul.mubr.bf16.gmra.mrb[48].mxu0 %v5607_v39  ;;  %v17102_v6 = vld [vmem:[#allocation2 + $0x308] sm:$0x7]  ;;  %v20124_v13 = vrot.slane %v16965_v25, 2 }
 0x2c7   : > { %v13102_v50 = vpop.f32.mrb[199].mxu1  ;;  %14256 = vmatprep.mubr.bf16.mxu0 %v5610_v5  ;;  %v17100_v5 = vld [vmem:[#allocation2 + $0x300] sm:$0xf8]  ;;  %v17117_v44 = vld [vmem:[#allocation2 + $0x1e8] sm:$0xf0]  ;;  %v20128_v25 = vrot.slane %v16976_v45, 2 }
 0x2c8   : > { %v13103_v8 = vadd.f32 %v13102_v50, %v13101_v42  ;;  %v17084_v51 = vadd.f32 %v13100_v33, %v12988_v19  ;;  %v12992_v33 = vpop.f32.mrb[200].mxu0  ;;  %v17097_v19 = vld [vmem:[#allocation2 + $0x1d0] sm:$0xf]  ;;  %v17104_v4 = vld [vmem:[#allocation2 + $0x1c0] sm:$0xf8]  ;;  %v20123_v50 = vrot.slane %v16970_v24, 2 }
 0x2c9   : > { %9414 = vmatmul.mubr.bf16.gmra.mrb[48].mxu1 %v7408_v49  ;;  %v12993_v35 = vpop.f32.mrb[201].mxu0  ;;  %v17113_v49 = vld [vmem:[#allocation2 + $0xd0] sm:$0xe0]  ;;  %v20127_v24 = vrot.slane %v16986_v46, 2  ;;  %v17139_v46 = vld [vmem:[#allocation2 + $0x328] sm:$0x7] }
 0x2ca   : > { %20121 = vst [vmem:[#allocation63_spill] sm:$0xff] %v17084_v51  ;;  %9421 = vmatprep.mubr.bf16.mxu1 %v7555_v37  ;;  %v17093_v39 = vadd.f32 %v13103_v8, %v12991_v56  ;;  %v17106_v37 = vld [vmem:[#allocation2 + $0x1c8] sm:$0x7]  ;;  %v12994_v56 = vadd.f32 %v12993_v35, %v12992_v33  ;;  %v12995_v22 = vpop.f32.mrb[202].mxu0  ;;  %v5613_v42 = vsel %vm4712_vm4, %v20124_v13, %v20123_v50  ;;  %v20126_v33 = vrot.slane %v16972_v28, 3 }
 0x2cb   : > { %v12996_v7 = vpop.f32.mrb[203].mxu0  ;;  %v5616_v50 = vsel %vm4712_vm4, %v20128_v25, %v20127_v24  ;;  %v17129_v13 = vld [vmem:[#allocation2 + $0x1f0] sm:$0xf]  ;;  %v17155_v25 = vld [vmem:[#allocation2 + $0x1e0] sm:$0xf8]  ;;  %v20158_v10 = vrot.slane %v17117_v44, 4 }
 0x2cc   : > { %20122 = vst [vmem:[#allocation64_spill] sm:$0xff] %v17093_v39  ;;  %v13104_v53 = vpop.f32.mrb[200].mxu1  ;;  %v7411_v35 = vsel %vm7393_vm5, %v20126_v33, %v20125_v23  ;;  %v12997_v39 = vadd.f32 %v12996_v7, %v12995_v22  ;;  %v17137_v23 = vld [vmem:[#allocation2 + $0x320] sm:$0xf8]  ;;  %v17168_v24 = vld [vmem:[#allocation2 + $0x208] sm:$0xf0] }
 0x2cd   : > { %v13105_v8 = vpop.f32.mrb[201].mxu1  ;;  %v20135_v7 = vrot.slane %v17043_v2, 3  ;;  %v20157_v29 = vrot.slane %v17129_v13, 4  ;;  %v17338_v13 = vld [vmem:[#allocation2 + $0x268] sm:$0x7] }
 0x2ce   : > { %v13106_v9 = vadd.f32 %v13105_v8, %v13104_v53  ;;  %v13107_v18 = vpop.f32.mrb[202].mxu1  ;;  %v20129_v53 = vrot.slane %v16990_v58, 4  ;;  %v20130_v8 = vrot.slane %v16988_v14, 4  ;;  %14257 = vmatmul.mubr.bf16.gmra.mrb[52].mxu0 %v5613_v42  ;;  %v20136_v58 = vrot.slane %v17038_v27, 3 }
 0x2cf   : > { %v13108_v51 = vpop.f32.mrb[203].mxu1  ;;  %14260 = vmatprep.mubr.bf16.mxu0 %v5616_v50 }
 0x2d0   : > { %v7558_v20 = vsel %vm1598_vm0, %v20130_v8, %v20129_v53  ;;  %v13109_v57 = vadd.f32 %v13108_v51, %v13107_v18  ;;  %v17141_v45 = vadd.f32 %v13106_v9, %v12994_v56  ;;  %v12998_v9 = vpop.f32.mrb[204].mxu0  ;;  %v17157_v8 = vld [vmem:[#allocation2 + $0x1e8] sm:$0x7] }
 0x2d1   : > { %9422 = vmatmul.mubr.bf16.gmra.mrb[52].mxu1 %v7411_v35  ;;  %v12999_v53 = vpop.f32.mrb[205].mxu0  ;;  %v17166_v35 = vld [vmem:[#allocation2 + $0xf8] sm:$0x1f] }
 0x2d2   : > { %20131 = vst [vmem:[#allocation65_spill] sm:$0xff] %v17141_v45  ;;  %9429 = vmatprep.mubr.bf16.mxu1 %v7558_v20  ;;  %v17150_v33 = vadd.f32 %v13109_v57, %v12997_v39  ;;  %v17159_v20 = vld [vmem:[#allocation2 + $0xf0] sm:$0xe0]  ;;  %v13000_v14 = vadd.f32 %v12999_v53, %v12998_v9  ;;  %v13001_v42 = vpop.f32.mrb[206].mxu0  ;;  %v20133_v57 = vrot.slane %v17014_v17, 2  ;;  %v20134_v39 = vrot.slane %v17012_v11, 2 }
 0x2d3   : > { %v13002_v28 = vpop.f32.mrb[207].mxu0  ;;  %v7414_v9 = vsel %vm7393_vm5, %v20136_v58, %v20135_v7  ;;  %v20137_v53 = vrot.slane %v17047_v0, 2  ;;  %v20138_v17 = vrot.slane %v17045_v30, 2  ;;  %v20144_v30 = vrot.slane %v17058_v52, 2 }
 0x2d4   : > { %20132 = vst [vmem:[#allocation66_spill] sm:$0xff] %v17150_v33  ;;  %v13110_v50 = vpop.f32.mrb[204].mxu1  ;;  %v5619_v56 = vsel %vm4712_vm4, %v20134_v39, %v20133_v57  ;;  %v20139_v57 = vrot.slane %v17056_v21, 4  ;;  %v20140_v39 = vrot.slane %v17049_v41, 4  ;;  %v17187_v33 = vld [vmem:[#allocation2 + $0x340] sm:$0xf8]  ;;  %v13003_v2 = vadd.f32 %v13002_v28, %v13001_v42 }
 0x2d5   : > { %v13111_v22 = vpop.f32.mrb[205].mxu1  ;;  %v5622_v11 = vsel %vm4712_vm4, %v20138_v17, %v20137_v53  ;;  %v17194_v53 = vld [vmem:[#allocation2 + $0x348] sm:$0x7]  ;;  %v17211_v28 = vld [vmem:[#allocation2 + $0x118] sm:$0x1f]  ;;  %v20145_v41 = vrot.slane %v17074_v60, 3 }
 0x2d6   : > { %v13112_v51 = vadd.f32 %v13111_v22, %v13110_v50  ;;  %v13113_v18 = vpop.f32.mrb[206].mxu1  ;;  %v7561_v22 = vsel %vm1598_vm0, %v20140_v39, %v20139_v57  ;;  %v17185_v50 = vld [vmem:[#allocation2 + $0x210] sm:$0xf]  ;;  %14261 = vmatmul.mubr.bf16.gmra.mrb[56].mxu0 %v5619_v56  ;;  %v17200_v57 = vld [vmem:[#allocation2 + $0x200] sm:$0xf8]  ;;  %v20150_v60 = vrot.slane %v17076_v15, 4 }
 0x2d7   : > { %v13114_v27 = vpop.f32.mrb[207].mxu1  ;;  %14264 = vmatprep.mubr.bf16.mxu0 %v5622_v11  ;;  %v17202_v39 = vld [vmem:[#allocation2 + $0x208] sm:$0x7]  ;;  %v20169_v59 = vrot.slane %v17185_v50, 4  ;;  %v20176_v12 = vrot.slane %v17200_v57, 3 }
 0x2d8   : > { %v13115_v58 = vadd.f32 %v13114_v27, %v13113_v18  ;;  %v17196_v17 = vadd.f32 %v13112_v51, %v13000_v14  ;;  %v17204_v18 = vld [vmem:[#allocation2 + $0x110] sm:$0xe0]  ;;  %v13004_v27 = vpop.f32.mrb[208].mxu0  ;;  %v17220_v14 = vld [vmem:[#allocation2 + $0x230] sm:$0xf] }
 0x2d9   : > { %9430 = vmatmul.mubr.bf16.gmra.mrb[56].mxu1 %v7414_v9  ;;  %v13005_v9 = vpop.f32.mrb[209].mxu0  ;;  %v20179_v54 = vrot.slane %v17220_v14, 4 }
 0x2da   : > { %20141 = vst [vmem:[#allocation67_spill] sm:$0xff] %v17196_v17  ;;  %9437 = vmatprep.mubr.bf16.mxu1 %v7561_v22  ;;  %v17206_v56 = vadd.f32 %v13115_v58, %v13003_v2  ;;  %v13006_v42 = vadd.f32 %v13005_v9, %v13004_v27  ;;  %v13007_v0 = vpop.f32.mrb[210].mxu0  ;;  %v20143_v22 = vrot.slane %v17060_v34, 2  ;;  %v17218_v58 = vld [vmem:[#allocation2 + $0x228] sm:$0xf0]  ;;  %v20146_v17 = vrot.slane %v17072_v55, 3 }
 0x2db   : > { %v13008_v11 = vpop.f32.mrb[211].mxu0  ;;  %v20147_v9 = vrot.slane %v17102_v6, 3  ;;  %v20148_v34 = vrot.slane %v17100_v5, 3  ;;  %v17244_v6 = vld [vmem:[#allocation2 + $0x228] sm:$0x7] }
 0x2dc   : > { %20142 = vst [vmem:[#allocation68_spill] sm:$0xff] %v17206_v56  ;;  %v13116_v51 = vpop.f32.mrb[208].mxu1  ;;  %v5625_v2 = vsel %vm4712_vm4, %v20144_v30, %v20143_v22  ;;  %v7417_v27 = vsel %vm7393_vm5, %v20146_v17, %v20145_v41  ;;  %v17232_v30 = vld [vmem:[#allocation2 + $0x360] sm:$0xf8]  ;;  %v17234_v22 = vld [vmem:[#allocation2 + $0x368] sm:$0x7]  ;;  %v13009_v45 = vadd.f32 %v13008_v11, %v13007_v0 }
 0x2dd   : > { %v13117_v7 = vpop.f32.mrb[209].mxu1  ;;  %v7829_v52 = vsel %vm7393_vm5, %v20148_v34, %v20147_v9  ;;  %v17242_v17 = vld [vmem:[#allocation2 + $0x220] sm:$0xf8]  ;;  %v17246_v9 = vld [vmem:[#allocation2 + $0x130] sm:$0xe0] }
 0x2de   : > { %v13118_v21 = vadd.f32 %v13117_v7, %v13116_v51  ;;  %v13119_v56 = vpop.f32.mrb[210].mxu1  ;;  %v20149_v51 = vrot.slane %v17097_v19, 4  ;;  %14265 = vmatmul.mubr.bf16.gmra.mrb[60].mxu0 %v5625_v2  ;;  %v17248_v34 = vld [vmem:[#allocation2 + $0x138] sm:$0x1f]  ;;  %v17250_v0 = vld [vmem:[#allocation2 + $0x248] sm:$0xf0] }
 0x2df   : > { %v13120_v7 = vpop.f32.mrb[211].mxu1  ;;  %9542 = vmatprep.mubr.bf16.mxu0 %v7829_v52  ;;  %v17268_v19 = vld [vmem:[#allocation2 + $0x250] sm:$0xf]  ;;  %v17271_v2 = vld [vmem:[#allocation2 + $0x380] sm:$0xf8] }
 0x2e0   : > { %v7564_v55 = vsel %vm1598_vm0, %v20150_v60, %v20149_v51  ;;  %v13121_v5 = vadd.f32 %v13120_v7, %v13119_v56  ;;  %v17252_v11 = vadd.f32 %v13118_v21, %v13006_v42  ;;  %v13010_v21 = vpop.f32.mrb[212].mxu0  ;;  %v14633_v42 = vld [vmem:[%s19994_s2 + $0x600] sm:$0xff]   ;;  %v17273_v7 = vld [vmem:[#allocation2 + $0x388] sm:$0x7] }
 0x2e1   : > { %9438 = vmatmul.mubr.bf16.gmra.mrb[60].mxu1 %v7417_v27  ;;  %v13011_v60 = vpop.f32.mrb[213].mxu0  ;;  %v20154_v27 = vrot.slane %v17113_v49, 5  ;;  %v17294_v49 = vld [vmem:[#allocation2 + $0x158] sm:$0x1f] }
 0x2e2   : > { %20151 = vst [vmem:[#allocation69_spill] sm:$0xff] %v17252_v11  ;;  %9445 = vmatprep.mubr.bf16.mxu1 %v7564_v55  ;;  %v17261_v41 = vadd.f32 %v13121_v5, %v13009_v45  ;;  %v17275_v45 = vld [vmem:[#allocation2 + $0x240] sm:$0xf8]  ;;  %v13012_v5 = vadd.f32 %v13011_v60, %v13010_v21  ;;  %v13013_v15 = vpop.f32.mrb[214].mxu0  ;;  %v14634_v55 = vld [vmem:[%s19994_s2 + $0x648] sm:$0xff]   ;;  %v20155_v60 = vrot.slane %v17106_v37, 3 }
 0x2e3   : > { %v17285_v11 = vld [vmem:[#allocation2 + $0x248] sm:$0x7]  ;;  %v13014_v40 = vpop.f32.mrb[215].mxu0  ;;  %v20156_v21 = vrot.slane %v17104_v4, 3  ;;  %v20160_v37 = vrot.slane %v17137_v23, 3 }
 0x2e4   : > { %20152 = vst [vmem:[#allocation70_spill] sm:$0xff] %v17261_v41  ;;  %v13122_v51 = vpop.f32.mrb[212].mxu1  ;;  %v20153_v41 = vrot.slane %v17115_v62, 5 }
 0x2e5   : > { %v13123_v56 = vpop.f32.mrb[213].mxu1  ;;  %v7420_v62 = vsel %vm7393_vm5, %v20156_v21, %v20155_v60  ;;  %v14647_v60 = vld [vmem:[%s19994_s2 + $0x658] sm:$0xff]  }
 0x2e6   : > { %v7685_v52 = vsel %vm7682_vm6, %v20154_v27, %v20153_v41  ;;  %v13124_v47 = vadd.f32 %v13123_v56, %v13122_v51  ;;  %v13125_v31 = vpop.f32.mrb[214].mxu1  ;;  %v17296_v41 = vld [vmem:[#allocation2 + $0x268] sm:$0xf0]  ;;  %v13015_v27 = vadd.f32 %v13014_v40, %v13013_v15  ;;  %v7567_v51 = vsel %vm1598_vm0, %v20158_v10, %v20157_v29 }
 0x2e7   : > { %v13126_v32 = vpop.f32.mrb[215].mxu1  ;;  %v20159_v56 = vrot.slane %v17139_v46, 3  ;;  %9543 = vmatmul.mubr.bf16.vlgmr.msra.gmra.mrb[64].mxu0 %v7685_v52  ;;  %v14635_v10 = vld [vmem:[%s19994_s2 + $0x608] sm:$0xff]   ;;  %v20164_v52 = vrot.slane %v17159_v20, 5 }
 0x2e8   : > { %v13127_v21 = vadd.f32 %v13126_v32, %v13125_v31  ;;  %v17311_v40 = vadd.f32 %v13124_v47, %v13012_v5  ;;  %13725 = vmatpush3.bf16.msra.mxu0 %v14633_v42  ;;  %v14637_v32 = vld [vmem:[%s19994_s2 + $0x650] sm:$0xff]   ;;  %v13016_v42 = vpop.f32.mrb[216].mxu0  ;;  %v17329_v5 = vld [vmem:[#allocation2 + $0x3a0] sm:$0xf8]  ;;  %v17347_v47 = vld [vmem:[#allocation2 + $0x178] sm:$0x1f] }
 0x2e9   : > { %v7832_v4 = vsel %vm7393_vm5, %v20160_v37, %v20159_v56  ;;  %9446 = vmatmul.mubr.bf16.gmra.mrb[64].mxu1 %v7420_v62  ;;  %13726 = vmatprep.subr.bf16.mxu0 %v14634_v55  ;;  %v17331_v62 = vld [vmem:[#allocation2 + $0x3a8] sm:$0x7]  ;;  %v13017_v56 = vpop.f32.mrb[217].mxu0  ;;  %v14639_v37 = vld [vmem:[%s19994_s2 + $0x610] sm:$0xff]   ;;  %v20163_v55 = vrot.slane %v17166_v35, 5  ;;  %v20166_v35 = vrot.slane %v17155_v25, 3 }
 0x2ea   : > { %20161 = vst [vmem:[#allocation71_spill] sm:$0xff] %v17311_v40  ;;  %9453 = vmatprep.mubr.bf16.mxu1 %v7567_v51  ;;  %9550 = vmatprep.mubr.bf16.mxu0 %v7832_v4  ;;  %v17326_v15 = vadd.f32 %v13127_v21, %v13015_v27  ;;  %v17336_v4 = vld [vmem:[#allocation2 + $0x260] sm:$0xf8]  ;;  %v13018_v27 = vadd.f32 %v13017_v56, %v13016_v42  ;;  %v13019_v46 = vpop.f32.mrb[218].mxu0  ;;  %v17345_v31 = vld [vmem:[#allocation2 + $0x170] sm:$0xe0] }
 0x2eb   : > { %v7688_v23 = vsel %vm7682_vm6, %v20164_v52, %v20163_v55  ;;  %v13020_v42 = vpop.f32.mrb[219].mxu0  ;;  %v20165_v56 = vrot.slane %v17157_v8, 3  ;;  %v20167_v52 = vrot.slane %v17194_v53, 3  ;;  %v17364_v40 = vld [vmem:[#allocation2 + $0x290] sm:$0xf]  ;;  %v20170_v8 = vrot.slane %v17168_v24, 4 }
 0x2ec   : > { %20162 = vst [vmem:[#allocation72_spill] sm:$0xff] %v17326_v15  ;;  %v13128_v51 = vpop.f32.mrb[216].mxu1  ;;  %13727 = vmatpush3.bf16.msra.mxu0 %v14635_v10  ;;  %v20168_v10 = vrot.slane %v17187_v33, 3  ;;  %v17362_v15 = vld [vmem:[#allocation2 + $0x288] sm:$0xf0] }
 0x2ed   : > { %v13129_v21 = vpop.f32.mrb[217].mxu1  ;;  %v7423_v20 = vsel %vm7393_vm5, %v20166_v35, %v20165_v56  ;;  %13728 = vmatprep.subr.bf16.mxu0 %v14637_v32  ;;  %v7570_v25 = vsel %vm1598_vm0, %v20170_v8, %v20169_v59  ;;  %v17372_v53 = vld [vmem:[#allocation2 + $0x3c0] sm:$0xf8]  ;;  %v17374_v33 = vld [vmem:[#allocation2 + $0x3c8] sm:$0x7]  ;;  %v20174_v59 = vrot.slane %v17204_v18, 5 }
 0x2ee   : > { %v13130_v29 = vadd.f32 %v13129_v21, %v13128_v51  ;;  %v13131_v44 = vpop.f32.mrb[218].mxu1  ;;  %v7835_v55 = vsel %vm7393_vm5, %v20168_v10, %v20167_v52  ;;  %v13021_v51 = vadd.f32 %v13020_v42, %v13019_v46  ;;  %v17379_v42 = vld [vmem:[#allocation2 + $0x280] sm:$0xf8]  ;;  %v13022_v50 = vpop.f32.mrb[220].mxu0  ;;  %v17397_v52 = vld [vmem:[#allocation2 + $0x288] sm:$0x7] }
 0x2ef   : > { %v13132_v21 = vpop.f32.mrb[219].mxu1  ;;  %9551 = vmatmul.mubr.bf16.gmra.mrb[68].mxu0 %v7688_v23  ;;  %v17402_v10 = vld [vmem:[#allocation2 + $0x198] sm:$0x1f]  ;;  %v17412_v24 = vld [vmem:[#allocation2 + $0x2a8] sm:$0xf0] }
 0x2f0   : > { %v13133_v35 = vadd.f32 %v13132_v21, %v13131_v44  ;;  %9558 = vmatprep.mubr.bf16.mxu0 %v7835_v55  ;;  %v14649_v44 = vld [vmem:[%s19994_s2 + $0x618] sm:$0xff]   ;;  %v17387_v23 = vadd.f32 %v13130_v29, %v13018_v27  ;;  %13729 = vmatpush3.bf16.msra.mxu0 %v14639_v37  ;;  %v14656_v55 = vld [vmem:[%s19994_s2 + $0x660] sm:$0xff]   ;;  %v17400_v27 = vld [vmem:[#allocation2 + $0x190] sm:$0xe0] }
 0x2f1   : > { %9454 = vmatmul.mubr.bf16.gmra.mrb[68].mxu1 %v7423_v20  ;;  %13730 = vmatprep.subr.bf16.mxu0 %v14647_v60  ;;  %v14657_v21 = vld [vmem:[%s19994_s2 + $0x620] sm:$0xff]   ;;  %v17414_v60 = vld [vmem:[#allocation2 + $0x2b0] sm:$0xf] }
 0x2f2   : > { %20171 = vst [vmem:[#allocation73_spill] sm:$0xff] %v17387_v23  ;;  %9461 = vmatprep.mubr.bf16.mxu1 %v7570_v25  ;;  %v17395_v8 = vadd.f32 %v13133_v35, %v13021_v51  ;;  %v13023_v25 = vpop.f32.mrb[221].mxu0  ;;  %v20173_v35 = vrot.slane %v17211_v28, 5  ;;  %v20175_v23 = vrot.slane %v17202_v39, 3  ;;  %v20178_v28 = vrot.slane %v17232_v30, 3  ;;  %v14658_v30 = vld [vmem:[%s19994_s2 + $0x668] sm:$0xff]  }
 0x2f3   : > { %v13024_v20 = vadd.f32 %v13023_v25, %v13022_v50  ;;  %v13025_v51 = vpop.f32.mrb[222].mxu0  ;;  %v20177_v25 = vrot.slane %v17234_v22, 3  ;;  %v20180_v39 = vrot.slane %v17218_v58, 4  ;;  %v17437_v22 = vld [vmem:[#allocation2 + $0x2a8] sm:$0x7] }
 0x2f4   : > { %20172 = vst [vmem:[#allocation74_spill] sm:$0xff] %v17395_v8  ;;  %v13134_v37 = vpop.f32.mrb[220].mxu1  ;;  %v7691_v29 = vsel %vm7682_vm6, %v20174_v59, %v20173_v35  ;;  %v13026_v8 = vpop.f32.mrb[223].mxu0  ;;  %v7426_v50 = vsel %vm7393_vm5, %v20176_v12, %v20175_v23  ;;  %13731 = vmatpush3.bf16.msra.mxu0 %v14649_v44  ;;  %v17426_v59 = vld [vmem:[#allocation2 + $0x3e0] sm:$0xf8] }
 0x2f5   : > { %v13135_v46 = vpop.f32.mrb[221].mxu1  ;;  %v7838_v18 = vsel %vm7393_vm5, %v20178_v28, %v20177_v25  ;;  %v17428_v35 = vld [vmem:[#allocation2 + $0x3e8] sm:$0x7]  ;;  %v7573_v57 = vsel %vm1598_vm0, %v20180_v39, %v20179_v54  ;;  %v17435_v12 = vld [vmem:[#allocation2 + $0x2a0] sm:$0xf8]  ;;  %13732 = vmatprep.subr.bf16.mxu0 %v14656_v55  ;;  %v20185_v55 = vrot.slane %v17246_v9, 5 }
 0x2f6   : > { %v13136_v56 = vadd.f32 %v13135_v46, %v13134_v37  ;;  %v13137_v32 = vpop.f32.mrb[222].mxu1  ;;  %v13027_v46 = vadd.f32 %v13026_v8, %v13025_v51  ;;  %20181 = vst [vmem:[#allocation75_spill] sm:$0xff] %v17435_v12  ;;  %v17453_v28 = vld [vmem:[#allocation2 + $0x1b0] sm:$0xe0]  ;;  %v17460_v39 = vld [vmem:[#allocation2 + $0x1b8] sm:$0x1f] }
 0x2f7   : > { %v13138_v37 = vpop.f32.mrb[223].mxu1  ;;  %9559 = vmatmul.mubr.bf16.gmra.mrb[72].mxu0 %v7691_v29  ;;  %v17467_v25 = vld [vmem:[#allocation2 + $0x408] sm:$0x7]  ;;  %v17478_v23 = vld [vmem:[#allocation2 + $0x1d0] sm:$0xe0]  ;;  %v20187_v12 = vrot.slane %v17242_v17, 3 }
 0x2f8   : > { %v13139_v44 = vadd.f32 %v13138_v37, %v13137_v32  ;;  %9566 = vmatprep.mubr.bf16.mxu0 %v7838_v18  ;;  %v17448_v51 = vadd.f32 %v13136_v56, %v13024_v20  ;;  %13733 = vmatpush3.bf16.msra.mxu0 %v14657_v21  ;;  %v13156_v37 = vpop.f32.mrb[224].mxu0  ;;  %v17462_v56 = vld [vmem:[#allocation2 + $0x400] sm:$0xf8]  ;;  %v14660_v20 = vld [vmem:[%s19994_s2 + $0x670] sm:$0xff]   ;;  %v20190_v17 = vrot.slane %v17268_v19, 4  ;;  %v20195_v19 = vrot.slane %v17287_v43, 5 }
 0x2f9   : > { %9462 = vmatmul.mubr.bf16.gmra.mrb[72].mxu1 %v7426_v50  ;;  %v14659_v50 = vld [vmem:[%s19994_s2 + $0x628] sm:$0xff]   ;;  %13734 = vmatprep.subr.bf16.mxu0 %v14658_v30  ;;  %v17469_v21 = vld [vmem:[#allocation2 + $0x310] sm:$0xe0]  ;;  %v17476_v30 = vld [vmem:[#allocation2 + $0x318] sm:$0x1f]  ;;  %v20199_v43 = vrot.slane %v17329_v5, 3 }
 0x2fa   : > { %20182 = vst [vmem:[#allocation76_spill] sm:$0xff] %v17448_v51  ;;  %9469 = vmatprep.mubr.bf16.mxu1 %v7573_v57  ;;  %v17458_v18 = vadd.f32 %v13139_v44, %v13027_v46  ;;  %v13157_v57 = vpop.f32.mrb[225].mxu0  ;;  %v20184_v44 = vrot.slane %v17248_v34, 5  ;;  %v20186_v51 = vrot.slane %v17244_v6, 3  ;;  %v20189_v34 = vrot.slane %v17271_v2, 3 }
 0x2fb   : > { %v13158_v54 = vadd.f32 %v13157_v57, %v13156_v37  ;;  %v13159_v58 = vpop.f32.mrb[226].mxu0  ;;  %v20188_v57 = vrot.slane %v17273_v7, 3  ;;  %v17501_v2 = vld [vmem:[#allocation2 + $0x308] sm:$0xf0]  ;;  %v17568_v5 = vld [vmem:[#allocation2 + $0x350] sm:$0xe0] }
 0x2fc   : > { %20183 = vst [vmem:[#allocation77_spill] sm:$0xff] %v17458_v18  ;;  %v13268_v29 = vpop.f32.mrb[224].mxu1  ;;  %v7694_v32 = vsel %vm7682_vm6, %v20185_v55, %v20184_v44  ;;  %v13160_v8 = vpop.f32.mrb[227].mxu0  ;;  %v7429_v37 = vsel %vm7393_vm5, %v20187_v12, %v20186_v51  ;;  %v17491_v44 = vld [vmem:[#allocation2 + $0x1d8] sm:$0x1f]  ;;  %13735 = vmatpush3.bf16.msra.mxu0 %v14659_v50  ;;  %v20191_v12 = vrot.slane %v17250_v0, 4 }
 0x2fd   : > { %v13269_v46 = vpop.f32.mrb[225].mxu1  ;;  %v7841_v9 = vsel %vm7393_vm5, %v20189_v34, %v20188_v57  ;;  %v13161_v6 = vadd.f32 %v13160_v8, %v13159_v58  ;;  %v17503_v51 = vld [vmem:[#allocation2 + $0x310] sm:$0xf]  ;;  %13736 = vmatprep.subr.bf16.mxu0 %v14660_v20  ;;  %v14662_v50 = vld [vmem:[%s19994_s2 + $0x678] sm:$0xff]   ;;  %v6736_v57 = vadd.f32 %v13158_v54, %v16688_v3  ;;  %v17512_v58 = vld [vmem:[#allocation2 + $0x420] sm:$0xf8] }
 0x2fe   : > { %v13270_v14 = vadd.f32 %v13269_v46, %v13268_v29  ;;  %v13271_v18 = vpop.f32.mrb[226].mxu1  ;;  %v14661_v29 = vld [vmem:[%s19994_s2 + $0x630] sm:$0xff]   ;;  %v7576_v7 = vsel %vm1598_vm0, %v20191_v12, %v20190_v17  ;;  %v17526_v20 = vld [vmem:[#allocation2 + $0x428] sm:$0x7]  ;;  %v20194_v17 = vrot.slane %v17294_v49, 5  ;;  %v20196_v8 = vrot.slane %v17285_v11, 3 }
 0x2ff   : > { %v13272_v46 = vpop.f32.mrb[227].mxu1  ;;  %9567 = vmatmul.mubr.bf16.gmra.mrb[76].mxu0 %v7694_v32  ;;  %v6739_v3 = vadd.f32 %v13161_v6, %v16690_v61  ;;  %v17529_v61 = vld [vmem:[#allocation2 + $0x330] sm:$0xe0]  ;;  %v17542_v0 = vld [vmem:[#allocation2 + $0x1f8] sm:$0x1f]  ;;  %v20198_v49 = vrot.slane %v17331_v62, 3 }
 0x300   : > { %v13273_v34 = vadd.f32 %v13272_v46, %v13271_v18  ;;  %9574 = vmatprep.mubr.bf16.mxu0 %v7841_v9  ;;  %v17516_v12 = vadd.f32 %v13270_v14, %v6736_v57  ;;  %13737 = vmatpush3.bf16.msra.mxu0 %v14661_v29  ;;  %v13162_v9 = vpop.f32.mrb[228].mxu0  ;;  %v17533_v18 = vld [vmem:[#allocation2 + $0x338] sm:$0x1f]  ;;  %v17535_v46 = vld [vmem:[#allocation2 + $0x1f0] sm:$0xe0]  ;;  %v7697_v14 = vsel %vm7682_vm6, %v20195_v19, %v20194_v17  ;;  %v20201_v11 = vrot.slane %v17296_v41, 4 }
 0x301   : > { %9470 = vmatmul.mubr.bf16.gmra.mrb[76].mxu1 %v7429_v37  ;;  %v14663_v37 = vld [vmem:[%s19994_s2 + $0x638] sm:$0xff]   ;;  %13738 = vmatprep.subr.bf16.mxu0 %v14662_v50  ;;  %v17544_v50 = vld [vmem:[#allocation2 + $0x328] sm:$0xf0]  ;;  %v7844_v19 = vsel %vm7393_vm5, %v20199_v43, %v20198_v49  ;;  %v17556_v17 = vld [vmem:[#allocation2 + $0x330] sm:$0xf]  ;;  %20202 = vst [vmem:[#allocation80_spill] sm:$0xff] %v17568_v5 }
 0x302   : > { %20192 = vst [vmem:[#allocation78_spill] sm:$0xff] %v17516_v12  ;;  %9477 = vmatprep.mubr.bf16.mxu1 %v7576_v7  ;;  %v17531_v6 = vadd.f32 %v13273_v34, %v6739_v3  ;;  %v13163_v7 = vpop.f32.mrb[229].mxu0  ;;  %v17566_v62 = vld [vmem:[#allocation2 + $0x448] sm:$0x7]  ;;  %v20206_v41 = vrot.slane %v17347_v47, 5  ;;  %v20211_v47 = vrot.slane %v17372_v53, 3 }
 0x303   : > { %v13164_v29 = vadd.f32 %v13163_v7, %v13162_v9  ;;  %v13165_v54 = vpop.f32.mrb[230].mxu0  ;;  %v20197_v9 = vrot.slane %v17275_v45, 3 }
 0x304   : > { %20193 = vst [vmem:[#allocation79_spill] sm:$0xff] %v17531_v6  ;;  %v13274_v57 = vpop.f32.mrb[228].mxu1  ;;  %v13166_v34 = vpop.f32.mrb[231].mxu0  ;;  %v17558_v6 = vld [vmem:[#allocation2 + $0x440] sm:$0xf8]  ;;  %13739 = vmatpush3.bf16.msra.mxu0 %v14663_v37 }
 0x305   : > { %v13275_v32 = vpop.f32.mrb[229].mxu1  ;;  %v7432_v7 = vsel %vm7393_vm5, %v20197_v9, %v20196_v8  ;;  %v13167_v12 = vadd.f32 %v13166_v34, %v13165_v54  ;;  %v14721_v9 = vld [vmem:[%s15128_s28 + $0x40] sm:$0xff]   ;;  %v6744_v49 = vadd.f32 %v13164_v29, %v16699_v48  ;;  %v17575_v37 = vld [vmem:[#allocation2 + $0x358] sm:$0x1f]  ;;  %v17600_v29 = vld [vmem:[#allocation2 + $0x350] sm:$0xf] }
 0x306   : > { %v13276_v3 = vadd.f32 %v13275_v32, %v13274_v57  ;;  %v13277_v55 = vpop.f32.mrb[230].mxu1  ;;  %v20200_v57 = vrot.slane %v17309_v26, 4  ;;  %13860 = vmatprep.subr.bf16.mxu0 %v14721_v9  ;;  %20203 = vst [vmem:[#allocation81_spill] sm:$0xff] %v17575_v37  ;;  %v17592_v9 = vld [vmem:[#allocation2 + $0x210] sm:$0xe0] }
 0x307   : > { %v13278_v32 = vpop.f32.mrb[231].mxu1  ;;  %9575 = vmatmul.mubr.bf16.gmra.mrb[80].mxu0 %v7697_v14  ;;  %v6747_v48 = vadd.f32 %v13167_v12, %v16701_v16  ;;  %v17594_v16 = vld [vmem:[#allocation2 + $0x218] sm:$0x1f]  ;;  %v17598_v14 = vld [vmem:[#allocation2 + $0x348] sm:$0xf0] }
 0x308   : > { %v7579_v45 = vsel %vm1598_vm0, %v20201_v11, %v20200_v57  ;;  %v13279_v43 = vadd.f32 %v13278_v32, %v13277_v55  ;;  %9582 = vmatprep.mubr.bf16.mxu0 %v7844_v19  ;;  %v17579_v11 = vadd.f32 %v13276_v3, %v6744_v49  ;;  %v13168_v19 = vpop.f32.mrb[232].mxu0  ;;  %v20207_v3 = vrot.slane %v17345_v31, 5  ;;  %v17608_v54 = vld [vmem:[#allocation2 + $0x460] sm:$0xf8] }
 0x309   : > { %9478 = vmatmul.mubr.bf16.gmra.mrb[80].mxu1 %v7432_v7  ;;  %v17589_v7 = vld [vmem:[%s19994_s2 + $0x680] sm:$0xff]  }
 0x30a   : > { %20204 = vst [vmem:[#allocation82_spill] sm:$0xff] %v17579_v11  ;;  %9485 = vmatprep.mubr.bf16.mxu1 %v7579_v45  ;;  %v17596_v12 = vadd.f32 %v13279_v43, %v6747_v48  ;;  %v13169_v45 = vpop.f32.mrb[233].mxu0  ;;  %14268 = vmatprep.subr.bf16.mxu1 %v17589_v7  ;;  %v7700_v34 = vsel %vm7682_vm6, %v20207_v3, %v20206_v41  ;;  %v17610_v43 = vld [vmem:[#allocation2 + $0x468] sm:$0x7]  ;;  %v20209_v11 = vrot.slane %v17336_v4, 3 }
 0x30b   : > { %v13170_v32 = vadd.f32 %v13169_v45, %v13168_v19  ;;  %v13171_v57 = vpop.f32.mrb[234].mxu0  ;;  %v20210_v45 = vrot.slane %v17374_v33, 3  ;;  %v17622_v41 = vld [vmem:[#allocation2 + $0x370] sm:$0xe0]  ;;  %v17624_v3 = vld [vmem:[#allocation2 + $0x378] sm:$0x1f] }
 0x30c   : > { %20205 = vst [vmem:[#allocation83_spill] sm:$0xff] %v17596_v12  ;;  %v13280_v49 = vpop.f32.mrb[232].mxu1  ;;  %v13172_v48 = vpop.f32.mrb[235].mxu0  ;;  %v20208_v12 = vrot.slane %v17338_v13, 3  ;;  %v20213_v13 = vrot.slane %v17362_v15, 4 }
 0x30d   : > { %v13281_v55 = vpop.f32.mrb[233].mxu1  ;;  %v7847_v31 = vsel %vm7393_vm5, %v20211_v47, %v20210_v45  ;;  %v13173_v5 = vadd.f32 %v13172_v48, %v13171_v57  ;;  %v17634_v33 = vld [vmem:[#allocation2 + $0x238] sm:$0x1f]  ;;  %v6752_v53 = vadd.f32 %v13170_v32, %v16707_v63  ;;  %v17640_v48 = vld [vmem:[#allocation2 + $0x368] sm:$0xf0]  ;;  %v20218_v57 = vrot.slane %v17402_v10, 5 }
 0x30e   : > { %v13282_v26 = vadd.f32 %v13281_v55, %v13280_v49  ;;  %v13283_v8 = vpop.f32.mrb[234].mxu1  ;;  %v7435_v19 = vsel %vm7393_vm5, %v20209_v11, %v20208_v12  ;;  %v20212_v55 = vrot.slane %v17364_v40, 4  ;;  %v17632_v12 = vld [vmem:[#allocation2 + $0x230] sm:$0xe0]  ;;  %20215 = vst [vmem:[#allocation85_spill] sm:$0xff] %v17640_v48 }
 0x30f   : > { %v13284_v37 = vpop.f32.mrb[235].mxu1  ;;  %20214 = vst [vmem:[#allocation84_spill] sm:$0xff] %v17632_v12  ;;  %9583 = vmatmul.mubr.bf16.gmra.mrb[84].mxu0 %v7700_v34  ;;  %v6755_v63 = vadd.f32 %v13173_v5, %v16715_v36  ;;  %v17654_v15 = vld [vmem:[#allocation2 + $0x480] sm:$0xf8]  ;;  %v17664_v34 = vld [vmem:[#allocation2 + $0x250] sm:$0xe0] }
 0x310   : > { %v7582_v4 = vsel %vm1598_vm0, %v20213_v13, %v20212_v55  ;;  %v13285_v49 = vadd.f32 %v13284_v37, %v13283_v8  ;;  %9590 = vmatprep.mubr.bf16.mxu0 %v7847_v31  ;;  %v17644_v55 = vadd.f32 %v13282_v26, %v6752_v53  ;;  %v17651_v13 = vld [vmem:[#allocation2 + $0x370] sm:$0xf]  ;;  %v17656_v26 = vld [vmem:[#allocation2 + $0x488] sm:$0x7]  ;;  %v17658_v53 = vld [vmem:[#allocation2 + $0x390] sm:$0xe0] }
 0x311   : > { %9486 = vmatmul.mubr.bf16.gmra.mrb[84].mxu1 %v7435_v19  ;;  %v13174_v19 = vpop.f32.mrb[236].mxu0  ;;  %v17662_v8 = vld [vmem:[#allocation2 + $0x398] sm:$0x1f]  ;;  %v20219_v31 = vrot.slane %v17400_v27, 5 }
 0x312   : > { %20216 = vst [vmem:[#allocation86_spill] sm:$0xff] %v17644_v55  ;;  %9493 = vmatprep.mubr.bf16.mxu1 %v7582_v4  ;;  %v17660_v36 = vadd.f32 %v13285_v49, %v6755_v63  ;;  %v13175_v5 = vpop.f32.mrb[237].mxu0  ;;  %v17671_v11 = vld [vmem:[#allocation2 + $0x258] sm:$0x1f]  ;;  %v20221_v55 = vrot.slane %v17379_v42, 3 }
 0x313   : > { %v13176_v32 = vadd.f32 %v13175_v5, %v13174_v19  ;;  %v13177_v37 = vpop.f32.mrb[238].mxu0  ;;  %v7703_v40 = vsel %vm7682_vm6, %v20219_v31, %v20218_v57  ;;  %v20222_v19 = vrot.slane %v17428_v35, 3  ;;  %v20223_v5 = vrot.slane %v17426_v59, 3 }
 0x314   : > { %20217 = vst [vmem:[#allocation87_spill] sm:$0xff] %v17660_v36  ;;  %v13286_v4 = vpop.f32.mrb[236].mxu1  ;;  %v13178_v45 = vpop.f32.mrb[239].mxu0  ;;  %v20220_v36 = vrot.slane %v17397_v52, 3  ;;  %v20224_v57 = vrot.slane %v17414_v60, 4  ;;  %v20225_v31 = vrot.slane %v17412_v24, 4 }
 0x315   : > { %v13287_v47 = vpop.f32.mrb[237].mxu1  ;;  %v7850_v10 = vsel %vm7393_vm5, %v20223_v5, %v20222_v19  ;;  %v13179_v27 = vadd.f32 %v13178_v45, %v13177_v37  ;;  %v6760_v42 = vadd.f32 %v13176_v32, %v16728_v38  ;;  %v17695_v37 = vld [vmem:[#allocation2 + $0x390] sm:$0xf]  ;;  %v17704_v32 = vld [vmem:[#allocation2 + $0x4a0] sm:$0xf8]  ;;  %v20228_v60 = vrot.slane %v17460_v39, 5 }
 0x316   : > { %v13288_v49 = vadd.f32 %v13287_v47, %v13286_v4  ;;  %v13289_v63 = vpop.f32.mrb[238].mxu1  ;;  %v7438_v48 = vsel %vm7393_vm5, %v20221_v55, %v20220_v36  ;;  %v7585_v47 = vsel %vm1598_vm0, %v20225_v31, %v20224_v57  ;;  %v17689_v4 = vld [vmem:[#allocation2 + $0x388] sm:$0xf0]  ;;  %v13180_v19 = vpop.f32.mrb[240].mxu0  ;;  %v17709_v5 = vld [vmem:[#allocation2 + $0x3b0] sm:$0xe0] }
 0x317   : > { %v13290_v12 = vpop.f32.mrb[239].mxu1  ;;  %9591 = vmatmul.mubr.bf16.gmra.mrb[88].mxu0 %v7703_v40  ;;  %v6763_v38 = vadd.f32 %v13179_v27, %v16736_v1  ;;  %v13181_v1 = vpop.f32.mrb[241].mxu0  ;;  %v17717_v31 = vld [vmem:[#allocation2 + $0x278] sm:$0x1f]  ;;  %v20230_v35 = vrot.slane %v17437_v22, 3  ;;  %v20235_v39 = vrot.slane %v17476_v30, 5 }
 0x318   : > { %v13291_v55 = vadd.f32 %v13290_v12, %v13289_v63  ;;  %9598 = vmatprep.mubr.bf16.mxu0 %v7850_v10  ;;  %v17699_v36 = vadd.f32 %v13288_v49, %v6760_v42  ;;  %v17706_v63 = vld [vmem:[#allocation2 + $0x4a8] sm:$0x7]  ;;  %v17711_v10 = vld [vmem:[#allocation2 + $0x3b8] sm:$0x1f]  ;;  %v17713_v49 = vld [vmem:[#allocation2 + $0x270] sm:$0xe0] }
 0x319   : > { %9494 = vmatmul.mubr.bf16.gmra.mrb[88].mxu1 %v7438_v48  ;;  %v13183_v42 = vpop.f32.mrb[242].mxu0  ;;  %v20229_v12 = vrot.slane %v17453_v28, 5  ;;  %v20236_v28 = vrot.slane %v17469_v21, 5  ;;  %v17761_v21 = vld [vmem:[#allocation2 + $0x3d0] sm:$0xe0] }
 0x31a   : > { %20226 = vst [vmem:[#allocation88_spill] sm:$0xff] %v17699_v36  ;;  %9501 = vmatprep.mubr.bf16.mxu1 %v7585_v47  ;;  %v17715_v57 = vadd.f32 %v13291_v55, %v6763_v38  ;;  %v13182_v47 = vadd.f32 %v13181_v1, %v13180_v19  ;;  %v13184_v45 = vpop.f32.mrb[243].mxu0  ;;  %v20231_v55 = vld [vmem:[#allocation75_spill] sm:$0xff]  ;;  %v20234_v19 = vrot.slane %v17462_v56, 3 }
 0x31b   : > { %v7706_v48 = vsel %vm7682_vm6, %v20229_v12, %v20228_v60  ;;  %v20232_v38 = vrot.slane %v20231_v55, 3  ;;  %v8117_v60 = vsel %vm7682_vm6, %v20236_v28, %v20235_v39  ;;  %v17739_v12 = vld [vmem:[#allocation2 + $0x3a8] sm:$0xf0]  ;;  %v20237_v55 = vld [vmem:[#allocation53_spill] sm:$0xff] }
 0x31c   : > { %20227 = vst [vmem:[#allocation89_spill] sm:$0xff] %v17715_v57  ;;  %v13292_v27 = vpop.f32.mrb[240].mxu1  ;;  %v20233_v57 = vrot.slane %v17467_v25, 3  ;;  %v6768_v25 = vadd.f32 %v13182_v47, %v20237_v55  ;;  %v20239_v39 = vld [vmem:[#allocation54_spill] sm:$0xff] }
 0x31d   : > { %v13293_v40 = vpop.f32.mrb[241].mxu1  ;;  %v7441_v52 = vsel %vm7393_vm5, %v20232_v38, %v20230_v35 }
 0x31e   : > { %v13294_v24 = vadd.f32 %v13293_v40, %v13292_v27  ;;  %v13295_v59 = vpop.f32.mrb[242].mxu1  ;;  %v7853_v1 = vsel %vm7393_vm5, %v20234_v19, %v20233_v57  ;;  %v13185_v40 = vadd.f32 %v13184_v45, %v13183_v42  ;;  %v17747_v57 = vld [vmem:[#allocation2 + $0x3b0] sm:$0xf]  ;;  %v13186_v28 = vpop.f32.mrb[244].mxu0  ;;  %v20243_v27 = vrot.slane %v17503_v51, 4 }
 0x31f   : > { %v13296_v22 = vpop.f32.mrb[243].mxu1  ;;  %9599 = vmatmul.mubr.bf16.gmra.mrb[92].mxu0 %v7706_v48  ;;  %v17756_v48 = vld [vmem:[#allocation2 + $0x4c8] sm:$0x7]  ;;  %v20248_v51 = vrot.slane %v17529_v61, 5 }
 0x320   : > { %v13297_v38 = vadd.f32 %v13296_v22, %v13295_v59  ;;  %9606 = vmatprep.mubr.bf16.mxu0 %v7853_v1  ;;  %v17751_v19 = vadd.f32 %v13294_v24, %v6768_v25  ;;  %v6771_v47 = vadd.f32 %v13185_v40, %v20239_v39  ;;  %v17754_v59 = vld [vmem:[#allocation2 + $0x4c0] sm:$0xf8]  ;;  %v20241_v25 = vrot.slane %v17491_v44, 5  ;;  %v17770_v22 = vld [vmem:[#allocation2 + $0x3d8] sm:$0x1f] }
 0x321   : > { %9502 = vmatmul.mubr.bf16.gmra.mrb[92].mxu1 %v7441_v52  ;;  %v13187_v52 = vpop.f32.mrb[245].mxu0  ;;  %v20245_v44 = vrot.slane %v17526_v20, 3  ;;  %v17784_v39 = vld [vmem:[#allocation2 + $0x298] sm:$0x1f]  ;;  %v20249_v20 = vld [vmem:[#allocation55_spill] sm:$0xff] }
 0x322   : > { %20238 = vst [vmem:[#allocation75_spill] sm:$0xff] %v17751_v19  ;;  %9703 = vmatprep.mubr.bf16.mxu1 %v8117_v60  ;;  %v17759_v55 = vadd.f32 %v13297_v38, %v6771_v47  ;;  %v13188_v45 = vadd.f32 %v13187_v52, %v13186_v28  ;;  %v13189_v42 = vpop.f32.mrb[246].mxu0  ;;  %v20242_v60 = vrot.slane %v17478_v23, 5  ;;  %v20244_v28 = vrot.slane %v17501_v2, 4  ;;  %v17803_v61 = vld [vmem:[#allocation2 + $0x4e8] sm:$0x7] }
 0x323   : > { %v13190_v38 = vpop.f32.mrb[247].mxu0  ;;  %v20246_v23 = vrot.slane %v17512_v58, 3  ;;  %v20257_v19 = vrot.slane %v17544_v50, 4 }
 0x324   : > { %20240 = vst [vmem:[#allocation53_spill] sm:$0xff] %v17759_v55  ;;  %v13298_v1 = vpop.f32.mrb[244].mxu1  ;;  %v7709_v40 = vsel %vm7682_vm6, %v20242_v60, %v20241_v25  ;;  %v7973_v52 = vsel %vm1598_vm0, %v20244_v28, %v20243_v27  ;;  %v17782_v60 = vld [vmem:[#allocation2 + $0x290] sm:$0xe0]  ;;  %v13191_v56 = vadd.f32 %v13190_v38, %v13189_v42  ;;  %v17793_v27 = vld [vmem:[#allocation2 + $0x3d0] sm:$0xf]  ;;  %v6776_v58 = vadd.f32 %v13188_v45, %v20249_v20 }
 0x325   : > { %v13299_v24 = vpop.f32.mrb[245].mxu1  ;;  %v7856_v25 = vsel %vm7393_vm5, %v20246_v23, %v20245_v44  ;;  %v14665_v28 = vld [vmem:[%s19994_s2 + $0x688] sm:$0xff]   ;;  %v17801_v38 = vld [vmem:[#allocation2 + $0x4e0] sm:$0xf8]  ;;  %v20254_v42 = vrot.slane %v17542_v0, 5  ;;  %v20259_v0 = vrot.slane %v17558_v6, 3 }
 0x326   : > { %v13300_v47 = vadd.f32 %v13299_v24, %v13298_v1  ;;  %v13301_v30 = vpop.f32.mrb[246].mxu1  ;;  %v20247_v1 = vrot.slane %v17533_v18, 5  ;;  %v17791_v24 = vld [vmem:[#allocation2 + $0x3c8] sm:$0xf0]  ;;  %20250 = vst [vmem:[#allocation54_spill] sm:$0xff] %v17801_v38  ;;  %v20265_v6 = vld [vmem:[#allocation57_spill] sm:$0xff] }
 0x327   : > { %v13302_v35 = vpop.f32.mrb[247].mxu1  ;;  %9607 = vmatmul.mubr.bf16.gmra.mrb[96].mxu0 %v7709_v40  ;;  %v13192_v40 = vpop.f32.mrb[248].mxu0  ;;  %v17831_v23 = vld [vmem:[#allocation2 + $0x2b8] sm:$0x1f] }
 0x328   : > { %v8120_v2 = vsel %vm7682_vm6, %v20248_v51, %v20247_v1  ;;  %v13303_v44 = vadd.f32 %v13302_v35, %v13301_v30  ;;  %9614 = vmatprep.mubr.bf16.mxu0 %v7856_v25  ;;  %v17807_v1 = vadd.f32 %v13300_v47, %v6776_v58  ;;  %v20252_v51 = vld [vmem:[#allocation56_spill] sm:$0xff]  ;;  %v14666_v47 = vld [vmem:[%s19994_s2 + $0x690] sm:$0xff]  }
 0x329   : > { %9704 = vmatmul.mubr.bf16.vlgmr.msra.gmra.mrb[96].mxu1 %v7973_v52  ;;  %v6779_v20 = vadd.f32 %v13191_v56, %v20252_v51  ;;  %v13193_v56 = vpop.f32.mrb[249].mxu0  ;;  %v17820_v58 = vld [vmem:[#allocation2 + $0x3f0] sm:$0xe0]  ;;  %v17822_v51 = vld [vmem:[#allocation2 + $0x3f8] sm:$0x1f]  ;;  %v20255_v52 = vrot.slane %v17535_v46, 5 }
 0x32a   : > { %20251 = vst [vmem:[#allocation55_spill] sm:$0xff] %v17807_v1  ;;  %9711 = vmatprep.mubr.bf16.mxu1 %v8120_v2  ;;  %14269 = vmatpush3.bf16.msra.mxu1 %v17589_v7  ;;  %v13194_v35 = vadd.f32 %v13193_v56, %v13192_v40  ;;  %v13195_v7 = vpop.f32.mrb[250].mxu0  ;;  %v20258_v56 = vrot.slane %v17566_v62, 3  ;;  %v17854_v62 = vld [vmem:[#allocation2 + $0x418] sm:$0x1f] }
 0x32b   : > { %14270 = vmatprep.subr.bf16.mxu1 %v14665_v28  ;;  %v17815_v25 = vadd.f32 %v13303_v44, %v6779_v20  ;;  %v7712_v44 = vsel %vm7682_vm6, %v20255_v52, %v20254_v42  ;;  %v17829_v20 = vld [vmem:[#allocation2 + $0x2b0] sm:$0xe0]  ;;  %v13196_v45 = vpop.f32.mrb[251].mxu0  ;;  %v17843_v42 = vld [vmem:[#allocation2 + $0x3e8] sm:$0xf0] }
 0x32c   : > { %v13304_v2 = vpop.f32.mrb[248].mxu1  ;;  %v7859_v46 = vsel %vm7393_vm5, %v20259_v0, %v20258_v56  ;;  %v17845_v52 = vld [vmem:[#allocation2 + $0x3f0] sm:$0xf]  ;;  %v13197_v1 = vadd.f32 %v13196_v45, %v13195_v7  ;;  %v14667_v56 = vld [vmem:[%s19994_s2 + $0x698] sm:$0xff]   ;;  %v17862_v0 = vld [vmem:[#allocation2 + $0x548] sm:$0xf0] }
 0x32d   : > { %20253 = vst [vmem:[#allocation56_spill] sm:$0xff] %v17815_v25  ;;  %v13305_v30 = vpop.f32.mrb[249].mxu1  ;;  %v20256_v25 = vrot.slane %v17556_v17, 4  ;;  %v20262_v17 = vld [vmem:[#allocation80_spill] sm:$0xff] }
 0x32e   : > { %v13306_v18 = vadd.f32 %v13305_v30, %v13304_v2  ;;  %v13307_v55 = vpop.f32.mrb[250].mxu1  ;;  %14271 = vmatpush3.bf16.msra.mxu1 %v14665_v28  ;;  %v20260_v2 = vld [vmem:[#allocation81_spill] sm:$0xff]  ;;  %v20263_v38 = vrot.slane %v20262_v17, 5  ;;  %20266 = vst [vmem:[#allocation80_spill] sm:$0xff] %v17862_v0  ;;  %v20269_v17 = vld [vmem:[#allocation58_spill] sm:$0xff]  ;;  %v20274_v0 = vrot.slane %v17600_v29, 4 }
 0x32f   : > { %v7976_v40 = vsel %vm1598_vm0, %v20257_v19, %v20256_v25  ;;  %v13308_v30 = vpop.f32.mrb[251].mxu1  ;;  %v20261_v36 = vrot.slane %v20260_v2, 5  ;;  %v17852_v19 = vld [vmem:[#allocation2 + $0x410] sm:$0xe0]  ;;  %14272 = vmatprep.subr.bf16.mxu1 %v14666_v47  ;;  %v6784_v25 = vadd.f32 %v13194_v35, %v20265_v6  ;;  %9615 = vmatmul.mubr.bf16.gmra.mrb[100].mxu0 %v7712_v44  ;;  %v6787_v6 = vadd.f32 %v13197_v1, %v20269_v17  ;;  %v17877_v35 = vld [vmem:[#allocation2 + $0x408] sm:$0xf0] }
 0x330   : > { %20264 = vst [vmem:[#allocation81_spill] sm:$0xff] %v17852_v19  ;;  %v13309_v28 = vadd.f32 %v13308_v30, %v13307_v55  ;;  %9622 = vmatprep.mubr.bf16.mxu0 %v7859_v46  ;;  %v14668_v1 = vld [vmem:[%s19994_s2 + $0x6a0] sm:$0xff]   ;;  %v17884_v17 = vld [vmem:[#allocation2 + $0x410] sm:$0xf]  ;;  %v20272_v55 = vrot.slane %v17592_v9, 5  ;;  %v20280_v29 = vrot.slane %v17622_v41, 5 }
 0x331   : > { %v8123_v50 = vsel %vm7682_vm6, %v20263_v38, %v20261_v36  ;;  %v17864_v36 = vld [vmem:[#allocation2 + $0x550] sm:$0xf]  ;;  %9712 = vmatmul.mubr.bf16.gmra.mrb[100].mxu1 %v7976_v40  ;;  %v17868_v2 = vadd.f32 %v13306_v18, %v6784_v25  ;;  %v13198_v40 = vpop.f32.mrb[252].mxu0  ;;  %v17886_v30 = vld [vmem:[#allocation2 + $0x540] sm:$0xf8]  ;;  %v20271_v38 = vrot.slane %v17594_v16, 5 }
 0x332   : > { %20267 = vst [vmem:[#allocation57_spill] sm:$0xff] %v17864_v36  ;;  %9719 = vmatprep.mubr.bf16.mxu1 %v8123_v50  ;;  %14273 = vmatpush3.bf16.msra.mxu1 %v14666_v47  ;;  %v17879_v18 = vadd.f32 %v13309_v28, %v6787_v6  ;;  %v13199_v50 = vpop.f32.mrb[253].mxu0  ;;  %v17893_v6 = vld [vmem:[#allocation2 + $0x548] sm:$0x7]  ;;  %v17895_v44 = vld [vmem:[#allocation2 + $0x430] sm:$0xe0] }
 0x333   : > { %20268 = vst [vmem:[#allocation90_spill] sm:$0xff] %v17868_v2  ;;  %14274 = vmatprep.subr.bf16.mxu1 %v14667_v56  ;;  %v13200_v47 = vadd.f32 %v13199_v50, %v13198_v40  ;;  %v13201_v45 = vpop.f32.mrb[254].mxu0  ;;  %v7715_v28 = vsel %vm7682_vm6, %v20272_v55, %v20271_v38  ;;  %20273 = vst [vmem:[#allocation91_spill] sm:$0xff] %v17895_v44  ;;  %v20275_v36 = vrot.slane %v17598_v14, 4  ;;  %v20276_v50 = vrot.slane %v17610_v43, 3 }
 0x334   : > { %20270 = vst [vmem:[#allocation58_spill] sm:$0xff] %v17879_v18  ;;  %v13310_v25 = vpop.f32.mrb[252].mxu1  ;;  %v13202_v7 = vpop.f32.mrb[255].mxu0  ;;  %v20277_v16 = vrot.slane %v17608_v54, 3  ;;  %v17907_v38 = vld [vmem:[#allocation2 + $0x438] sm:$0x1f] }
 0x335   : > { %v13311_v46 = vpop.f32.mrb[253].mxu1  ;;  %v7979_v40 = vsel %vm1598_vm0, %v20275_v36, %v20274_v0  ;;  %v17909_v55 = vld [vmem:[#allocation2 + $0x568] sm:$0xf0]  ;;  %v13203_v19 = vadd.f32 %v13202_v7, %v13201_v45  ;;  %v17916_v0 = vld [vmem:[#allocation2 + $0x570] sm:$0xf] }
 0x336   : > { %v13312_v18 = vadd.f32 %v13311_v46, %v13310_v25  ;;  %v13313_v2 = vpop.f32.mrb[254].mxu1  ;;  %v7862_v9 = vsel %vm7393_vm5, %v20277_v16, %v20276_v50  ;;  %20278 = vst [vmem:[#allocation92_spill] sm:$0xff] %v17909_v55  ;;  %14275 = vmatpush3.bf16.msra.mxu1 %v14667_v56  ;;  %v20279_v25 = vrot.slane %v17624_v3, 5  ;;  %20281 = vst [vmem:[#allocation93_spill] sm:$0xff] %v17916_v0  ;;  %v17918_v43 = vld [vmem:[#allocation2 + $0x428] sm:$0xf0] }
 0x337   : > { %v13314_v46 = vpop.f32.mrb[255].mxu1  ;;  %20282 = vst [vmem:[#allocation94_spill] sm:$0xff] %v17918_v43  ;;  %v20283_v54 = vld [vmem:[#allocation59_spill] sm:$0xff]  ;;  %14276 = vmatprep.subr.bf16.mxu1 %v14668_v1  ;;  %v14669_v50 = vld [vmem:[%s19994_s2 + $0x6a8] sm:$0xff]   ;;  %9623 = vmatmul.mubr.bf16.gmra.mrb[104].mxu0 %v7715_v28  ;;  %v17930_v7 = vld [vmem:[%s19998_s6 + $0x1] ss:$0 sm:$0xff] }
 0x338   : > { %v8126_v14 = vsel %vm7682_vm6, %v20280_v29, %v20279_v25  ;;  %v6792_v36 = vadd.f32 %v13200_v47, %v20283_v54  ;;  %v13315_v56 = vadd.f32 %v13314_v46, %v13313_v2  ;;  %9630 = vmatprep.mubr.bf16.mxu0 %v7862_v9  ;;  %v20285_v2 = vld [vmem:[#allocation60_spill] sm:$0xff]  ;;  %v17940_v41 = vld [vmem:[#allocation2 + $0x430] sm:$0xf]  ;;  %v13204_v9 = vpop.f32.mrb[0].mxu0  ;;  %v17943_v47 = vld [vmem:[#allocation2 + $0x560] sm:$0xf8] }
 0x339   : > { %9720 = vmatmul.mubr.bf16.gmra.mrb[104].mxu1 %v7979_v40  ;;  %v6795_v28 = vadd.f32 %v13203_v19, %v20285_v2  ;;  %v14670_v19 = vld [vmem:[%s19994_s2 + $0x6b0] sm:$0xff]   ;;  %v20291_v40 = vld [vmem:[#allocation24_spill] sm:$0xff]  ;;  %v13205_v29 = vpop.f32.mrb[1].mxu0  ;;  %v20293_v54 = vld [vmem:[#allocation25_spill] sm:$0xff]  ;;  %v20300_v0 = vrot.slane %v17651_v13, 4 }
 0x33a   : > { %v17934_v25 = vadd.f32 %v13312_v18, %v6792_v36  ;;  %9727 = vmatprep.mubr.bf16.mxu1 %v8126_v14  ;;  %14277 = vmatpush3.bf16.msra.mxu1 %v14668_v1  ;;  %v20287_v18 = vld [vmem:[#allocation22_spill] sm:$0xff]  ;;  %v20289_v36 = vld [vmem:[#allocation23_spill] sm:$0xff]  ;;  %v17960_v1 = vmul.f32 %v17930_v7, %v20291_v40  ;;  %v17966_v46 = vmul.f32 %v17930_v7, %v20293_v54  ;;  %v20307_v13 = vld [vmem:[#allocation61_spill] sm:$0xff] }
 0x33b   : > { %v17945_v16 = vadd.f32 %v13315_v56, %v6795_v28  ;;  %14278 = vmatprep.subr.bf16.mxu1 %v14669_v50  ;;  %v17952_v14 = vmul.f32 %v17930_v7, %v20287_v18  ;;  %v17956_v2 = vmul.f32 %v17930_v7, %v20289_v36  ;;  %v17962_v28 = vld [vmem:[#allocation2 + $0x568] sm:$0x7]  ;;  %v13206_v3 = vadd.f32 %v13205_v29, %v13204_v9  ;;  %v17977_v43 = vld [vmem:[#allocation2 + $0x450] sm:$0xe0] }
 0x33c   : > { %20284 = vst [vmem:[#allocation59_spill] sm:$0xff] %v17934_v25  ;;  %20292 = vst [vmem:[#allocation24_spill] sm:$0xff] %v17960_v1  ;;  %v13316_v56 = vpop.f32.mrb[0].mxu1  ;;  %v20295_v45 = vld [vmem:[#allocation26_spill] sm:$0xff]  ;;  %v20297_v25 = vrot.slane %v17634_v33, 5  ;;  %v20303_v9 = vrot.slane %v17656_v26, 3 }
 0x33d   : > { %20286 = vst [vmem:[#allocation60_spill] sm:$0xff] %v17945_v16  ;;  %20288 = vst [vmem:[#allocation22_spill] sm:$0xff] %v17952_v14  ;;  %v17970_v18 = vmul.f32 %v17930_v7, %v20295_v45  ;;  %v13207_v16 = vpop.f32.mrb[2].mxu0  ;;  %v13317_v36 = vpop.f32.mrb[1].mxu1  ;;  %v20298_v14 = vld [vmem:[#allocation84_spill] sm:$0xff]  ;;  %v20301_v45 = vld [vmem:[#allocation85_spill] sm:$0xff] }
 0x33e   : > { %20290 = vst [vmem:[#allocation23_spill] sm:$0xff] %v17956_v2  ;;  %20294 = vst [vmem:[#allocation25_spill] sm:$0xff] %v17966_v46  ;;  %v20299_v40 = vrot.slane %v20298_v14, 5  ;;  %v17979_v2 = vld [vmem:[#allocation2 + $0x458] sm:$0x1f]  ;;  %v13208_v55 = vpop.f32.mrb[3].mxu0  ;;  %v13318_v54 = vadd.f32 %v13317_v36, %v13316_v56  ;;  %14279 = vmatpush3.bf16.msra.mxu1 %v14669_v50 }
 0x33f   : > { %20296 = vst [vmem:[#allocation26_spill] sm:$0xff] %v17970_v18  ;;  %v13319_v46 = vpop.f32.mrb[2].mxu1  ;;  %v20302_v18 = vrot.slane %v20301_v45, 4  ;;  %v20304_v33 = vrot.slane %v17654_v15, 3  ;;  %v17996_v56 = vld [vmem:[#allocation2 + $0x588] sm:$0xf0]  ;;  %v6800_v45 = vadd.f32 %v13206_v3, %v20307_v13  ;;  %14280 = vmatprep.subr.bf16.mxu1 %v14670_v19 }
 0x340   : > { %v7718_v1 = vsel %vm7682_vm6, %v20299_v40, %v20297_v25  ;;  %v20305_v25 = vrot.slane %v17662_v8, 5  ;;  %v20306_v40 = vrot.slane %v17658_v53, 5  ;;  %v17998_v36 = vld [vmem:[#allocation2 + $0x590] sm:$0xf]  ;;  %v14671_v8 = vld [vmem:[%s19994_s2 + $0x6b8] sm:$0xff]   ;;  %v20314_v50 = vld [vmem:[#allocation29_spill] sm:$0xff] }
 0x341   : > { %v7982_v29 = vsel %vm1598_vm0, %v20302_v18, %v20300_v0  ;;  %v7865_v14 = vsel %vm7393_vm5, %v20304_v33, %v20303_v9  ;;  %v13209_v0 = vadd.f32 %v13208_v55, %v13207_v16  ;;  %v13320_v18 = vpop.f32.mrb[3].mxu1  ;;  %9631 = vmatmul.mubr.bf16.gmra.mrb[108].mxu0 %v7718_v1  ;;  %v18009_v3 = vld [vmem:[#allocation2 + $0x448] sm:$0xf0]  ;;  %v18014_v13 = vadd.f32 %v13318_v54, %v6800_v45  ;;  %v20328_v26 = vld [vmem:[#allocation35_spill] sm:$0xff] }
 0x342   : > { %v8129_v44 = vsel %vm7682_vm6, %v20306_v40, %v20305_v25  ;;  %v13321_v53 = vadd.f32 %v13320_v18, %v13319_v46  ;;  %v20308_v55 = vld [vmem:[#allocation62_spill] sm:$0xff]  ;;  %9728 = vmatmul.mubr.bf16.gmra.mrb[108].mxu1 %v7982_v29  ;;  %9638 = vmatprep.mubr.bf16.mxu0 %v7865_v14  ;;  %v20310_v46 = vld [vmem:[#allocation27_spill] sm:$0xff]  ;;  %v20312_v18 = vld [vmem:[#allocation28_spill] sm:$0xff]  ;;  %v18026_v15 = vmul.f32 %v17930_v7, %v20314_v50 }
 0x343   : > { %v6803_v16 = vadd.f32 %v13209_v0, %v20308_v55  ;;  %20309 = vst [vmem:[#allocation84_spill] sm:$0xff] %v18014_v13  ;;  %v18018_v1 = vmul.f32 %v17930_v7, %v20310_v46  ;;  %v18022_v33 = vmul.f32 %v17930_v7, %v20312_v18  ;;  %9735 = vmatprep.mubr.bf16.mxu1 %v8129_v44  ;;  %v18028_v29 = vld [vmem:[#allocation2 + $0x450] sm:$0xf]  ;;  %v18030_v14 = vld [vmem:[#allocation2 + $0x580] sm:$0xf8]  ;;  %v20317_v54 = vld [vmem:[#allocation30_spill] sm:$0xff] }
 0x344   : > { %20315 = vst [vmem:[#allocation62_spill] sm:$0xff] %v18026_v15  ;;  %20316 = vst [vmem:[#allocation27_spill] sm:$0xff] %v18030_v14  ;;  %14281 = vmatpush3.bf16.msra.mxu1 %v14670_v19  ;;  %v18034_v45 = vmul.f32 %v17930_v7, %v20317_v54  ;;  %v20318_v0 = vld [vmem:[#allocation31_spill] sm:$0xff]  ;;  %v13210_v46 = vpop.f32.mrb[4].mxu0  ;;  %v18041_v25 = vld [vmem:[#allocation2 + $0x588] sm:$0x7]  ;;  %v18059_v18 = vmul.f32 %v17930_v7, %v20328_v26 }
 0x345   : > { %20311 = vst [vmem:[#allocation85_spill] sm:$0xff] %v18018_v1  ;;  %20313 = vst [vmem:[#allocation61_spill] sm:$0xff] %v18022_v33  ;;  %v18038_v55 = vmul.f32 %v17930_v7, %v20318_v0  ;;  %v18043_v50 = vadd.f32 %v13321_v53, %v6803_v16  ;;  %14282 = vmatprep.subr.bf16.mxu1 %v14671_v8  ;;  %v20322_v44 = vld [vmem:[#allocation32_spill] sm:$0xff]  ;;  %v20324_v19 = vld [vmem:[#allocation33_spill] sm:$0xff]  ;;  %v13211_v13 = vpop.f32.mrb[5].mxu0  ;;  %v13322_v53 = vpop.f32.mrb[4].mxu1 }
 0x346   : > { %20320 = vst [vmem:[#allocation29_spill] sm:$0xff] %v18041_v25  ;;  %v18047_v40 = vmul.f32 %v17930_v7, %v20322_v44  ;;  %v18051_v54 = vmul.f32 %v17930_v7, %v20324_v19  ;;  %v20326_v9 = vld [vmem:[#allocation34_spill] sm:$0xff]  ;;  %v20330_v16 = vld [vmem:[#allocation36_spill] sm:$0xff]  ;;  %v20332_v44 = vld [vmem:[#allocation37_spill] sm:$0xff]  ;;  %v13212_v19 = vadd.f32 %v13211_v13, %v13210_v46  ;;  %v13323_v33 = vpop.f32.mrb[5].mxu1  ;;  %v20335_v15 = vrot.slane %v17664_v34, 5 }
 0x347   : > { %20319 = vst [vmem:[#allocation28_spill] sm:$0xff] %v18038_v55  ;;  %20321 = vst [vmem:[#allocation30_spill] sm:$0xff] %v18043_v50  ;;  %v18055_v0 = vmul.f32 %v17930_v7, %v20326_v9  ;;  %v18063_v50 = vmul.f32 %v17930_v7, %v20330_v16  ;;  %v18067_v55 = vmul.f32 %v17930_v7, %v20332_v44  ;;  %v20334_v9 = vrot.slane %v17671_v11, 5  ;;  %v18074_v1 = vld [vmem:[#allocation2 + $0x470] sm:$0xe0] }
 0x348   : > { %20323 = vst [vmem:[#allocation31_spill] sm:$0xff] %v18047_v40  ;;  %20325 = vst [vmem:[#allocation32_spill] sm:$0xff] %v18051_v54  ;;  %v13213_v54 = vpop.f32.mrb[6].mxu0  ;;  %v13324_v16 = vadd.f32 %v13323_v33, %v13322_v53  ;;  %v20338_v40 = vrot.slane %v17695_v37, 4  ;;  %v20339_v44 = vrot.slane %v17689_v4, 4  ;;  %v20340_v46 = vrot.slane %v17706_v63, 3  ;;  %14283 = vmatpush3.bf16.msra.mxu1 %v14671_v8 }
 0x349   : > { %20327 = vst [vmem:[#allocation33_spill] sm:$0xff] %v18055_v0  ;;  %20329 = vst [vmem:[#allocation34_spill] sm:$0xff] %v18059_v18  ;;  %v7721_v26 = vsel %vm7682_vm6, %v20335_v15, %v20334_v9  ;;  %v18076_v0 = vld [vmem:[#allocation2 + $0x478] sm:$0x1f]  ;;  %v13214_v18 = vpop.f32.mrb[7].mxu0  ;;  %v20341_v11 = vrot.slane %v17704_v32, 3 }
 0x34a   : > { %20331 = vst [vmem:[#allocation35_spill] sm:$0xff] %v18063_v50  ;;  %20333 = vst [vmem:[#allocation36_spill] sm:$0xff] %v18067_v55  ;;  %v13325_v50 = vpop.f32.mrb[6].mxu1  ;;  %v7985_v13 = vsel %vm1598_vm0, %v20339_v44, %v20338_v40  ;;  %v20342_v15 = vrot.slane %v17711_v10, 5  ;;  %v20343_v9 = vrot.slane %v17709_v5, 5  ;;  %v20346_v4 = vld [vmem:[#allocation63_spill] sm:$0xff]  ;;  %v13215_v40 = vadd.f32 %v13214_v18, %v13213_v54  ;;  %9639 = vmatmul.mubr.bf16.gmra.mrb[112].mxu0 %v7721_v26 }
 0x34b   : > { %20336 = vst [vmem:[#allocation37_spill] sm:$0xff] %v18074_v1  ;;  %20337 = vst [vmem:[#allocation95_spill] sm:$0xff] %v18076_v0  ;;  %v7868_v34 = vsel %vm7393_vm5, %v20341_v11, %v20340_v46  ;;  %v18093_v33 = vld [vmem:[#allocation2 + $0x5a8] sm:$0xf0]  ;;  %v18095_v53 = vld [vmem:[#allocation2 + $0x5b0] sm:$0xf]  ;;  %v6808_v37 = vadd.f32 %v13212_v19, %v20346_v4  ;;  %9736 = vmatmul.mubr.bf16.gmra.mrb[112].mxu1 %v7985_v13 }
 0x34c   : > { %v8132_v55 = vsel %vm7682_vm6, %v20343_v9, %v20342_v15  ;;  %20344 = vst [vmem:[#allocation96_spill] sm:$0xff] %v18093_v33  ;;  %20345 = vst [vmem:[#allocation97_spill] sm:$0xff] %v18095_v53  ;;  %v13326_v44 = vpop.f32.mrb[7].mxu1  ;;  %v18103_v15 = vld [vmem:[#allocation2 + $0x468] sm:$0xf0]  ;;  %v20348_v9 = vld [vmem:[#allocation64_spill] sm:$0xff]  ;;  %9646 = vmatprep.mubr.bf16.mxu0 %v7868_v34 }
 0x34d   : > { %v13327_v46 = vadd.f32 %v13326_v44, %v13325_v50  ;;  %20347 = vst [vmem:[#allocation63_spill] sm:$0xff] %v18103_v15  ;;  %v6811_v8 = vadd.f32 %v13215_v40, %v20348_v9  ;;  %v18108_v19 = vadd.f32 %v13324_v16, %v6808_v37  ;;  %v20350_v50 = vld [vmem:[#allocation38_spill] sm:$0xff]  ;;  %v20351_v4 = vld [vmem:[#allocation39_spill] sm:$0xff]  ;;  %v20352_v5 = vld [vmem:[#allocation40_spill] sm:$0xff]  ;;  %9743 = vmatprep.mubr.bf16.mxu1 %v8132_v55  ;;  %v13216_v18 = vpop.f32.mrb[8].mxu0  ;;  %v13328_v15 = vpop.f32.mrb[8].mxu1 }
 0x34e   : > { %v18112_v26 = vmul.f32 %v17930_v7, %v20350_v50  ;;  %v18116_v44 = vmul.f32 %v17930_v7, %v20351_v4  ;;  %v18120_v11 = vmul.f32 %v17930_v7, %v20352_v5  ;;  %v20353_v13 = vld [vmem:[#allocation41_spill] sm:$0xff]  ;;  %v18126_v40 = vld [vmem:[#allocation2 + $0x470] sm:$0xf]  ;;  %v20354_v37 = vld [vmem:[#allocation42_spill] sm:$0xff]  ;;  %v13217_v5 = vpop.f32.mrb[9].mxu0  ;;  %v13329_v33 = vpop.f32.mrb[9].mxu1 }
 0x34f   : > { %20349 = vst [vmem:[#allocation64_spill] sm:$0xff] %v18108_v19  ;;  %v18124_v34 = vmul.f32 %v17930_v7, %v20353_v13  ;;  %v18128_v16 = vld [vmem:[#allocation2 + $0x5a0] sm:$0xf8]  ;;  %v18132_v9 = vmul.f32 %v17930_v7, %v20354_v37  ;;  %v20355_v50 = vld [vmem:[#allocation43_spill] sm:$0xff]  ;;  %v18139_v54 = vld [vmem:[#allocation2 + $0x5a8] sm:$0x7]  ;;  %v18141_v13 = vadd.f32 %v13327_v46, %v6811_v8 }
 0x350   : > { %v18136_v4 = vmul.f32 %v17930_v7, %v20355_v50  ;;  %v20357_v55 = vld [vmem:[#allocation44_spill] sm:$0xff]  ;;  %v20359_v10 = vld [vmem:[#allocation45_spill] sm:$0xff]  ;;  %v20360_v37 = vld [vmem:[#allocation46_spill] sm:$0xff]  ;;  %v13219_v0 = vpop.f32.mrb[10].mxu0  ;;  %v20369_v53 = vrot.slane %v17713_v49, 5 }
 0x351   : > { %20356 = vst [vmem:[#allocation38_spill] sm:$0xff] %v18141_v13  ;;  %v18145_v32 = vmul.f32 %v17930_v7, %v20357_v55  ;;  %v18149_v63 = vmul.f32 %v17930_v7, %v20359_v10  ;;  %v18153_v19 = vmul.f32 %v17930_v7, %v20360_v37  ;;  %v20362_v50 = vld [vmem:[#allocation47_spill] sm:$0xff]  ;;  %v20364_v46 = vld [vmem:[#allocation48_spill] sm:$0xff]  ;;  %v20366_v55 = vld [vmem:[#allocation49_spill] sm:$0xff]  ;;  %v13218_v10 = vadd.f32 %v13217_v5, %v13216_v18 }
 0x352   : > { %v18157_v1 = vmul.f32 %v17930_v7, %v20362_v50  ;;  %v18161_v8 = vmul.f32 %v17930_v7, %v20364_v46  ;;  %v18165_v13 = vmul.f32 %v17930_v7, %v20366_v55  ;;  %v20368_v37 = vrot.slane %v17717_v31, 5  ;;  %v18172_v14 = vld [vmem:[#allocation2 + $0x490] sm:$0xe0]  ;;  %v18174_v25 = vld [vmem:[#allocation2 + $0x498] sm:$0x1f] }
 0x353   : > { %20358 = vst [vmem:[#allocation39_spill] sm:$0xff] %v18145_v32  ;;  %20361 = vst [vmem:[#allocation40_spill] sm:$0xff] %v18153_v19  ;;  %v13220_v19 = vpop.f32.mrb[11].mxu0  ;;  %v13330_v46 = vadd.f32 %v13329_v33, %v13328_v15  ;;  %v20373_v55 = vrot.slane %v17739_v12, 4  ;;  %v20374_v5 = vrot.slane %v17756_v48, 3  ;;  %v20375_v31 = vrot.slane %v17754_v59, 3 }
 0x354   : > { %20363 = vst [vmem:[#allocation41_spill] sm:$0xff] %v18157_v1  ;;  %20365 = vst [vmem:[#allocation42_spill] sm:$0xff] %v18161_v8  ;;  %v7724_v50 = vsel %vm7682_vm6, %v20369_v53, %v20368_v37  ;;  %v13331_v8 = vpop.f32.mrb[10].mxu1  ;;  %v20372_v1 = vrot.slane %v17747_v57, 4  ;;  %v20376_v53 = vrot.slane %v17770_v22, 5  ;;  %v20377_v37 = vrot.slane %v17761_v21, 5 }
 0x355   : > { %20367 = vst [vmem:[#allocation43_spill] sm:$0xff] %v18165_v13  ;;  %20370 = vst [vmem:[#allocation44_spill] sm:$0xff] %v18172_v14  ;;  %v7871_v49 = vsel %vm7393_vm5, %v20375_v31, %v20374_v5  ;;  %v18191_v33 = vld [vmem:[#allocation2 + $0x5c8] sm:$0xf0]  ;;  %v18193_v15 = vld [vmem:[#allocation2 + $0x5d0] sm:$0xf]  ;;  %v13221_v32 = vadd.f32 %v13220_v19, %v13219_v0  ;;  %9647 = vmatmul.mubr.bf16.gmra.mrb[116].mxu0 %v7724_v50 }
 0x356   : > { %20371 = vst [vmem:[#allocation45_spill] sm:$0xff] %v18174_v25  ;;  %v7988_v18 = vsel %vm1598_vm0, %v20373_v55, %v20372_v1  ;;  %v8135_v13 = vsel %vm7682_vm6, %v20377_v37, %v20376_v53  ;;  %v20378_v57 = vld [vmem:[#allocation65_spill] sm:$0xff]  ;;  %v13332_v1 = vpop.f32.mrb[11].mxu1  ;;  %v18201_v31 = vld [vmem:[#allocation2 + $0x488] sm:$0xf0]  ;;  %9654 = vmatprep.mubr.bf16.mxu0 %v7871_v49  ;;  %v20384_v21 = vrot.slane %v17784_v39, 5 }
 0x357   : > { %v6816_v12 = vadd.f32 %v13218_v10, %v20378_v57  ;;  %v13333_v55 = vadd.f32 %v13332_v1, %v13331_v8  ;;  %20379 = vst [vmem:[#allocation46_spill] sm:$0xff] %v18201_v31  ;;  %v20380_v53 = vld [vmem:[#allocation66_spill] sm:$0xff]  ;;  %9744 = vmatmul.mubr.bf16.gmra.mrb[116].mxu1 %v7988_v18  ;;  %v20382_v8 = vld [vmem:[#allocation21_spill] sm:$0xff]  ;;  %v20386_v49 = vrot.slane %v17793_v27, 4  ;;  %v20388_v5 = vrot.slane %v17803_v61, 3 }
 0x358   : > { %v6819_v37 = vadd.f32 %v13221_v32, %v20380_v53  ;;  %v18210_v50 = vmul.f32 %v17930_v7, %v20382_v8  ;;  %v20383_v57 = vld [vmem:[#allocation50_spill] sm:$0xff]  ;;  %9751 = vmatprep.mubr.bf16.mxu1 %v8135_v13  ;;  %v20385_v32 = vrot.slane %v17782_v60, 5  ;;  %v18226_v53 = vld [vmem:[#allocation2 + $0x490] sm:$0xf]  ;;  %v13222_v8 = vpop.f32.mrb[12].mxu0  ;;  %v20391_v39 = vrot.slane %v17822_v51, 5 }
 0x359   : > { %v18206_v10 = vadd.f32 %v13330_v46, %v6816_v12  ;;  %v18214_v1 = vmul.f32 %v17930_v7, %v20383_v57  ;;  %v20387_v46 = vrot.slane %v17791_v24, 4  ;;  %v20389_v57 = vld [vmem:[#allocation54_spill] sm:$0xff]  ;;  %v20392_v60 = vrot.slane %v17820_v58, 5  ;;  %v18239_v24 = vld [vmem:[#allocation2 + $0x5c0] sm:$0xf8] }
 0x35a   : > { %v7727_v18 = vsel %vm7682_vm6, %v20385_v32, %v20384_v21  ;;  %v20390_v0 = vrot.slane %v20389_v57, 3  ;;  %v18241_v32 = vadd.f32 %v13333_v55, %v6819_v37  ;;  %v18246_v61 = vld [vmem:[%s19999_s7 + $0x1] ss:$0 sm:$0xff]  ;;  %v20395_v51 = vrot.slane %v17829_v20, 5  ;;  %v20403_v20 = vld [vmem:[#allocation80_spill] sm:$0xff] }
 0x35b   : > { %20381 = vst [vmem:[#allocation47_spill] sm:$0xff] %v18206_v10  ;;  %v7991_v12 = vsel %vm1598_vm0, %v20387_v46, %v20386_v49  ;;  %v8138_v21 = vsel %vm7682_vm6, %v20392_v60, %v20391_v39  ;;  %v13223_v49 = vpop.f32.mrb[13].mxu0  ;;  %v13334_v46 = vpop.f32.mrb[12].mxu1  ;;  %v20397_v57 = vrot.slane %v17843_v42, 4  ;;  %v20398_v37 = vrot.slane %v17854_v62, 5  ;;  %v20399_v39 = vld [vmem:[#allocation81_spill] sm:$0xff] }
 0x35c   : > { %v7874_v13 = vsel %vm7393_vm5, %v20390_v0, %v20388_v5  ;;  %20393 = vst [vmem:[#allocation48_spill] sm:$0xff] %v18241_v32  ;;  %v20394_v5 = vrot.slane %v17831_v23, 5  ;;  %v20396_v0 = vrot.slane %v17845_v52, 4  ;;  %v20400_v60 = vrot.slane %v20399_v39, 5  ;;  %v20401_v23 = vld [vmem:[#allocation57_spill] sm:$0xff]  ;;  %v13335_v42 = vpop.f32.mrb[13].mxu1 }
 0x35d   : > { %v20402_v19 = vrot.slane %v20401_v23, 4  ;;  %v20404_v59 = vrot.slane %v20403_v20, 4  ;;  %v13224_v52 = vadd.f32 %v13223_v49, %v13222_v8  ;;  %v20408_v39 = vrot.slane %v17886_v30, 3  ;;  %v20414_v30 = vld [vmem:[#allocation92_spill] sm:$0xff]  ;;  %v20418_v32 = vld [vmem:[#allocation67_spill] sm:$0xff]  ;;  %9655 = vmatmul.mubr.bf16.gmra.mrb[120].mxu0 %v7727_v18 }
 0x35e   : > { %v18253_v58 = vsel %vm7682_vm6, %v20395_v51, %v20394_v5  ;;  %v18260_v55 = vsel %vm1598_vm0, %v20397_v57, %v20396_v0  ;;  %v18267_v27 = vsel %vm7682_vm6, %v20400_v60, %v20398_v37  ;;  %v13225_v51 = vpop.f32.mrb[14].mxu0  ;;  %v20405_v0 = vrot.slane %v17884_v17, 4  ;;  %v18297_v17 = vld [vmem:[#allocation2 + $0x5c8] sm:$0x7]  ;;  %v18325_v14 = vld [vmem:[#allocation2 + $0x5f0] sm:$0xf]  ;;  %9662 = vmatprep.mubr.bf16.mxu0 %v7874_v13 }
 0x35f   : > { %v18274_v5 = vsel %vm1598_vm0, %v20404_v59, %v20402_v19  ;;  %v20406_v57 = vrot.slane %v17877_v35, 4  ;;  %v20407_v37 = vrot.slane %v17893_v6, 3  ;;  %v20409_v59 = vrot.slane %v17907_v38, 5  ;;  %v20410_v19 = vld [vmem:[#allocation91_spill] sm:$0xff]  ;;  %v13226_v23 = vpop.f32.mrb[15].mxu0  ;;  %v20412_v6 = vld [vmem:[#allocation93_spill] sm:$0xff]  ;;  %9752 = vmatmul.mubr.bf16.gmra.mrb[120].mxu1 %v7991_v12 }
 0x360   : > { %v20411_v8 = vrot.slane %v20410_v19, 5  ;;  %v18299_v35 = vld [vmem:[#allocation2 + $0x4b0] sm:$0xe0]  ;;  %v13336_v20 = vadd.f32 %v13335_v42, %v13334_v46  ;;  %v20415_v22 = vrot.slane %v20414_v30, 4  ;;  %v18308_v38 = vld [vmem:[#allocation2 + $0x4b8] sm:$0x1f]  ;;  %v6824_v46 = vadd.f32 %v13224_v52, %v20418_v32  ;;  %9759 = vmatprep.mubr.bf16.mxu1 %v8138_v21 }
 0x361   : > { %v18281_v62 = vsel %vm1598_vm0, %v20406_v57, %v20405_v0  ;;  %v18288_v60 = vsel %vm7393_vm5, %v20408_v39, %v20407_v37  ;;  %v13337_v0 = vpop.f32.mrb[14].mxu1  ;;  %v20413_v57 = vrot.slane %v20412_v6, 4  ;;  %v18310_v39 = vld [vmem:[#allocation2 + $0x5e8] sm:$0xf0]  ;;  %v13227_v42 = vadd.f32 %v13226_v23, %v13225_v51  ;;  %v20424_v51 = vld [vmem:[#allocation68_spill] sm:$0xff]  ;;  %v13228_v52 = vpop.f32.mrb[16].mxu0 }
 0x362   : > { %v18295_v49 = vsel %vm7682_vm6, %v20411_v8, %v20409_v59  ;;  %v20416_v59 = vld [vmem:[#allocation23_spill] sm:$0xff]  ;;  %v20417_v8 = vld [vmem:[#allocation25_spill] sm:$0xff]  ;;  %v13338_v10 = vpop.f32.mrb[15].mxu1  ;;  %v20419_v6 = vrot.slane %v17940_v41, 4  ;;  %v20420_v30 = vld [vmem:[#allocation94_spill] sm:$0xff]  ;;  %v20426_v32 = vrot.slane %v17962_v28, 3 }
 0x363   : > { %v18306_v37 = vsel %vm1598_vm0, %v20415_v22, %v20413_v57  ;;  %v4262_v19 = vadd.f32 %v18246_v61, %v20416_v59  ;;  %v4263_v48 = vadd.f32 %v18246_v61, %v20417_v8  ;;  %v20421_v31 = vrot.slane %v20420_v30, 4  ;;  %v18327_v25 = vld [vmem:[#allocation2 + $0x4a8] sm:$0xf0]  ;;  %v18332_v41 = vld [vmem:[#allocation2 + $0x4b0] sm:$0xf] }
 0x364   : > { %20422 = vst [vmem:[#allocation49_spill] sm:$0xff] %v18327_v25  ;;  %v13339_v59 = vadd.f32 %v13338_v10, %v13337_v0  ;;  %20423 = vst [vmem:[#allocation65_spill] sm:$0xff] %v18332_v41  ;;  %v6827_v23 = vadd.f32 %v13227_v42, %v20424_v51  ;;  %v18337_v30 = vadd.f32 %v13336_v20, %v6824_v46  ;;  %v20427_v42 = vrot.slane %v17943_v47, 3  ;;  %v20442_v46 = vld [vmem:[#allocation24_spill] sm:$0xff]  ;;  %v20448_v25 = vld [vmem:[#allocation51_spill] sm:$0xff] }
 0x365   : > { %v18322_v22 = vsel %vm1598_vm0, %v20421_v31, %v20419_v6  ;;  %v4294_v0 = vmax.f32 %v4262_v19, 0.0  ;;  %v4295_v8 = vmax.f32 %v4263_v48, 0.0  ;;  %v20428_v13 = vrot.slane %v17979_v2, 5  ;;  %v13229_v48 = vpop.f32.mrb[17].mxu0  ;;  %v13340_v19 = vpop.f32.mrb[16].mxu1  ;;  %v20443_v6 = vld [vmem:[#allocation33_spill] sm:$0xff]  ;;  %9663 = vmatmul.mubr.bf16.gmra.mrb[124].mxu0 %v18253_v58 }
 0x366   : > { %20425 = vst [vmem:[#allocation66_spill] sm:$0xff] %v18337_v30  ;;  %v18346_v12 = vsel %vm7393_vm5, %v20427_v42, %v20426_v32  ;;  %v20429_v20 = vrot.slane %v17977_v43, 5  ;;  %v18356_v51 = vadd.f32 %v13339_v59, %v6827_v23  ;;  %v20431_v28 = vrot.slane %v17998_v36, 4  ;;  %v13231_v36 = vpop.f32.mrb[18].mxu0  ;;  %9864 = vmatprep.mubr.bf16.mxu0 %v18274_v5 }
 0x367   : > { %v20432_v47 = vrot.slane %v17996_v56, 4  ;;  %v20433_v2 = vrot.slane %v18028_v29, 4  ;;  %v20434_v43 = vrot.slane %v18009_v3, 4  ;;  %v18376_v59 = vadd.f32 %v18246_v61, %v18034_v45  ;;  %v18378_v56 = vld [vmem:[#allocation2 + $0x5e0] sm:$0xf8]  ;;  %v20438_v29 = vld [vmem:[#allocation34_spill] sm:$0xff]  ;;  %9760 = vmatmul.mubr.bf16.gmra.mrb[124].mxu1 %v18260_v55 }
 0x368   : > { %v18353_v21 = vsel %vm7682_vm6, %v20429_v20, %v20428_v13  ;;  %20430 = vst [vmem:[#allocation21_spill] sm:$0xff] %v18356_v51  ;;  %v18372_v13 = vpack.c.bf16 %v4295_v8, %v4294_v0  ;;  %v13230_v23 = vadd.f32 %v13229_v48, %v13228_v52  ;;  %v13341_v20 = vpop.f32.mrb[17].mxu1  ;;  %20436 = vst [vmem:[#allocation54_spill] sm:$0xff] %v18378_v56  ;;  %v13232_v0 = vpop.f32.mrb[19].mxu0  ;;  %v18392_v52 = vld [vmem:[#allocation2 + $0x5e8] sm:$0x7]  ;;  %9767 = vmatprep.mubr.bf16.mxu1 %v18267_v27 }
 0x369   : > { %v18363_v32 = vsel %vm1598_vm0, %v20432_v47, %v20431_v28  ;;  %v18370_v42 = vsel %vm1598_vm0, %v20434_v43, %v20433_v2  ;;  %v20437_v28 = vld [vmem:[#allocation31_spill] sm:$0xff]  ;;  %v18386_v3 = vadd.f32 %v18246_v61, %v20438_v29  ;;  %v20439_v2 = vld [vmem:[#allocation36_spill] sm:$0xff]  ;;  %v13342_v45 = vadd.f32 %v13341_v20, %v13340_v19  ;;  %v13343_v43 = vpop.f32.mrb[18].mxu1  ;;  %20440 = vst [vmem:[#allocation81_spill] sm:$0xff] %v18392_v52  ;;  %v20441_v48 = vld [vmem:[#allocation22_spill] sm:$0xff]  ;;  %v13234_v55 = vpop.f32.mrb[20].mxu0 }
 0x36a   : > { %20435 = vst [vmem:[#allocation50_spill] sm:$0xff] %v18372_v13  ;;  %v18382_v47 = vadd.f32 %v18246_v61, %v20437_v28  ;;  %v18390_v8 = vadd.f32 %v18246_v61, %v20439_v2  ;;  %v4264_v18 = vadd.f32 %v18246_v61, %v20441_v48  ;;  %v4265_v28 = vadd.f32 %v18246_v61, %v20442_v46  ;;  %v20444_v29 = vld [vmem:[#allocation69_spill] sm:$0xff]  ;;  %v13344_v2 = vpop.f32.mrb[19].mxu1  ;;  %v20446_v20 = vld [vmem:[#allocation35_spill] sm:$0xff]  ;;  %v20447_v48 = vld [vmem:[#allocation62_spill] sm:$0xff]  ;;  %v13235_v27 = vpop.f32.mrb[21].mxu0 }
 0x36b   : > { %v18400_v10 = vadd.f32 %v18246_v61, %v20443_v6  ;;  %v6832_v31 = vadd.f32 %v13230_v23, %v20444_v29  ;;  %v13233_v57 = vadd.f32 %v13232_v0, %v13231_v36  ;;  %v20445_v13 = vld [vmem:[#allocation85_spill] sm:$0xff]  ;;  %v18407_v51 = vadd.f32 %v18246_v61, %v20446_v20  ;;  %v20449_v36 = vld [vmem:[#allocation70_spill] sm:$0xff] }
 0x36c   : > { %v4266_v19 = vadd.f32 %v18246_v61, %v20445_v13  ;;  %v13345_v30 = vadd.f32 %v13344_v2, %v13343_v43  ;;  %v4267_v6 = vadd.f32 %v18246_v61, %v20447_v48  ;;  %v4252_v23 = vmul.f32 %v17930_v7, %v20448_v25  ;;  %v20451_v43 = vld [vmem:[#allocation26_spill] sm:$0xff]  ;;  %v20452_v48 = vld [vmem:[#allocation61_spill] sm:$0xff] }
 0x36d   : > { %v6835_v0 = vadd.f32 %v13233_v57, %v20449_v36  ;;  %v18419_v29 = vadd.f32 %v13342_v45, %v6832_v31  ;;  %v4268_v58 = vadd.f32 %v18246_v61, %v20451_v43  ;;  %v4296_v2 = vmax.f32 %v4264_v18, 0.0  ;;  %v20454_v31 = vld [vmem:[#allocation28_spill] sm:$0xff]  ;;  %v13346_v18 = vpop.f32.mrb[20].mxu1  ;;  %9865 = vmatmul.mubr.bf16.vlgmr.msra.gmra.mrb[128].mxu0 %v18288_v60 }
 0x36e   : > { %v4297_v20 = vmax.f32 %v4265_v28, 0.0  ;;  %v4269_v25 = vadd.f32 %v18246_v61, %v20452_v48  ;;  %v18428_v57 = vadd.f32 %v18246_v61, %v18116_v44  ;;  %v4298_v36 = vmax.f32 %v4266_v19, 0.0  ;;  %v20456_v48 = vld [vmem:[#allocation32_spill] sm:$0xff]  ;;  %9872 = vmatprep.mubr.bf16.mxu0 %v18306_v37 }
 0x36f   : > { %20450 = vst [vmem:[#allocation57_spill] sm:$0xff] %v18419_v29  ;;  %v18430_v5 = vadd.f32 %v13345_v30, %v6835_v0  ;;  %v4270_v45 = vadd.f32 %v18246_v61, %v20454_v31  ;;  %v18436_v43 = vadd.f32 %v18246_v61, %v18124_v34  ;;  %v4271_v46 = vadd.f32 %v18246_v61, %v20456_v48  ;;  %v13237_v0 = vpop.f32.mrb[22].mxu0  ;;  %v13347_v31 = vpop.f32.mrb[21].mxu1 }
 0x370   : > { %v18438_v28 = vpack.c.bf16 %v4297_v20, %v4296_v2  ;;  %v18444_v44 = vadd.f32 %v18246_v61, %v18112_v26  ;;  %v18448_v30 = vadd.f32 %v18246_v61, %v18120_v11  ;;  %v13236_v19 = vadd.f32 %v13235_v27, %v13234_v55  ;;  %v13238_v26 = vpop.f32.mrb[23].mxu0  ;;  %v13349_v13 = vpop.f32.mrb[22].mxu1  ;;  %v20457_v11 = vld [vmem:[#allocation39_spill] sm:$0xff]  ;;  %v20458_v27 = vld [vmem:[#allocation41_spill] sm:$0xff]  ;;  %9768 = vmatmul.mubr.bf16.gmra.mrb[128].mxu1 %v18281_v62 }
 0x371   : > { %20453 = vst [vmem:[#allocation80_spill] sm:$0xff] %v18430_v5  ;;  %v18452_v34 = vadd.f32 %v18246_v61, %v18136_v4  ;;  %v18456_v2 = vadd.f32 %v18246_v61, %v18149_v63  ;;  %v18460_v20 = vadd.f32 %v18246_v61, %v18132_v9  ;;  %v13348_v48 = vadd.f32 %v13347_v31, %v13346_v18  ;;  %v20460_v5 = vld [vmem:[#allocation71_spill] sm:$0xff]  ;;  %v13350_v56 = vpop.f32.mrb[23].mxu1  ;;  %v20461_v18 = vld [vmem:[#allocation40_spill] sm:$0xff]  ;;  %v13240_v62 = vpop.f32.mrb[24].mxu0 }
 0x372   : > { %20455 = vst [vmem:[#allocation91_spill] sm:$0xff] %v18438_v28  ;;  %v18464_v55 = vadd.f32 %v18246_v61, %v20457_v11  ;;  %v18468_v4 = vadd.f32 %v18246_v61, %v20458_v27  ;;  %v20459_v28 = vld [vmem:[#allocation43_spill] sm:$0xff]  ;;  %v6840_v29 = vadd.f32 %v13236_v19, %v20460_v5  ;;  %v13239_v9 = vadd.f32 %v13238_v26, %v13237_v0  ;;  %v20462_v11 = vld [vmem:[#allocation42_spill] sm:$0xff]  ;;  %v20463_v5 = vld [vmem:[#allocation52_spill] sm:$0xff]  ;;  %v13241_v37 = vpop.f32.mrb[25].mxu0 }
 0x373   : > { %v18472_v63 = vadd.f32 %v18246_v61, %v20459_v28  ;;  %v4299_v52 = vmax.f32 %v4267_v6, 0.0  ;;  %v18477_v31 = vadd.f32 %v18246_v61, %v20461_v18  ;;  %v13351_v41 = vadd.f32 %v13350_v56, %v13349_v13  ;;  %v20464_v6 = vld [vmem:[#allocation72_spill] sm:$0xff]  ;;  %v14722_v56 = vld [vmem:[%s15128_s28] sm:$0xff]   ;;  %9775 = vmatprep.mubr.bf16.mxu1 %v18295_v49  ;;  %v14723_v18 = vld [vmem:[%s15128_s28 + $0x48] sm:$0xff]  }
 0x374   : > { %v18482_v27 = vadd.f32 %v18246_v61, %v20462_v11  ;;  %v18486_v28 = vadd.f32 %v18246_v61, %v18210_v50  ;;  %v18490_v19 = vmul.f32 %v17930_v7, %v20463_v5  ;;  %v6843_v0 = vadd.f32 %v13239_v9, %v20464_v6  ;;  %13861 = vmatpush3.bf16.msra.mxu0 %v14722_v56  ;;  %v13243_v5 = vpop.f32.mrb[26].mxu0 }
 0x375   : > { %v18495_v60 = vadd.f32 %v13348_v48, %v6840_v29  ;;  %v18497_v13 = vpack.c.bf16 %v4299_v52, %v4298_v36  ;;  %v4300_v50 = vmax.f32 %v4268_v58, 0.0  ;;  %v4301_v26 = vmax.f32 %v4269_v25, 0.0  ;;  %13862 = vmatprep.subr.bf16.mxu0 %v14723_v18  ;;  %v13352_v58 = vpop.f32.mrb[24].mxu1  ;;  %9873 = vmatmul.mubr.bf16.gmra.mrb[132].mxu0 %v18346_v12  ;;  %v14726_v12 = vld [vmem:[%s15128_s28 + $0x10] sm:$0xff]  }
 0x376   : > { %v18503_v7 = vadd.f32 %v18246_v61, %v18214_v1  ;;  %v18506_v9 = vadd.f32 %v18246_v61, %v4252_v23  ;;  %v18509_v29 = vadd.f32 %v13351_v41, %v6843_v0  ;;  %v4302_v52 = vmax.f32 %v4270_v45, 0.0  ;;  %v13353_v6 = vpop.f32.mrb[25].mxu1  ;;  %v14724_v41 = vld [vmem:[%s15128_s28 + $0x8] sm:$0xff]   ;;  %v13244_v0 = vpop.f32.mrb[27].mxu0  ;;  %9880 = vmatprep.mubr.bf16.mxu0 %v18363_v32 }
 0x377   : > { %v4303_v36 = vmax.f32 %v4271_v46, 0.0  ;;  %v4304_v49 = vmax.f32 %v18376_v59, 0.0  ;;  %v18512_v25 = vpack.c.bf16 %v4301_v26, %v4300_v50  ;;  %v4305_v1 = vmax.f32 %v18382_v47, 0.0  ;;  %v13355_v50 = vpop.f32.mrb[26].mxu1  ;;  %v14725_v26 = vld [vmem:[%s15128_s28 + $0x50] sm:$0xff]  }
 0x378   : > { %v4306_v23 = vmax.f32 %v18386_v3, 0.0  ;;  %v4307_v48 = vmax.f32 %v18390_v8, 0.0  ;;  %v13242_v11 = vadd.f32 %v13241_v37, %v13240_v62  ;;  %13863 = vmatpush3.bf16.msra.mxu0 %v14724_v41  ;;  %v4308_v59 = vmax.f32 %v18400_v10, 0.0  ;;  %v20465_v62 = vld [vmem:[#allocation73_spill] sm:$0xff]  ;;  %9776 = vmatmul.mubr.bf16.gmra.mrb[132].mxu1 %v18322_v22 }
 0x379   : > { %v18518_v45 = vpack.c.bf16 %v4303_v36, %v4302_v52  ;;  %v4309_v46 = vmax.f32 %v18407_v51, 0.0  ;;  %v13354_v56 = vadd.f32 %v13353_v6, %v13352_v58  ;;  %13864 = vmatprep.subr.bf16.mxu0 %v14725_v26  ;;  %v18523_v47 = vpack.c.bf16 %v4305_v1, %v4304_v49  ;;  %v13356_v52 = vpop.f32.mrb[27].mxu1  ;;  %9783 = vmatprep.mubr.bf16.mxu1 %v18353_v21  ;;  %v14727_v6 = vld [vmem:[%s15128_s28 + $0x58] sm:$0xff]  }
 0x37a   : > { %v18525_v3 = vpack.c.bf16 %v4307_v48, %v4306_v23  ;;  %v4310_v8 = vmax.f32 %v18428_v57, 0.0  ;;  %v6848_v18 = vadd.f32 %v13242_v11, %v20465_v62  ;;  %v13245_v37 = vadd.f32 %v13244_v0, %v13243_v5  ;;  %v20466_v23 = vld [vmem:[#allocation74_spill] sm:$0xff]  ;;  %v13246_v5 = vpop.f32.mrb[28].mxu0  ;;  %v13358_v0 = vpop.f32.mrb[28].mxu1  ;;  %v20467_v62 = vld [vmem:[#allocation29_spill] sm:$0xff] }
 0x37b   : > { %v18529_v36 = vpack.c.bf16 %v4309_v46, %v4308_v59  ;;  %v4311_v10 = vmax.f32 %v18436_v43, 0.0  ;;  %v13357_v51 = vadd.f32 %v13356_v52, %v13355_v50  ;;  %v4312_v58 = vmax.f32 %v18444_v44, 0.0  ;;  %v18546_v44 = vld [vmem:[#allocation2 + $0x4d0] sm:$0xe0]  ;;  %v13247_v46 = vpop.f32.mrb[29].mxu0 }
 0x37c   : > { %v4313_v49 = vmax.f32 %v18448_v30, 0.0  ;;  %v4314_v1 = vmax.f32 %v18452_v34, 0.0  ;;  %v6851_v57 = vadd.f32 %v13245_v37, %v20466_v23  ;;  %v18539_v48 = vadd.f32 %v13354_v56, %v6848_v18  ;;  %13865 = vmatpush3.bf16.msra.mxu0 %v14726_v12  ;;  %v13249_v26 = vpop.f32.mrb[30].mxu0  ;;  %v20469_v37 = vld [vmem:[#allocation27_spill] sm:$0xff] }
 0x37d   : > { %v18541_v11 = vpack.c.bf16 %v4311_v10, %v4310_v8  ;;  %v4315_v43 = vmax.f32 %v18456_v2, 0.0  ;;  %v4316_v34 = vmax.f32 %v18460_v20, 0.0  ;;  %v4317_v22 = vmax.f32 %v18464_v55, 0.0  ;;  %13866 = vmatprep.subr.bf16.mxu0 %v14727_v6  ;;  %v13359_v8 = vpop.f32.mrb[29].mxu1 }
 0x37e   : > { %v18548_v30 = vpack.c.bf16 %v4313_v49, %v4312_v58  ;;  %v4318_v32 = vmax.f32 %v18468_v4, 0.0  ;;  %v18554_v41 = vadd.f32 %v13357_v51, %v6851_v57  ;;  %v4319_v21 = vmax.f32 %v18472_v63, 0.0  ;;  %v20471_v58 = vld [vmem:[#allocation97_spill] sm:$0xff]  ;;  %v20473_v49 = vld [vmem:[#allocation96_spill] sm:$0xff] }
 0x37f   : > { %v18556_v2 = vpack.c.bf16 %v4315_v43, %v4314_v1  ;;  %v4320_v59 = vmax.f32 %v18477_v31, 0.0  ;;  %v18560_v56 = vpack.c.bf16 %v4317_v22, %v4316_v34  ;;  %v4321_v20 = vmax.f32 %v18482_v27, 0.0  ;;  %v13250_v27 = vpop.f32.mrb[31].mxu0  ;;  %v18579_v57 = vld [vmem:[#allocation2 + $0x4d8] sm:$0x1f] }
 0x380   : > { %v4322_v55 = vmax.f32 %v18486_v28, 0.0  ;;  %v4323_v4 = vmax.f32 %v18503_v7, 0.0  ;;  %v13248_v50 = vadd.f32 %v13247_v46, %v13246_v5  ;;  %v20468_v18 = vrot.slane %v20467_v62, 3  ;;  %v13361_v28 = vpop.f32.mrb[30].mxu1  ;;  %v14728_v43 = vld [vmem:[%s15128_s28 + $0x18] sm:$0xff]   ;;  %v20477_v5 = vld [vmem:[#allocation95_spill] sm:$0xff]  ;;  %9784 = vmatmul.mubr.bf16.gmra.mrb[136].mxu1 %v18370_v42 }
 0x381   : > { %v20470_v63 = vrot.slane %v20469_v37, 3  ;;  %v18570_v52 = vpack.c.bf16 %v4319_v21, %v4318_v32  ;;  %v4293_v10 = vadd.f32 %v18246_v61, %v18490_v19  ;;  %v13360_v51 = vadd.f32 %v13359_v8, %v13358_v0  ;;  %13867 = vmatpush3.bf16.msra.mxu0 %v14728_v43  ;;  %v20476_v22 = vld [vmem:[#allocation76_spill] sm:$0xff]  ;;  %v13362_v19 = vpop.f32.mrb[31].mxu1  ;;  %v20479_v21 = vld [vmem:[#allocation37_spill] sm:$0xff]  ;;  %v18604_v37 = vld [vmem:[#allocation2 + $0x608] sm:$0xf0] }
 0x382   : > { %v20472_v7 = vrot.slane %v20471_v58, 4  ;;  %v20474_v1 = vrot.slane %v20473_v49, 4  ;;  %v18582_v12 = vpack.c.bf16 %v4321_v20, %v4320_v59  ;;  %v18584_v34 = vpack.c.bf16 %v4323_v4, %v4322_v55  ;;  %v14729_v62 = vld [vmem:[%s15128_s28 + $0x60] sm:$0xff]   ;;  %v13404_v49 = vpop.f32.mrb[32].mxu1 }
 0x383   : > { %v8268_v31 = vsel %vm7393_vm5, %v20470_v63, %v20468_v18  ;;  %v6856_v32 = vadd.f32 %v13248_v50, %v20476_v22  ;;  %v13251_v61 = vadd.f32 %v13250_v27, %v13249_v26  ;;  %v20478_v6 = vrot.slane %v20477_v5, 5  ;;  %13868 = vmatprep.subr.bf16.mxu0 %v14729_v62  ;;  %v20481_v55 = vld [vmem:[#allocation77_spill] sm:$0xff]  ;;  %v20490_v62 = vld [vmem:[#allocation83_spill] sm:$0xff] }
 0x384   : > { %v8415_v23 = vsel %vm1598_vm0, %v20474_v1, %v20472_v7  ;;  %20475 = vst [vmem:[#allocation93_spill] sm:$0xff] %v18584_v34  ;;  %v20480_v46 = vrot.slane %v20479_v21, 5  ;;  %v8157_v8 = vrot.slane %v18546_v44, 5  ;;  %v13363_v18 = vadd.f32 %v13362_v19, %v13361_v28  ;;  %9881 = vmatmul.mubr.bf16.gmra.mrb[136].mxu0 %v8268_v31  ;;  %v18600_v50 = vld [vmem:[%s19998_s6 + $0x2] ss:$0 sm:$0xff]  ;;  %v14238_v31 = vpop.f32.mrb[32].mxu0 }
 0x385   : > { %v4324_v59 = vmax.f32 %v18506_v9, 0.0  ;;  %v4325_v20 = vmax.f32 %v4293_v10, 0.0  ;;  %v6859_v4 = vadd.f32 %v13251_v61, %v20481_v55  ;;  %9888 = vmatprep.mubr.bf16.mxu0 %v8415_v23  ;;  %v18602_v26 = vadd.f32 %v13360_v51, %v6856_v32  ;;  %v14730_v63 = vld [vmem:[%s15128_s28 + $0x20] sm:$0xff]   ;;  %v14731_v51 = vld [vmem:[%s15128_s28 + $0x68] sm:$0xff]   ;;  %v7057_v7 = vpop.f32.mrb[33].mxu0  ;;  %v20486_v32 = vld [vmem:[#allocation63_spill] sm:$0xff] }
 0x386   : > { %v8150_v0 = vsel %vm7682_vm6, %v20480_v46, %v20478_v6  ;;  %13869 = vmatpush3.bf16.msra.mxu0 %v14730_v63  ;;  %v18612_v42 = vld [vmem:[%s19999_s7 + $0x2] ss:$0 sm:$0xff]  ;;  %v8158_v10 = vrot.slane %v18579_v57, 5  ;;  %v20483_v28 = vld [vmem:[#allocation82_spill] sm:$0xff]  ;;  %v14239_v43 = vpop.f32.mrb[34].mxu0  ;;  %v20485_v22 = vrot.slane %v18126_v40, 4 }
 0x387   : > { %9791 = vmatprep.mubr.bf16.mxu1 %v8150_v0  ;;  %v18607_v9 = vpack.c.bf16 %v4325_v20, %v4324_v59  ;;  %v18615_v27 = vadd.f32 %v13363_v18, %v6859_v4  ;;  %13870 = vmatprep.subr.bf16.mxu0 %v14731_v51  ;;  %v7066_v58 = vadd.f32 %v14238_v31, %v20483_v28  ;;  %v20484_v1 = vld [vmem:[#allocation78_spill] sm:$0xff]  ;;  %v20487_v61 = vrot.slane %v20486_v32, 4  ;;  %v13405_v46 = vpop.f32.mrb[33].mxu1  ;;  %v7060_v59 = vpop.f32.mrb[35].mxu0  ;;  %v18637_v4 = vld [vmem:[#allocation2 + $0x610] sm:$0xf] }
 0x388   : > { %v7058_v23 = vadd.f32 %v7057_v7, %v20484_v1  ;;  %v20488_v5 = vrot.slane %v18139_v54, 3  ;;  %v20489_v6 = vrot.slane %v18128_v16, 3  ;;  %v7069_v18 = vadd.f32 %v14239_v43, %v20490_v62  ;;  %v14732_v54 = vld [vmem:[%s15128_s28 + $0x28] sm:$0xff]   ;;  %v13407_v63 = vpop.f32.mrb[34].mxu1  ;;  %v20493_v51 = vld [vmem:[#allocation79_spill] sm:$0xff]  ;;  %v20496_v1 = vld [vmem:[#allocation44_spill] sm:$0xff] }
 0x389   : > { %20482 = vst [vmem:[#allocation92_spill] sm:$0xff] %v18607_v9  ;;  %v8006_v19 = vsel %vm1598_vm0, %v20487_v61, %v20485_v22  ;;  %v7194_v0 = vmul.f32 %v18600_v50, %v7066_v58  ;;  %v20491_v20 = vrot.slane %v18193_v15, 4  ;;  %v20492_v40 = vrot.slane %v18191_v33, 4  ;;  %v20494_v58 = vld [vmem:[#allocation45_spill] sm:$0xff]  ;;  %v13408_v22 = vpop.f32.mrb[35].mxu1  ;;  %v14733_v32 = vld [vmem:[%s15128_s28 + $0x70] sm:$0xff]  }
 0x38a   : > { %v8271_v21 = vsel %vm7393_vm5, %v20489_v6, %v20488_v5  ;;  %13871 = vmatpush3.bf16.msra.mxu0 %v14732_v54  ;;  %v18640_v16 = vadd.f32 %v13405_v46, %v13404_v49  ;;  %v7192_v31 = vmul.f32 %v18600_v50, %v7058_v23  ;;  %v7061_v28 = vadd.f32 %v7060_v59, %v20493_v51  ;;  %v20499_v59 = vld [vmem:[#allocation46_spill] sm:$0xff]  ;;  %v14242_v54 = vpop.f32.mrb[36].mxu0 }
 0x38b   : > { %v8418_v55 = vsel %vm1598_vm0, %v20492_v40, %v20491_v20  ;;  %v20495_v7 = vrot.slane %v20494_v58, 5  ;;  %v20497_v43 = vrot.slane %v20496_v1, 5  ;;  %v8422_v33 = vrot.slane %v18604_v37, 4  ;;  %13872 = vmatprep.subr.bf16.mxu0 %v14733_v32  ;;  %9792 = vmatmul.mubr.bf16.gmra.mrb[140].mxu1 %v8006_v19  ;;  %v14735_v58 = vld [vmem:[%s15128_s28 + $0x78] sm:$0xff]  }
 0x38c   : > { %v7234_v49 = vadd.f32 %v18612_v42, %v7194_v0  ;;  %v7195_v61 = vmul.f32 %v18600_v50, %v7069_v18  ;;  %9889 = vmatmul.mubr.bf16.gmra.mrb[140].mxu0 %v8271_v21  ;;  %v18653_v23 = vadd.f32 %v13408_v22, %v13407_v63  ;;  %v7232_v5 = vadd.f32 %v18612_v42, %v7192_v31  ;;  %v18663_v18 = vld [vmem:[#allocation2 + $0x4c8] sm:$0xf0]  ;;  %v14734_v21 = vld [vmem:[%s15128_s28 + $0x30] sm:$0xff]   ;;  %v7073_v22 = vpop.f32.mrb[37].mxu0 }
 0x38d   : > { %v8153_v15 = vsel %vm7682_vm6, %v20497_v43, %v20495_v7  ;;  %v7193_v6 = vmul.f32 %v18600_v50, %v7061_v28  ;;  %9896 = vmatprep.mubr.bf16.mxu0 %v8418_v55  ;;  %v20498_v62 = vrot.slane %v18226_v53, 4  ;;  %v20500_v20 = vrot.slane %v20499_v59, 4  ;;  %v20505_v43 = vld [vmem:[#allocation88_spill] sm:$0xff]  ;;  %v14243_v59 = vpop.f32.mrb[38].mxu0 }
 0x38e   : > { %v7235_v46 = vadd.f32 %v18612_v42, %v7195_v61  ;;  %9799 = vmatprep.mubr.bf16.mxu1 %v8153_v15  ;;  %13873 = vmatpush3.bf16.msra.mxu0 %v14734_v21  ;;  %v20501_v63 = vrot.slane %v18297_v17, 3  ;;  %v20502_v19 = vrot.slane %v18239_v24, 3  ;;  %v20503_v31 = vrot.slane %v18308_v38, 5  ;;  %v18685_v38 = vld [vmem:[#allocation2 + $0x4d0] sm:$0xf] }
 0x38f   : > { %v8009_v0 = vsel %vm1598_vm0, %v20500_v20, %v20498_v62  ;;  %v7233_v40 = vadd.f32 %v18612_v42, %v7193_v6  ;;  %v20504_v53 = vrot.slane %v18299_v35, 5  ;;  %v8423_v28 = vrot.slane %v18637_v4, 4  ;;  %13874 = vmatprep.subr.bf16.mxu0 %v14735_v58  ;;  %v13410_v35 = vpop.f32.mrb[36].mxu1  ;;  %v20508_v4 = vld [vmem:[#allocation86_spill] sm:$0xff]  ;;  %v20511_v20 = vld [vmem:[#allocation49_spill] sm:$0xff] }
 0x390   : > { %v8274_v55 = vsel %vm7393_vm5, %v20502_v19, %v20501_v63  ;;  %v7266_v7 = vmax.f32 %v7234_v49, 0.0  ;;  %v7267_v1 = vmax.f32 %v7235_v46, 0.0  ;;  %v7082_v15 = vadd.f32 %v14242_v54, %v20505_v43  ;;  %v20509_v49 = vld [vmem:[#allocation65_spill] sm:$0xff]  ;;  %v14736_v43 = vld [vmem:[%s15128_s28 + $0x38] sm:$0xff]  }
 0x391   : > { %v8156_v51 = vsel %vm7682_vm6, %v20504_v53, %v20503_v31  ;;  %v20506_v17 = vrot.slane %v18325_v14, 4  ;;  %v20507_v24 = vrot.slane %v18310_v39, 4  ;;  %v7264_v61 = vmax.f32 %v7232_v5, 0.0  ;;  %v18695_v14 = vld [vmem:[#allocation2 + $0x600] sm:$0xf8]  ;;  %v13411_v39 = vpop.f32.mrb[37].mxu1 }
 0x392   : > { %v7265_v6 = vmax.f32 %v7233_v40, 0.0  ;;  %v7074_v62 = vadd.f32 %v7073_v22, %v20508_v4  ;;  %v20510_v46 = vrot.slane %v20509_v49, 4  ;;  %v20512_v21 = vrot.slane %v20511_v20, 4  ;;  %v20514_v31 = vld [vmem:[#allocation89_spill] sm:$0xff]  ;;  %v7076_v40 = vpop.f32.mrb[39].mxu0  ;;  %v13413_v58 = vpop.f32.mrb[38].mxu1  ;;  %13875 = vmatpush3.bf16.msra.mxu0 %v14736_v43 }
 0x393   : > { %v8421_v32 = vsel %vm1598_vm0, %v20507_v24, %v20506_v17  ;;  %v18697_v63 = vpack.c.bf16 %v7267_v1, %v7266_v7  ;;  %v7198_v19 = vmul.f32 %v18600_v50, %v7082_v15  ;;  %v7085_v5 = vadd.f32 %v14243_v59, %v20514_v31  ;;  %v20516_v24 = vld [vmem:[#allocation87_spill] sm:$0xff]  ;;  %v18709_v7 = vld [vmem:[#allocation2 + $0x608] sm:$0x7]  ;;  %v13414_v15 = vpop.f32.mrb[39].mxu1  ;;  %9800 = vmatmul.mubr.bf16.gmra.mrb[144].mxu1 %v8009_v0 }
 0x394   : > { %v18693_v54 = vsel %vm1598_vm0, %v20512_v21, %v20510_v46  ;;  %v18701_v53 = vadd.f32 %v13411_v39, %v13410_v35  ;;  %v18704_v22 = vpack.c.bf16 %v7265_v6, %v7264_v61  ;;  %v7196_v17 = vmul.f32 %v18600_v50, %v7074_v62  ;;  %v18711_v1 = vld [vmem:[#allocation2 + $0x4f0] sm:$0xe0]  ;;  %9897 = vmatmul.mubr.bf16.gmra.mrb[144].mxu0 %v8274_v55  ;;  %v20517_v46 = vld [vmem:[#allocation81_spill] sm:$0xff]  ;;  %v20519_v61 = vld [vmem:[#allocation54_spill] sm:$0xff] }
 0x395   : > { %20513 = vst [vmem:[#allocation23_spill] sm:$0xff] %v18697_v63  ;;  %v7077_v4 = vadd.f32 %v7076_v40, %v20516_v24  ;;  %v8013_v49 = vrot.slane %v18663_v18, 4  ;;  %v7238_v59 = vadd.f32 %v18612_v42, %v7198_v19  ;;  %v7199_v35 = vmul.f32 %v18600_v50, %v7085_v5  ;;  %v18720_v21 = vld [vmem:[#allocation2 + $0x4f8] sm:$0x1f]  ;;  %v18722_v39 = vld [vmem:[#allocation2 + $0x628] sm:$0xf0]  ;;  %9904 = vmatprep.mubr.bf16.mxu0 %v8421_v32 }
 0x396   : > { %20515 = vst [vmem:[#allocation25_spill] sm:$0xff] %v18704_v22  ;;  %v20518_v20 = vrot.slane %v20517_v46, 3  ;;  %v20520_v6 = vrot.slane %v20519_v61, 3  ;;  %v8355_v18 = vld [vmem:[#allocation2 + $0x630] sm:$0xf]  ;;  %v18724_v31 = vadd.f32 %v13414_v15, %v13413_v58  ;;  %v7236_v40 = vadd.f32 %v18612_v42, %v7196_v17  ;;  %9807 = vmatprep.mubr.bf16.mxu1 %v8156_v51  ;;  %v14246_v32 = vpop.f32.mrb[40].mxu0 }
 0x397   : > { %v7197_v19 = vmul.f32 %v18600_v50, %v7077_v4  ;;  %v8159_v55 = vsel %vm7682_vm6, %v8157_v8, %v8158_v10  ;;  %v8014_v5 = vrot.slane %v18685_v38, 4  ;;  %v7239_v43 = vadd.f32 %v18612_v42, %v7199_v35  ;;  %v7937_v4 = vld [vmem:[#allocation2 + $0x4e8] sm:$0xf0]  ;;  %v20521_v15 = vld [vmem:[#allocation55_spill] sm:$0xff]  ;;  %v7089_v51 = vpop.f32.mrb[41].mxu0 }
 0x398   : > { %v8277_v62 = vsel %vm7393_vm5, %v20520_v6, %v20518_v20  ;;  %v8278_v58 = vrot.slane %v18695_v14, 3  ;;  %v8279_v24 = vrot.slane %v18709_v7, 3  ;;  %v8160_v17 = vrot.slane %v18711_v1, 5  ;;  %v7938_v7 = vld [vmem:[#allocation2 + $0x4f0] sm:$0xf]  ;;  %v13416_v1 = vpop.f32.mrb[40].mxu1 }
 0x399   : > { %v7237_v0 = vadd.f32 %v18612_v42, %v7197_v19  ;;  %v8161_v57 = vrot.slane %v18720_v21, 5  ;;  %v8425_v44 = vrot.slane %v18722_v39, 4  ;;  %v8426_v8 = vrot.slane %v8355_v18, 4  ;;  %v20522_v61 = vld [vmem:[#allocation75_spill] sm:$0xff]  ;;  %v14247_v19 = vpop.f32.mrb[42].mxu0  ;;  %v13417_v63 = vpop.f32.mrb[41].mxu1 }
 0x39a   : > { %v7270_v10 = vmax.f32 %v7238_v59, 0.0  ;;  %v7271_v38 = vmax.f32 %v7239_v43, 0.0  ;;  %v7098_v35 = vadd.f32 %v14246_v32, %v20521_v15  ;;  %v8424_v14 = vsel %vm1598_vm0, %v8422_v33, %v8423_v28  ;;  %v20524_v18 = vld [vmem:[#allocation56_spill] sm:$0xff]  ;;  %v7092_v32 = vpop.f32.mrb[43].mxu0  ;;  %v13419_v37 = vpop.f32.mrb[42].mxu1 }
 0x39b   : > { %v7268_v46 = vmax.f32 %v7236_v40, 0.0  ;;  %v7269_v20 = vmax.f32 %v7237_v0, 0.0  ;;  %v7090_v6 = vadd.f32 %v7089_v51, %v20522_v61  ;;  %v8016_v21 = vrot.slane %v7937_v4, 4  ;;  %v20526_v40 = vld [vmem:[#allocation53_spill] sm:$0xff]  ;;  %v13420_v4 = vpop.f32.mrb[43].mxu1  ;;  %9808 = vmatmul.mubr.bf16.gmra.mrb[148].mxu1 %v18693_v54 }
 0x39c   : > { %v18746_v39 = vpack.c.bf16 %v7271_v38, %v7270_v10  ;;  %v7202_v59 = vmul.f32 %v18600_v50, %v7098_v35  ;;  %v7101_v43 = vadd.f32 %v14247_v19, %v20524_v18  ;;  %v18750_v15 = vadd.f32 %v13417_v63, %v13416_v1  ;;  %v8210_v61 = vld [vmem:[#allocation2 + $0x620] sm:$0xf8]  ;;  %9905 = vmatmul.mubr.bf16.gmra.mrb[148].mxu0 %v8277_v62  ;;  %v8211_v19 = vld [vmem:[#allocation2 + $0x628] sm:$0x7]  ;;  %v8356_v63 = vld [vmem:[#allocation2 + $0x648] sm:$0xf0] }
 0x39d   : > { %v18752_v33 = vpack.c.bf16 %v7269_v20, %v7268_v46  ;;  %v7200_v28 = vmul.f32 %v18600_v50, %v7090_v6  ;;  %v7093_v0 = vadd.f32 %v7092_v32, %v20526_v40  ;;  %v8017_v51 = vrot.slane %v7938_v7, 4  ;;  %v8357_v1 = vld [vmem:[#allocation2 + $0x650] sm:$0xf]  ;;  %9912 = vmatprep.mubr.bf16.mxu0 %v8424_v14  ;;  %9815 = vmatprep.mubr.bf16.mxu1 %v8159_v55  ;;  %v14250_v32 = vpop.f32.mrb[44].mxu0 }
 0x39e   : > { %20523 = vst [vmem:[#allocation67_spill] sm:$0xff] %v18746_v39  ;;  %v7242_v10 = vadd.f32 %v18612_v42, %v7202_v59  ;;  %v7203_v38 = vmul.f32 %v18600_v50, %v7101_v43  ;;  %v8015_v35 = vsel %vm1598_vm0, %v8013_v49, %v8014_v5  ;;  %v18759_v18 = vadd.f32 %v13420_v4, %v13419_v37  ;;  %v18768_v59 = vld [vmem:[#allocation2 + $0x550] sm:$0xe0]  ;;  %v18789_v39 = vld [vmem:[#allocation2 + $0x648] sm:$0x7] }
 0x39f   : > { %20525 = vst [vmem:[#allocation94_spill] sm:$0xff] %v18752_v33  ;;  %v7240_v46 = vadd.f32 %v18612_v42, %v7200_v28  ;;  %v7201_v20 = vmul.f32 %v18600_v50, %v7093_v0  ;;  %v8280_v7 = vsel %vm7393_vm5, %v8278_v58, %v8279_v24  ;;  %v8162_v62 = vsel %vm7682_vm6, %v8160_v17, %v8161_v57  ;;  %v20527_v0 = vld [vmem:[#allocation59_spill] sm:$0xff]  ;;  %v7105_v24 = vpop.f32.mrb[45].mxu0  ;;  %v8485_v17 = vld [vmem:[#allocation2 + $0x558] sm:$0x1f]  ;;  %v13422_v57 = vpop.f32.mrb[44].mxu1 }
 0x3a0   : > { %v7243_v6 = vadd.f32 %v18612_v42, %v7203_v38  ;;  %v8427_v49 = vsel %vm1598_vm0, %v8425_v44, %v8426_v8  ;;  %v8281_v5 = vrot.slane %v8210_v61, 3  ;;  %v8282_v37 = vrot.slane %v8211_v19, 3  ;;  %v20528_v61 = vld [vmem:[#allocation90_spill] sm:$0xff]  ;;  %v14251_v38 = vpop.f32.mrb[46].mxu0  ;;  %v13423_v19 = vpop.f32.mrb[45].mxu1  ;;  %v20534_v33 = vld [vmem:[#allocation84_spill] sm:$0xff] }
 0x3a1   : > { %v7241_v43 = vadd.f32 %v18612_v42, %v7201_v20  ;;  %v8428_v28 = vrot.slane %v8356_v63, 4  ;;  %v8429_v40 = vrot.slane %v8357_v1, 4  ;;  %v7274_v54 = vmax.f32 %v7242_v10, 0.0  ;;  %v20530_v1 = vld [vmem:[#allocation60_spill] sm:$0xff] }
 0x3a2   : > { %v7275_v14 = vmax.f32 %v7243_v6, 0.0  ;;  %v7114_v58 = vadd.f32 %v14250_v32, %v20527_v0  ;;  %v18773_v55 = vsel %vm1598_vm0, %v8016_v21, %v8017_v51  ;;  %v7272_v44 = vmax.f32 %v7240_v46, 0.0  ;;  %v7108_v32 = vpop.f32.mrb[47].mxu0  ;;  %v18781_v0 = vld [vmem:[#allocation2 + $0x640] sm:$0xf8]  ;;  %v13425_v51 = vpop.f32.mrb[46].mxu1 }
 0x3a3   : > { %v7273_v8 = vmax.f32 %v7241_v43, 0.0  ;;  %v7106_v4 = vadd.f32 %v7105_v24, %v20528_v61  ;;  %v8548_v20 = vrot.slane %v18768_v59, 5  ;;  %v7117_v6 = vadd.f32 %v14251_v38, %v20530_v1  ;;  %v20532_v24 = vld [vmem:[#allocation58_spill] sm:$0xff]  ;;  %9816 = vmatmul.mubr.bf16.gmra.mrb[152].mxu1 %v8015_v35 }
 0x3a4   : > { %v18777_v63 = vpack.c.bf16 %v7275_v14, %v7274_v54  ;;  %v7206_v10 = vmul.f32 %v18600_v50, %v7114_v58  ;;  %v18783_v21 = vadd.f32 %v13423_v19, %v13422_v57  ;;  %v7109_v61 = vadd.f32 %v7108_v32, %v20532_v24  ;;  %v18791_v54 = vld [vmem:[#allocation2 + $0x570] sm:$0xe0]  ;;  %v13426_v14 = vpop.f32.mrb[47].mxu1  ;;  %9913 = vmatmul.mubr.bf16.gmra.mrb[152].mxu0 %v8280_v7  ;;  %v8487_v19 = vld [vmem:[#allocation2 + $0x578] sm:$0x1f]  ;;  %v14254_v24 = vpop.f32.mrb[48].mxu0 }
 0x3a5   : > { %v18785_v46 = vpack.c.bf16 %v7273_v8, %v7272_v44  ;;  %v7204_v43 = vmul.f32 %v18600_v50, %v7106_v4  ;;  %v8549_v59 = vrot.slane %v8485_v17, 5  ;;  %v7207_v38 = vmul.f32 %v18600_v50, %v7117_v6  ;;  %v8358_v44 = vld [vmem:[#allocation2 + $0x668] sm:$0xf0]  ;;  %v8359_v8 = vld [vmem:[#allocation2 + $0x670] sm:$0xf]  ;;  %9920 = vmatprep.mubr.bf16.mxu0 %v8427_v49  ;;  %9823 = vmatprep.mubr.bf16.mxu1 %v8162_v62 }
 0x3a6   : > { %20529 = vst [vmem:[#allocation68_spill] sm:$0xff] %v18777_v63  ;;  %v7246_v58 = vadd.f32 %v18612_v42, %v7206_v10  ;;  %v8283_v57 = vsel %vm7393_vm5, %v8281_v5, %v8282_v37  ;;  %v18796_v1 = vadd.f32 %v13426_v14, %v13425_v51  ;;  %v7205_v17 = vmul.f32 %v18600_v50, %v7109_v61  ;;  %v8488_v6 = vld [vmem:[#allocation2 + $0x590] sm:$0xe0]  ;;  %v20533_v63 = vld [vmem:[#allocation64_spill] sm:$0xff] }
 0x3a7   : > { %20531 = vst [vmem:[#allocation31_spill] sm:$0xff] %v18785_v46  ;;  %v7244_v4 = vadd.f32 %v18612_v42, %v7204_v43  ;;  %v8430_v32 = vsel %vm1598_vm0, %v8428_v28, %v8429_v40  ;;  %v7247_v10 = vadd.f32 %v18612_v42, %v7207_v38  ;;  %v8284_v7 = vrot.slane %v18781_v0, 3  ;;  %v7121_v40 = vpop.f32.mrb[49].mxu0  ;;  %v8489_v38 = vld [vmem:[#allocation2 + $0x598] sm:$0x1f]  ;;  %v13428_v0 = vpop.f32.mrb[48].mxu1 }
 0x3a8   : > { %v8285_v5 = vrot.slane %v18789_v39, 3  ;;  %v8551_v37 = vrot.slane %v18791_v54, 5  ;;  %v7245_v51 = vadd.f32 %v18612_v42, %v7205_v17  ;;  %v8552_v43 = vrot.slane %v8487_v19, 5  ;;  %v14255_v22 = vpop.f32.mrb[50].mxu0  ;;  %v13429_v17 = vpop.f32.mrb[49].mxu1 }
 0x3a9   : > { %v8431_v14 = vrot.slane %v8358_v44, 4  ;;  %v8432_v61 = vrot.slane %v8359_v8, 4  ;;  %v7278_v35 = vmax.f32 %v7246_v58, 0.0  ;;  %v7279_v49 = vmax.f32 %v7247_v10, 0.0  ;;  %v20536_v58 = vld [vmem:[#allocation38_spill] sm:$0xff]  ;;  %v7124_v8 = vpop.f32.mrb[51].mxu0 }
 0x3aa   : > { %v7130_v28 = vadd.f32 %v14254_v24, %v20533_v63  ;;  %v8550_v62 = vsel %vm7682_vm6, %v8548_v20, %v8549_v59  ;;  %v7276_v46 = vmax.f32 %v7244_v4, 0.0  ;;  %v7277_v39 = vmax.f32 %v7245_v51, 0.0  ;;  %v13431_v10 = vpop.f32.mrb[50].mxu1  ;;  %v20538_v4 = vld [vmem:[#allocation30_spill] sm:$0xff]  ;;  %v18819_v24 = vld [vmem:[#allocation2 + $0x660] sm:$0xf8] }
 0x3ab   : > { %v7122_v54 = vadd.f32 %v7121_v40, %v20534_v33  ;;  %v8554_v9 = vrot.slane %v8488_v6, 5  ;;  %v18809_v34 = vpack.c.bf16 %v7279_v49, %v7278_v35  ;;  %v7133_v44 = vadd.f32 %v14255_v22, %v20536_v58  ;;  %v13432_v6 = vpop.f32.mrb[51].mxu1  ;;  %v8215_v22 = vld [vmem:[#allocation2 + $0x668] sm:$0x7]  ;;  %v8491_v40 = vld [vmem:[#allocation2 + $0x5b8] sm:$0x1f]  ;;  %9824 = vmatmul.mubr.bf16.gmra.mrb[156].mxu1 %v18773_v55 }
 0x3ac   : > { %v7210_v19 = vmul.f32 %v18600_v50, %v7130_v28  ;;  %v18813_v63 = vadd.f32 %v13429_v17, %v13428_v0  ;;  %v18815_v20 = vpack.c.bf16 %v7277_v39, %v7276_v46  ;;  %v7125_v51 = vadd.f32 %v7124_v8, %v20538_v4  ;;  %9921 = vmatmul.mubr.bf16.gmra.mrb[156].mxu0 %v8283_v57  ;;  %v8490_v28 = vld [vmem:[#allocation2 + $0x5b0] sm:$0xe0]  ;;  %v8360_v58 = vld [vmem:[#allocation2 + $0x688] sm:$0xf0]  ;;  %v14258_v8 = vpop.f32.mrb[52].mxu0 }
 0x3ad   : > { %20535 = vst [vmem:[#allocation34_spill] sm:$0xff] %v18809_v34  ;;  %v7208_v59 = vmul.f32 %v18600_v50, %v7122_v54  ;;  %v8555_v33 = vrot.slane %v8489_v38, 5  ;;  %v7211_v49 = vmul.f32 %v18600_v50, %v7133_v44  ;;  %v18823_v0 = vadd.f32 %v13432_v6, %v13431_v10  ;;  %9928 = vmatprep.mubr.bf16.mxu0 %v8430_v32  ;;  %v8361_v6 = vld [vmem:[#allocation2 + $0x690] sm:$0xf] }
 0x3ae   : > { %20537 = vst [vmem:[#allocation36_spill] sm:$0xff] %v18815_v20  ;;  %v7250_v35 = vadd.f32 %v18612_v42, %v7210_v19  ;;  %v7209_v39 = vmul.f32 %v18600_v50, %v7125_v51  ;;  %v8286_v38 = vsel %vm7393_vm5, %v8284_v7, %v8285_v5  ;;  %14284 = vmatprep.mubr.bf16.mxu1 %v8550_v62  ;;  %v8287_v19 = vrot.slane %v18819_v24, 3  ;;  %v20539_v51 = vld [vmem:[#allocation66_spill] sm:$0xff]  ;;  %v7137_v5 = vpop.f32.mrb[53].mxu0 }
 0x3af   : > { %v7248_v46 = vadd.f32 %v18612_v42, %v7208_v59  ;;  %v7251_v54 = vadd.f32 %v18612_v42, %v7211_v49  ;;  %v8553_v17 = vsel %vm7682_vm6, %v8551_v37, %v8552_v43  ;;  %v8433_v57 = vsel %vm1598_vm0, %v8431_v14, %v8432_v61  ;;  %v13434_v37 = vpop.f32.mrb[52].mxu1  ;;  %v20540_v61 = vld [vmem:[#allocation47_spill] sm:$0xff]  ;;  %v14259_v49 = vpop.f32.mrb[54].mxu0 }
 0x3b0   : > { %v7249_v44 = vadd.f32 %v18612_v42, %v7209_v39  ;;  %v8288_v10 = vrot.slane %v8215_v22, 3  ;;  %v8557_v59 = vrot.slane %v8490_v28, 5  ;;  %v8558_v4 = vrot.slane %v8491_v40, 5  ;;  %v13435_v39 = vpop.f32.mrb[53].mxu1  ;;  %v7140_v40 = vpop.f32.mrb[55].mxu0 }
 0x3b1   : > { %v7282_v55 = vmax.f32 %v7250_v35, 0.0  ;;  %v7283_v32 = vmax.f32 %v7251_v54, 0.0  ;;  %v7146_v7 = vadd.f32 %v14258_v8, %v20539_v51  ;;  %v8556_v62 = vsel %vm7682_vm6, %v8554_v9, %v8555_v33  ;;  %v20542_v35 = vld [vmem:[#allocation21_spill] sm:$0xff]  ;;  %v13437_v8 = vpop.f32.mrb[54].mxu1 }
 0x3b2   : > { %v7280_v43 = vmax.f32 %v7248_v46, 0.0  ;;  %v7281_v14 = vmax.f32 %v7249_v44, 0.0  ;;  %v7138_v24 = vadd.f32 %v7137_v5, %v20540_v61  ;;  %v8434_v34 = vrot.slane %v8360_v58, 4  ;;  %v20544_v46 = vld [vmem:[#allocation48_spill] sm:$0xff]  ;;  %v8492_v5 = vld [vmem:[#allocation2 + $0x5d0] sm:$0xe0] }
 0x3b3   : > { %v18837_v20 = vpack.c.bf16 %v7283_v32, %v7282_v55  ;;  %v7214_v22 = vmul.f32 %v18600_v50, %v7146_v7  ;;  %v7149_v28 = vadd.f32 %v14259_v49, %v20542_v35  ;;  %v18841_v54 = vadd.f32 %v13435_v39, %v13434_v37  ;;  %v13438_v58 = vpop.f32.mrb[55].mxu1  ;;  %v8493_v7 = vld [vmem:[#allocation2 + $0x5d8] sm:$0x1f]  ;;  %v18849_v61 = vld [vmem:[#allocation2 + $0x680] sm:$0xf8]  ;;  %14285 = vmatmul.mubr.bf16.vlgmr.msra.gmra.mrb[160].mxu1 %v8553_v17 }
 0x3b4   : > { %v18843_v9 = vpack.c.bf16 %v7281_v14, %v7280_v43  ;;  %v7212_v33 = vmul.f32 %v18600_v50, %v7138_v24  ;;  %v7141_v44 = vadd.f32 %v7140_v40, %v20544_v46  ;;  %v8435_v51 = vrot.slane %v8361_v6, 4  ;;  %9929 = vmatmul.mubr.bf16.gmra.mrb[160].mxu0 %v8286_v38  ;;  %v8217_v37 = vld [vmem:[#allocation2 + $0x688] sm:$0x7]  ;;  %14288 = vmatprep.mubr.bf16.mxu1 %v8556_v62 }
 0x3b5   : > { %20541 = vst [vmem:[#allocation22_spill] sm:$0xff] %v18837_v20  ;;  %v7254_v55 = vadd.f32 %v18612_v42, %v7214_v22  ;;  %v7215_v32 = vmul.f32 %v18600_v50, %v7149_v28  ;;  %v18851_v49 = vadd.f32 %v13438_v58, %v13437_v8  ;;  %9936 = vmatprep.mubr.bf16.mxu0 %v8433_v57  ;;  %v8560_v38 = vrot.slane %v8492_v5, 5  ;;  %v8494_v22 = vld [vmem:[#allocation2 + $0x5f0] sm:$0xe0]  ;;  %v14262_v28 = vpop.f32.mrb[56].mxu0 }
 0x3b6   : > { %20543 = vst [vmem:[#allocation24_spill] sm:$0xff] %v18843_v9  ;;  %v7252_v43 = vadd.f32 %v18612_v42, %v7212_v33  ;;  %v7213_v14 = vmul.f32 %v18600_v50, %v7141_v44  ;;  %v8289_v24 = vsel %vm7393_vm5, %v8287_v19, %v8288_v10  ;;  %v8559_v39 = vsel %vm7682_vm6, %v8557_v59, %v8558_v4  ;;  %v7153_v57 = vpop.f32.mrb[57].mxu0  ;;  %v8495_v58 = vld [vmem:[#allocation2 + $0x5f8] sm:$0x1f]  ;;  %v13440_v19 = vpop.f32.mrb[56].mxu1  ;;  %v20545_v4 = vld [vmem:[#allocation57_spill] sm:$0xff] }
 0x3b7   : > { %v7255_v6 = vadd.f32 %v18612_v42, %v7215_v32  ;;  %v8561_v40 = vrot.slane %v8493_v7, 5  ;;  %v8290_v8 = vrot.slane %v18849_v61, 3  ;;  %v8291_v33 = vrot.slane %v8217_v37, 3  ;;  %v14263_v32 = vpop.f32.mrb[58].mxu0  ;;  %v13441_v20 = vpop.f32.mrb[57].mxu1 }
 0x3b8   : > { %v7253_v35 = vadd.f32 %v18612_v42, %v7213_v14  ;;  %v7286_v46 = vmax.f32 %v7254_v55, 0.0  ;;  %v7162_v17 = vadd.f32 %v14262_v28, %v18495_v60  ;;  %v8436_v62 = vsel %vm1598_vm0, %v8434_v34, %v8435_v51  ;;  %v7156_v37 = vpop.f32.mrb[59].mxu0  ;;  %v8362_v60 = vld [vmem:[#allocation2 + $0x6a8] sm:$0xf0]  ;;  %v13443_v34 = vpop.f32.mrb[58].mxu1 }
 0x3b9   : > { %v7287_v44 = vmax.f32 %v7255_v6, 0.0  ;;  %v7284_v10 = vmax.f32 %v7252_v43, 0.0  ;;  %v7154_v5 = vadd.f32 %v7153_v57, %v20545_v4  ;;  %v8563_v14 = vrot.slane %v8494_v22, 5  ;;  %v8363_v6 = vld [vmem:[#allocation2 + $0x6b0] sm:$0xf] }
 0x3ba   : > { %v7285_v59 = vmax.f32 %v7253_v35, 0.0  ;;  %v7218_v61 = vmul.f32 %v18600_v50, %v7162_v17  ;;  %v7165_v55 = vadd.f32 %v14263_v32, %v18509_v29  ;;  %v18867_v28 = vadd.f32 %v13441_v20, %v13440_v19  ;;  %v20548_v35 = vld [vmem:[#allocation80_spill] sm:$0xff]  ;;  %v8496_v4 = vld [vmem:[#allocation2 + $0x610] sm:$0xe0] }
 0x3bb   : > { %v18863_v7 = vpack.c.bf16 %v7287_v44, %v7286_v46  ;;  %v7216_v43 = vmul.f32 %v18600_v50, %v7154_v5  ;;  %v7157_v57 = vadd.f32 %v7156_v37, %v20548_v35  ;;  %v8562_v22 = vsel %vm7682_vm6, %v8560_v38, %v8561_v40  ;;  %v13444_v46 = vpop.f32.mrb[59].mxu1  ;;  %v8497_v32 = vld [vmem:[#allocation2 + $0x618] sm:$0x1f]  ;;  %14289 = vmatmul.mubr.bf16.gmra.mrb[164].mxu1 %v8559_v39 }
 0x3bc   : > { %v18869_v51 = vpack.c.bf16 %v7285_v59, %v7284_v10  ;;  %v7258_v44 = vadd.f32 %v18612_v42, %v7218_v61  ;;  %v7219_v17 = vmul.f32 %v18600_v50, %v7165_v55  ;;  %9937 = vmatmul.mubr.bf16.gmra.mrb[164].mxu0 %v8289_v24  ;;  %v8564_v29 = vrot.slane %v8495_v58, 5  ;;  %14292 = vmatprep.mubr.bf16.mxu1 %v8562_v22  ;;  %v14266_v61 = vpop.f32.mrb[60].mxu0 }
 0x3bd   : > { %20546 = vst [vmem:[#allocation33_spill] sm:$0xff] %v18863_v7  ;;  %v18876_v20 = vadd.f32 %v13444_v46, %v13443_v34  ;;  %v7256_v19 = vadd.f32 %v18612_v42, %v7216_v43  ;;  %v7217_v10 = vmul.f32 %v18600_v50, %v7157_v57  ;;  %9944 = vmatprep.mubr.bf16.mxu0 %v8436_v62  ;;  %v8437_v59 = vrot.slane %v8362_v60, 4  ;;  %v7169_v35 = vpop.f32.mrb[61].mxu0  ;;  %v8218_v62 = vld [vmem:[#allocation2 + $0x6a0] sm:$0xf8]  ;;  %v13446_v60 = vpop.f32.mrb[60].mxu1 }
 0x3be   : > { %20547 = vst [vmem:[#allocation69_spill] sm:$0xff] %v18869_v51  ;;  %v8438_v5 = vrot.slane %v8363_v6, 4  ;;  %v7259_v38 = vadd.f32 %v18612_v42, %v7219_v17  ;;  %v8292_v24 = vsel %vm7393_vm5, %v8290_v8, %v8291_v33  ;;  %v8566_v58 = vrot.slane %v8496_v4, 5  ;;  %v14267_v46 = vpop.f32.mrb[62].mxu0  ;;  %v13447_v8 = vpop.f32.mrb[61].mxu1 }
 0x3bf   : > { %v7257_v40 = vadd.f32 %v18612_v42, %v7217_v10  ;;  %v8567_v55 = vrot.slane %v8497_v32, 5  ;;  %v7290_v37 = vmax.f32 %v7258_v44, 0.0  ;;  %v7178_v43 = vadd.f32 %v14266_v61, %v18602_v26  ;;  %v8219_v10 = vld [vmem:[#allocation2 + $0x6a8] sm:$0x7]  ;;  %v7172_v4 = vpop.f32.mrb[63].mxu0 }
 0x3c0   : > { %v7291_v34 = vmax.f32 %v7259_v38, 0.0  ;;  %v8565_v39 = vsel %vm7682_vm6, %v8563_v14, %v8564_v29  ;;  %v7288_v6 = vmax.f32 %v7256_v19, 0.0  ;;  %v7170_v22 = vadd.f32 %v7169_v35, %v18539_v48  ;;  %v8498_v32 = vld [vmem:[#allocation2 + $0x630] sm:$0xe0]  ;;  %v8499_v14 = vld [vmem:[#allocation2 + $0x638] sm:$0x1f] }
 0x3c1   : > { %v7289_v57 = vmax.f32 %v7257_v40, 0.0  ;;  %v8439_v17 = vsel %vm1598_vm0, %v8437_v59, %v8438_v5  ;;  %v7222_v44 = vmul.f32 %v18600_v50, %v7178_v43  ;;  %v7181_v26 = vadd.f32 %v14267_v46, %v18615_v27  ;;  %v13449_v19 = vpop.f32.mrb[62].mxu1  ;;  %v8364_v40 = vld [vmem:[#allocation2 + $0x6c8] sm:$0xf0]  ;;  %v8365_v61 = vld [vmem:[#allocation2 + $0x6d0] sm:$0xf] }
 0x3c2   : > { %v18887_v33 = vpack.c.bf16 %v7291_v34, %v7290_v37  ;;  %v18891_v29 = vadd.f32 %v13447_v8, %v13446_v60  ;;  %v7220_v48 = vmul.f32 %v18600_v50, %v7170_v22  ;;  %v7173_v59 = vadd.f32 %v7172_v4, %v18554_v41  ;;  %v13450_v37 = vpop.f32.mrb[63].mxu1  ;;  %v8500_v35 = vld [vmem:[#allocation2 + $0x650] sm:$0xe0]  ;;  %v8501_v60 = vld [vmem:[#allocation2 + $0x658] sm:$0x1f] }
 0x3c3   : > { %v18893_v38 = vpack.c.bf16 %v7289_v57, %v7288_v6  ;;  %v8568_v5 = vsel %vm7682_vm6, %v8566_v58, %v8567_v55  ;;  %v7262_v34 = vadd.f32 %v18612_v42, %v7222_v44  ;;  %v7223_v27 = vmul.f32 %v18600_v50, %v7181_v26  ;;  %14293 = vmatmul.mubr.bf16.gmra.mrb[168].mxu1 %v8565_v39  ;;  %v8513_v7 = vld [vmem:[#allocation2 + $0x718] sm:$0x1f] }
 0x3c4   : > { %20549 = vst [vmem:[#allocation85_spill] sm:$0xff] %v18887_v33  ;;  %9945 = vmatmul.mubr.bf16.gmra.mrb[168].mxu0 %v8292_v24  ;;  %v8293_v43 = vrot.slane %v8218_v62, 3  ;;  %v18900_v46 = vadd.f32 %v13450_v37, %v13449_v19  ;;  %v7260_v6 = vadd.f32 %v18612_v42, %v7220_v48  ;;  %v7221_v57 = vmul.f32 %v18600_v50, %v7173_v59  ;;  %v13516_v62 = vpop.f32.mrb[64].mxu0  ;;  %v8220_v33 = vld [vmem:[#allocation2 + $0x6c0] sm:$0xf8]  ;;  %v13452_v50 = vpop.f32.mrb[64].mxu1 }
 0x3c5   : > { %20550 = vst [vmem:[#allocation35_spill] sm:$0xff] %v18893_v38  ;;  %9952 = vmatprep.mubr.bf16.mxu0 %v8439_v17  ;;  %v8294_v41 = vrot.slane %v8219_v10, 3  ;;  %v8569_v58 = vrot.slane %v8498_v32, 5  ;;  %v7263_v55 = vadd.f32 %v18612_v42, %v7223_v27  ;;  %14296 = vmatprep.mubr.bf16.mxu1 %v8568_v5  ;;  %v8570_v22 = vrot.slane %v8499_v14, 5  ;;  %v13517_v48 = vpop.f32.mrb[65].mxu0  ;;  %v13453_v14 = vpop.f32.mrb[65].mxu1 }
 0x3c6   : > { %v8440_v8 = vrot.slane %v8364_v40, 4  ;;  %v8441_v44 = vrot.slane %v8365_v61, 4  ;;  %v7261_v24 = vadd.f32 %v18612_v42, %v7221_v57  ;;  %v8572_v26 = vrot.slane %v8500_v35, 5  ;;  %v13519_v32 = vpop.f32.mrb[66].mxu0  ;;  %v8221_v5 = vld [vmem:[#allocation2 + $0x6c8] sm:$0x7] }
 0x3c7   : > { %v8573_v4 = vrot.slane %v8501_v60, 5  ;;  %v7294_v19 = vmax.f32 %v7262_v34, 0.0  ;;  %v7295_v37 = vmax.f32 %v7263_v55, 0.0  ;;  %v7292_v39 = vmax.f32 %v7260_v6, 0.0  ;;  %v13520_v61 = vpop.f32.mrb[67].mxu0  ;;  %v13455_v57 = vpop.f32.mrb[66].mxu1 }
 0x3c8   : > { %v7293_v17 = vmax.f32 %v7261_v24, 0.0  ;;  %v13518_v10 = vadd.f32 %v13517_v48, %v13516_v62  ;;  %v8295_v59 = vsel %vm7393_vm5, %v8293_v43, %v8294_v41  ;;  %v8571_v42 = vsel %vm7682_vm6, %v8569_v58, %v8570_v22  ;;  %v8502_v34 = vld [vmem:[#allocation2 + $0x670] sm:$0xe0]  ;;  %v8503_v35 = vld [vmem:[#allocation2 + $0x678] sm:$0x1f] }
 0x3c9   : > { %v18907_v40 = vpack.c.bf16 %v7295_v37, %v7294_v19  ;;  %v8442_v27 = vsel %vm1598_vm0, %v8440_v8, %v8441_v44  ;;  %v18911_v60 = vadd.f32 %v13453_v14, %v13452_v50  ;;  %v13521_v43 = vadd.f32 %v13520_v61, %v13519_v32  ;;  %v8366_v24 = vld [vmem:[#allocation2 + $0x6e8] sm:$0xf0]  ;;  %v8367_v62 = vld [vmem:[#allocation2 + $0x6f0] sm:$0xf]  ;;  %v13456_v19 = vpop.f32.mrb[67].mxu1 }
 0x3ca   : > { %v18913_v6 = vpack.c.bf16 %v7293_v17, %v7292_v39  ;;  %v18916_v55 = vadd.f32 %v13518_v10, %v18640_v16  ;;  %v8574_v41 = vsel %vm7682_vm6, %v8572_v26, %v8573_v4  ;;  %v8504_v58 = vld [vmem:[#allocation2 + $0x690] sm:$0xe0]  ;;  %v8505_v22 = vld [vmem:[#allocation2 + $0x698] sm:$0x1f]  ;;  %v18919_v8 = vadd.f32 %v13456_v19, %v13455_v57  ;;  %v13522_v4 = vpop.f32.mrb[68].mxu0 }
 0x3cb   : > { %20551 = vst [vmem:[#allocation62_spill] sm:$0xff] %v18907_v40  ;;  %v18922_v44 = vadd.f32 %v13521_v43, %v18653_v23  ;;  %14297 = vmatmul.mubr.bf16.gmra.mrb[172].mxu1 %v8571_v42  ;;  %v8296_v37 = vrot.slane %v8220_v33, 3  ;;  %v8297_v48 = vrot.slane %v8221_v5, 3  ;;  %v8575_v16 = vrot.slane %v8502_v34, 5  ;;  %v13523_v32 = vpop.f32.mrb[69].mxu0 }
 0x3cc   : > { %20552 = vst [vmem:[#allocation51_spill] sm:$0xff] %v18913_v6  ;;  %9953 = vmatmul.mubr.bf16.gmra.mrb[172].mxu0 %v8295_v59  ;;  %14300 = vmatprep.mubr.bf16.mxu1 %v8574_v41  ;;  %v8576_v50 = vrot.slane %v8503_v35, 5  ;;  %v8443_v39 = vrot.slane %v8366_v24, 4  ;;  %v8444_v26 = vrot.slane %v8367_v62, 4  ;;  %v8578_v17 = vrot.slane %v8504_v58, 5  ;;  %v13458_v59 = vpop.f32.mrb[68].mxu1 }
 0x3cd   : > { %9960 = vmatprep.mubr.bf16.mxu0 %v8442_v27  ;;  %v8579_v10 = vrot.slane %v8505_v22, 5  ;;  %v13524_v14 = vadd.f32 %v13523_v32, %v13522_v4  ;;  %v13525_v61 = vpop.f32.mrb[70].mxu0  ;;  %v8298_v57 = vsel %vm7393_vm5, %v8296_v37, %v8297_v48  ;;  %v8222_v23 = vld [vmem:[#allocation2 + $0x6e0] sm:$0xf8]  ;;  %v8223_v43 = vld [vmem:[#allocation2 + $0x6e8] sm:$0x7] }
 0x3ce   : > { %v13459_v42 = vpop.f32.mrb[69].mxu1  ;;  %v13526_v27 = vpop.f32.mrb[71].mxu0  ;;  %v8577_v33 = vsel %vm7682_vm6, %v8575_v16, %v8576_v50  ;;  %v8445_v5 = vsel %vm1598_vm0, %v8443_v39, %v8444_v26  ;;  %v8506_v34 = vld [vmem:[#allocation2 + $0x6b0] sm:$0xe0]  ;;  %v8507_v35 = vld [vmem:[#allocation2 + $0x6b8] sm:$0x1f] }
 0x3cf   : > { %v18927_v41 = vadd.f32 %v13459_v42, %v13458_v59  ;;  %v13461_v24 = vpop.f32.mrb[70].mxu1  ;;  %v18930_v62 = vadd.f32 %v13524_v14, %v18701_v53  ;;  %v13527_v19 = vadd.f32 %v13526_v27, %v13525_v61  ;;  %v8580_v58 = vsel %vm7682_vm6, %v8578_v17, %v8579_v10  ;;  %v8368_v22 = vld [vmem:[#allocation2 + $0x708] sm:$0xf0]  ;;  %v8369_v37 = vld [vmem:[#allocation2 + $0x710] sm:$0xf]  ;;  %v13528_v10 = vpop.f32.mrb[72].mxu0 }
 0x3d0   : > { %v13462_v48 = vpop.f32.mrb[71].mxu1  ;;  %v8508_v4 = vld [vmem:[#allocation2 + $0x6d0] sm:$0xe0]  ;;  %v8509_v32 = vld [vmem:[#allocation2 + $0x6d8] sm:$0x1f]  ;;  %v8299_v39 = vrot.slane %v8222_v23, 3 }
 0x3d1   : > { %v18933_v16 = vadd.f32 %v13462_v48, %v13461_v24  ;;  %v18936_v50 = vadd.f32 %v13527_v19, %v18724_v31  ;;  %v8300_v26 = vrot.slane %v8223_v43, 3  ;;  %v8581_v53 = vrot.slane %v8506_v34, 5  ;;  %v13464_v27 = vpop.f32.mrb[72].mxu1  ;;  %v8224_v31 = vld [vmem:[#allocation2 + $0x700] sm:$0xf8] }
 0x3d2   : > { %v8582_v59 = vrot.slane %v8507_v35, 5  ;;  %v8446_v14 = vrot.slane %v8368_v22, 4  ;;  %v8447_v17 = vrot.slane %v8369_v37, 4  ;;  %v8584_v61 = vrot.slane %v8508_v4, 5  ;;  %v8225_v19 = vld [vmem:[#allocation2 + $0x708] sm:$0x7] }
 0x3d3   : > { %14301 = vmatmul.mubr.bf16.gmra.mrb[176].mxu1 %v8577_v33  ;;  %v8585_v42 = vrot.slane %v8509_v32, 5  ;;  %v8301_v48 = vsel %vm7393_vm5, %v8299_v39, %v8300_v26  ;;  %v13465_v33 = vpop.f32.mrb[73].mxu1  ;;  %v8510_v34 = vld [vmem:[#allocation2 + $0x6f0] sm:$0xe0]  ;;  %v8511_v35 = vld [vmem:[#allocation2 + $0x6f8] sm:$0x1f] }
 0x3d4   : > { %9961 = vmatmul.mubr.bf16.gmra.mrb[176].mxu0 %v8298_v57  ;;  %14304 = vmatprep.mubr.bf16.mxu1 %v8580_v58  ;;  %v13529_v57 = vpop.f32.mrb[73].mxu0  ;;  %v8583_v23 = vsel %vm7682_vm6, %v8581_v53, %v8582_v59  ;;  %v8448_v43 = vsel %vm1598_vm0, %v8446_v14, %v8447_v17  ;;  %v18941_v58 = vadd.f32 %v13465_v33, %v13464_v27  ;;  %v13467_v22 = vpop.f32.mrb[74].mxu1  ;;  %v8370_v39 = vld [vmem:[#allocation2 + $0x728] sm:$0xf0]  ;;  %v8371_v26 = vld [vmem:[#allocation2 + $0x730] sm:$0xf] }
 0x3d5   : > { %9968 = vmatprep.mubr.bf16.mxu0 %v8445_v5  ;;  %v13530_v38 = vadd.f32 %v13529_v57, %v13528_v10  ;;  %v13531_v24 = vpop.f32.mrb[74].mxu0  ;;  %v8586_v32 = vsel %vm7682_vm6, %v8584_v61, %v8585_v42  ;;  %v13468_v10 = vpop.f32.mrb[75].mxu1  ;;  %v8512_v57 = vld [vmem:[#allocation2 + $0x710] sm:$0xe0]  ;;  %v8302_v14 = vrot.slane %v8224_v31, 3  ;;  %v8303_v17 = vrot.slane %v8225_v19, 3 }
 0x3d6   : > { %v13532_v5 = vpop.f32.mrb[75].mxu0  ;;  %v18947_v53 = vadd.f32 %v13468_v10, %v13467_v22  ;;  %v8449_v27 = vrot.slane %v8370_v39, 4  ;;  %v8450_v61 = vrot.slane %v8371_v26, 4  ;;  %v8591_v33 = vrot.slane %v8513_v7, 5  ;;  %v8226_v19 = vld [vmem:[#allocation2 + $0x720] sm:$0xf8] }
 0x3d7   : > { %v18944_v37 = vadd.f32 %v13530_v38, %v18750_v15  ;;  %v13533_v4 = vadd.f32 %v13532_v5, %v13531_v24  ;;  %v8587_v15 = vrot.slane %v8510_v34, 5  ;;  %v8588_v38 = vrot.slane %v8511_v35, 5  ;;  %v13534_v42 = vpop.f32.mrb[76].mxu0  ;;  %v13470_v5 = vpop.f32.mrb[76].mxu1  ;;  %v8514_v26 = vld [vmem:[#allocation2 + $0x730] sm:$0xe0] }
 0x3d8   : > { %v8590_v24 = vrot.slane %v8512_v57, 5  ;;  %v8304_v10 = vsel %vm7393_vm5, %v8302_v14, %v8303_v17  ;;  %v8451_v31 = vsel %vm1598_vm0, %v8449_v27, %v8450_v61  ;;  %v8515_v57 = vld [vmem:[#allocation2 + $0x738] sm:$0x1f]  ;;  %v8593_v61 = vrot.slane %v8514_v26, 5 }
 0x3d9   : > { %v18950_v59 = vadd.f32 %v13533_v4, %v18759_v18  ;;  %v13471_v18 = vpop.f32.mrb[77].mxu1 }
 0x3da   : > { %v18955_v34 = vadd.f32 %v13471_v18, %v13470_v5  ;;  %v13473_v35 = vpop.f32.mrb[78].mxu1  ;;  %v8592_v39 = vsel %vm7682_vm6, %v8590_v24, %v8591_v33 }
 0x3db   : > { %14305 = vmatmul.mubr.bf16.gmra.mrb[180].mxu1 %v8583_v23  ;;  %v8589_v23 = vsel %vm7682_vm6, %v8587_v15, %v8588_v38  ;;  %v13474_v14 = vpop.f32.mrb[79].mxu1  ;;  %v8305_v38 = vrot.slane %v8226_v19, 3 }
 0x3dc   : > { %9969 = vmatmul.mubr.bf16.gmra.mrb[180].mxu0 %v8301_v48  ;;  %14308 = vmatprep.mubr.bf16.mxu1 %v8586_v32  ;;  %v13535_v48 = vpop.f32.mrb[77].mxu0  ;;  %v18961_v17 = vadd.f32 %v13474_v14, %v13473_v35 }
 0x3dd   : > { %9976 = vmatprep.mubr.bf16.mxu0 %v8448_v43  ;;  %v13536_v51 = vadd.f32 %v13535_v48, %v13534_v42  ;;  %v13537_v22 = vpop.f32.mrb[78].mxu0  ;;  %v8227_v43 = vld [vmem:[#allocation2 + $0x728] sm:$0x7]  ;;  %v13476_v48 = vpop.f32.mrb[80].mxu1 }
 0x3de   : > { %v13538_v4 = vpop.f32.mrb[79].mxu0  ;;  %v8306_v27 = vrot.slane %v8227_v43, 3 }
 0x3df   : > { %v18958_v32 = vadd.f32 %v13536_v51, %v18783_v21  ;;  %v13539_v7 = vadd.f32 %v13538_v4, %v13537_v22  ;;  %v8594_v21 = vrot.slane %v8515_v57, 5  ;;  %v13540_v51 = vpop.f32.mrb[80].mxu0  ;;  %v13477_v22 = vpop.f32.mrb[81].mxu1 }
 0x3e0   : > { %v13541_v42 = vpop.f32.mrb[81].mxu0  ;;  %v8307_v5 = vsel %vm7393_vm5, %v8305_v38, %v8306_v27  ;;  %v13479_v4 = vpop.f32.mrb[82].mxu1 }
 0x3e1   : > { %v18964_v15 = vadd.f32 %v13539_v7, %v18796_v1  ;;  %v13542_v24 = vadd.f32 %v13541_v42, %v13540_v51  ;;  %v13543_v33 = vpop.f32.mrb[82].mxu0  ;;  %v8595_v18 = vsel %vm7682_vm6, %v8593_v61, %v8594_v21  ;;  %v18968_v1 = vadd.f32 %v13477_v22, %v13476_v48  ;;  %v13480_v19 = vpop.f32.mrb[83].mxu1 }
 0x3e2   : > { %v18973_v43 = vadd.f32 %v13480_v19, %v13479_v4  ;;  %v14762_v7 = vmov 1065369472  }
 0x3e3   : > { %14309 = vmatmul.mubr.bf16.gmra.mrb[184].mxu1 %v8589_v23  ;;  %v18971_v23 = vadd.f32 %v13542_v24, %v18813_v63 }
 0x3e4   : > { %9977 = vmatmul.mubr.bf16.gmra.mrb[184].mxu0 %v8304_v10  ;;  %14312 = vmatprep.mubr.bf16.mxu1 %v8592_v39  ;;  %v13544_v10 = vpop.f32.mrb[83].mxu0  ;;  %v13482_v57 = vpop.f32.mrb[84].mxu1 }
 0x3e5   : > { %9984 = vmatprep.mubr.bf16.mxu0 %v8451_v31  ;;  %v13545_v31 = vadd.f32 %v13544_v10, %v13543_v33  ;;  %v13546_v39 = vpop.f32.mrb[84].mxu0  ;;  %v13483_v27 = vpop.f32.mrb[85].mxu1 }
 0x3e6   : > { %v13547_v26 = vpop.f32.mrb[85].mxu0  ;;  %v18978_v63 = vadd.f32 %v13483_v27, %v13482_v57  ;;  %v13485_v21 = vpop.f32.mrb[86].mxu1 }
 0x3e7   : > { %v18976_v35 = vadd.f32 %v13545_v31, %v18823_v0  ;;  %v13548_v14 = vadd.f32 %v13547_v26, %v13546_v39  ;;  %v13549_v38 = vpop.f32.mrb[86].mxu0  ;;  %v13486_v48 = vpop.f32.mrb[87].mxu1 }
 0x3e8   : > { %v13550_v61 = vpop.f32.mrb[87].mxu0  ;;  %v18983_v0 = vadd.f32 %v13486_v48, %v13485_v21 }
 0x3e9   : > { %v18981_v51 = vadd.f32 %v13548_v14, %v18841_v54  ;;  %v13551_v42 = vadd.f32 %v13550_v61, %v13549_v38 }
 0x3ea   : > { %v13552_v33 = vpop.f32.mrb[88].mxu0 }
 0x3eb   : > { %14313 = vmatmul.mubr.bf16.gmra.mrb[188].mxu1 %v8595_v18  ;;  %v18986_v24 = vadd.f32 %v13551_v42, %v18851_v49 }
 0x3ec   : > { %9985 = vmatmul.mubr.bf16.gmra.mrb[188].mxu0 %v8307_v5  ;;  %v13553_v5 = vpop.f32.mrb[89].mxu0  ;;  %v13488_v22 = vpop.f32.mrb[88].mxu1 }
 0x3ed   : > { %10330 = vmatprep.mubr.bf16.mxu0 %v14762_v7  ;;  %v13554_v10 = vadd.f32 %v13553_v5, %v13552_v33  ;;  %v13555_v18 = vpop.f32.mrb[90].mxu0  ;;  %v13489_v4 = vpop.f32.mrb[89].mxu1 }
 0x3ee   : > { %v13556_v31 = vpop.f32.mrb[91].mxu0  ;;  %v18988_v19 = vadd.f32 %v13489_v4, %v13488_v22  ;;  %v13491_v39 = vpop.f32.mrb[90].mxu1 }
 0x3ef   : > { %v18991_v54 = vadd.f32 %v13554_v10, %v18867_v28  ;;  %v13557_v26 = vadd.f32 %v13556_v31, %v13555_v18 }
 0x3f1   : > { %v18996_v49 = vadd.f32 %v13557_v26, %v18876_v20 }
 0x3f2   : > { %v13558_v14 = vpop.f32.mrb[92].mxu0 }
 0x3f3   : > { %v13559_v38 = vpop.f32.mrb[93].mxu0 }
 0x3f4   : > { %10331 = vmatmul.mubr.bf16.vlgmr.msra.gmra.mrb[192].mxu0 %v14762_v7  ;;  %v13492_v7 = vpop.f32.mrb[91].mxu1  ;;  %v13560_v61 = vadd.f32 %v13559_v38, %v13558_v14  ;;  %v13561_v21 = vpop.f32.mrb[94].mxu0 }
 0x3f5   : > { %v18993_v57 = vadd.f32 %v13492_v7, %v13491_v39  ;;  %v13494_v27 = vpop.f32.mrb[92].mxu1  ;;  %v13562_v48 = vpop.f32.mrb[95].mxu0 }
 0x3f6   : > { %v13495_v42 = vpop.f32.mrb[93].mxu1  ;;  %v19001_v28 = vadd.f32 %v13560_v61, %v18891_v29  ;;  %v13563_v22 = vadd.f32 %v13562_v48, %v13561_v21 }
 0x3f7   : > { %v18998_v33 = vadd.f32 %v13495_v42, %v13494_v27  ;;  %v13497_v5 = vpop.f32.mrb[94].mxu1 }
 0x3f8   : > { %v13498_v10 = vpop.f32.mrb[95].mxu1  ;;  %v19006_v20 = vadd.f32 %v13563_v22, %v18900_v46 }
 0x3f9   : > { %v19003_v18 = vadd.f32 %v13498_v10, %v13497_v5 }
 0x3fa   : > { %v13564_v4 = vpop.f32.mrb[96].mxu0 }
 0x3fb   : > { %v13565_v39 = vpop.f32.mrb[97].mxu0 }
 0x3fc   : > { %v13628_v31 = vpop.f32.mrb[96].mxu1  ;;  %v13566_v26 = vadd.f32 %v13565_v39, %v13564_v4  ;;  %v13567_v14 = vpop.f32.mrb[98].mxu0 }
 0x3fd   : > { %v13629_v7 = vpop.f32.mrb[97].mxu1  ;;  %v13568_v42 = vpop.f32.mrb[99].mxu0 }
 0x3fe   : > { %v13630_v38 = vadd.f32 %v13629_v7, %v13628_v31  ;;  %v13631_v27 = vpop.f32.mrb[98].mxu1  ;;  %v19009_v9 = vadd.f32 %v13566_v26, %v18911_v60  ;;  %v13569_v29 = vadd.f32 %v13568_v42, %v13567_v14 }
 0x3ff   : > { %v13632_v61 = vpop.f32.mrb[99].mxu1 }
 0x400   : > { %v19012_v21 = vadd.f32 %v13630_v38, %v18916_v55  ;;  %v13633_v48 = vadd.f32 %v13632_v61, %v13631_v27  ;;  %v19015_v46 = vadd.f32 %v13569_v29, %v18919_v8 }
 0x402   : > { %v19018_v5 = vadd.f32 %v13633_v48, %v18922_v44  ;;  %v13570_v22 = vpop.f32.mrb[100].mxu0 }
 0x403   : > { %v13571_v4 = vpop.f32.mrb[101].mxu0 }
 0x404   : > { %v13634_v10 = vpop.f32.mrb[100].mxu1  ;;  %v13572_v31 = vadd.f32 %v13571_v4, %v13570_v22  ;;  %v13573_v7 = vpop.f32.mrb[102].mxu0 }
 0x405   : > { %v13635_v39 = vpop.f32.mrb[101].mxu1  ;;  %v13574_v14 = vpop.f32.mrb[103].mxu0 }
 0x406   : > { %v13636_v60 = vadd.f32 %v13635_v39, %v13634_v10  ;;  %v13637_v26 = vpop.f32.mrb[102].mxu1  ;;  %v19021_v42 = vadd.f32 %v13572_v31, %v18927_v41  ;;  %v13575_v55 = vadd.f32 %v13574_v14, %v13573_v7  ;;  %v20030_v10 = vmov 0.0   ;;  %v14672_v41 = vld [vmem:[%s19995_s3] sm:$0xff]  }
 0x407   : > { %v13638_v38 = vpop.f32.mrb[103].mxu1  ;;  %14316 = vmatprep.subr.bf16.mxu1 %v20030_v10  ;;  %14336 = vmatprep.subr.bf16.mxu0 %v20030_v10 }
 0x408   : > { %v19024_v8 = vadd.f32 %v13636_v60, %v18930_v62  ;;  %v13639_v27 = vadd.f32 %v13638_v38, %v13637_v26  ;;  %v19027_v44 = vadd.f32 %v13575_v55, %v18933_v16  ;;  %14317 = vmatpush3.bf16.msra.mxu1 %v14672_v41  ;;  %14332 = vmatprep.mubr.msk.bf16.mxu1 %vm14764_vm7, %v20030_v10 }
 0x409   : > { %14318 = vmatprep.subr.bf16.mxu1 %v20030_v10  ;;  %14352 = vmatprep.mubr.msk.bf16.mxu0 %vm14764_vm7, %v20030_v10 }
 0x40a   : > { %v19030_v29 = vadd.f32 %v13639_v27, %v18936_v50  ;;  %v13576_v61 = vpop.f32.mrb[104].mxu0 }
 0x40b   : > { %v13577_v22 = vpop.f32.mrb[105].mxu0 }
 0x40c   : > { %v13640_v48 = vpop.f32.mrb[104].mxu1  ;;  %v13578_v62 = vadd.f32 %v13577_v22, %v13576_v61  ;;  %v13579_v31 = vpop.f32.mrb[106].mxu0 }
 0x40d   : > { %v13641_v4 = vpop.f32.mrb[105].mxu1  ;;  %v13580_v7 = vpop.f32.mrb[107].mxu0 }
 0x40e   : > { %v13642_v16 = vadd.f32 %v13641_v4, %v13640_v48  ;;  %v13643_v39 = vpop.f32.mrb[106].mxu1  ;;  %v19038_v50 = vadd.f32 %v13578_v62, %v18941_v58  ;;  %v13581_v60 = vadd.f32 %v13580_v7, %v13579_v31  ;;  %v14673_v58 = vld [vmem:[%s19995_s3 + $0x8] sm:$0xff]  }
 0x40f   : > { %v13644_v26 = vpop.f32.mrb[107].mxu1  ;;  %14319 = vmatpush3.bf16.msra.mxu1 %v14673_v58 }
 0x410   : > { %v19042_v14 = vadd.f32 %v13642_v16, %v18944_v37  ;;  %v13645_v55 = vadd.f32 %v13644_v26, %v13643_v39  ;;  %v19045_v38 = vadd.f32 %v13581_v60, %v18947_v53  ;;  %14320 = vmatprep.subr.bf16.mxu1 %v20030_v10 }
 0x412   : > { %v19048_v27 = vadd.f32 %v13645_v55, %v18950_v59 }
 0x414   : > { %v13582_v61 = vpop.f32.mrb[108].mxu0 }
 0x415   : > { %v13646_v48 = vpop.f32.mrb[108].mxu1  ;;  %v13583_v22 = vpop.f32.mrb[109].mxu0 }
 0x416   : > { %v13584_v41 = vadd.f32 %v13583_v22, %v13582_v61  ;;  %v13647_v62 = vpop.f32.mrb[109].mxu1  ;;  %v13585_v4 = vpop.f32.mrb[110].mxu0 }
 0x417   : > { %v13648_v31 = vadd.f32 %v13647_v62, %v13646_v48  ;;  %v13649_v37 = vpop.f32.mrb[110].mxu1  ;;  %v13586_v16 = vpop.f32.mrb[111].mxu0 }
 0x418   : > { %v19054_v53 = vadd.f32 %v13584_v41, %v18955_v34  ;;  %v13587_v39 = vadd.f32 %v13586_v16, %v13585_v4  ;;  %v13650_v59 = vpop.f32.mrb[111].mxu1  ;;  %v14674_v34 = vld [vmem:[%s19995_s3 + $0x10] sm:$0xff]  }
 0x419   : > { %v19058_v7 = vadd.f32 %v13648_v31, %v18958_v32  ;;  %v13651_v60 = vadd.f32 %v13650_v59, %v13649_v37  ;;  %14321 = vmatpush3.bf16.msra.mxu1 %v14674_v34 }
 0x41a   : > { %v19061_v26 = vadd.f32 %v13587_v39, %v18961_v17  ;;  %14322 = vmatprep.subr.bf16.mxu1 %v20030_v10 }
 0x41b   : > { %v19064_v55 = vadd.f32 %v13651_v60, %v18964_v15 }
 0x41d   : > { %v13588_v61 = vpop.f32.mrb[112].mxu0 }
 0x41e   : > { %v13652_v48 = vpop.f32.mrb[112].mxu1  ;;  %v13589_v22 = vpop.f32.mrb[113].mxu0 }
 0x41f   : > { %v13590_v58 = vadd.f32 %v13589_v22, %v13588_v61  ;;  %v13653_v41 = vpop.f32.mrb[113].mxu1  ;;  %v13591_v62 = vpop.f32.mrb[114].mxu0 }
 0x420   : > { %v13654_v4 = vadd.f32 %v13653_v41, %v13652_v48  ;;  %v13655_v32 = vpop.f32.mrb[114].mxu1  ;;  %v13592_v31 = vpop.f32.mrb[115].mxu0 }
 0x421   : > { %v19070_v17 = vadd.f32 %v13590_v58, %v18968_v1  ;;  %v13593_v37 = vadd.f32 %v13592_v31, %v13591_v62  ;;  %v13656_v15 = vpop.f32.mrb[115].mxu1  ;;  %v14675_v1 = vld [vmem:[%s19995_s3 + $0x18] sm:$0xff]  }
 0x422   : > { %v19074_v16 = vadd.f32 %v13654_v4, %v18971_v23  ;;  %v13657_v39 = vadd.f32 %v13656_v15, %v13655_v32  ;;  %14323 = vmatpush3.bf16.msra.mxu1 %v14675_v1 }
 0x423   : > { %v19077_v59 = vadd.f32 %v13593_v37, %v18973_v43  ;;  %14324 = vmatprep.subr.bf16.mxu1 %v20030_v10 }
 0x424   : > { %v19080_v60 = vadd.f32 %v13657_v39, %v18976_v35 }
 0x428   : > { %v13594_v61 = vpop.f32.mrb[116].mxu0 }
 0x429   : > { %v13595_v22 = vpop.f32.mrb[117].mxu0 }
 0x42a   : > { %v13658_v48 = vpop.f32.mrb[116].mxu1  ;;  %v13596_v34 = vadd.f32 %v13595_v22, %v13594_v61  ;;  %v13597_v41 = vpop.f32.mrb[118].mxu0 }
 0x42b   : > { %v13659_v58 = vpop.f32.mrb[117].mxu1  ;;  %v13598_v4 = vpop.f32.mrb[119].mxu0 }
 0x42c   : > { %v13660_v62 = vadd.f32 %v13659_v58, %v13658_v48  ;;  %v13661_v23 = vpop.f32.mrb[118].mxu1  ;;  %v19086_v43 = vadd.f32 %v13596_v34, %v18978_v63  ;;  %v13599_v32 = vadd.f32 %v13598_v4, %v13597_v41  ;;  %v14676_v63 = vld [vmem:[%s19995_s3 + $0x20] sm:$0xff]  }
 0x42d   : > { %v13662_v35 = vpop.f32.mrb[119].mxu1  ;;  %14325 = vmatpush3.bf16.msra.mxu1 %v14676_v63 }
 0x42e   : > { %v19090_v31 = vadd.f32 %v13660_v62, %v18981_v51  ;;  %v13663_v37 = vadd.f32 %v13662_v35, %v13661_v23  ;;  %v19093_v15 = vadd.f32 %v13599_v32, %v18983_v0  ;;  %14326 = vmatprep.subr.bf16.mxu1 %v20030_v10 }
 0x430   : > { %v19096_v39 = vadd.f32 %v13663_v37, %v18986_v24  ;;  %v13600_v61 = vpop.f32.mrb[120].mxu0 }
 0x431   : > { %v13601_v22 = vpop.f32.mrb[121].mxu0 }
 0x432   : > { %v13664_v48 = vpop.f32.mrb[120].mxu1  ;;  %v13602_v1 = vadd.f32 %v13601_v22, %v13600_v61  ;;  %v13603_v58 = vpop.f32.mrb[122].mxu0 }
 0x433   : > { %v13665_v34 = vpop.f32.mrb[121].mxu1  ;;  %v13604_v62 = vpop.f32.mrb[123].mxu0 }
 0x434   : > { %v13666_v41 = vadd.f32 %v13665_v34, %v13664_v48  ;;  %v13667_v51 = vpop.f32.mrb[122].mxu1  ;;  %v19102_v0 = vadd.f32 %v13602_v1, %v18988_v19  ;;  %v13605_v23 = vadd.f32 %v13604_v62, %v13603_v58  ;;  %v14677_v19 = vld [vmem:[%s19995_s3 + $0x28] sm:$0xff]  }
 0x435   : > { %v13668_v24 = vpop.f32.mrb[123].mxu1  ;;  %14327 = vmatpush3.bf16.msra.mxu1 %v14677_v19 }
 0x436   : > { %v19106_v4 = vadd.f32 %v13666_v41, %v18991_v54  ;;  %v13669_v32 = vadd.f32 %v13668_v24, %v13667_v51  ;;  %v19109_v35 = vadd.f32 %v13605_v23, %v18993_v57  ;;  %14328 = vmatprep.subr.bf16.mxu1 %v20030_v10 }
 0x438   : > { %v19112_v37 = vadd.f32 %v13669_v32, %v18996_v49  ;;  %v13606_v61 = vpop.f32.mrb[124].mxu0 }
 0x439   : > { %v13607_v22 = vpop.f32.mrb[125].mxu0 }
 0x43a   : > { %v13670_v48 = vpop.f32.mrb[124].mxu1  ;;  %v13608_v63 = vadd.f32 %v13607_v22, %v13606_v61  ;;  %v13609_v34 = vpop.f32.mrb[126].mxu0 }
 0x43b   : > { %v13671_v1 = vpop.f32.mrb[125].mxu1  ;;  %v13610_v41 = vpop.f32.mrb[127].mxu0 }
 0x43c   : > { %v13672_v58 = vadd.f32 %v13671_v1, %v13670_v48  ;;  %v13673_v54 = vpop.f32.mrb[126].mxu1  ;;  %v19118_v57 = vadd.f32 %v13608_v63, %v18998_v33  ;;  %v13611_v51 = vadd.f32 %v13610_v41, %v13609_v34  ;;  %v14678_v33 = vld [vmem:[%s19995_s3 + $0x30] sm:$0xff]   ;;  %v14679_v41 = vld [vmem:[%s19995_s3 + $0x38] sm:$0xff]  }
 0x43d   : > { %v13674_v49 = vpop.f32.mrb[127].mxu1  ;;  %14329 = vmatpush3.bf16.msra.mxu1 %v14678_v33 }
 0x43e   : > { %v19122_v62 = vadd.f32 %v13672_v58, %v19001_v28  ;;  %v13675_v23 = vadd.f32 %v13674_v49, %v13673_v54  ;;  %v19125_v24 = vadd.f32 %v13611_v51, %v19003_v18  ;;  %14330 = vmatprep.subr.bf16.mxu1 %v20030_v10 }
 0x440   : > { %v19128_v32 = vadd.f32 %v13675_v23, %v19006_v20  ;;  %v13740_v61 = vpop.f32.mrb[128].mxu0 }
 0x441   : > { %v13741_v22 = vpop.f32.mrb[129].mxu0  ;;  %14331 = vmatpush3.bf16.msra.mxu1 %v14679_v41 }
 0x442   : > { %v13742_v63 = vadd.f32 %v13741_v22, %v13740_v61  ;;  %v13743_v1 = vpop.f32.mrb[130].mxu0  ;;  %v14680_v61 = vld [vmem:[%s19996_s4 + $0x40] sm:$0xff]  }
 0x443   : > { %v13676_v48 = vpop.f32.mrb[128].mxu1  ;;  %v13744_v58 = vpop.f32.mrb[131].mxu0  ;;  %13900 = vmatprep.subr.bf16.mxu1 %v14680_v61 }
 0x444   : > { %v13677_v19 = vpop.f32.mrb[129].mxu1  ;;  %v13745_v54 = vadd.f32 %v13744_v58, %v13743_v1  ;;  %v19135_v20 = vadd.f32 %v13742_v63, %v19012_v21 }
 0x445   : > { %v13678_v28 = vadd.f32 %v13677_v19, %v13676_v48  ;;  %v13679_v34 = vpop.f32.mrb[130].mxu1 }
 0x446   : > { %v13680_v18 = vpop.f32.mrb[131].mxu1  ;;  %v19144_v23 = vadd.f32 %v13745_v54, %v19018_v5 }
 0x447   : > { %v19141_v51 = vadd.f32 %v13678_v28, %v19009_v9  ;;  %v13681_v49 = vadd.f32 %v13680_v18, %v13679_v34 }
 0x448   : > { %v13746_v21 = vpop.f32.mrb[132].mxu0 }
 0x449   : > { %v19150_v33 = vadd.f32 %v13681_v49, %v19015_v46  ;;  %v13747_v48 = vpop.f32.mrb[133].mxu0 }
 0x44a   : > { %v13748_v5 = vadd.f32 %v13747_v48, %v13746_v21  ;;  %v13749_v19 = vpop.f32.mrb[134].mxu0 }
 0x44b   : > { %v13682_v9 = vpop.f32.mrb[132].mxu1  ;;  %v13750_v28 = vpop.f32.mrb[135].mxu0 }
 0x44c   : > { %v13683_v22 = vpop.f32.mrb[133].mxu1  ;;  %v13751_v58 = vadd.f32 %v13750_v28, %v13749_v19  ;;  %v19155_v46 = vadd.f32 %v13748_v5, %v19024_v8 }
 0x44d   : > { %v13684_v63 = vadd.f32 %v13683_v22, %v13682_v9  ;;  %v13685_v1 = vpop.f32.mrb[134].mxu1 }
 0x44e   : > { %v13686_v34 = vpop.f32.mrb[135].mxu1  ;;  %v19161_v41 = vadd.f32 %v13751_v58, %v19030_v29 }
 0x44f   : > { %v19158_v18 = vadd.f32 %v13684_v63, %v19021_v42  ;;  %v13687_v54 = vadd.f32 %v13686_v34, %v13685_v1 }
 0x451   : > { %v19164_v49 = vadd.f32 %v13687_v54, %v19027_v44 }
 0x453   : > { %v13688_v21 = vpop.f32.mrb[136].mxu1 }
 0x454   : > { %v13689_v48 = vpop.f32.mrb[137].mxu1 }
 0x455   : > { %v13690_v19 = vadd.f32 %v13689_v48, %v13688_v21  ;;  %v13691_v28 = vpop.f32.mrb[138].mxu1 }
 0x456   : > { %v13692_v5 = vpop.f32.mrb[139].mxu1 }
 0x457   : > { %v13752_v61 = vpop.f32.mrb[136].mxu0  ;;  %v19170_v29 = vadd.f32 %v13690_v19, %v19038_v50  ;;  %v13693_v63 = vadd.f32 %v13692_v5, %v13691_v28 }
 0x458   : > { %v13753_v9 = vpop.f32.mrb[137].mxu0 }
 0x459   : > { %v13754_v22 = vadd.f32 %v13753_v9, %v13752_v61  ;;  %v13755_v10 = vpop.f32.mrb[138].mxu0  ;;  %v19176_v1 = vadd.f32 %v13693_v63, %v19045_v38 }
 0x45a   : > { %v13756_v8 = vpop.f32.mrb[139].mxu0 }
 0x45b   : > { %v13757_v40 = vadd.f32 %v13756_v8, %v13755_v10  ;;  %v19167_v42 = vadd.f32 %v13754_v22, %v19042_v14 }
 0x45d   : > { %v19173_v44 = vadd.f32 %v13757_v40, %v19048_v27 }
 0x45e   : > { %v13694_v58 = vpop.f32.mrb[140].mxu1 }
 0x45f   : > { %v13758_v34 = vpop.f32.mrb[140].mxu0  ;;  %v13695_v61 = vpop.f32.mrb[141].mxu1 }
 0x460   : > { %v13759_v54 = vpop.f32.mrb[141].mxu0  ;;  %v13696_v10 = vadd.f32 %v13695_v61, %v13694_v58  ;;  %v13697_v48 = vpop.f32.mrb[142].mxu1 }
 0x461   : > { %v13760_v21 = vadd.f32 %v13759_v54, %v13758_v34  ;;  %v13761_v9 = vpop.f32.mrb[142].mxu0  ;;  %v13698_v22 = vpop.f32.mrb[143].mxu1 }
 0x462   : > { %v13762_v14 = vpop.f32.mrb[143].mxu0  ;;  %v19182_v40 = vadd.f32 %v13696_v10, %v19054_v53  ;;  %v13699_v27 = vadd.f32 %v13698_v22, %v13697_v48 }
 0x463   : > { %v13763_v8 = vadd.f32 %v13762_v14, %v13761_v9  ;;  %v19179_v50 = vadd.f32 %v13760_v21, %v19058_v7 }
 0x464   : > { %v19188_v19 = vadd.f32 %v13699_v27, %v19061_v26 }
 0x465   : > { %v19185_v38 = vadd.f32 %v13763_v8, %v19064_v55 }
 0x466   : > { %v13700_v5 = vpop.f32.mrb[144].mxu1 }
 0x467   : > { %v13764_v28 = vpop.f32.mrb[144].mxu0  ;;  %v13701_v34 = vpop.f32.mrb[145].mxu1 }
 0x468   : > { %v13765_v63 = vpop.f32.mrb[145].mxu0  ;;  %v13702_v61 = vadd.f32 %v13701_v34, %v13700_v5  ;;  %v13703_v9 = vpop.f32.mrb[146].mxu1 }
 0x469   : > { %v13766_v58 = vadd.f32 %v13765_v63, %v13764_v28  ;;  %v13767_v54 = vpop.f32.mrb[146].mxu0  ;;  %v13704_v21 = vpop.f32.mrb[147].mxu1 }
 0x46a   : > { %v13768_v7 = vpop.f32.mrb[147].mxu0  ;;  %v19194_v55 = vadd.f32 %v13702_v61, %v19070_v17  ;;  %v13705_v10 = vadd.f32 %v13704_v21, %v13703_v9 }
 0x46b   : > { %v13769_v14 = vadd.f32 %v13768_v7, %v13767_v54  ;;  %v19191_v53 = vadd.f32 %v13766_v58, %v19074_v16 }
 0x46c   : > { %v19200_v48 = vadd.f32 %v13705_v10, %v19077_v59 }
 0x46d   : > { %v19197_v26 = vadd.f32 %v13769_v14, %v19080_v60 }
 0x46e   : > { %v13706_v8 = vpop.f32.mrb[148].mxu1 }
 0x46f   : > { %v13770_v22 = vpop.f32.mrb[148].mxu0  ;;  %v13707_v28 = vpop.f32.mrb[149].mxu1 }
 0x470   : > { %v13771_v27 = vpop.f32.mrb[149].mxu0  ;;  %v13708_v34 = vadd.f32 %v13707_v28, %v13706_v8  ;;  %v13709_v54 = vpop.f32.mrb[150].mxu1 }
 0x471   : > { %v13772_v5 = vadd.f32 %v13771_v27, %v13770_v22  ;;  %v13773_v63 = vpop.f32.mrb[150].mxu0  ;;  %v13710_v58 = vpop.f32.mrb[151].mxu1 }
 0x472   : > { %v13774_v16 = vpop.f32.mrb[151].mxu0  ;;  %v19206_v60 = vadd.f32 %v13708_v34, %v19086_v43  ;;  %v13711_v61 = vadd.f32 %v13710_v58, %v13709_v54 }
 0x473   : > { %v13775_v7 = vadd.f32 %v13774_v16, %v13773_v63  ;;  %v19203_v17 = vadd.f32 %v13772_v5, %v19090_v31 }
 0x474   : > { %v19212_v9 = vadd.f32 %v13711_v61, %v19093_v15 }
 0x475   : > { %v19209_v59 = vadd.f32 %v13775_v7, %v19096_v39 }
 0x476   : > { %v13712_v14 = vpop.f32.mrb[152].mxu1 }
 0x477   : > { %v13776_v21 = vpop.f32.mrb[152].mxu0  ;;  %v13713_v22 = vpop.f32.mrb[153].mxu1 }
 0x478   : > { %v13777_v10 = vpop.f32.mrb[153].mxu0  ;;  %v13714_v28 = vadd.f32 %v13713_v22, %v13712_v14  ;;  %v13715_v63 = vpop.f32.mrb[154].mxu1 }
 0x479   : > { %v13778_v8 = vadd.f32 %v13777_v10, %v13776_v21  ;;  %v13779_v27 = vpop.f32.mrb[154].mxu0  ;;  %v13716_v5 = vpop.f32.mrb[155].mxu1 }
 0x47a   : > { %v13780_v31 = vpop.f32.mrb[155].mxu0  ;;  %v19218_v39 = vadd.f32 %v13714_v28, %v19102_v0  ;;  %v13717_v34 = vadd.f32 %v13716_v5, %v13715_v63 }
 0x47b   : > { %v13781_v16 = vadd.f32 %v13780_v31, %v13779_v27  ;;  %v19215_v43 = vadd.f32 %v13778_v8, %v19106_v4 }
 0x47c   : > { %v19224_v54 = vadd.f32 %v13717_v34, %v19109_v35  ;;  %v19241_v34 = vld [vmem:[%s19998_s6 + $0x3] ss:$0 sm:$0xff] }
 0x47d   : > { %v19221_v15 = vadd.f32 %v13781_v16, %v19112_v37 }
 0x47e   : > { %v13718_v7 = vpop.f32.mrb[156].mxu1 }
 0x47f   : > { %v13782_v58 = vpop.f32.mrb[156].mxu0  ;;  %v13719_v21 = vpop.f32.mrb[157].mxu1 }
 0x480   : > { %v13783_v61 = vpop.f32.mrb[157].mxu0  ;;  %v13720_v22 = vadd.f32 %v13719_v21, %v13718_v7  ;;  %v13721_v27 = vpop.f32.mrb[158].mxu1 }
 0x481   : > { %v13784_v14 = vadd.f32 %v13783_v61, %v13782_v58  ;;  %v13785_v10 = vpop.f32.mrb[158].mxu0  ;;  %v13722_v8 = vpop.f32.mrb[159].mxu1 }
 0x482   : > { %v13786_v4 = vpop.f32.mrb[159].mxu0  ;;  %v19230_v37 = vadd.f32 %v13720_v22, %v19118_v57  ;;  %v13723_v28 = vadd.f32 %v13722_v8, %v13721_v27 }
 0x483   : > { %v13787_v31 = vadd.f32 %v13786_v4, %v13785_v10  ;;  %v19227_v0 = vadd.f32 %v13784_v14, %v19122_v62 }
 0x484   : > { %v19236_v63 = vadd.f32 %v13723_v28, %v19125_v24 }
 0x485   : > { %v19233_v35 = vadd.f32 %v13787_v31, %v19128_v32 }
 0x486   : > { %v14286_v16 = vpop.f32.mrb[160].mxu1 }
 0x487   : > { %v13788_v5 = vpop.f32.mrb[160].mxu0  ;;  %v10036_v62 = vadd.f32 %v14286_v16, %v19155_v46  ;;  %v10027_v57 = vpop.f32.mrb[161].mxu1 }
 0x488   : > { %v13789_v58 = vpop.f32.mrb[161].mxu0  ;;  %v10028_v21 = vadd.f32 %v10027_v57, %v19135_v20  ;;  %v14287_v32 = vpop.f32.mrb[162].mxu1 }
 0x489   : > { %v13790_v7 = vadd.f32 %v13789_v58, %v13788_v5  ;;  %v13791_v61 = vpop.f32.mrb[162].mxu0  ;;  %v19246_v24 = vmul.f32 %v19241_v34, %v10036_v62  ;;  %v10039_v10 = vadd.f32 %v14287_v32, %v19161_v41  ;;  %v10030_v27 = vpop.f32.mrb[163].mxu1 }
 0x48a   : > { %v13792_v14 = vpop.f32.mrb[163].mxu0  ;;  %v19253_v8 = vmul.f32 %v19241_v34, %v10028_v21  ;;  %v10031_v46 = vadd.f32 %v10030_v27, %v19144_v23 }
 0x48b   : > { %v13793_v22 = vadd.f32 %v13792_v14, %v13791_v61  ;;  %v19250_v4 = vadd.f32 %v13790_v7, %v19141_v51  ;;  %v19257_v31 = vmul.f32 %v19241_v34, %v10039_v10 }
 0x48c   : > { %v19263_v28 = vmul.f32 %v19241_v34, %v10031_v46 }
 0x48d   : > { %v19260_v20 = vadd.f32 %v13793_v22, %v19150_v33 }
 0x48e   : > { %v14290_v5 = vpop.f32.mrb[164].mxu1 }
 0x48f   : > { %v13794_v41 = vpop.f32.mrb[164].mxu0  ;;  %v10052_v51 = vadd.f32 %v14290_v5, %v19179_v50  ;;  %v10043_v62 = vpop.f32.mrb[165].mxu1 }
 0x490   : > { %v13795_v16 = vpop.f32.mrb[165].mxu0  ;;  %v10044_v57 = vadd.f32 %v10043_v62, %v19167_v42  ;;  %v14291_v23 = vpop.f32.mrb[166].mxu1 }
 0x491   : > { %v13796_v58 = vadd.f32 %v13795_v16, %v13794_v41  ;;  %v13797_v7 = vpop.f32.mrb[166].mxu0  ;;  %v19268_v21 = vmul.f32 %v19241_v34, %v10052_v51  ;;  %v10055_v33 = vadd.f32 %v14291_v23, %v19185_v38  ;;  %v10046_v14 = vpop.f32.mrb[167].mxu1 }
 0x492   : > { %v13798_v61 = vpop.f32.mrb[167].mxu0  ;;  %v19273_v22 = vmul.f32 %v19241_v34, %v10044_v57  ;;  %v10047_v50 = vadd.f32 %v10046_v14, %v19173_v44 }
 0x493   : > { %v13799_v32 = vadd.f32 %v13798_v61, %v13797_v7  ;;  %v9939_v10 = vadd.f32 %v13796_v58, %v19158_v18  ;;  %v19277_v27 = vmul.f32 %v19241_v34, %v10055_v33 }
 0x494   : > { %v19281_v46 = vmul.f32 %v19241_v34, %v10047_v50 }
 0x495   : > { %v9942_v42 = vadd.f32 %v13799_v32, %v19164_v49 }
 0x496   : > { %v14294_v5 = vpop.f32.mrb[168].mxu1 }
 0x497   : > { %v13800_v41 = vpop.f32.mrb[168].mxu0  ;;  %v10068_v16 = vadd.f32 %v14294_v5, %v19203_v17  ;;  %v10059_v18 = vpop.f32.mrb[169].mxu1 }
 0x498   : > { %v13801_v38 = vpop.f32.mrb[169].mxu0  ;;  %v10060_v62 = vadd.f32 %v10059_v18, %v19191_v53  ;;  %v14295_v7 = vpop.f32.mrb[170].mxu1 }
 0x499   : > { %v13802_v51 = vadd.f32 %v13801_v38, %v13800_v41  ;;  %v13803_v58 = vpop.f32.mrb[170].mxu0  ;;  %v19286_v57 = vmul.f32 %v19241_v34, %v10068_v16  ;;  %v10071_v49 = vadd.f32 %v14295_v7, %v19209_v59  ;;  %v10062_v61 = vpop.f32.mrb[171].mxu1 }
 0x49a   : > { %v13804_v44 = vpop.f32.mrb[171].mxu0  ;;  %v19291_v32 = vmul.f32 %v19241_v34, %v10060_v62  ;;  %v10063_v17 = vadd.f32 %v10062_v61, %v19197_v26 }
 0x49b   : > { %v13805_v23 = vadd.f32 %v13804_v44, %v13803_v58  ;;  %v9947_v33 = vadd.f32 %v13802_v51, %v19170_v29  ;;  %v19295_v14 = vmul.f32 %v19241_v34, %v10071_v49 }
 0x49c   : > { %v19299_v50 = vmul.f32 %v19241_v34, %v10063_v17 }
 0x49d   : > { %v9950_v53 = vadd.f32 %v13805_v23, %v19176_v1 }
 0x49e   : > { %v14298_v5 = vpop.f32.mrb[172].mxu1 }
 0x49f   : > { %v13806_v41 = vpop.f32.mrb[172].mxu0  ;;  %v10084_v38 = vadd.f32 %v14298_v5, %v19227_v0  ;;  %v10075_v29 = vpop.f32.mrb[173].mxu1 }
 0x4a0   : > { %v13807_v59 = vpop.f32.mrb[173].mxu0  ;;  %v10076_v18 = vadd.f32 %v10075_v29, %v19215_v43  ;;  %v14299_v58 = vpop.f32.mrb[174].mxu1 }
 0x4a1   : > { %v13808_v16 = vadd.f32 %v13807_v59, %v13806_v41  ;;  %v13809_v51 = vpop.f32.mrb[174].mxu0  ;;  %v19304_v62 = vmul.f32 %v19241_v34, %v10084_v38  ;;  %v10087_v1 = vadd.f32 %v14299_v58, %v19233_v35  ;;  %v10078_v44 = vpop.f32.mrb[175].mxu1 }
 0x4a2   : > { %v13810_v26 = vpop.f32.mrb[175].mxu0  ;;  %v19309_v23 = vmul.f32 %v19241_v34, %v10076_v18  ;;  %v10079_v0 = vadd.f32 %v10078_v44, %v19221_v15 }
 0x4a3   : > { %v13811_v7 = vadd.f32 %v13810_v26, %v13809_v51  ;;  %v9955_v49 = vadd.f32 %v13808_v16, %v19182_v40  ;;  %v19313_v61 = vmul.f32 %v19241_v34, %v10087_v1 }
 0x4a4   : > { %v19317_v17 = vmul.f32 %v19241_v34, %v10079_v0 }
 0x4a5   : > { %v9958_v43 = vadd.f32 %v13811_v7, %v19188_v19 }
 0x4a6   : > { %v14302_v5 = vpop.f32.mrb[176].mxu1 }
 0x4a7   : > { %v13812_v41 = vpop.f32.mrb[176].mxu0  ;;  %v10100_v59 = vadd.f32 %v14302_v5, %v9939_v10  ;;  %v10091_v29 = vpop.f32.mrb[177].mxu1 }
 0x4a8   : > { %v13813_v35 = vpop.f32.mrb[177].mxu0  ;;  %v10092_v16 = vadd.f32 %v10091_v29, %v19250_v4  ;;  %v14303_v51 = vpop.f32.mrb[178].mxu1 }
 0x4a9   : > { %v13814_v38 = vadd.f32 %v13813_v35, %v13812_v41  ;;  %v13815_v40 = vpop.f32.mrb[178].mxu0  ;;  %v19321_v15 = vmul.f32 %v19241_v34, %v10100_v59  ;;  %v10103_v58 = vadd.f32 %v14303_v51, %v9942_v42  ;;  %v10094_v19 = vpop.f32.mrb[179].mxu1 }
 0x4aa   : > { %v13816_v18 = vpop.f32.mrb[179].mxu0  ;;  %v19325_v7 = vmul.f32 %v19241_v34, %v10092_v16  ;;  %v10095_v10 = vadd.f32 %v10094_v19, %v19260_v20 }
 0x4ab   : > { %v13817_v26 = vadd.f32 %v13816_v18, %v13815_v40  ;;  %v9963_v1 = vadd.f32 %v13814_v38, %v19194_v55  ;;  %v19329_v44 = vmul.f32 %v19241_v34, %v10103_v58 }
 0x4ac   : > { %v19333_v0 = vmul.f32 %v19241_v34, %v10095_v10 }
 0x4ad   : > { %v9966_v4 = vadd.f32 %v13817_v26, %v19200_v48 }
 0x4ae   : > { %v14306_v5 = vpop.f32.mrb[180].mxu1 }
 0x4af   : > { %v13818_v41 = vpop.f32.mrb[180].mxu0  ;;  %v10116_v35 = vadd.f32 %v14306_v5, %v9955_v49  ;;  %v10107_v29 = vpop.f32.mrb[181].mxu1 }
 0x4b0   : > { %v13819_v42 = vpop.f32.mrb[181].mxu0  ;;  %v10108_v38 = vadd.f32 %v10107_v29, %v9947_v33  ;;  %v14307_v40 = vpop.f32.mrb[182].mxu1 }
 0x4b1   : > { %v13820_v59 = vadd.f32 %v13819_v42, %v13818_v41  ;;  %v13821_v55 = vpop.f32.mrb[182].mxu0  ;;  %v19336_v20 = vmul.f32 %v19241_v34, %v10116_v35  ;;  %v10119_v51 = vadd.f32 %v14307_v40, %v9958_v43  ;;  %v10110_v58 = vpop.f32.mrb[183].mxu1 }
 0x4b2   : > { %v13822_v16 = vpop.f32.mrb[183].mxu0  ;;  %v19340_v26 = vmul.f32 %v19241_v34, %v10108_v38  ;;  %v10111_v19 = vadd.f32 %v10110_v58, %v9950_v53 }
 0x4b3   : > { %v13823_v18 = vadd.f32 %v13822_v16, %v13821_v55  ;;  %v9971_v48 = vadd.f32 %v13820_v59, %v19206_v60  ;;  %v19343_v49 = vmul.f32 %v19241_v34, %v10119_v51 }
 0x4b4   : > { %v19347_v33 = vmul.f32 %v19241_v34, %v10111_v19 }
 0x4b5   : > { %v9974_v10 = vadd.f32 %v13823_v18, %v19212_v9 }
 0x4b6   : > { %v14310_v5 = vpop.f32.mrb[184].mxu1 }
 0x4b7   : > { %v13824_v41 = vpop.f32.mrb[184].mxu0  ;;  %v10132_v43 = vadd.f32 %v14310_v5, %v9971_v48  ;;  %v10123_v29 = vpop.f32.mrb[185].mxu1 }
 0x4b8   : > { %v13825_v42 = vpop.f32.mrb[185].mxu0  ;;  %v10124_v60 = vadd.f32 %v10123_v29, %v9963_v1  ;;  %v14311_v59 = vpop.f32.mrb[186].mxu1 }
 0x4b9   : > { %v13826_v35 = vadd.f32 %v13825_v42, %v13824_v41  ;;  %v13827_v55 = vpop.f32.mrb[186].mxu0  ;;  %v19350_v53 = vmul.f32 %v19241_v34, %v10132_v43  ;;  %v10135_v40 = vadd.f32 %v14311_v59, %v9974_v10  ;;  %v10126_v51 = vpop.f32.mrb[187].mxu1 }
 0x4ba   : > { %v13828_v38 = vpop.f32.mrb[187].mxu0  ;;  %v19354_v18 = vmul.f32 %v19241_v34, %v10124_v60  ;;  %v10127_v58 = vadd.f32 %v10126_v51, %v9966_v4 }
 0x4bb   : > { %20553 = vst [vmem:[#allocation70_spill] sm:$0xff] %v19350_v53  ;;  %v13829_v16 = vadd.f32 %v13828_v38, %v13827_v55  ;;  %v9979_v9 = vadd.f32 %v13826_v35, %v19218_v39  ;;  %v19357_v48 = vmul.f32 %v19241_v34, %v10135_v40 }
 0x4bc   : > { %20554 = vst [vmem:[#allocation26_spill] sm:$0xff] %v19354_v18  ;;  %v19361_v1 = vmul.f32 %v19241_v34, %v10127_v58 }
 0x4bd   : > { %v9982_v19 = vadd.f32 %v13829_v16, %v19224_v54 }
 0x4be   : > { %v14314_v5 = vpop.f32.mrb[188].mxu1 }
 0x4bf   : > { %v13830_v41 = vpop.f32.mrb[188].mxu0  ;;  %v10139_v43 = vpop.f32.mrb[189].mxu1 }
 0x4c0   : > { %v13831_v42 = vpop.f32.mrb[189].mxu0  ;;  %v10140_v55 = vadd.f32 %v10139_v43, %v9979_v9  ;;  %v14315_v39 = vpop.f32.mrb[190].mxu1  ;;  %v14681_v9 = vld [vmem:[%s19996_s4] sm:$0xff]  }
 0x4c1   : > { %v13832_v10 = vadd.f32 %v13831_v42, %v13830_v41  ;;  %v13833_v29 = vpop.f32.mrb[190].mxu0  ;;  %v10142_v59 = vpop.f32.mrb[191].mxu1 }
 0x4c2   : > { %v13834_v35 = vpop.f32.mrb[191].mxu0  ;;  %v10143_v38 = vadd.f32 %v10142_v59, %v9982_v19  ;;  %v20555_v19 = vld [vmem:[#allocation50_spill] sm:$0xff] }
 0x4c3   : > { %v9987_v60 = vadd.f32 %v13832_v10, %v19230_v37  ;;  %v13835_v4 = vadd.f32 %v13834_v35, %v13833_v29  ;;  %v14682_v37 = vld [vmem:[%s19996_s4 + $0x48] sm:$0xff]   ;;  %v14688_v10 = vld [vmem:[%s19996_s4 + $0x60] sm:$0xff]  }
 0x4c4   : > { %v10191_v43 = vmul.f32 %v19241_v34, %v10143_v38  ;;  %v14689_v29 = vld [vmem:[%s19996_s4 + $0x20] sm:$0xff]   ;;  %v14690_v35 = vld [vmem:[%s19996_s4 + $0x68] sm:$0xff]  }
 0x4c5   : > { %v10148_v40 = vadd.f32 %v14314_v5, %v9987_v60  ;;  %v9990_v54 = vadd.f32 %v13835_v4, %v19236_v63  ;;  %v14683_v63 = vld [vmem:[%s19996_s4 + $0x8] sm:$0xff]   ;;  %v14687_v5 = vld [vmem:[%s19996_s4 + $0x18] sm:$0xff]   ;;  %v19401_v60 = vld [vmem:[%s19999_s7 + $0x3] ss:$0 sm:$0xff] }
 0x4c6   : > { %v10231_v4 = vadd.f32 %v19401_v60, %v10191_v43  ;;  %v14691_v59 = vld [vmem:[%s19996_s4 + $0x28] sm:$0xff]  }
 0x4c7   : > { %v10151_v16 = vadd.f32 %v14315_v39, %v9990_v54  ;;  %v13876_v51 = vpop.f32.mrb[192].mxu0  ;;  %v10190_v39 = vmul.f32 %v19241_v34, %v10140_v55  ;;  %v14692_v55 = vld [vmem:[%s19996_s4 + $0x70] sm:$0xff]  }
 0x4c8   : > { %v13877_v58 = vpop.f32.mrb[193].mxu0  ;;  %v10263_v54 = vmax.f32 %v10231_v4, 0.0  ;;  %v19468_v4 = vld [vmem:[%s19996_s4 + $0xd8] sm:$0xff]  }
 0x4c9   : > { %v13878_v6 = vadd.f32 %v13877_v58, %v13876_v51  ;;  %v13879_v18 = vpop.f32.mrb[194].mxu0  ;;  %v10230_v38 = vadd.f32 %v19401_v60, %v10190_v39  ;;  %v14693_v51 = vld [vmem:[%s19996_s4 + $0x30] sm:$0xff]  }
 0x4ca   : > { %v13880_v53 = vpop.f32.mrb[195].mxu0  ;;  %v14686_v18 = vld [vmem:[%s19996_s4 + $0x58] sm:$0xff]  }
 0x4cb   : > { %v10338_v41 = vmul.f32 0.00390625, %v13878_v6  ;;  %v14684_v6 = vld [vmem:[%s19996_s4 + $0x50] sm:$0xff]   ;;  %v10262_v58 = vmax.f32 %v10230_v38, 0.0  ;;  %v14712_v38 = vld [vmem:[%s19997_s5] sm:$0xff]  }
 0x4cc   : > { %v14685_v53 = vld [vmem:[%s19996_s4 + $0x10] sm:$0xff]   ;;  %14337 = vmatpush3.bf16.msra.mxu0 %v14712_v38  ;;  %v20563_v38 = vld [vmem:[#allocation9_spill] sm:$0xff] }
 0x4cd   : > { %v10339_v42 = vpack.c.bf16 %v10338_v41, %v10338_v41  ;;  %v14694_v41 = vld [vmem:[%s19996_s4 + $0x78] sm:$0xff]  }
 0x4cf   : > { %14333 = vmatmul.mubr.bf16.vlgmr.msra.gmra.mrb[192].mxu1 %v10339_v42  ;;  %v14695_v42 = vld [vmem:[%s19996_s4 + $0x38] sm:$0xff]  }
 0x4d0   : > { %13901 = vmatpush3.bf16.msra.mxu1 %v14681_v9  ;;  %10924 = vmatprep.mubr.bf16.mxu1 %v20555_v19  ;;  %v19417_v9 = vpack.c.bf16 %v10263_v54, %v10262_v58  ;;  %v10192_v19 = vmul.f32 %v19241_v34, %v10148_v40  ;;  %v19485_v54 = vld [vmem:[%s19996_s4 + $0xe0] sm:$0xff]  }
 0x4d1   : > { %13902 = vmatprep.subr.bf16.mxu1 %v14682_v37  ;;  %v19425_v37 = vld [vmem:[%s19996_s4 + $0xc0] sm:$0xff]  }
 0x4d2   : > { %v19495_v58 = vld [vmem:[%s19996_s4 + $0xa0] sm:$0xff]  }
 0x4d4   : > { %13903 = vmatpush3.bf16.msra.mxu1 %v14683_v63  ;;  %v10193_v63 = vmul.f32 %v19241_v34, %v10151_v16  ;;  %v20557_v34 = vld [vmem:[#allocation91_spill] sm:$0xff]  ;;  %v19448_v16 = vld [vmem:[%s19996_s4 + $0x88] sm:$0xff]  }
 0x4d5   : > { %13904 = vmatprep.subr.bf16.mxu1 %v14684_v6  ;;  %v19432_v6 = vld [vmem:[%s19996_s4 + $0x80] sm:$0xff]  }
 0x4d6   : > { %v10233_v40 = vadd.f32 %v19401_v60, %v10193_v63  ;;  %v19513_v63 = vld [vmem:[%s19996_s4 + $0xa8] sm:$0xff]  }
 0x4d8   : > { %13905 = vmatpush3.bf16.msra.mxu1 %v14685_v53  ;;  %v19438_v53 = vld [vmem:[%s19996_s4 + $0xc8] sm:$0xff]  }
 0x4d9   : > { %13906 = vmatprep.subr.bf16.mxu1 %v14686_v18  ;;  %v20556_v18 = vld [vmem:[#allocation6_spill] sm:$0xff] }
 0x4dc   : > { %13907 = vmatpush3.bf16.msra.mxu1 %v14687_v5  ;;  %v10232_v5 = vadd.f32 %v19401_v60, %v10192_v19  ;;  %v20560_v19 = vld [vmem:[#allocation8_spill] sm:$0xff] }
 0x4dd   : > { %13908 = vmatprep.subr.bf16.mxu1 %v14688_v10  ;;  %v19454_v10 = vld [vmem:[%s19996_s4 + $0xd0] sm:$0xff]  }
 0x4de   : > { %v10264_v43 = vmax.f32 %v10232_v5, 0.0  ;;  %v14715_v5 = vld [vmem:[%s19997_s5 + $0x18] sm:$0xff]  }
 0x4e0   : > { %13909 = vmatpush3.bf16.msra.mxu1 %v14689_v29  ;;  %v10265_v29 = vmax.f32 %v10233_v40, 0.0  ;;  %v19535_v40 = vld [vmem:[%s19996_s4 + $0xf8] sm:$0xff]  }
 0x4e1   : > { %13910 = vmatprep.subr.bf16.mxu1 %v14690_v35  ;;  %v19462_v35 = vld [vmem:[%s19996_s4 + $0x90] sm:$0xff]  }
 0x4e2   : > { %v19456_v39 = vpack.c.bf16 %v10265_v29, %v10264_v43  ;;  %v20561_v43 = vld [vmem:[#allocation7_spill] sm:$0xff]  ;;  %v19547_v29 = vld [vmem:[%s19996_s4 + $0xb8] sm:$0xff]  }
 0x4e4   : > { %13911 = vmatpush3.bf16.msra.mxu1 %v14691_v59  ;;  %v20558_v59 = vld [vmem:[#allocation5_spill] sm:$0xff] }
 0x4e5   : > { %13912 = vmatprep.subr.bf16.mxu1 %v14692_v55  ;;  %v19479_v55 = vld [vmem:[%s19996_s4 + $0x98] sm:$0xff]  }
 0x4e8   : > { %13913 = vmatpush3.bf16.msra.mxu1 %v14693_v51  ;;  %v14713_v51 = vld [vmem:[%s19997_s5 + $0x8] sm:$0xff]  }
 0x4e9   : > { %13914 = vmatprep.subr.bf16.mxu1 %v14694_v41  ;;  %v19501_v41 = vld [vmem:[%s19996_s4 + $0xe8] sm:$0xff]  }
 0x4ec   : > { %13915 = vmatpush3.bf16.msra.mxu1 %v14695_v42  ;;  %v14714_v42 = vld [vmem:[%s19997_s5 + $0x10] sm:$0xff]  }
 0x4ed   : > { %14356 = vmatprep.subr.bf16.mxu1 %v19425_v37 }
 0x4ef   : > { %10925 = vmatmul.mubr.bf16.vlgmr.msra.gmra.mrb[196].mxu1 %v20556_v18  ;;  %v19519_v18 = vld [vmem:[%s19996_s4 + $0xf0] sm:$0xff]  }
 0x4f0   : > { %10932 = vmatprep.mubr.bf16.mxu1 %v20557_v34  ;;  %14364 = vmatpush3.bf16.msra.mxu1 %v19432_v6  ;;  %v14716_v34 = vld [vmem:[%s19997_s5 + $0x20] sm:$0xff]  }
 0x4f1   : > { %14357 = vmatprep.subr.bf16.mxu1 %v19438_v53 }
 0x4f4   : > { %14365 = vmatpush3.bf16.msra.mxu1 %v19448_v16 }
 0x4f5   : > { %14358 = vmatprep.subr.bf16.mxu1 %v19454_v10 }
 0x4f7   : > { %10933 = vmatmul.mubr.bf16.gmra.mrb[200].mxu1 %v20558_v59  ;;  %v14717_v59 = vld [vmem:[%s19997_s5 + $0x28] sm:$0xff]  }
 0x4f8   : > { %10940 = vmatprep.mubr.bf16.mxu1 %v18497_v13  ;;  %14366 = vmatpush3.bf16.msra.mxu1 %v19462_v35  ;;  %v20559_v13 = vmov 0.0  }
 0x4f9   : > { %14359 = vmatprep.subr.bf16.mxu1 %v19468_v4  ;;  %14338 = vmatprep.subr.bf16.mxu0 %v20559_v13 }
 0x4fa   : > { %14339 = vmatpush3.bf16.msra.mxu0 %v14713_v51  ;;  %v20564_v51 = vld [vmem:[#allocation12_spill] sm:$0xff] }
 0x4fb   : > { %14340 = vmatprep.subr.bf16.mxu0 %v20559_v13 }
 0x4fc   : > { %14367 = vmatpush3.bf16.msra.mxu1 %v19479_v55 }
 0x4fd   : > { %14360 = vmatprep.subr.bf16.mxu1 %v19485_v54 }
 0x4fe   : > { %14341 = vmatpush3.bf16.msra.mxu0 %v14714_v42  ;;  %v10203_v42 = vadd.f32 %v19401_v60, %v19263_v28 }
 0x4ff   : > { %10941 = vmatmul.mubr.bf16.gmra.mrb[204].mxu1 %v20560_v19  ;;  %14342 = vmatprep.subr.bf16.mxu0 %v20559_v13  ;;  %v10202_v19 = vadd.f32 %v19401_v60, %v19253_v8  ;;  %v10204_v8 = vadd.f32 %v19401_v60, %v19246_v24  ;;  %v10207_v24 = vadd.f32 %v19401_v60, %v19281_v46 }
 0x500   : > { %10948 = vmatprep.mubr.bf16.mxu1 %v18512_v25  ;;  %14368 = vmatpush3.bf16.msra.mxu1 %v19495_v58  ;;  %v19529_v25 = vld [vmem:[%s19996_s4 + $0xb0] sm:$0xff]   ;;  %v10211_v46 = vadd.f32 %v19401_v60, %v19299_v50 }
 0x501   : > { %14361 = vmatprep.subr.bf16.mxu1 %v19501_v41 }
 0x502   : > { %14343 = vmatpush3.bf16.msra.mxu0 %v14715_v5  ;;  %v20565_v5 = vld [vmem:[#allocation11_spill] sm:$0xff] }
 0x503   : > { %14344 = vmatprep.subr.bf16.mxu0 %v20559_v13 }
 0x504   : > { %14369 = vmatpush3.bf16.msra.mxu1 %v19513_v63 }
 0x505   : > { %14362 = vmatprep.subr.bf16.mxu1 %v19519_v18 }
 0x506   : > { %14345 = vmatpush3.bf16.msra.mxu0 %v14716_v34  ;;  %v10235_v34 = vmax.f32 %v10203_v42, 0.0 }
 0x507   : > { %10949 = vmatmul.mubr.bf16.gmra.mrb[208].mxu1 %v20561_v43  ;;  %14346 = vmatprep.subr.bf16.mxu0 %v20559_v13  ;;  %v10205_v43 = vadd.f32 %v19401_v60, %v19257_v31  ;;  %v10209_v31 = vadd.f32 %v19401_v60, %v19277_v27  ;;  %v10213_v27 = vadd.f32 %v19401_v60, %v19295_v14 }
 0x508   : > { %10956 = vmatprep.mubr.bf16.mxu1 %v18518_v45  ;;  %14370 = vmatpush3.bf16.msra.mxu1 %v19529_v25  ;;  %v20562_v45 = vld [vmem:[#allocation10_spill] sm:$0xff] }
 0x509   : > { %14363 = vmatprep.subr.bf16.mxu1 %v19535_v40  ;;  %v10241_v42 = vmax.f32 %v10209_v31, 0.0 }
 0x50a   : > { %14347 = vmatpush3.bf16.msra.mxu0 %v14717_v59  ;;  %v20566_v59 = vld [vmem:[#allocation14_spill] sm:$0xff] }
 0x50b   : > { %14348 = vmatprep.subr.bf16.mxu0 %v20559_v13 }
 0x50c   : > { %14371 = vmatpush3.bf16.msra.mxu1 %v19547_v29 }
 0x50f   : > { %10957 = vmatmul.mubr.bf16.gmra.mrb[212].mxu1 %v20562_v45  ;;  %v10236_v45 = vmax.f32 %v10204_v8, 0.0  ;;  %v10217_v8 = vadd.f32 %v19401_v60, %v19313_v61 }
 0x510   : > { %10964 = vmatprep.mubr.bf16.mxu1 %v18523_v47  ;;  %v14718_v47 = vld [vmem:[%s19997_s5 + $0x30] sm:$0xff]  }
 0x511   : > { %14349 = vmatpush3.bf16.msra.mxu0 %v14718_v47  ;;  %v10210_v47 = vadd.f32 %v19401_v60, %v19291_v32  ;;  %v10216_v32 = vadd.f32 %v19401_v60, %v19304_v62 }
 0x512   : > { %14350 = vmatprep.subr.bf16.mxu0 %v20559_v13  ;;  %v10208_v13 = vadd.f32 %v19401_v60, %v19268_v21 }
 0x513   : > { %v10242_v14 = vmax.f32 %v10210_v47, 0.0 }
 0x517   : > { %10965 = vmatmul.mubr.bf16.gmra.mrb[216].mxu1 %v20563_v38 }
 0x518   : > { %10972 = vmatprep.mubr.bf16.mxu1 %v18525_v3  ;;  %v10234_v3 = vmax.f32 %v10202_v19, 0.0  ;;  %v10239_v19 = vmax.f32 %v10207_v24, 0.0  ;;  %v10248_v24 = vmax.f32 %v10216_v32, 0.0 }
 0x51a   : > { %v19579_v28 = vpack.c.bf16 %v10235_v34, %v10234_v3  ;;  %v10245_v3 = vmax.f32 %v10213_v27, 0.0  ;;  %v10223_v27 = vadd.f32 %v19401_v60, %v19347_v33 }
 0x51c   : > { %v10255_v47 = vmax.f32 %v10223_v27, 0.0  ;;  %v20581_v27 = vld [vmem:[#allocation23_spill] sm:$0xff] }
 0x51f   : > { %10973 = vmatmul.mubr.bf16.gmra.mrb[220].mxu1 %v20564_v51  ;;  %v10206_v51 = vadd.f32 %v19401_v60, %v19273_v22  ;;  %v10212_v22 = vadd.f32 %v19401_v60, %v19286_v57 }
 0x520   : > { %10980 = vmatprep.mubr.bf16.mxu1 %v18529_v36  ;;  %v14719_v36 = vld [vmem:[%s19997_s5 + $0x38] sm:$0xff]  }
 0x521   : > { %14351 = vmatpush3.bf16.msra.mxu0 %v14719_v36  ;;  %v10244_v36 = vmax.f32 %v10212_v22, 0.0 }
 0x522   : > { %14012 = vmatprep.subr.bf16.mxu0 %v19425_v37  ;;  %v10238_v37 = vmax.f32 %v10206_v51, 0.0  ;;  %v10219_v51 = vadd.f32 %v19401_v60, %v19333_v0 }
 0x523   : > { %v19612_v50 = vpack.c.bf16 %v10245_v3, %v10244_v36  ;;  %v10227_v36 = vadd.f32 %v19401_v60, %v19361_v1  ;;  %v20577_v1 = vld [vmem:[#allocation19_spill] sm:$0xff] }
 0x524   : > { %v19602_v21 = vpack.c.bf16 %v10239_v19, %v10238_v37  ;;  %v10225_v37 = vadd.f32 %v19401_v60, %v19343_v49 }
 0x526   : > { %v10257_v22 = vmax.f32 %v10225_v37, 0.0 }
 0x527   : > { %10981 = vmatmul.mubr.bf16.gmra.mrb[224].mxu1 %v20565_v5  ;;  %v20567_v5 = vld [vmem:[#allocation13_spill] sm:$0xff] }
 0x528   : > { %10988 = vmatprep.mubr.bf16.mxu1 %v18541_v11  ;;  %v10237_v11 = vmax.f32 %v10205_v43, 0.0  ;;  %v10243_v43 = vmax.f32 %v10211_v46, 0.0  ;;  %v10222_v46 = vadd.f32 %v19401_v60, %v19340_v26 }
 0x52a   : > { %v19586_v38 = vpack.c.bf16 %v10237_v11, %v10236_v45  ;;  %v10215_v11 = vadd.f32 %v19401_v60, %v19317_v17  ;;  %v19616_v57 = vpack.c.bf16 %v10243_v43, %v10242_v14  ;;  %v10249_v45 = vmax.f32 %v10217_v8, 0.0  ;;  %v20572_v43 = vld [vmem:[#allocation93_spill] sm:$0xff]  ;;  %v20573_v14 = vld [vmem:[#allocation70_spill] sm:$0xff] }
 0x52b   : > { %v10254_v49 = vmax.f32 %v10222_v46, 0.0  ;;  %v10228_v26 = vadd.f32 %v19401_v60, %v20573_v14  ;;  %v20574_v8 = vld [vmem:[#allocation26_spill] sm:$0xff]  ;;  %v20583_v14 = vld [vmem:[#allocation67_spill] sm:$0xff] }
 0x52c   : > { %v10247_v31 = vmax.f32 %v10215_v11, 0.0  ;;  %v19626_v17 = vpack.c.bf16 %v10249_v45, %v10248_v24  ;;  %v10226_v11 = vadd.f32 %v19401_v60, %v20574_v8  ;;  %v20575_v45 = vld [vmem:[#allocation20_spill] sm:$0xff] }
 0x52f   : > { %10989 = vmatmul.mubr.bf16.gmra.mrb[228].mxu1 %v20566_v59  ;;  %v10214_v59 = vadd.f32 %v19401_v60, %v19309_v23  ;;  %v10220_v23 = vadd.f32 %v19401_v60, %v19321_v15 }
 0x530   : > { %10996 = vmatprep.mubr.bf16.mxu1 %v18548_v30  ;;  %v10240_v30 = vmax.f32 %v10208_v13, 0.0  ;;  %v10221_v13 = vadd.f32 %v19401_v60, %v19329_v44 }
 0x531   : > { %v10246_v61 = vmax.f32 %v10214_v59, 0.0  ;;  %v10259_v59 = vmax.f32 %v10227_v36, 0.0 }
 0x532   : > { %v19598_v34 = vpack.c.bf16 %v10241_v42, %v10240_v30  ;;  %v10218_v42 = vadd.f32 %v19401_v60, %v19325_v7  ;;  %v10253_v19 = vmax.f32 %v10221_v13, 0.0  ;;  %v10252_v30 = vmax.f32 %v10220_v23, 0.0  ;;  %v20578_v13 = vld [vmem:[#allocation51_spill] sm:$0xff] }
 0x533   : > { %v19630_v62 = vpack.c.bf16 %v10247_v31, %v10246_v61  ;;  %v10224_v7 = vadd.f32 %v19401_v60, %v19336_v20  ;;  %v19658_v20 = vpack.c.bf16 %v10255_v47, %v10254_v49  ;;  %v10260_v31 = vmax.f32 %v10228_v26, 0.0 }
 0x534   : > { %v10250_v44 = vmax.f32 %v10218_v42, 0.0  ;;  %v19640_v0 = vpack.c.bf16 %v10253_v19, %v10252_v30  ;;  %v12214_v42 = vld [vmem:[%s19999_s7 + $0x4] ss:$0 sm:$0xff] }
 0x535   : > { %v10256_v3 = vmax.f32 %v10224_v7, 0.0 }
 0x537   : > { %10997 = vmatmul.mubr.bf16.gmra.mrb[232].mxu1 %v20567_v5  ;;  %v10251_v5 = vmax.f32 %v10219_v51, 0.0  ;;  %v19654_v33 = vpack.c.bf16 %v10257_v22, %v10256_v3  ;;  %v12212_v51 = vld [vmem:[%s19998_s6 + $0x4] ss:$0 sm:$0xff] }
 0x538   : > { %11004 = vmatprep.mubr.bf16.mxu1 %v18556_v2  ;;  %v20568_v2 = vld [vmem:[#allocation16_spill] sm:$0xff] }
 0x539   : > { %v19644_v15 = vpack.c.bf16 %v10251_v5, %v10250_v44 }
 0x53f   : > { %11005 = vmatmul.mubr.bf16.gmra.mrb[236].mxu1 %v20568_v2  ;;  %v10229_v2 = vadd.f32 %v19401_v60, %v19357_v48  ;;  %v10258_v48 = vmax.f32 %v10226_v11, 0.0  ;;  %v20579_v60 = vld [vmem:[#allocation62_spill] sm:$0xff] }
 0x540   : > { %11012 = vmatprep.mubr.bf16.mxu1 %v18560_v56  ;;  %v20569_v56 = vld [vmem:[#allocation15_spill] sm:$0xff] }
 0x541   : > { %v10261_v32 = vmax.f32 %v10229_v2, 0.0  ;;  %v19668_v61 = vpack.c.bf16 %v10259_v59, %v10258_v48 }
 0x543   : > { %v19666_v24 = vpack.c.bf16 %v10261_v32, %v10260_v31 }
 0x547   : > { %11013 = vmatmul.mubr.bf16.gmra.mrb[240].mxu1 %v20569_v56  ;;  %v20576_v56 = vld [vmem:[#allocation92_spill] sm:$0xff] }
 0x548   : > { %11020 = vmatprep.mubr.bf16.mxu1 %v18570_v52  ;;  %v20570_v52 = vld [vmem:[#allocation18_spill] sm:$0xff] }
 0x54f   : > { %11021 = vmatmul.mubr.bf16.gmra.mrb[244].mxu1 %v20570_v52 }
 0x550   : > { %11028 = vmatprep.mubr.bf16.mxu1 %v18582_v12  ;;  %v20571_v12 = vld [vmem:[#allocation17_spill] sm:$0xff] }
 0x557   : > { %11029 = vmatmul.mubr.bf16.gmra.mrb[248].mxu1 %v20571_v12  ;;  %v20582_v12 = vld [vmem:[#allocation94_spill] sm:$0xff] }
 0x558   : > { %11036 = vmatprep.mubr.bf16.mxu1 %v20572_v43 }
 0x55f   : > { %11037 = vmatmul.mubr.bf16.gmra.mrb[252].mxu1 %v20575_v45  ;;  %v20584_v45 = vld [vmem:[#allocation31_spill] sm:$0xff] }
 0x560   : > { %11044 = vmatprep.mubr.bf16.mxu1 %v20576_v56 }
 0x567   : > { %11045 = vmatmul.mubr.bf16.gmra.mrb[0].mxu1 %v20577_v1 }
 0x568   : > { %11197 = vmatprep.mubr.bf16.mxu1 %v19417_v9 }
 0x56f   : > { %11198 = vmatmul.mubr.bf16.vlgmr.msra.gmra.mrb[4].mxu1 %v20578_v13 }
 0x570   : > { %11205 = vmatprep.mubr.bf16.mxu1 %v19456_v39 }
 0x577   : > { %11206 = vmatmul.mubr.bf16.gmra.mrb[8].mxu1 %v20579_v60  ;;  %v20585_v60 = vld [vmem:[#allocation68_spill] sm:$0xff] }
 0x5a2   : > { %v10438_v23 = vpop.f32.mrb[192].mxu1 }
 0x5a3   : > { %v10452_v19 = vmul.f32 %v12212_v51, %v10438_v23  ;;  %v14334_v5 = vpop.f32.mrb[193].mxu1 }
 0x5a4   : > { %v10441_v52 = vpop.f32.mrb[194].mxu1 }
 0x5a5   : > { %v10461_v30 = vadd.f32 %v12214_v42, %v10452_v19  ;;  %v14335_v9 = vpop.f32.mrb[195].mxu1  ;;  %v20586_v52 = vld [vmem:[#allocation36_spill] sm:$0xff] }
 0x5a7   : > { %v10462_v44 = vmax.f32 %v10461_v30, 0.0 }
 0x5a9   : > { %v10463_v37 = vpack.c.bf16 %v10462_v44, %v10462_v44 }
 0x5ab   : > { %14353 = vmatmul.mubr.bf16.vlgmr.msra.gmra.mrb[196].mxu0 %v10463_v37 }
 0x5ac   : > { %14013 = vmatpush3.bf16.msra.mxu0 %v19432_v6  ;;  %11085 = vmatprep.mubr.bf16.mxu0 %v19579_v28 }
 0x5ad   : > { %14014 = vmatprep.subr.bf16.mxu0 %v19438_v53 }
 0x5b0   : > { %14015 = vmatpush3.bf16.msra.mxu0 %v19448_v16 }
 0x5b1   : > { %14016 = vmatprep.subr.bf16.mxu0 %v19454_v10 }
 0x5b4   : > { %14017 = vmatpush3.bf16.msra.mxu0 %v19462_v35 }
 0x5b5   : > { %14018 = vmatprep.subr.bf16.mxu0 %v19468_v4 }
 0x5b8   : > { %14019 = vmatpush3.bf16.msra.mxu0 %v19479_v55 }
 0x5b9   : > { %14020 = vmatprep.subr.bf16.mxu0 %v19485_v54  ;;  %v20580_v54 = vld [vmem:[#allocation25_spill] sm:$0xff] }
 0x5bc   : > { %14021 = vmatpush3.bf16.msra.mxu0 %v19495_v58 }
 0x5bd   : > { %14022 = vmatprep.subr.bf16.mxu0 %v19501_v41 }
 0x5c0   : > { %14023 = vmatpush3.bf16.msra.mxu0 %v19513_v63 }
 0x5c1   : > { %14024 = vmatprep.subr.bf16.mxu0 %v19519_v18 }
 0x5c2   : > { %v13916_v6 = vpop.f32.mrb[196].mxu1 }
 0x5c3   : > { %v13917_v53 = vpop.f32.mrb[197].mxu1 }
 0x5c4   : > { %v19694_v16 = vadd.f32 %v13917_v53, %v13916_v6  ;;  %v13919_v10 = vpop.f32.mrb[198].mxu1  ;;  %14025 = vmatpush3.bf16.msra.mxu0 %v19529_v25  ;;  %v20587_v53 = vld [vmem:[#allocation34_spill] sm:$0xff] }
 0x5c5   : > { %v13920_v39 = vpop.f32.mrb[199].mxu1  ;;  %14026 = vmatprep.subr.bf16.mxu0 %v19535_v40 }
 0x5c6   : > { %v19698_v35 = vadd.f32 %v13920_v39, %v13919_v10 }
 0x5c8   : > { %14027 = vmatpush3.bf16.msra.mxu0 %v19547_v29 }
 0x5ca   : > { %v13922_v4 = vpop.f32.mrb[200].mxu1 }
 0x5cb   : > { %v13923_v55 = vpop.f32.mrb[201].mxu1  ;;  %11086 = vmatmul.mubr.bf16.vlgmr.msra.gmra.mrb[200].mxu0 %v20580_v54 }
 0x5cc   : > { %v19702_v58 = vadd.f32 %v13923_v55, %v13922_v4  ;;  %v13925_v41 = vpop.f32.mrb[202].mxu1  ;;  %11093 = vmatprep.mubr.bf16.mxu0 %v19586_v38 }
 0x5cd   : > { %v13926_v63 = vpop.f32.mrb[203].mxu1 }
 0x5ce   : > { %v19705_v18 = vadd.f32 %v13926_v63, %v13925_v41  ;;  %v20588_v41 = vld [vmem:[#allocation24_spill] sm:$0xff] }
 0x5d2   : > { %v13928_v25 = vpop.f32.mrb[204].mxu1 }
 0x5d3   : > { %v13929_v28 = vpop.f32.mrb[205].mxu1  ;;  %11094 = vmatmul.mubr.bf16.gmra.mrb[204].mxu0 %v20581_v27 }
 0x5d4   : > { %v19708_v40 = vadd.f32 %v13929_v28, %v13928_v25  ;;  %v13931_v7 = vpop.f32.mrb[206].mxu1  ;;  %11101 = vmatprep.mubr.bf16.mxu0 %v19602_v21 }
 0x5d5   : > { %v13932_v29 = vpop.f32.mrb[207].mxu1 }
 0x5d6   : > { %v19711_v46 = vadd.f32 %v13932_v29, %v13931_v7  ;;  %v20589_v29 = vld [vmem:[#allocation22_spill] sm:$0xff] }
 0x5da   : > { %v13934_v22 = vpop.f32.mrb[208].mxu1 }
 0x5db   : > { %v13935_v47 = vpop.f32.mrb[209].mxu1  ;;  %11102 = vmatmul.mubr.bf16.gmra.mrb[208].mxu0 %v20582_v12 }
 0x5dc   : > { %v19714_v38 = vadd.f32 %v13935_v47, %v13934_v22  ;;  %v13937_v3 = vpop.f32.mrb[210].mxu1  ;;  %11109 = vmatprep.mubr.bf16.mxu0 %v19598_v34 }
 0x5dd   : > { %v13938_v43 = vpop.f32.mrb[211].mxu1 }
 0x5de   : > { %v19717_v49 = vadd.f32 %v13938_v43, %v13937_v3 }
 0x5e2   : > { %v13940_v2 = vpop.f32.mrb[212].mxu1 }
 0x5e3   : > { %v13941_v36 = vpop.f32.mrb[213].mxu1  ;;  %11110 = vmatmul.mubr.bf16.gmra.mrb[212].mxu0 %v20583_v14 }
 0x5e4   : > { %v19720_v21 = vadd.f32 %v13941_v36, %v13940_v2  ;;  %v13943_v26 = vpop.f32.mrb[214].mxu1  ;;  %11117 = vmatprep.mubr.bf16.mxu0 %v19616_v57  ;;  %v20590_v2 = vld [vmem:[#allocation69_spill] sm:$0xff] }
 0x5e5   : > { %v13944_v8 = vpop.f32.mrb[215].mxu1 }
 0x5e6   : > { %v19723_v11 = vadd.f32 %v13944_v8, %v13943_v26 }
 0x5ea   : > { %v13946_v32 = vpop.f32.mrb[216].mxu1 }
 0x5eb   : > { %v13947_v59 = vpop.f32.mrb[217].mxu1  ;;  %11118 = vmatmul.mubr.bf16.gmra.mrb[216].mxu0 %v20584_v45 }
 0x5ec   : > { %v19726_v34 = vadd.f32 %v13947_v59, %v13946_v32  ;;  %v13949_v31 = vpop.f32.mrb[218].mxu1  ;;  %11125 = vmatprep.mubr.bf16.mxu0 %v19612_v50  ;;  %v20591_v59 = vld [vmem:[#allocation33_spill] sm:$0xff] }
 0x5ed   : > { %v13950_v56 = vpop.f32.mrb[219].mxu1 }
 0x5ee   : > { %v19729_v48 = vadd.f32 %v13950_v56, %v13949_v31 }
 0x5f2   : > { %v13952_v1 = vpop.f32.mrb[220].mxu1 }
 0x5f3   : > { %v13953_v13 = vpop.f32.mrb[221].mxu1  ;;  %11126 = vmatmul.mubr.bf16.gmra.mrb[220].mxu0 %v20585_v60  ;;  %v20592_v60 = vld [vmem:[#allocation35_spill] sm:$0xff] }
 0x5f4   : > { %v19732_v57 = vadd.f32 %v13953_v13, %v13952_v1  ;;  %v13955_v51 = vpop.f32.mrb[222].mxu1  ;;  %11133 = vmatprep.mubr.bf16.mxu0 %v19630_v62 }
 0x5f5   : > { %v13956_v23 = vpop.f32.mrb[223].mxu1 }
 0x5f6   : > { %v19735_v42 = vadd.f32 %v13956_v23, %v13955_v51 }
 0x5fa   : > { %v13958_v19 = vpop.f32.mrb[224].mxu1 }
 0x5fb   : > { %v13959_v5 = vpop.f32.mrb[225].mxu1  ;;  %11134 = vmatmul.mubr.bf16.gmra.mrb[224].mxu0 %v20586_v52 }
 0x5fc   : > { %v19738_v50 = vadd.f32 %v13959_v5, %v13958_v19  ;;  %v13961_v30 = vpop.f32.mrb[226].mxu1  ;;  %11141 = vmatprep.mubr.bf16.mxu0 %v19626_v17 }
 0x5fd   : > { %v13962_v9 = vpop.f32.mrb[227].mxu1 }
 0x5fe   : > { %v19741_v44 = vadd.f32 %v13962_v9, %v13961_v30  ;;  %v20593_v30 = vld [vmem:[#allocation85_spill] sm:$0xff] }
 0x602   : > { %v13964_v37 = vpop.f32.mrb[228].mxu1 }
 0x603   : > { %v13965_v6 = vpop.f32.mrb[229].mxu1  ;;  %11142 = vmatmul.mubr.bf16.gmra.mrb[228].mxu0 %v20587_v53 }
 0x604   : > { %v19744_v62 = vadd.f32 %v13965_v6, %v13964_v37  ;;  %v13967_v10 = vpop.f32.mrb[230].mxu1  ;;  %11149 = vmatprep.mubr.bf16.mxu0 %v19644_v15 }
 0x605   : > { %v13968_v39 = vpop.f32.mrb[231].mxu1 }
 0x606   : > { %v19747_v4 = vadd.f32 %v13968_v39, %v13967_v10 }
 0x60a   : > { %v13970_v55 = vpop.f32.mrb[232].mxu1 }
 0x60b   : > { %v13971_v54 = vpop.f32.mrb[233].mxu1  ;;  %11150 = vmatmul.mubr.bf16.gmra.mrb[232].mxu0 %v20588_v41 }
 0x60c   : > { %v19750_v17 = vadd.f32 %v13971_v54, %v13970_v55  ;;  %v13973_v63 = vpop.f32.mrb[234].mxu1  ;;  %11157 = vmatprep.mubr.bf16.mxu0 %v19640_v0 }
 0x60d   : > { %v13974_v25 = vpop.f32.mrb[235].mxu1 }
 0x60e   : > { %v19753_v28 = vadd.f32 %v13974_v25, %v13973_v63 }
 0x612   : > { %v13976_v27 = vpop.f32.mrb[236].mxu1 }
 0x613   : > { %v13977_v7 = vpop.f32.mrb[237].mxu1  ;;  %11158 = vmatmul.mubr.bf16.gmra.mrb[236].mxu0 %v20589_v29 }
 0x614   : > { %v19756_v15 = vadd.f32 %v13977_v7, %v13976_v27  ;;  %v13979_v22 = vpop.f32.mrb[238].mxu1  ;;  %11165 = vmatprep.mubr.bf16.mxu0 %v19658_v20 }
 0x615   : > { %v13980_v47 = vpop.f32.mrb[239].mxu1 }
 0x616   : > { %v19759_v12 = vadd.f32 %v13980_v47, %v13979_v22 }
 0x61a   : > { %v13982_v3 = vpop.f32.mrb[240].mxu1 }
 0x61b   : > { %v13983_v43 = vpop.f32.mrb[241].mxu1  ;;  %11166 = vmatmul.mubr.bf16.gmra.mrb[240].mxu0 %v20590_v2 }
 0x61c   : > { %v19762_v0 = vadd.f32 %v13983_v43, %v13982_v3  ;;  %v13985_v36 = vpop.f32.mrb[242].mxu1  ;;  %11173 = vmatprep.mubr.bf16.mxu0 %v19654_v33 }
 0x61d   : > { %v13986_v14 = vpop.f32.mrb[243].mxu1 }
 0x61e   : > { %v19765_v26 = vadd.f32 %v13986_v14, %v13985_v36  ;;  %v10696_v14 = vlaneseq }
 0x622   : > { %v13988_v8 = vpop.f32.mrb[244].mxu1 }
 0x623   : > { %v13989_v32 = vpop.f32.mrb[245].mxu1  ;;  %11174 = vmatmul.mubr.bf16.gmra.mrb[244].mxu0 %v20591_v59 }
 0x624   : > { %v19768_v20 = vadd.f32 %v13989_v32, %v13988_v8  ;;  %v13991_v45 = vpop.f32.mrb[246].mxu1  ;;  %11181 = vmatprep.mubr.bf16.mxu0 %v19668_v61  ;;  %v10697_v8 = vshrl.u32 %v10696_v14, 7 }
 0x625   : > { %v13992_v31 = vpop.f32.mrb[247].mxu1 }
 0x626   : > { %v19771_v56 = vadd.f32 %v13992_v31, %v13991_v45  ;;  %v10698_v32 = vsub.s32 0, %v10697_v8 }
 0x62a   : > { %v13994_v1 = vpop.f32.mrb[248].mxu1 }
 0x62b   : > { %v13995_v13 = vpop.f32.mrb[249].mxu1  ;;  %11182 = vmatmul.mubr.bf16.gmra.mrb[248].mxu0 %v20592_v60 }
 0x62c   : > { %v19774_v33 = vadd.f32 %v13995_v13, %v13994_v1  ;;  %v13997_v51 = vpop.f32.mrb[250].mxu1  ;;  %11189 = vmatprep.mubr.bf16.mxu0 %v19666_v24 }
 0x62d   : > { %v13998_v23 = vpop.f32.mrb[251].mxu1 }
 0x62e   : > { %v19777_v19 = vadd.f32 %v13998_v23, %v13997_v51 }
 0x632   : > { %v14000_v5 = vpop.f32.mrb[252].mxu1 }
 0x633   : > { %v14001_v52 = vpop.f32.mrb[253].mxu1  ;;  %11190 = vmatmul.mubr.bf16.gmra.mrb[252].mxu0 %v20593_v30 }
 0x634   : > { %v14002_v61 = vadd.f32 %v14001_v52, %v14000_v5  ;;  %v14003_v9 = vpop.f32.mrb[254].mxu1  ;;  %v19785_v52 = vld [vmem:[%s20000_s8] ss:$0 sm:$0xff] }
 0x635   : > { %v14004_v37 = vpop.f32.mrb[255].mxu1 }
 0x636   : > { %v14005_v6 = vadd.f32 %v14004_v37, %v14003_v9 }
 0x63a   : > { %v14006_v53 = vpop.f32.mrb[0].mxu1 }
 0x63b   : > { %v14007_v10 = vpop.f32.mrb[1].mxu1 }
 0x63c   : > { %v14008_v39 = vadd.f32 %v14007_v10, %v14006_v53  ;;  %v14009_v55 = vpop.f32.mrb[2].mxu1 }
 0x63d   : > { %v14010_v54 = vpop.f32.mrb[3].mxu1 }
 0x63e   : > { %v14011_v41 = vadd.f32 %v14010_v54, %v14009_v55 }
 0x642   : > { %v14112_v63 = vpop.f32.mrb[4].mxu1 }
 0x643   : > { %v14113_v25 = vpop.f32.mrb[5].mxu1 }
 0x644   : > { %v14114_v24 = vadd.f32 %v14113_v25, %v14112_v63  ;;  %v14115_v27 = vpop.f32.mrb[6].mxu1 }
 0x645   : > { %v14116_v7 = vpop.f32.mrb[7].mxu1 }
 0x646   : > { %v14117_v29 = vadd.f32 %v14116_v7, %v14115_v27 }
 0x64a   : > { %v14118_v22 = vpop.f32.mrb[8].mxu1 }
 0x64b   : > { %v14119_v47 = vpop.f32.mrb[9].mxu1 }
 0x64c   : > { %v14120_v3 = vadd.f32 %v14119_v47, %v14118_v22  ;;  %v14121_v43 = vpop.f32.mrb[10].mxu1 }
 0x64d   : > { %v14122_v2 = vpop.f32.mrb[11].mxu1 }
 0x64e   : > { %v14123_v36 = vadd.f32 %v14122_v2, %v14121_v43 }
 0x67e   : > { %v10562_v59 = vpop.f32.mrb[196].mxu0 }
 0x67f   : > { %v10699_v45 = vrot.slane %v10562_v59, %v10698_v32  ;;  %v14354_v31 = vpop.f32.mrb[197].mxu0 }
 0x680   : > { %v10565_v1 = vpop.f32.mrb[198].mxu0 }
 0x681   : > { %v14355_v13 = vpop.f32.mrb[199].mxu0  ;;  %v10927_v60 = vadd.f32 %v19694_v16, %v10699_v45  ;;  %v10930_v51 = vadd.f32 %v19698_v35, %v10699_v45  ;;  %v11039_v23 = vadd.f32 %v14002_v61, %v10699_v45  ;;  %v11042_v5 = vadd.f32 %v14005_v6, %v10699_v45  ;;  %v19802_v61 = vld [vmem:[%s20001_s9] ss:$0 sm:$0xff] }
 0x682   : > { %v11047_v30 = vadd.f32 %v14008_v39, %v10699_v45  ;;  %v11050_v9 = vadd.f32 %v14011_v41, %v10699_v45  ;;  %v19788_v37 = vadd.f32 %v19702_v58, %v10699_v45  ;;  %v19791_v53 = vadd.f32 %v19705_v18, %v10699_v45 }
 0x683   : > { %v11200_v10 = vadd.f32 %v14114_v24, %v11039_v23  ;;  %v11203_v55 = vadd.f32 %v14117_v29, %v11042_v5  ;;  %v19794_v16 = vadd.f32 %v19708_v40, %v10699_v45  ;;  %v19797_v35 = vadd.f32 %v19711_v46, %v10699_v45 }
 0x684   : > { %v11208_v6 = vadd.f32 %v14120_v3, %v11047_v30  ;;  %v11211_v39 = vadd.f32 %v14123_v36, %v11050_v9  ;;  %v19805_v58 = vadd.f32 %v19714_v38, %v10699_v45  ;;  %v19808_v18 = vadd.f32 %v19717_v49, %v10699_v45 }
 0x685   : > { %v11249_v54 = vmul.f32 %v19785_v52, %v11200_v10  ;;  %v11250_v40 = vmul.f32 %v19785_v52, %v11203_v55  ;;  %v19813_v46 = vadd.f32 %v19720_v21, %v10699_v45  ;;  %v19816_v41 = vadd.f32 %v19723_v11, %v10699_v45 }
 0x686   : > { %v11251_v63 = vmul.f32 %v19785_v52, %v11208_v6  ;;  %v11252_v25 = vmul.f32 %v19785_v52, %v11211_v39  ;;  %v19821_v38 = vadd.f32 %v19726_v34, %v10699_v45  ;;  %v19824_v49 = vadd.f32 %v19729_v48, %v10699_v45 }
 0x687   : > { %v11288_v24 = vadd.f32 %v19802_v61, %v11249_v54  ;;  %v11289_v27 = vadd.f32 %v19802_v61, %v11250_v40  ;;  %v19829_v21 = vadd.f32 %v19732_v57, %v10699_v45  ;;  %v19832_v11 = vadd.f32 %v19735_v42, %v10699_v45 }
 0x688   : > { %v11290_v7 = vadd.f32 %v19802_v61, %v11251_v63  ;;  %v11291_v29 = vadd.f32 %v19802_v61, %v11252_v25  ;;  %v19837_v34 = vadd.f32 %v19738_v50, %v10699_v45  ;;  %v19840_v48 = vadd.f32 %v19741_v44, %v10699_v45 }
 0x689   : > { %v11320_v22 = vmax.f32 %v11288_v24, 0.0  ;;  %v11321_v47 = vmax.f32 %v11289_v27, 0.0  ;;  %v19843_v3 = vadd.f32 %v19744_v62, %v10699_v45  ;;  %v19846_v57 = vadd.f32 %v19747_v4, %v10699_v45 }
 0x68a   : > { %v11322_v42 = vmax.f32 %v11290_v7, 0.0  ;;  %v11323_v50 = vmax.f32 %v11291_v29, 0.0  ;;  %v19856_v44 = vadd.f32 %v19750_v17, %v10699_v45  ;;  %v19859_v43 = vadd.f32 %v19753_v28, %v10699_v45 }
 0x68b   : > { %v12398_v62 = vpack.c.bf16 %v11321_v47, %v11320_v22  ;;  %v19862_v4 = vadd.f32 %v19756_v15, %v10699_v45  ;;  %v19865_v2 = vadd.f32 %v19759_v12, %v10699_v45  ;;  %v19868_v36 = vadd.f32 %v19762_v0, %v10699_v45 }
 0x68c   : > { %v12403_v14 = vpack.c.bf16 %v11323_v50, %v11322_v42  ;;  %v19871_v8 = vadd.f32 %v19765_v26, %v10699_v45  ;;  %v19874_v17 = vadd.f32 %v19768_v20, %v10699_v45  ;;  %v19877_v28 = vadd.f32 %v19771_v56, %v10699_v45 }
 0x68d   : > { %12418 = vst [vmem:[%s19853_s20 + $0x70] sm:$0xff] %v12398_v62   ;;  %v19882_v15 = vadd.f32 %v19774_v33, %v10699_v45  ;;  %v19885_v12 = vadd.f32 %v19777_v19, %v10699_v45 }
 0x68e   : > { %12419 = vst [vmem:[%s19853_s20 + $0x78] sm:$0xff] %v12403_v14  }
 0x69e   : > { %v14028_v0 = vpop.f32.mrb[200].mxu0 }
 0x69f   : > { %v14029_v32 = vpop.f32.mrb[201].mxu0 }
 0x6a0   : > { %v14030_v59 = vadd.f32 %v14029_v32, %v14028_v0  ;;  %v14031_v31 = vpop.f32.mrb[202].mxu0 }
 0x6a1   : > { %v14032_v26 = vpop.f32.mrb[203].mxu0 }
 0x6a2   : > { %v11088_v1 = vadd.f32 %v14030_v59, %v10927_v60  ;;  %v14033_v13 = vadd.f32 %v14032_v26, %v14031_v31 }
 0x6a4   : > { %v11221_v20 = vmul.f32 %v19785_v52, %v11088_v1  ;;  %v11091_v23 = vadd.f32 %v14033_v13, %v10930_v51 }
 0x6a6   : > { %v11260_v56 = vadd.f32 %v19802_v61, %v11221_v20  ;;  %v11222_v5 = vmul.f32 %v19785_v52, %v11091_v23  ;;  %v14034_v33 = vpop.f32.mrb[204].mxu0 }
 0x6a7   : > { %v14035_v30 = vpop.f32.mrb[205].mxu0 }
 0x6a8   : > { %v11261_v19 = vadd.f32 %v19802_v61, %v11222_v5  ;;  %v14036_v45 = vadd.f32 %v14035_v30, %v14034_v33  ;;  %v14037_v9 = vpop.f32.mrb[206].mxu0  ;;  %v11292_v55 = vmax.f32 %v11260_v56, 0.0 }
 0x6a9   : > { %v14038_v10 = vpop.f32.mrb[207].mxu0 }
 0x6aa   : > { %v11293_v6 = vmax.f32 %v11261_v19, 0.0  ;;  %v11096_v60 = vadd.f32 %v14036_v45, %v19788_v37  ;;  %v14039_v39 = vadd.f32 %v14038_v10, %v14037_v9 }
 0x6ac   : > { %v12328_v54 = vpack.c.bf16 %v11293_v6, %v11292_v55  ;;  %v11223_v51 = vmul.f32 %v19785_v52, %v11096_v60  ;;  %v11099_v40 = vadd.f32 %v14039_v39, %v19791_v53 }
 0x6ae   : > { %12329 = vst [vmem:[%s19853_s20] sm:$0xff] %v12328_v54   ;;  %v11262_v63 = vadd.f32 %v19802_v61, %v11223_v51  ;;  %v11224_v25 = vmul.f32 %v19785_v52, %v11099_v40  ;;  %v14040_v24 = vpop.f32.mrb[208].mxu0 }
 0x6af   : > { %v14041_v27 = vpop.f32.mrb[209].mxu0 }
 0x6b0   : > { %v11263_v7 = vadd.f32 %v19802_v61, %v11224_v25  ;;  %v14042_v29 = vadd.f32 %v14041_v27, %v14040_v24  ;;  %v14043_v22 = vpop.f32.mrb[210].mxu0  ;;  %v11294_v37 = vmax.f32 %v11262_v63, 0.0 }
 0x6b1   : > { %v14044_v47 = vpop.f32.mrb[211].mxu0 }
 0x6b2   : > { %v11295_v42 = vmax.f32 %v11263_v7, 0.0  ;;  %v11104_v50 = vadd.f32 %v14042_v29, %v19794_v16  ;;  %v14045_v62 = vadd.f32 %v14044_v47, %v14043_v22 }
 0x6b4   : > { %v12333_v14 = vpack.c.bf16 %v11295_v42, %v11294_v37  ;;  %v11225_v53 = vmul.f32 %v19785_v52, %v11104_v50  ;;  %v11107_v0 = vadd.f32 %v14045_v62, %v19797_v35 }
 0x6b6   : > { %12405 = vst [vmem:[%s19853_s20 + $0x8] sm:$0xff] %v12333_v14   ;;  %v11264_v32 = vadd.f32 %v19802_v61, %v11225_v53  ;;  %v11226_v59 = vmul.f32 %v19785_v52, %v11107_v0  ;;  %v14046_v31 = vpop.f32.mrb[212].mxu0 }
 0x6b7   : > { %v14047_v26 = vpop.f32.mrb[213].mxu0 }
 0x6b8   : > { %v11265_v1 = vadd.f32 %v19802_v61, %v11226_v59  ;;  %v14048_v13 = vadd.f32 %v14047_v26, %v14046_v31  ;;  %v14049_v20 = vpop.f32.mrb[214].mxu0  ;;  %v11296_v16 = vmax.f32 %v11264_v32, 0.0 }
 0x6b9   : > { %v14050_v23 = vpop.f32.mrb[215].mxu0 }
 0x6ba   : > { %v11297_v56 = vmax.f32 %v11265_v1, 0.0  ;;  %v11112_v5 = vadd.f32 %v14048_v13, %v19805_v58  ;;  %v14051_v33 = vadd.f32 %v14050_v23, %v14049_v20 }
 0x6bc   : > { %v12338_v30 = vpack.c.bf16 %v11297_v56, %v11296_v16  ;;  %v11227_v35 = vmul.f32 %v19785_v52, %v11112_v5  ;;  %v11115_v19 = vadd.f32 %v14051_v33, %v19808_v18 }
 0x6be   : > { %12406 = vst [vmem:[%s19853_s20 + $0x10] sm:$0xff] %v12338_v30   ;;  %v11266_v45 = vadd.f32 %v19802_v61, %v11227_v35  ;;  %v11228_v9 = vmul.f32 %v19785_v52, %v11115_v19  ;;  %v14052_v10 = vpop.f32.mrb[216].mxu0 }
 0x6bf   : > { %v14053_v55 = vpop.f32.mrb[217].mxu0 }
 0x6c0   : > { %v11267_v6 = vadd.f32 %v19802_v61, %v11228_v9  ;;  %v14054_v60 = vadd.f32 %v14053_v55, %v14052_v10  ;;  %v14055_v39 = vpop.f32.mrb[218].mxu0  ;;  %v11298_v58 = vmax.f32 %v11266_v45, 0.0 }
 0x6c1   : > { %v14056_v54 = vpop.f32.mrb[219].mxu0 }
 0x6c2   : > { %v11299_v51 = vmax.f32 %v11267_v6, 0.0  ;;  %v11120_v40 = vadd.f32 %v14054_v60, %v19813_v46  ;;  %v14057_v63 = vadd.f32 %v14056_v54, %v14055_v39 }
 0x6c4   : > { %v12343_v25 = vpack.c.bf16 %v11299_v51, %v11298_v58  ;;  %v11229_v18 = vmul.f32 %v19785_v52, %v11120_v40  ;;  %v11123_v24 = vadd.f32 %v14057_v63, %v19816_v41 }
 0x6c6   : > { %12407 = vst [vmem:[%s19853_s20 + $0x18] sm:$0xff] %v12343_v25   ;;  %v11268_v27 = vadd.f32 %v19802_v61, %v11229_v18  ;;  %v11230_v7 = vmul.f32 %v19785_v52, %v11123_v24  ;;  %v14058_v29 = vpop.f32.mrb[220].mxu0 }
 0x6c7   : > { %v14059_v22 = vpop.f32.mrb[221].mxu0 }
 0x6c8   : > { %v11269_v47 = vadd.f32 %v19802_v61, %v11230_v7  ;;  %v14060_v37 = vadd.f32 %v14059_v22, %v14058_v29  ;;  %v14061_v42 = vpop.f32.mrb[222].mxu0  ;;  %v11300_v46 = vmax.f32 %v11268_v27, 0.0 }
 0x6c9   : > { %v14062_v50 = vpop.f32.mrb[223].mxu0 }
 0x6ca   : > { %v11301_v62 = vmax.f32 %v11269_v47, 0.0  ;;  %v11128_v14 = vadd.f32 %v14060_v37, %v19821_v38  ;;  %v14063_v53 = vadd.f32 %v14062_v50, %v14061_v42 }
 0x6cc   : > { %v12348_v0 = vpack.c.bf16 %v11301_v62, %v11300_v46  ;;  %v11231_v41 = vmul.f32 %v19785_v52, %v11128_v14  ;;  %v11131_v32 = vadd.f32 %v14063_v53, %v19824_v49 }
 0x6ce   : > { %12408 = vst [vmem:[%s19853_s20 + $0x20] sm:$0xff] %v12348_v0   ;;  %v11270_v59 = vadd.f32 %v19802_v61, %v11231_v41  ;;  %v11232_v31 = vmul.f32 %v19785_v52, %v11131_v32  ;;  %v14064_v26 = vpop.f32.mrb[224].mxu0 }
 0x6cf   : > { %v14065_v1 = vpop.f32.mrb[225].mxu0 }
 0x6d0   : > { %v11271_v13 = vadd.f32 %v19802_v61, %v11232_v31  ;;  %v14066_v20 = vadd.f32 %v14065_v1, %v14064_v26  ;;  %v14067_v23 = vpop.f32.mrb[226].mxu0  ;;  %v11302_v38 = vmax.f32 %v11270_v59, 0.0 }
 0x6d1   : > { %v14068_v16 = vpop.f32.mrb[227].mxu0 }
 0x6d2   : > { %v11303_v56 = vmax.f32 %v11271_v13, 0.0  ;;  %v11136_v5 = vadd.f32 %v14066_v20, %v19829_v21  ;;  %v14069_v33 = vadd.f32 %v14068_v16, %v14067_v23 }
 0x6d4   : > { %v12353_v30 = vpack.c.bf16 %v11303_v56, %v11302_v38  ;;  %v11233_v49 = vmul.f32 %v19785_v52, %v11136_v5  ;;  %v11139_v35 = vadd.f32 %v14069_v33, %v19832_v11 }
 0x6d6   : > { %12409 = vst [vmem:[%s19853_s20 + $0x28] sm:$0xff] %v12353_v30   ;;  %v11272_v19 = vadd.f32 %v19802_v61, %v11233_v49  ;;  %v11234_v45 = vmul.f32 %v19785_v52, %v11139_v35  ;;  %v14070_v9 = vpop.f32.mrb[228].mxu0 }
 0x6d7   : > { %v14071_v10 = vpop.f32.mrb[229].mxu0 }
 0x6d8   : > { %v11273_v55 = vadd.f32 %v19802_v61, %v11234_v45  ;;  %v14072_v6 = vadd.f32 %v14071_v10, %v14070_v9  ;;  %v14073_v60 = vpop.f32.mrb[230].mxu0  ;;  %v11304_v21 = vmax.f32 %v11272_v19, 0.0 }
 0x6d9   : > { %v14074_v39 = vpop.f32.mrb[231].mxu0 }
 0x6da   : > { %v11305_v54 = vmax.f32 %v11273_v55, 0.0  ;;  %v11144_v58 = vadd.f32 %v14072_v6, %v19837_v34  ;;  %v14075_v51 = vadd.f32 %v14074_v39, %v14073_v60 }
 0x6dc   : > { %v12358_v40 = vpack.c.bf16 %v11305_v54, %v11304_v21  ;;  %v11235_v11 = vmul.f32 %v19785_v52, %v11144_v58  ;;  %v11147_v63 = vadd.f32 %v14075_v51, %v19840_v48 }
 0x6de   : > { %12410 = vst [vmem:[%s19853_s20 + $0x30] sm:$0xff] %v12358_v40   ;;  %v11274_v25 = vadd.f32 %v19802_v61, %v11235_v11  ;;  %v11236_v18 = vmul.f32 %v19785_v52, %v11147_v63  ;;  %v14076_v24 = vpop.f32.mrb[232].mxu0 }
 0x6df   : > { %v14077_v27 = vpop.f32.mrb[233].mxu0 }
 0x6e0   : > { %v11275_v7 = vadd.f32 %v19802_v61, %v11236_v18  ;;  %v14078_v29 = vadd.f32 %v14077_v27, %v14076_v24  ;;  %v14079_v22 = vpop.f32.mrb[234].mxu0  ;;  %v11306_v34 = vmax.f32 %v11274_v25, 0.0 }
 0x6e1   : > { %v14080_v47 = vpop.f32.mrb[235].mxu0 }
 0x6e2   : > { %v11307_v37 = vmax.f32 %v11275_v7, 0.0  ;;  %v11152_v42 = vadd.f32 %v14078_v29, %v19843_v3  ;;  %v14081_v50 = vadd.f32 %v14080_v47, %v14079_v22 }
 0x6e4   : > { %v12363_v46 = vpack.c.bf16 %v11307_v37, %v11306_v34  ;;  %v11237_v48 = vmul.f32 %v19785_v52, %v11152_v42  ;;  %v11155_v62 = vadd.f32 %v14081_v50, %v19846_v57 }
 0x6e6   : > { %12411 = vst [vmem:[%s19853_s20 + $0x38] sm:$0xff] %v12363_v46   ;;  %v11276_v14 = vadd.f32 %v19802_v61, %v11237_v48  ;;  %v11238_v53 = vmul.f32 %v19785_v52, %v11155_v62  ;;  %v14082_v0 = vpop.f32.mrb[236].mxu0 }
 0x6e7   : > { %v14083_v41 = vpop.f32.mrb[237].mxu0 }
 0x6e8   : > { %v11277_v32 = vadd.f32 %v19802_v61, %v11238_v53  ;;  %v14084_v59 = vadd.f32 %v14083_v41, %v14082_v0  ;;  %v14085_v31 = vpop.f32.mrb[238].mxu0  ;;  %v11308_v3 = vmax.f32 %v11276_v14, 0.0 }
 0x6e9   : > { %v14086_v26 = vpop.f32.mrb[239].mxu0 }
 0x6ea   : > { %v11309_v1 = vmax.f32 %v11277_v32, 0.0  ;;  %v11160_v13 = vadd.f32 %v14084_v59, %v19856_v44  ;;  %v14087_v20 = vadd.f32 %v14086_v26, %v14085_v31 }
 0x6ec   : > { %v12368_v23 = vpack.c.bf16 %v11309_v1, %v11308_v3  ;;  %v11239_v57 = vmul.f32 %v19785_v52, %v11160_v13  ;;  %v11163_v16 = vadd.f32 %v14087_v20, %v19859_v43 }
 0x6ee   : > { %12412 = vst [vmem:[%s19853_s20 + $0x40] sm:$0xff] %v12368_v23   ;;  %v11278_v38 = vadd.f32 %v19802_v61, %v11239_v57  ;;  %v11240_v56 = vmul.f32 %v19785_v52, %v11163_v16  ;;  %v14088_v5 = vpop.f32.mrb[240].mxu0 }
 0x6ef   : > { %v14089_v33 = vpop.f32.mrb[241].mxu0 }
 0x6f0   : > { %v11279_v30 = vadd.f32 %v19802_v61, %v11240_v56  ;;  %v14090_v49 = vadd.f32 %v14089_v33, %v14088_v5  ;;  %v14091_v35 = vpop.f32.mrb[242].mxu0  ;;  %v11310_v44 = vmax.f32 %v11278_v38, 0.0 }
 0x6f1   : > { %v14092_v19 = vpop.f32.mrb[243].mxu0 }
 0x6f2   : > { %v11311_v45 = vmax.f32 %v11279_v30, 0.0  ;;  %v11168_v9 = vadd.f32 %v14090_v49, %v19862_v4  ;;  %v14093_v10 = vadd.f32 %v14092_v19, %v14091_v35 }
 0x6f4   : > { %v12373_v55 = vpack.c.bf16 %v11311_v45, %v11310_v44  ;;  %v11241_v43 = vmul.f32 %v19785_v52, %v11168_v9  ;;  %v11171_v6 = vadd.f32 %v14093_v10, %v19865_v2 }
 0x6f6   : > { %12413 = vst [vmem:[%s19853_s20 + $0x48] sm:$0xff] %v12373_v55   ;;  %v11280_v60 = vadd.f32 %v19802_v61, %v11241_v43  ;;  %v11242_v39 = vmul.f32 %v19785_v52, %v11171_v6  ;;  %v14094_v21 = vpop.f32.mrb[244].mxu0 }
 0x6f7   : > { %v14095_v54 = vpop.f32.mrb[245].mxu0 }
 0x6f8   : > { %v11281_v58 = vadd.f32 %v19802_v61, %v11242_v39  ;;  %v14096_v51 = vadd.f32 %v14095_v54, %v14094_v21  ;;  %v14097_v40 = vpop.f32.mrb[246].mxu0  ;;  %v11312_v4 = vmax.f32 %v11280_v60, 0.0 }
 0x6f9   : > { %v14098_v11 = vpop.f32.mrb[247].mxu0 }
 0x6fa   : > { %v11313_v63 = vmax.f32 %v11281_v58, 0.0  ;;  %v11176_v25 = vadd.f32 %v14096_v51, %v19868_v36  ;;  %v14099_v18 = vadd.f32 %v14098_v11, %v14097_v40 }
 0x6fc   : > { %v12378_v24 = vpack.c.bf16 %v11313_v63, %v11312_v4  ;;  %v11243_v2 = vmul.f32 %v19785_v52, %v11176_v25  ;;  %v11179_v27 = vadd.f32 %v14099_v18, %v19871_v8 }
 0x6fe   : > { %12414 = vst [vmem:[%s19853_s20 + $0x50] sm:$0xff] %v12378_v24   ;;  %v11282_v7 = vadd.f32 %v19802_v61, %v11243_v2  ;;  %v11244_v29 = vmul.f32 %v19785_v52, %v11179_v27  ;;  %v14100_v22 = vpop.f32.mrb[248].mxu0 }
 0x6ff   : > { %v14101_v47 = vpop.f32.mrb[249].mxu0 }
 0x700   : > { %v11283_v34 = vadd.f32 %v19802_v61, %v11244_v29  ;;  %v14102_v37 = vadd.f32 %v14101_v47, %v14100_v22  ;;  %v14103_v42 = vpop.f32.mrb[250].mxu0  ;;  %v11314_v36 = vmax.f32 %v11282_v7, 0.0 }
 0x701   : > { %v14104_v50 = vpop.f32.mrb[251].mxu0 }
 0x702   : > { %v11315_v46 = vmax.f32 %v11283_v34, 0.0  ;;  %v11184_v48 = vadd.f32 %v14102_v37, %v19874_v17  ;;  %v14105_v62 = vadd.f32 %v14104_v50, %v14103_v42 }
 0x704   : > { %v12383_v14 = vpack.c.bf16 %v11315_v46, %v11314_v36  ;;  %v11245_v8 = vmul.f32 %v19785_v52, %v11184_v48  ;;  %v11187_v53 = vadd.f32 %v14105_v62, %v19877_v28 }
 0x706   : > { %12415 = vst [vmem:[%s19853_s20 + $0x58] sm:$0xff] %v12383_v14   ;;  %v11284_v0 = vadd.f32 %v19802_v61, %v11245_v8  ;;  %v11246_v41 = vmul.f32 %v19785_v52, %v11187_v53  ;;  %v14106_v32 = vpop.f32.mrb[252].mxu0 }
 0x707   : > { %v14107_v59 = vpop.f32.mrb[253].mxu0 }
 0x708   : > { %v11285_v31 = vadd.f32 %v19802_v61, %v11246_v41  ;;  %v14108_v26 = vadd.f32 %v14107_v59, %v14106_v32  ;;  %v14109_v3 = vpop.f32.mrb[254].mxu0  ;;  %v11316_v1 = vmax.f32 %v11284_v0, 0.0 }
 0x709   : > { %v14110_v17 = vpop.f32.mrb[255].mxu0 }
 0x70a   : > { %v11317_v13 = vmax.f32 %v11285_v31, 0.0  ;;  %v11192_v20 = vadd.f32 %v14108_v26, %v19882_v15  ;;  %v14111_v23 = vadd.f32 %v14110_v17, %v14109_v3 }
 0x70c   : > { %v12388_v28 = vpack.c.bf16 %v11317_v13, %v11316_v1  ;;  %v11247_v57 = vmul.f32 %v19785_v52, %v11192_v20  ;;  %v11195_v16 = vadd.f32 %v14111_v23, %v19885_v12 }
 0x70e   : > { %12416 = vst [vmem:[%s19853_s20 + $0x60] sm:$0xff] %v12388_v28   ;;  %v11286_v38 = vadd.f32 %v19802_v61, %v11247_v57  ;;  %v11248_v56 = vmul.f32 %v19785_v52, %v11195_v16 }
 0x710   : > { %v11287_v5 = vadd.f32 %v19802_v61, %v11248_v56  ;;  %v11318_v33 = vmax.f32 %v11286_v38, 0.0 }
 0x712   : > { %v11319_v30 = vmax.f32 %v11287_v5, 0.0 }
 0x714   : > { %v12393_v49 = vpack.c.bf16 %v11319_v30, %v11318_v33 }
 0x716   : > { %12417 = vst [vmem:[%s19853_s20 + $0x68] sm:$0xff] %v12393_v49  }
 0x717 PF: > { %s20_s15 = sadd.s32 1, %s14759_s15   ;;  %s20594_s13 = smov %s14755_s14 }
 0x718   : > { %p17_p5 = scmp.ge.s32.totalorder %s20_s15, 4   ;;  %s20595_s14 = smov %s20597_s16 }
 0x71a   :  { %19 = sbr.rel (!%p17_p5) target bundleno = 2 (0x2), region = 119 }

</bundles_post_ra>
